<compile_context>
chip_gen: v7x
topology: tpu7x:2x2x1
jax: 0.10.0
libtpu: 0.0.40
codegen_flags: <defaults>
</compile_context>

<pallas_src>
import functools

import jax
import jax.numpy as jnp
from jax import lax
from jax.experimental import pallas as pl
from jax.experimental.pallas import tpu as pltpu

EPS = 1e-3            # nn.BatchNorm2d(dim, eps=0.001) in the reference module.
_ROW_PAD = 8          # spare zero rows after the flattened padded image so the
                      # last tap's row window stays in bounds (needs >= 2).
_KSTACK_ALIGN = 128   # use the single K=9C matmul only when C is lane-aligned.
_IM2COL_BYTES = 4 * 1024 * 1024   # per-strip im2col / accumulator budget.


def _vmem_limit_bytes():
    """Generation-aware scoped-VMEM limit (~5/8 of physical, clamped)."""
    try:
        cap = int(getattr(pltpu.get_tpu_info(), "vmem_capacity_bytes"))
    except Exception:                      # pragma: no cover - conservative fallback
        cap = 64 * 1024 * 1024
    return int(min(max(cap * 5 // 8, 32 * 1024 * 1024), 100 * 1024 * 1024))


_VMEM_LIMIT = _vmem_limit_bytes()


def _padded_channels(C):
    """Pad C to a 128 multiple only when the extra HBM bytes are <= 12.5%."""
    if C % 128 == 0:
        return C
    Cp = ((C + 127) // 128) * 128
    return Cp if (Cp - C) * 8 <= C else C


def _strip_rows(H, Wp, Cp, itemsize):
    s = _IM2COL_BYTES // max(1, Wp * 9 * Cp * itemsize)
    return int(max(1, min(H, s)))


# ---------------------------------------------------------------------------
# Kernel bodies
# ---------------------------------------------------------------------------
def _conv3x3_strips(src_scr, w_ref, *, H, W, S, k_stack, emit):
    """3x3 'valid' conv over the flat reflect-padded image in `src_scr` (rows of
    length Wp = W+2, row-major), computed in row strips of S output rows.

    For each strip calls emit(r0, Sr, acc) with the f32 conv result in the
    width-padded flat layout (columns w in {W, W+1} of each row block are junk).
    Returns per-channel (sum, sum_sq) over the valid pixels only.
    """
    Wp = W + 2
    C = src_scr.shape[-1]
    cout = w_ref.shape[-1]
    s_sum = jnp.zeros((1, cout), jnp.float32)
    s_sq = jnp.zeros((1, cout), jnp.float32)

    for r0 in range(0, H, S):
        Sr = min(S, H - r0)
        Ls = Sr * Wp
        base = r0 * Wp
        if k_stack:
            # One K=9C MXU matmul: im2col by lane-concatenating the 9 contiguous
            # row windows (each tap is a constant row shift of the flat image).
            cols = [src_scr[pl.ds(base + dy * Wp + dx, Ls), :]
                    for dy in range(3) for dx in range(3)]
            lhs = jnp.concatenate(cols, axis=-1)                  # (Ls, 9C)
            acc = jnp.dot(lhs, w_ref[...], preferred_element_type=jnp.float32)
        else:
            # Lane-unaligned C: per-tap accumulation (still f32 accumulate).
            acc = jnp.zeros((Ls, cout), jnp.float32)
            for t in range(9):
                dy, dx = divmod(t, 3)
                win = src_scr[pl.ds(base + dy * Wp + dx, Ls), :]
                acc = acc + jnp.dot(win, w_ref[pl.ds(t * C, C), :],
                                    preferred_element_type=jnp.float32)

        # Partial BN statistics over valid pixels (junk columns w >= W masked).
        colid = lax.broadcasted_iota(jnp.int32, (Ls, 1), 0) % Wp
        acc_m = jnp.where(colid < W, acc, 0.0)
        s_sum = s_sum + jnp.sum(acc_m, axis=0, keepdims=True)
        s_sq = s_sq + jnp.sum(acc_m * acc_m, axis=0, keepdims=True)

        emit(r0, Sr, acc)

    return s_sum, s_sq


def conv1_kernel(x_ref, w_ref, y1p_ref, st_ref, xp_scr,
                 *, H, W, S, k_stack, row_pad):
    """Reflect-pad x (in VMEM) + Conv1 (no bias) + BN1 partial stats.

    Output y1p_ref is the *pre-BN* conv1 result already in the reflect-padded
    flat (R, C) layout kernel 2 consumes (BN1/ReLU commute with the pad since
    they are per-channel element-wise).
    """
    Wp, Hp = W + 2, H + 2
    C = x_ref.shape[-1]
    cout = w_ref.shape[-1]

    # ---- build the reflect-padded flat image in VMEM ----
    for r in range(H):
        base = (r + 1) * Wp
        xp_scr[pl.ds(base + 1, W), :] = x_ref[r, :, :]
        xp_scr[pl.ds(base, 1), :] = x_ref[r, pl.ds(1, 1), :]          # left  = col 1
        xp_scr[pl.ds(base + W + 1, 1), :] = x_ref[r, pl.ds(W - 2, 1), :]  # right = col W-2
    xp_scr[pl.ds(0, Wp), :] = xp_scr[pl.ds(2 * Wp, Wp), :]            # top    = row 1
    xp_scr[pl.ds((H + 1) * Wp, Wp), :] = xp_scr[pl.ds((H - 1) * Wp, Wp), :]  # bottom
    xp_scr[pl.ds(Hp * Wp, row_pad), :] = jnp.zeros((row_pad, C), xp_scr.dtype)

    # ---- conv + stats; interior of the padded output is one contiguous store
    # (junk entries land on border slots and are overwritten below) ----
    def emit(r0, Sr, acc):
        y1p_ref[pl.ds(Wp + 1 + r0 * Wp, Sr * Wp), :] = acc.astype(y1p_ref.dtype)

    s_sum, s_sq = _conv3x3_strips(xp_scr, w_ref, H=H, W=W, S=S,
                                  k_stack=k_stack, emit=emit)

    # ---- reflect borders of the (pre-BN) conv output in the output block ----
    for r in range(H):
        base = (r + 1) * Wp
        y1p_ref[pl.ds(base, 1), :] = y1p_ref[pl.ds(base + 2, 1), :]
        y1p_ref[pl.ds(base + W + 1, 1), :] = y1p_ref[pl.ds(base + W - 1, 1), :]
    y1p_ref[pl.ds(0, Wp), :] = y1p_ref[pl.ds(2 * Wp, Wp), :]
    y1p_ref[pl.ds((H + 1) * Wp, Wp), :] = y1p_ref[pl.ds((H - 1) * Wp, Wp), :]
    y1p_ref[pl.ds(Hp * Wp, row_pad), :] = jnp.zeros((row_pad, cout), y1p_ref.dtype)

    st_ref[0:1, :] = s_sum
    st_ref[1:2, :] = s_sq


def bn1_relu_conv2_kernel(y1p_ref, ab_ref, w_ref, y2_ref, st_ref, hp_scr,
                          *, H, W, S, k_stack, row_pad):
    """BN1 apply + ReLU (on the padded pre-BN conv1 output), Conv2 + BN2 partial
    stats.  Output y2_ref is a clean (H, W, C) block (junk columns stripped)."""
    Wp, Hp = W + 2, H + 2
    C = y1p_ref.shape[-1]
    a = ab_ref[0:1, :]
    bias = ab_ref[1:2, :]
    h = jnp.maximum(y1p_ref[...].astype(jnp.float32) * a + bias, 0.0)
    hp_scr[...] = h.astype(hp_scr.dtype)
    hp_scr[pl.ds(Hp * Wp, row_pad), :] = jnp.zeros((row_pad, C), hp_scr.dtype)

    def emit(r0, Sr, acc):
        out = acc.astype(y2_ref.dtype)
        for rl in range(Sr):                       # strip junk columns per row
            y2_ref[r0 + rl, :, :] = out[rl * Wp:rl * Wp + W, :]

    s_sum, s_sq = _conv3x3_strips(hp_scr, w_ref, H=H, W=W, S=S,
                                  k_stack=k_stack, emit=emit)
    st_ref[0:1, :] = s_sum
    st_ref[1:2, :] = s_sq


def bn2_residual_relu_kernel(y2_ref, x_ref, ab_ref, o_ref):
    """BN2 apply + residual add + final ReLU (clean NHWC in / out, f32 math)."""
    C = y2_ref.shape[-1]
    a = ab_ref[0:1, :].reshape(1, 1, C)
    bias = ab_ref[1:2, :].reshape(1, 1, C)
    xv = x_ref[...].astype(jnp.float32)
    yv = y2_ref[...].astype(jnp.float32)
    o_ref[...] = jnp.maximum(xv + yv * a + bias, 0.0)


# ---------------------------------------------------------------------------
# JAX glue
# ---------------------------------------------------------------------------
def _stats_to_scale_shift(stats, gamma, beta, count):
    """(N,2,C) partials -> BN fold: y*a + b with a=g*rsqrt(var+eps), b=beta-mean*a."""
    s = jnp.sum(stats[:, 0, :], axis=0)
    q = jnp.sum(stats[:, 1, :], axis=0)
    mean = s / count
    # One-pass biased variance; clamped at 0 (minor cancellation risk acknowledged).
    var = jnp.maximum(q / count - mean * mean, 0.0)
    a = gamma * lax.rsqrt(var + EPS)
    b = beta - mean * a
    return jnp.stack([a, b], axis=0).astype(jnp.float32)      # (2, C)


def _pad_c(v, Cp):
    C = v.shape[-1]
    return v if Cp == C else jnp.pad(v, ((0, Cp - C),))


def _pad_w(w, Cp):
    C = w.shape[-1]
    if Cp == C:
        return w
    return jnp.pad(w, ((0, 0), (0, 0), (0, Cp - C), (0, Cp - C)))


@functools.partial(jax.jit, static_argnames=("compute_dtype",))
def resnet_block_forward(x_nchw, params, compute_dtype=jnp.bfloat16):
    """x_nchw: (N, C, H, W) float32 -> (N, C, H, W) float32.
    params: HWIO conv weights w1/w2 (torch OIHW should be transposed to HWIO),
    BN affine g1/b1/g2/b2."""
    N, C, H, W = x_nchw.shape
    Cp = _padded_channels(C)
    Hp, Wp = H + 2, W + 2
    R = Hp * Wp + _ROW_PAD
    cdtype = jnp.dtype(compute_dtype)
    S = _strip_rows(H, Wp, Cp, cdtype.itemsize)
    k_stack = (Cp % _KSTACK_ALIGN == 0)

    # The only XLA-side data movement: NCHW -> NHWC transpose + cast (+ optional
    # channel pad).  The same array feeds kernel 1 and kernel 3 (residual).
    x = jnp.transpose(x_nchw, (0, 2, 3, 1)).astype(cdtype)
    if Cp != C:
        x = jnp.pad(x, ((0, 0), (0, 0), (0, 0), (0, Cp - C)))

    w1 = _pad_w(params["w1"], Cp).reshape(9 * Cp, Cp).astype(cdtype)
    w2 = _pad_w(params["w2"], Cp).reshape(9 * Cp, Cp).astype(cdtype)
    g1, b1 = _pad_c(params["g1"], Cp), _pad_c(params["b1"], Cp)
    g2, b2 = _pad_c(params["g2"], Cp), _pad_c(params["b2"], Cp)

    cparams = pltpu.CompilerParams(
        dimension_semantics=("parallel",),       # images independent -> both TCs on v7x
        vmem_limit_bytes=_VMEM_LIMIT,
    )

    x_spec = pl.BlockSpec((None, H, W, Cp), lambda n: (n, 0, 0, 0))
    pad_spec = pl.BlockSpec((None, R, Cp), lambda n: (n, 0, 0))
    st_spec = pl.BlockSpec((None, 2, Cp), lambda n: (n, 0, 0))
    w_spec = pl.BlockSpec((9 * Cp, Cp), lambda n: (0, 0))
    ab_spec = pl.BlockSpec((2, Cp), lambda n: (0, 0))

    # ---- kernel 1: reflect-pad + Conv1 + BN1 partial stats ----
    y1p, st1 = pl.pallas_call(
        functools.partial(conv1_kernel, H=H, W=W, S=S,
                          k_stack=k_stack, row_pad=_ROW_PAD),
        grid=(N,),
        in_specs=[x_spec, w_spec],
        out_specs=(pad_spec, st_spec),
        out_shape=(jax.ShapeDtypeStruct((N, R, Cp), cdtype),          # bf16 intermediate
                   jax.ShapeDtypeStruct((N, 2, Cp), jnp.float32)),
        scratch_shapes=[pltpu.VMEM((R, Cp), cdtype)],
        compiler_params=cparams,
    )(x, w1)

    count = float(N * H * W)
    ab1 = _stats_to_scale_shift(st1, g1, b1, count)

    # ---- kernel 2: BN1 + ReLU + Conv2 + BN2 partial stats ----
    y2, st2 = pl.pallas_call(
        functools.partial(bn1_relu_conv2_kernel, H=H, W=W, S=S,
                          k_stack=k_stack, row_pad=_ROW_PAD),
        grid=(N,),
        in_specs=[pad_spec, ab_spec, w_spec],
        out_specs=(x_spec, st_spec),
        out_shape=(jax.ShapeDtypeStruct((N, H, W, Cp), cdtype),       # bf16 intermediate
                   jax.ShapeDtypeStruct((N, 2, Cp), jnp.float32)),
        scratch_shapes=[pltpu.VMEM((R, Cp), cdtype)],
        compiler_params=cparams,
    )(y1p, ab1, w2)

    ab2 = _stats_to_scale_shift(st2, g2, b2, count)

    # ---- kernel 3: BN2 apply + residual + ReLU (clean NHWC in/out) ----
    out_nhwc = pl.pallas_call(
        bn2_residual_relu_kernel,
        grid=(N,),
        in_specs=[x_spec, x_spec, ab_spec],
        out_specs=x_spec,
        out_shape=jax.ShapeDtypeStruct((N, H, W, Cp), jnp.float32),
        compiler_params=cparams,
    )(y2, x, ab2)

    if Cp != C:
        out_nhwc = out_nhwc[..., :C]
    return jnp.transpose(out_nhwc, (0, 3, 1, 2))                      # back to NCHW


# ---------------------------------------------------------------------------
# Reference + test harness
# ---------------------------------------------------------------------------
def reference_forward(x_nchw, params):
    """Pure-JAX reference (lax.conv) for correctness checks."""
    x = jnp.transpose(x_nchw, (0, 2, 3, 1)).astype(jnp.float32)

    def conv(t, w_hwio):
        tp = jnp.pad(t, ((0, 0), (1, 1), (1, 1), (0, 0)), mode="reflect")
        return lax.conv_general_dilated(
            tp, w_hwio, window_strides=(1, 1), padding="VALID",
            dimension_numbers=("NHWC", "HWIO", "NHWC"))

    def bn(t, g, b):
        m = jnp.mean(t, axis=(0, 1, 2))
        v = jnp.mean(jnp.square(t - m), axis=(0, 1, 2))
        return (t - m) * lax.rsqrt(v + EPS) * g + b

    h = jax.nn.relu(bn(conv(x, params["w1"]), params["g1"], params["b1"]))
    h = bn(conv(h, params["w2"]), params["g2"], params["b2"])
    return jnp.transpose(jax.nn.relu(x + h), (0, 3, 1, 2))


def init_params(key, dim):
    """Synthetic init. Conv weights HWIO (3,3,dim,dim), no bias (use_bias=False).
    BN gamma=1, beta=0 (PyTorch BatchNorm2d default init)."""
    k1, k2 = jax.random.split(key)
    return {
        "w1": jax.random.normal(k1, (3, 3, dim, dim), jnp.float32) * 0.1,
        "w2": jax.random.normal(k2, (3, 3, dim, dim), jnp.float32) * 0.1,
        "g1": jnp.ones((dim,), jnp.float32), "b1": jnp.zeros((dim,), jnp.float32),
        "g2": jnp.ones((dim,), jnp.float32), "b2": jnp.zeros((dim,), jnp.float32),
    }
    # TODO(synk): use_dropout branch (nn.Dropout(0.5)) omitted — the reference
    # module is constructed with use_dropout=False.


if __name__ == "__main__":
    # ---- Test 1: tiny unaligned channel count (per-tap matmul path) ----
    kx, kp = jax.random.split(jax.random.PRNGKey(0))
    N, C, H, W = 2, 4, 16, 16
    x = jax.random.normal(kx, (N, C, H, W), jnp.float32)
    params = init_params(kp, C)
    ref = jax.block_until_ready(reference_forward(x, params))

    out_f32 = jax.block_until_ready(
        resnet_block_forward(x, params, compute_dtype=jnp.float32))
    assert out_f32.shape == (N, C, H, W)
    assert jnp.allclose(out_f32, ref, atol=1e-3, rtol=1e-3), "f32 mismatch vs ref"

    out_bf16 = jax.block_until_ready(
        resnet_block_forward(x, params, compute_dtype=jnp.bfloat16))
    assert out_bf16.shape == (N, C, H, W)
    assert jnp.allclose(out_bf16, ref, atol=5e-2, rtol=5e-2), "bf16 mismatch vs ref"

    # ---- Test 2: lane-aligned channels -> exercises the K=9C stacked MXU path ----
    kx2, kp2 = jax.random.split(jax.random.PRNGKey(1))
    N2, C2, H2, W2 = 2, 128, 8, 8
    x2 = jax.random.normal(kx2, (N2, C2, H2, W2), jnp.float32)
    params2 = init_params(kp2, C2)
    ref2 = jax.block_until_ready(reference_forward(x2, params2))
    out2 = jax.block_until_ready(
        resnet_block_forward(x2, params2, compute_dtype=jnp.bfloat16))
    assert out2.shape == (N2, C2, H2, W2)
    assert jnp.allclose(out2, ref2, atol=5e-2, rtol=5e-2), "bf16 K-stack mismatch vs ref"

    print("KERNEL_OK")
</pallas_src>

<mosaic_0001>
module attributes {stable_mosaic.version = 11 : i64} {
  func.func @conv1_kernel(%arg0: i32, %arg1: memref<1x16x16x4xf32, #tpu.memory_space<vmem>>, %arg2: memref<36x4xf32, #tpu.memory_space<vmem>>, %arg3: memref<1x332x4xf32, #tpu.memory_space<vmem>>, %arg4: memref<1x2x4xf32, #tpu.memory_space<vmem>>, %arg5: memref<332x4xf32, #tpu.memory_space<vmem>>) attributes {dimension_semantics = [#tpu.dimension_semantics<parallel>], iteration_bounds = array<i64: 2>, scalar_prefetch = 0 : i64, scratch_operands = 1 : i64, tpu.core_type = #tpu.core_type<tc>, window_params = [{transform_indices = @transform_0, window_bounds = array<i64: 1, 16, 16, 4>}, {pipeline_mode = #tpu.pipeline_mode<synchronous>, transform_indices = @transform_1, window_bounds = array<i64: 36, 4>}, {transform_indices = @transform_2, window_bounds = array<i64: 1, 332, 4>}, {transform_indices = @transform_3, window_bounds = array<i64: 1, 2, 4>}]} {
    %c0 = arith.constant 0 : index
    %c0_0 = arith.constant 0 : index
    %c0_1 = arith.constant 0 : index
    %c0_2 = arith.constant 0 : index
    %0 = vector.load %arg1[%c0, %c0_0, %c0_1, %c0_2] : memref<1x16x16x4xf32, #tpu.memory_space<vmem>>, vector<1x1x16x4xf32>
    %1 = vector.shape_cast %0 : vector<1x1x16x4xf32> to vector<16x4xf32>
    %c19 = arith.constant 19 : index
    %c0_3 = arith.constant 0 : index
    %2 = vector.load %arg5[%c19, %c0_3] : memref<332x4xf32, #tpu.memory_space<vmem>>, vector<16x4xf32>
    tpu.vector_store %arg5[%c19, %c0_3], %1 {strides = array<i32>} : memref<332x4xf32, #tpu.memory_space<vmem>>, vector<16x4xf32>,
    %c0_4 = arith.constant 0 : index
    %c0_5 = arith.constant 0 : index
    %c1 = arith.constant 1 : index
    %c0_6 = arith.constant 0 : index
    %3 = vector.load %arg1[%c0_4, %c0_5, %c1, %c0_6] : memref<1x16x16x4xf32, #tpu.memory_space<vmem>>, vector<1x1x1x4xf32>
    %4 = vector.shape_cast %3 : vector<1x1x1x4xf32> to vector<1x4xf32>
    %c18 = arith.constant 18 : index
    %c0_7 = arith.constant 0 : index
    %5 = vector.load %arg5[%c18, %c0_7] : memref<332x4xf32, #tpu.memory_space<vmem>>, vector<1x4xf32>
    tpu.vector_store %arg5[%c18, %c0_7], %4 {strides = array<i32>} : memref<332x4xf32, #tpu.memory_space<vmem>>, vector<1x4xf32>,
    %c0_8 = arith.constant 0 : index
    %c0_9 = arith.constant 0 : index
    %c14 = arith.constant 14 : index
    %c0_10 = arith.constant 0 : index
    %6 = vector.load %arg1[%c0_8, %c0_9, %c14, %c0_10] : memref<1x16x16x4xf32, #tpu.memory_space<vmem>>, vector<1x1x1x4xf32>
    %7 = vector.shape_cast %6 : vector<1x1x1x4xf32> to vector<1x4xf32>
    %c35 = arith.constant 35 : index
    %c0_11 = arith.constant 0 : index
    %8 = vector.load %arg5[%c35, %c0_11] : memref<332x4xf32, #tpu.memory_space<vmem>>, vector<1x4xf32>
    tpu.vector_store %arg5[%c35, %c0_11], %7 {strides = array<i32>} : memref<332x4xf32, #tpu.memory_space<vmem>>, vector<1x4xf32>,
    %c0_12 = arith.constant 0 : index
    %c1_13 = arith.constant 1 : index
    %c0_14 = arith.constant 0 : index
    %c0_15 = arith.constant 0 : index
    %9 = vector.load %arg1[%c0_12, %c1_13, %c0_14, %c0_15] : memref<1x16x16x4xf32, #tpu.memory_space<vmem>>, vector<1x1x16x4xf32>
    %10 = vector.shape_cast %9 : vector<1x1x16x4xf32> to vector<16x4xf32>
    %c37 = arith.constant 37 : index
    %c0_16 = arith.constant 0 : index
    %11 = vector.load %arg5[%c37, %c0_16] : memref<332x4xf32, #tpu.memory_space<vmem>>, vector<16x4xf32>
    tpu.vector_store %arg5[%c37, %c0_16], %10 {strides = array<i32>} : memref<332x4xf32, #tpu.memory_space<vmem>>, vector<16x4xf32>,
    %c0_17 = arith.constant 0 : index
    %c1_18 = arith.constant 1 : index
    %c1_19 = arith.constant 1 : index
    %c0_20 = arith.constant 0 : index
    %12 = vector.load %arg1[%c0_17, %c1_18, %c1_19, %c0_20] : memref<1x16x16x4xf32, #tpu.memory_space<vmem>>, vector<1x1x1x4xf32>
    %13 = vector.shape_cast %12 : vector<1x1x1x4xf32> to vector<1x4xf32>
    %c36 = arith.constant 36 : index
    %c0_21 = arith.constant 0 : index
    %14 = vector.load %arg5[%c36, %c0_21] : memref<332x4xf32, #tpu.memory_space<vmem>>, vector<1x4xf32>
    tpu.vector_store %arg5[%c36, %c0_21], %13 {strides = array<i32>} : memref<332x4xf32, #tpu.memory_space<vmem>>, vector<1x4xf32>,
    %c0_22 = arith.constant 0 : index
    %c1_23 = arith.constant 1 : index
    %c14_24 = arith.constant 14 : index
    %c0_25 = arith.constant 0 : index
    %15 = vector.load %arg1[%c0_22, %c1_23, %c14_24, %c0_25] : memref<1x16x16x4xf32, #tpu.memory_space<vmem>>, vector<1x1x1x4xf32>
    %16 = vector.shape_cast %15 : vector<1x1x1x4xf32> to vector<1x4xf32>
    %c53 = arith.constant 53 : index
    %c0_26 = arith.constant 0 : index
    %17 = vector.load %arg5[%c53, %c0_26] : memref<332x4xf32, #tpu.memory_space<vmem>>, vector<1x4xf32>
    tpu.vector_store %arg5[%c53, %c0_26], %16 {strides = array<i32>} : memref<332x4xf32, #tpu.memory_space<vmem>>, vector<1x4xf32>,
    %c0_27 = arith.constant 0 : index
    %c2 = arith.constant 2 : index
    %c0_28 = arith.constant 0 : index
    %c0_29 = arith.constant 0 : index
    %18 = vector.load %arg1[%c0_27, %c2, %c0_28, %c0_29] : memref<1x16x16x4xf32, #tpu.memory_space<vmem>>, vector<1x1x16x4xf32>
    %19 = vector.shape_cast %18 : vector<1x1x16x4xf32> to vector<16x4xf32>
    %c55 = arith.constant 55 : index
    %c0_30 = arith.constant 0 : index
    %20 = vector.load %arg5[%c55, %c0_30] : memref<332x4xf32, #tpu.memory_space<vmem>>, vector<16x4xf32>
    tpu.vector_store %arg5[%c55, %c0_30], %19 {strides = array<i32>} : memref<332x4xf32, #tpu.memory_space<vmem>>, vector<16x4xf32>,
    %c0_31 = arith.constant 0 : index
    %c2_32 = arith.constant 2 : index
    %c1_33 = arith.constant 1 : index
    %c0_34 = arith.constant 0 : index
    %21 = vector.load %arg1[%c0_31, %c2_32, %c1_33, %c0_34] : memref<1x16x16x4xf32, #tpu.memory_space<vmem>>, vector<1x1x1x4xf32>
    %22 = vector.shape_cast %21 : vector<1x1x1x4xf32> to vector<1x4xf32>
    %c54 = arith.constant 54 : index
    %c0_35 = arith.constant 0 : index
    %23 = vector.load %arg5[%c54, %c0_35] : memref<332x4xf32, #tpu.memory_space<vmem>>, vector<1x4xf32>
    tpu.vector_store %arg5[%c54, %c0_35], %22 {strides = array<i32>} : memref<332x4xf32, #tpu.memory_space<vmem>>, vector<1x4xf32>,
    %c0_36 = arith.constant 0 : index
    %c2_37 = arith.constant 2 : index
    %c14_38 = arith.constant 14 : index
    %c0_39 = arith.constant 0 : index
    %24 = vector.load %arg1[%c0_36, %c2_37, %c14_38, %c0_39] : memref<1x16x16x4xf32, #tpu.memory_space<vmem>>, vector<1x1x1x4xf32>
    %25 = vector.shape_cast %24 : vector<1x1x1x4xf32> to vector<1x4xf32>
    %c71 = arith.constant 71 : index
    %c0_40 = arith.constant 0 : index
    %26 = vector.load %arg5[%c71, %c0_40] : memref<332x4xf32, #tpu.memory_space<vmem>>, vector<1x4xf32>
    tpu.vector_store %arg5[%c71, %c0_40], %25 {strides = array<i32>} : memref<332x4xf32, #tpu.memory_space<vmem>>, vector<1x4xf32>,
    %c0_41 = arith.constant 0 : index
    %c3 = arith.constant 3 : index
    %c0_42 = arith.constant 0 : index
    %c0_43 = arith.constant 0 : index
    %27 = vector.load %arg1[%c0_41, %c3, %c0_42, %c0_43] : memref<1x16x16x4xf32, #tpu.memory_space<vmem>>, vector<1x1x16x4xf32>
    %28 = vector.shape_cast %27 : vector<1x1x16x4xf32> to vector<16x4xf32>
    %c73 = arith.constant 73 : index
    %c0_44 = arith.constant 0 : index
    %29 = vector.load %arg5[%c73, %c0_44] : memref<332x4xf32, #tpu.memory_space<vmem>>, vector<16x4xf32>
    tpu.vector_store %arg5[%c73, %c0_44], %28 {strides = array<i32>} : memref<332x4xf32, #tpu.memory_space<vmem>>, vector<16x4xf32>,
    %c0_45 = arith.constant 0 : index
    %c3_46 = arith.constant 3 : index
    %c1_47 = arith.constant 1 : index
    %c0_48 = arith.constant 0 : index
    %30 = vector.load %arg1[%c0_45, %c3_46, %c1_47, %c0_48] : memref<1x16x16x4xf32, #tpu.memory_space<vmem>>, vector<1x1x1x4xf32>
    %31 = vector.shape_cast %30 : vector<1x1x1x4xf32> to vector<1x4xf32>
    %c72 = arith.constant 72 : index
    %c0_49 = arith.constant 0 : index
    %32 = vector.load %arg5[%c72, %c0_49] : memref<332x4xf32, #tpu.memory_space<vmem>>, vector<1x4xf32>
    tpu.vector_store %arg5[%c72, %c0_49], %31 {strides = array<i32>} : memref<332x4xf32, #tpu.memory_space<vmem>>, vector<1x4xf32>,
    %c0_50 = arith.constant 0 : index
    %c3_51 = arith.constant 3 : index
    %c14_52 = arith.constant 14 : index
    %c0_53 = arith.constant 0 : index
    %33 = vector.load %arg1[%c0_50, %c3_51, %c14_52, %c0_53] : memref<1x16x16x4xf32, #tpu.memory_space<vmem>>, vector<1x1x1x4xf32>
    %34 = vector.shape_cast %33 : vector<1x1x1x4xf32> to vector<1x4xf32>
    %c89 = arith.constant 89 : index
    %c0_54 = arith.constant 0 : index
    %35 = vector.load %arg5[%c89, %c0_54] : memref<332x4xf32, #tpu.memory_space<vmem>>, vector<1x4xf32>
    tpu.vector_store %arg5[%c89, %c0_54], %34 {strides = array<i32>} : memref<332x4xf32, #tpu.memory_space<vmem>>, vector<1x4xf32>,
    %c0_55 = arith.constant 0 : index
    %c4 = arith.constant 4 : index
    %c0_56 = arith.constant 0 : index
    %c0_57 = arith.constant 0 : index
    %36 = vector.load %arg1[%c0_55, %c4, %c0_56, %c0_57] : memref<1x16x16x4xf32, #tpu.memory_space<vmem>>, vector<1x1x16x4xf32>
    %37 = vector.shape_cast %36 : vector<1x1x16x4xf32> to vector<16x4xf32>
    %c91 = arith.constant 91 : index
    %c0_58 = arith.constant 0 : index
    %38 = vector.load %arg5[%c91, %c0_58] : memref<332x4xf32, #tpu.memory_space<vmem>>, vector<16x4xf32>
    tpu.vector_store %arg5[%c91, %c0_58], %37 {strides = array<i32>} : memref<332x4xf32, #tpu.memory_space<vmem>>, vector<16x4xf32>,
    %c0_59 = arith.constant 0 : index
    %c4_60 = arith.constant 4 : index
    %c1_61 = arith.constant 1 : index
    %c0_62 = arith.constant 0 : index
    %39 = vector.load %arg1[%c0_59, %c4_60, %c1_61, %c0_62] : memref<1x16x16x4xf32, #tpu.memory_space<vmem>>, vector<1x1x1x4xf32>
    %40 = vector.shape_cast %39 : vector<1x1x1x4xf32> to vector<1x4xf32>
    %c90 = arith.constant 90 : index
    %c0_63 = arith.constant 0 : index
    %41 = vector.load %arg5[%c90, %c0_63] : memref<332x4xf32, #tpu.memory_space<vmem>>, vector<1x4xf32>
    tpu.vector_store %arg5[%c90, %c0_63], %40 {strides = array<i32>} : memref<332x4xf32, #tpu.memory_space<vmem>>, vector<1x4xf32>,
    %c0_64 = arith.constant 0 : index
    %c4_65 = arith.constant 4 : index
    %c14_66 = arith.constant 14 : index
    %c0_67 = arith.constant 0 : index
    %42 = vector.load %arg1[%c0_64, %c4_65, %c14_66, %c0_67] : memref<1x16x16x4xf32, #tpu.memory_space<vmem>>, vector<1x1x1x4xf32>
    %43 = vector.shape_cast %42 : vector<1x1x1x4xf32> to vector<1x4xf32>
    %c107 = arith.constant 107 : index
    %c0_68 = arith.constant 0 : index
    %44 = vector.load %arg5[%c107, %c0_68] : memref<332x4xf32, #tpu.memory_space<vmem>>, vector<1x4xf32>
    tpu.vector_store %arg5[%c107, %c0_68], %43 {strides = array<i32>} : memref<332x4xf32, #tpu.memory_space<vmem>>, vector<1x4xf32>,
    %c0_69 = arith.constant 0 : index
    %c5 = arith.constant 5 : index
    %c0_70 = arith.constant 0 : index
    %c0_71 = arith.constant 0 : index
    %45 = vector.load %arg1[%c0_69, %c5, %c0_70, %c0_71] : memref<1x16x16x4xf32, #tpu.memory_space<vmem>>, vector<1x1x16x4xf32>
    %46 = vector.shape_cast %45 : vector<1x1x16x4xf32> to vector<16x4xf32>
    %c109 = arith.constant 109 : index
    %c0_72 = arith.constant 0 : index
    %47 = vector.load %arg5[%c109, %c0_72] : memref<332x4xf32, #tpu.memory_space<vmem>>, vector<16x4xf32>
    tpu.vector_store %arg5[%c109, %c0_72], %46 {strides = array<i32>} : memref<332x4xf32, #tpu.memory_space<vmem>>, vector<16x4xf32>,
    %c0_73 = arith.constant 0 : index
    %c5_74 = arith.constant 5 : index
    %c1_75 = arith.constant 1 : index
    %c0_76 = arith.constant 0 : index
    %48 = vector.load %arg1[%c0_73, %c5_74, %c1_75, %c0_76] : memref<1x16x16x4xf32, #tpu.memory_space<vmem>>, vector<1x1x1x4xf32>
    %49 = vector.shape_cast %48 : vector<1x1x1x4xf32> to vector<1x4xf32>
    %c108 = arith.constant 108 : index
    %c0_77 = arith.constant 0 : index
    %50 = vector.load %arg5[%c108, %c0_77] : memref<332x4xf32, #tpu.memory_space<vmem>>, vector<1x4xf32>
    tpu.vector_store %arg5[%c108, %c0_77], %49 {strides = array<i32>} : memref<332x4xf32, #tpu.memory_space<vmem>>, vector<1x4xf32>,
    %c0_78 = arith.constant 0 : index
    %c5_79 = arith.constant 5 : index
    %c14_80 = arith.constant 14 : index
    %c0_81 = arith.constant 0 : index
    %51 = vector.load %arg1[%c0_78, %c5_79, %c14_80, %c0_81] : memref<1x16x16x4xf32, #tpu.memory_space<vmem>>, vector<1x1x1x4xf32>
    %52 = vector.shape_cast %51 : vector<1x1x1x4xf32> to vector<1x4xf32>
    %c125 = arith.constant 125 : index
    %c0_82 = arith.constant 0 : index
    %53 = vector.load %arg5[%c125, %c0_82] : memref<332x4xf32, #tpu.memory_space<vmem>>, vector<1x4xf32>
    tpu.vector_store %arg5[%c125, %c0_82], %52 {strides = array<i32>} : memref<332x4xf32, #tpu.memory_space<vmem>>, vector<1x4xf32>,
    %c0_83 = arith.constant 0 : index
    %c6 = arith.constant 6 : index
    %c0_84 = arith.constant 0 : index
    %c0_85 = arith.constant 0 : index
    %54 = vector.load %arg1[%c0_83, %c6, %c0_84, %c0_85] : memref<1x16x16x4xf32, #tpu.memory_space<vmem>>, vector<1x1x16x4xf32>
    %55 = vector.shape_cast %54 : vector<1x1x16x4xf32> to vector<16x4xf32>
    %c127 = arith.constant 127 : index
    %c0_86 = arith.constant 0 : index
    %56 = vector.load %arg5[%c127, %c0_86] : memref<332x4xf32, #tpu.memory_space<vmem>>, vector<16x4xf32>
    tpu.vector_store %arg5[%c127, %c0_86], %55 {strides = array<i32>} : memref<332x4xf32, #tpu.memory_space<vmem>>, vector<16x4xf32>,
    %c0_87 = arith.constant 0 : index
    %c6_88 = arith.constant 6 : index
    %c1_89 = arith.constant 1 : index
    %c0_90 = arith.constant 0 : index
    %57 = vector.load %arg1[%c0_87, %c6_88, %c1_89, %c0_90] : memref<1x16x16x4xf32, #tpu.memory_space<vmem>>, vector<1x1x1x4xf32>
    %58 = vector.shape_cast %57 : vector<1x1x1x4xf32> to vector<1x4xf32>
    %c126 = arith.constant 126 : index
    %c0_91 = arith.constant 0 : index
    %59 = vector.load %arg5[%c126, %c0_91] : memref<332x4xf32, #tpu.memory_space<vmem>>, vector<1x4xf32>
    tpu.vector_store %arg5[%c126, %c0_91], %58 {strides = array<i32>} : memref<332x4xf32, #tpu.memory_space<vmem>>, vector<1x4xf32>,
    %c0_92 = arith.constant 0 : index
    %c6_93 = arith.constant 6 : index
    %c14_94 = arith.constant 14 : index
    %c0_95 = arith.constant 0 : index
    %60 = vector.load %arg1[%c0_92, %c6_93, %c14_94, %c0_95] : memref<1x16x16x4xf32, #tpu.memory_space<vmem>>, vector<1x1x1x4xf32>
    %61 = vector.shape_cast %60 : vector<1x1x1x4xf32> to vector<1x4xf32>
    %c143 = arith.constant 143 : index
    %c0_96 = arith.constant 0 : index
    %62 = vector.load %arg5[%c143, %c0_96] : memref<332x4xf32, #tpu.memory_space<vmem>>, vector<1x4xf32>
    tpu.vector_store %arg5[%c143, %c0_96], %61 {strides = array<i32>} : memref<332x4xf32, #tpu.memory_space<vmem>>, vector<1x4xf32>,
    %c0_97 = arith.constant 0 : index
    %c7 = arith.constant 7 : index
    %c0_98 = arith.constant 0 : index
    %c0_99 = arith.constant 0 : index
    %63 = vector.load %arg1[%c0_97, %c7, %c0_98, %c0_99] : memref<1x16x16x4xf32, #tpu.memory_space<vmem>>, vector<1x1x16x4xf32>
    %64 = vector.shape_cast %63 : vector<1x1x16x4xf32> to vector<16x4xf32>
    %c145 = arith.constant 145 : index
    %c0_100 = arith.constant 0 : index
    %65 = vector.load %arg5[%c145, %c0_100] : memref<332x4xf32, #tpu.memory_space<vmem>>, vector<16x4xf32>
    tpu.vector_store %arg5[%c145, %c0_100], %64 {strides = array<i32>} : memref<332x4xf32, #tpu.memory_space<vmem>>, vector<16x4xf32>,
    %c0_101 = arith.constant 0 : index
    %c7_102 = arith.constant 7 : index
    %c1_103 = arith.constant 1 : index
    %c0_104 = arith.constant 0 : index
    %66 = vector.load %arg1[%c0_101, %c7_102, %c1_103, %c0_104] : memref<1x16x16x4xf32, #tpu.memory_space<vmem>>, vector<1x1x1x4xf32>
    %67 = vector.shape_cast %66 : vector<1x1x1x4xf32> to vector<1x4xf32>
    %c144 = arith.constant 144 : index
    %c0_105 = arith.constant 0 : index
    %68 = vector.load %arg5[%c144, %c0_105] : memref<332x4xf32, #tpu.memory_space<vmem>>, vector<1x4xf32>
    tpu.vector_store %arg5[%c144, %c0_105], %67 {strides = array<i32>} : memref<332x4xf32, #tpu.memory_space<vmem>>, vector<1x4xf32>,
    %c0_106 = arith.constant 0 : index
    %c7_107 = arith.constant 7 : index
    %c14_108 = arith.constant 14 : index
    %c0_109 = arith.constant 0 : index
    %69 = vector.load %arg1[%c0_106, %c7_107, %c14_108, %c0_109] : memref<1x16x16x4xf32, #tpu.memory_space<vmem>>, vector<1x1x1x4xf32>
    %70 = vector.shape_cast %69 : vector<1x1x1x4xf32> to vector<1x4xf32>
    %c161 = arith.constant 161 : index
    %c0_110 = arith.constant 0 : index
    %71 = vector.load %arg5[%c161, %c0_110] : memref<332x4xf32, #tpu.memory_space<vmem>>, vector<1x4xf32>
    tpu.vector_store %arg5[%c161, %c0_110], %70 {strides = array<i32>} : memref<332x4xf32, #tpu.memory_space<vmem>>, vector<1x4xf32>,
    %c0_111 = arith.constant 0 : index
    %c8 = arith.constant 8 : index
    %c0_112 = arith.constant 0 : index
    %c0_113 = arith.constant 0 : index
    %72 = vector.load %arg1[%c0_111, %c8, %c0_112, %c0_113] : memref<1x16x16x4xf32, #tpu.memory_space<vmem>>, vector<1x1x16x4xf32>
    %73 = vector.shape_cast %72 : vector<1x1x16x4xf32> to vector<16x4xf32>
    %c163 = arith.constant 163 : index
    %c0_114 = arith.constant 0 : index
    %74 = vector.load %arg5[%c163, %c0_114] : memref<332x4xf32, #tpu.memory_space<vmem>>, vector<16x4xf32>
    tpu.vector_store %arg5[%c163, %c0_114], %73 {strides = array<i32>} : memref<332x4xf32, #tpu.memory_space<vmem>>, vector<16x4xf32>,
    %c0_115 = arith.constant 0 : index
    %c8_116 = arith.constant 8 : index
    %c1_117 = arith.constant 1 : index
    %c0_118 = arith.constant 0 : index
    %75 = vector.load %arg1[%c0_115, %c8_116, %c1_117, %c0_118] : memref<1x16x16x4xf32, #tpu.memory_space<vmem>>, vector<1x1x1x4xf32>
    %76 = vector.shape_cast %75 : vector<1x1x1x4xf32> to vector<1x4xf32>
    %c162 = arith.constant 162 : index
    %c0_119 = arith.constant 0 : index
    %77 = vector.load %arg5[%c162, %c0_119] : memref<332x4xf32, #tpu.memory_space<vmem>>, vector<1x4xf32>
    tpu.vector_store %arg5[%c162, %c0_119], %76 {strides = array<i32>} : memref<332x4xf32, #tpu.memory_space<vmem>>, vector<1x4xf32>,
    %c0_120 = arith.constant 0 : index
    %c8_121 = arith.constant 8 : index
    %c14_122 = arith.constant 14 : index
    %c0_123 = arith.constant 0 : index
    %78 = vector.load %arg1[%c0_120, %c8_121, %c14_122, %c0_123] : memref<1x16x16x4xf32, #tpu.memory_space<vmem>>, vector<1x1x1x4xf32>
    %79 = vector.shape_cast %78 : vector<1x1x1x4xf32> to vector<1x4xf32>
    %c179 = arith.constant 179 : index
    %c0_124 = arith.constant 0 : index
    %80 = vector.load %arg5[%c179, %c0_124] : memref<332x4xf32, #tpu.memory_space<vmem>>, vector<1x4xf32>
    tpu.vector_store %arg5[%c179, %c0_124], %79 {strides = array<i32>} : memref<332x4xf32, #tpu.memory_space<vmem>>, vector<1x4xf32>,
    %c0_125 = arith.constant 0 : index
    %c9 = arith.constant 9 : index
    %c0_126 = arith.constant 0 : index
    %c0_127 = arith.constant 0 : index
    %81 = vector.load %arg1[%c0_125, %c9, %c0_126, %c0_127] : memref<1x16x16x4xf32, #tpu.memory_space<vmem>>, vector<1x1x16x4xf32>
    %82 = vector.shape_cast %81 : vector<1x1x16x4xf32> to vector<16x4xf32>
    %c181 = arith.constant 181 : index
    %c0_128 = arith.constant 0 : index
    %83 = vector.load %arg5[%c181, %c0_128] : memref<332x4xf32, #tpu.memory_space<vmem>>, vector<16x4xf32>
    tpu.vector_store %arg5[%c181, %c0_128], %82 {strides = array<i32>} : memref<332x4xf32, #tpu.memory_space<vmem>>, vector<16x4xf32>,
    %c0_129 = arith.constant 0 : index
    %c9_130 = arith.constant 9 : index
    %c1_131 = arith.constant 1 : index
    %c0_132 = arith.constant 0 : index
    %84 = vector.load %arg1[%c0_129, %c9_130, %c1_131, %c0_132] : memref<1x16x16x4xf32, #tpu.memory_space<vmem>>, vector<1x1x1x4xf32>
    %85 = vector.shape_cast %84 : vector<1x1x1x4xf32> to vector<1x4xf32>
    %c180 = arith.constant 180 : index
    %c0_133 = arith.constant 0 : index
    %86 = vector.load %arg5[%c180, %c0_133] : memref<332x4xf32, #tpu.memory_space<vmem>>, vector<1x4xf32>
    tpu.vector_store %arg5[%c180, %c0_133], %85 {strides = array<i32>} : memref<332x4xf32, #tpu.memory_space<vmem>>, vector<1x4xf32>,
    %c0_134 = arith.constant 0 : index
    %c9_135 = arith.constant 9 : index
    %c14_136 = arith.constant 14 : index
    %c0_137 = arith.constant 0 : index
    %87 = vector.load %arg1[%c0_134, %c9_135, %c14_136, %c0_137] : memref<1x16x16x4xf32, #tpu.memory_space<vmem>>, vector<1x1x1x4xf32>
    %88 = vector.shape_cast %87 : vector<1x1x1x4xf32> to vector<1x4xf32>
    %c197 = arith.constant 197 : index
    %c0_138 = arith.constant 0 : index
    %89 = vector.load %arg5[%c197, %c0_138] : memref<332x4xf32, #tpu.memory_space<vmem>>, vector<1x4xf32>
    tpu.vector_store %arg5[%c197, %c0_138], %88 {strides = array<i32>} : memref<332x4xf32, #tpu.memory_space<vmem>>, vector<1x4xf32>,
    %c0_139 = arith.constant 0 : index
    %c10 = arith.constant 10 : index
    %c0_140 = arith.constant 0 : index
    %c0_141 = arith.constant 0 : index
    %90 = vector.load %arg1[%c0_139, %c10, %c0_140, %c0_141] : memref<1x16x16x4xf32, #tpu.memory_space<vmem>>, vector<1x1x16x4xf32>
    %91 = vector.shape_cast %90 : vector<1x1x16x4xf32> to vector<16x4xf32>
    %c199 = arith.constant 199 : index
    %c0_142 = arith.constant 0 : index
    %92 = vector.load %arg5[%c199, %c0_142] : memref<332x4xf32, #tpu.memory_space<vmem>>, vector<16x4xf32>
    tpu.vector_store %arg5[%c199, %c0_142], %91 {strides = array<i32>} : memref<332x4xf32, #tpu.memory_space<vmem>>, vector<16x4xf32>,
    %c0_143 = arith.constant 0 : index
    %c10_144 = arith.constant 10 : index
    %c1_145 = arith.constant 1 : index
    %c0_146 = arith.constant 0 : index
    %93 = vector.load %arg1[%c0_143, %c10_144, %c1_145, %c0_146] : memref<1x16x16x4xf32, #tpu.memory_space<vmem>>, vector<1x1x1x4xf32>
    %94 = vector.shape_cast %93 : vector<1x1x1x4xf32> to vector<1x4xf32>
    %c198 = arith.constant 198 : index
    %c0_147 = arith.constant 0 : index
    %95 = vector.load %arg5[%c198, %c0_147] : memref<332x4xf32, #tpu.memory_space<vmem>>, vector<1x4xf32>
    tpu.vector_store %arg5[%c198, %c0_147], %94 {strides = array<i32>} : memref<332x4xf32, #tpu.memory_space<vmem>>, vector<1x4xf32>,
    %c0_148 = arith.constant 0 : index
    %c10_149 = arith.constant 10 : index
    %c14_150 = arith.constant 14 : index
    %c0_151 = arith.constant 0 : index
    %96 = vector.load %arg1[%c0_148, %c10_149, %c14_150, %c0_151] : memref<1x16x16x4xf32, #tpu.memory_space<vmem>>, vector<1x1x1x4xf32>
    %97 = vector.shape_cast %96 : vector<1x1x1x4xf32> to vector<1x4xf32>
    %c215 = arith.constant 215 : index
    %c0_152 = arith.constant 0 : index
    %98 = vector.load %arg5[%c215, %c0_152] : memref<332x4xf32, #tpu.memory_space<vmem>>, vector<1x4xf32>
    tpu.vector_store %arg5[%c215, %c0_152], %97 {strides = array<i32>} : memref<332x4xf32, #tpu.memory_space<vmem>>, vector<1x4xf32>,
    %c0_153 = arith.constant 0 : index
    %c11 = arith.constant 11 : index
    %c0_154 = arith.constant 0 : index
    %c0_155 = arith.constant 0 : index
    %99 = vector.load %arg1[%c0_153, %c11, %c0_154, %c0_155] : memref<1x16x16x4xf32, #tpu.memory_space<vmem>>, vector<1x1x16x4xf32>
    %100 = vector.shape_cast %99 : vector<1x1x16x4xf32> to vector<16x4xf32>
    %c217 = arith.constant 217 : index
    %c0_156 = arith.constant 0 : index
    %101 = vector.load %arg5[%c217, %c0_156] : memref<332x4xf32, #tpu.memory_space<vmem>>, vector<16x4xf32>
    tpu.vector_store %arg5[%c217, %c0_156], %100 {strides = array<i32>} : memref<332x4xf32, #tpu.memory_space<vmem>>, vector<16x4xf32>,
    %c0_157 = arith.constant 0 : index
    %c11_158 = arith.constant 11 : index
    %c1_159 = arith.constant 1 : index
    %c0_160 = arith.constant 0 : index
    %102 = vector.load %arg1[%c0_157, %c11_158, %c1_159, %c0_160] : memref<1x16x16x4xf32, #tpu.memory_space<vmem>>, vector<1x1x1x4xf32>
    %103 = vector.shape_cast %102 : vector<1x1x1x4xf32> to vector<1x4xf32>
    %c216 = arith.constant 216 : index
    %c0_161 = arith.constant 0 : index
    %104 = vector.load %arg5[%c216, %c0_161] : memref<332x4xf32, #tpu.memory_space<vmem>>, vector<1x4xf32>
    tpu.vector_store %arg5[%c216, %c0_161], %103 {strides = array<i32>} : memref<332x4xf32, #tpu.memory_space<vmem>>, vector<1x4xf32>,
    %c0_162 = arith.constant 0 : index
    %c11_163 = arith.constant 11 : index
    %c14_164 = arith.constant 14 : index
    %c0_165 = arith.constant 0 : index
    %105 = vector.load %arg1[%c0_162, %c11_163, %c14_164, %c0_165] : memref<1x16x16x4xf32, #tpu.memory_space<vmem>>, vector<1x1x1x4xf32>
    %106 = vector.shape_cast %105 : vector<1x1x1x4xf32> to vector<1x4xf32>
    %c233 = arith.constant 233 : index
    %c0_166 = arith.constant 0 : index
    %107 = vector.load %arg5[%c233, %c0_166] : memref<332x4xf32, #tpu.memory_space<vmem>>, vector<1x4xf32>
    tpu.vector_store %arg5[%c233, %c0_166], %106 {strides = array<i32>} : memref<332x4xf32, #tpu.memory_space<vmem>>, vector<1x4xf32>,
    %c0_167 = arith.constant 0 : index
    %c12 = arith.constant 12 : index
    %c0_168 = arith.constant 0 : index
    %c0_169 = arith.constant 0 : index
    %108 = vector.load %arg1[%c0_167, %c12, %c0_168, %c0_169] : memref<1x16x16x4xf32, #tpu.memory_space<vmem>>, vector<1x1x16x4xf32>
    %109 = vector.shape_cast %108 : vector<1x1x16x4xf32> to vector<16x4xf32>
    %c235 = arith.constant 235 : index
    %c0_170 = arith.constant 0 : index
    %110 = vector.load %arg5[%c235, %c0_170] : memref<332x4xf32, #tpu.memory_space<vmem>>, vector<16x4xf32>
    tpu.vector_store %arg5[%c235, %c0_170], %109 {strides = array<i32>} : memref<332x4xf32, #tpu.memory_space<vmem>>, vector<16x4xf32>,
    %c0_171 = arith.constant 0 : index
    %c12_172 = arith.constant 12 : index
    %c1_173 = arith.constant 1 : index
    %c0_174 = arith.constant 0 : index
    %111 = vector.load %arg1[%c0_171, %c12_172, %c1_173, %c0_174] : memref<1x16x16x4xf32, #tpu.memory_space<vmem>>, vector<1x1x1x4xf32>
    %112 = vector.shape_cast %111 : vector<1x1x1x4xf32> to vector<1x4xf32>
    %c234 = arith.constant 234 : index
    %c0_175 = arith.constant 0 : index
    %113 = vector.load %arg5[%c234, %c0_175] : memref<332x4xf32, #tpu.memory_space<vmem>>, vector<1x4xf32>
    tpu.vector_store %arg5[%c234, %c0_175], %112 {strides = array<i32>} : memref<332x4xf32, #tpu.memory_space<vmem>>, vector<1x4xf32>,
    %c0_176 = arith.constant 0 : index
    %c12_177 = arith.constant 12 : index
    %c14_178 = arith.constant 14 : index
    %c0_179 = arith.constant 0 : index
    %114 = vector.load %arg1[%c0_176, %c12_177, %c14_178, %c0_179] : memref<1x16x16x4xf32, #tpu.memory_space<vmem>>, vector<1x1x1x4xf32>
    %115 = vector.shape_cast %114 : vector<1x1x1x4xf32> to vector<1x4xf32>
    %c251 = arith.constant 251 : index
    %c0_180 = arith.constant 0 : index
    %116 = vector.load %arg5[%c251, %c0_180] : memref<332x4xf32, #tpu.memory_space<vmem>>, vector<1x4xf32>
    tpu.vector_store %arg5[%c251, %c0_180], %115 {strides = array<i32>} : memref<332x4xf32, #tpu.memory_space<vmem>>, vector<1x4xf32>,
    %c0_181 = arith.constant 0 : index
    %c13 = arith.constant 13 : index
    %c0_182 = arith.constant 0 : index
    %c0_183 = arith.constant 0 : index
    %117 = vector.load %arg1[%c0_181, %c13, %c0_182, %c0_183] : memref<1x16x16x4xf32, #tpu.memory_space<vmem>>, vector<1x1x16x4xf32>
    %118 = vector.shape_cast %117 : vector<1x1x16x4xf32> to vector<16x4xf32>
    %c253 = arith.constant 253 : index
    %c0_184 = arith.constant 0 : index
    %119 = vector.load %arg5[%c253, %c0_184] : memref<332x4xf32, #tpu.memory_space<vmem>>, vector<16x4xf32>
    tpu.vector_store %arg5[%c253, %c0_184], %118 {strides = array<i32>} : memref<332x4xf32, #tpu.memory_space<vmem>>, vector<16x4xf32>,
    %c0_185 = arith.constant 0 : index
    %c13_186 = arith.constant 13 : index
    %c1_187 = arith.constant 1 : index
    %c0_188 = arith.constant 0 : index
    %120 = vector.load %arg1[%c0_185, %c13_186, %c1_187, %c0_188] : memref<1x16x16x4xf32, #tpu.memory_space<vmem>>, vector<1x1x1x4xf32>
    %121 = vector.shape_cast %120 : vector<1x1x1x4xf32> to vector<1x4xf32>
    %c252 = arith.constant 252 : index
    %c0_189 = arith.constant 0 : index
    %122 = vector.load %arg5[%c252, %c0_189] : memref<332x4xf32, #tpu.memory_space<vmem>>, vector<1x4xf32>
    tpu.vector_store %arg5[%c252, %c0_189], %121 {strides = array<i32>} : memref<332x4xf32, #tpu.memory_space<vmem>>, vector<1x4xf32>,
    %c0_190 = arith.constant 0 : index
    %c13_191 = arith.constant 13 : index
    %c14_192 = arith.constant 14 : index
    %c0_193 = arith.constant 0 : index
    %123 = vector.load %arg1[%c0_190, %c13_191, %c14_192, %c0_193] : memref<1x16x16x4xf32, #tpu.memory_space<vmem>>, vector<1x1x1x4xf32>
    %124 = vector.shape_cast %123 : vector<1x1x1x4xf32> to vector<1x4xf32>
    %c269 = arith.constant 269 : index
    %c0_194 = arith.constant 0 : index
    %125 = vector.load %arg5[%c269, %c0_194] : memref<332x4xf32, #tpu.memory_space<vmem>>, vector<1x4xf32>
    tpu.vector_store %arg5[%c269, %c0_194], %124 {strides = array<i32>} : memref<332x4xf32, #tpu.memory_space<vmem>>, vector<1x4xf32>,
    %c0_195 = arith.constant 0 : index
    %c14_196 = arith.constant 14 : index
    %c0_197 = arith.constant 0 : index
    %c0_198 = arith.constant 0 : index
    %126 = vector.load %arg1[%c0_195, %c14_196, %c0_197, %c0_198] : memref<1x16x16x4xf32, #tpu.memory_space<vmem>>, vector<1x1x16x4xf32>
    %127 = vector.shape_cast %126 : vector<1x1x16x4xf32> to vector<16x4xf32>
    %c271 = arith.constant 271 : index
    %c0_199 = arith.constant 0 : index
    %128 = vector.load %arg5[%c271, %c0_199] : memref<332x4xf32, #tpu.memory_space<vmem>>, vector<16x4xf32>
    tpu.vector_store %arg5[%c271, %c0_199], %127 {strides = array<i32>} : memref<332x4xf32, #tpu.memory_space<vmem>>, vector<16x4xf32>,
    %c0_200 = arith.constant 0 : index
    %c14_201 = arith.constant 14 : index
    %c1_202 = arith.constant 1 : index
    %c0_203 = arith.constant 0 : index
    %129 = vector.load %arg1[%c0_200, %c14_201, %c1_202, %c0_203] : memref<1x16x16x4xf32, #tpu.memory_space<vmem>>, vector<1x1x1x4xf32>
    %130 = vector.shape_cast %129 : vector<1x1x1x4xf32> to vector<1x4xf32>
    %c270 = arith.constant 270 : index
    %c0_204 = arith.constant 0 : index
    %131 = vector.load %arg5[%c270, %c0_204] : memref<332x4xf32, #tpu.memory_space<vmem>>, vector<1x4xf32>
    tpu.vector_store %arg5[%c270, %c0_204], %130 {strides = array<i32>} : memref<332x4xf32, #tpu.memory_space<vmem>>, vector<1x4xf32>,
    %c0_205 = arith.constant 0 : index
    %c14_206 = arith.constant 14 : index
    %c14_207 = arith.constant 14 : index
    %c0_208 = arith.constant 0 : index
    %132 = vector.load %arg1[%c0_205, %c14_206, %c14_207, %c0_208] : memref<1x16x16x4xf32, #tpu.memory_space<vmem>>, vector<1x1x1x4xf32>
    %133 = vector.shape_cast %132 : vector<1x1x1x4xf32> to vector<1x4xf32>
    %c287 = arith.constant 287 : index
    %c0_209 = arith.constant 0 : index
    %134 = vector.load %arg5[%c287, %c0_209] : memref<332x4xf32, #tpu.memory_space<vmem>>, vector<1x4xf32>
    tpu.vector_store %arg5[%c287, %c0_209], %133 {strides = array<i32>} : memref<332x4xf32, #tpu.memory_space<vmem>>, vector<1x4xf32>,
    %c0_210 = arith.constant 0 : index
    %c15 = arith.constant 15 : index
    %c0_211 = arith.constant 0 : index
    %c0_212 = arith.constant 0 : index
    %135 = vector.load %arg1[%c0_210, %c15, %c0_211, %c0_212] : memref<1x16x16x4xf32, #tpu.memory_space<vmem>>, vector<1x1x16x4xf32>
    %136 = vector.shape_cast %135 : vector<1x1x16x4xf32> to vector<16x4xf32>
    %c289 = arith.constant 289 : index
    %c0_213 = arith.constant 0 : index
    %137 = vector.load %arg5[%c289, %c0_213] : memref<332x4xf32, #tpu.memory_space<vmem>>, vector<16x4xf32>
    tpu.vector_store %arg5[%c289, %c0_213], %136 {strides = array<i32>} : memref<332x4xf32, #tpu.memory_space<vmem>>, vector<16x4xf32>,
    %c0_214 = arith.constant 0 : index
    %c15_215 = arith.constant 15 : index
    %c1_216 = arith.constant 1 : index
    %c0_217 = arith.constant 0 : index
    %138 = vector.load %arg1[%c0_214, %c15_215, %c1_216, %c0_217] : memref<1x16x16x4xf32, #tpu.memory_space<vmem>>, vector<1x1x1x4xf32>
    %139 = vector.shape_cast %138 : vector<1x1x1x4xf32> to vector<1x4xf32>
    %c288 = arith.constant 288 : index
    %c0_218 = arith.constant 0 : index
    %140 = vector.load %arg5[%c288, %c0_218] : memref<332x4xf32, #tpu.memory_space<vmem>>, vector<1x4xf32>
    tpu.vector_store %arg5[%c288, %c0_218], %139 {strides = array<i32>} : memref<332x4xf32, #tpu.memory_space<vmem>>, vector<1x4xf32>,
    %c0_219 = arith.constant 0 : index
    %c15_220 = arith.constant 15 : index
    %c14_221 = arith.constant 14 : index
    %c0_222 = arith.constant 0 : index
    %141 = vector.load %arg1[%c0_219, %c15_220, %c14_221, %c0_222] : memref<1x16x16x4xf32, #tpu.memory_space<vmem>>, vector<1x1x1x4xf32>
    %142 = vector.shape_cast %141 : vector<1x1x1x4xf32> to vector<1x4xf32>
    %c305 = arith.constant 305 : index
    %c0_223 = arith.constant 0 : index
    %143 = vector.load %arg5[%c305, %c0_223] : memref<332x4xf32, #tpu.memory_space<vmem>>, vector<1x4xf32>
    tpu.vector_store %arg5[%c305, %c0_223], %142 {strides = array<i32>} : memref<332x4xf32, #tpu.memory_space<vmem>>, vector<1x4xf32>,
    %c36_224 = arith.constant 36 : index
    %c0_225 = arith.constant 0 : index
    %144 = vector.load %arg5[%c36_224, %c0_225] : memref<332x4xf32, #tpu.memory_space<vmem>>, vector<18x4xf32>
    %c0_226 = arith.constant 0 : index
    %c0_227 = arith.constant 0 : index
    %145 = vector.load %arg5[%c0_226, %c0_227] : memref<332x4xf32, #tpu.memory_space<vmem>>, vector<18x4xf32>
    tpu.vector_store %arg5[%c0_226, %c0_227], %144 {strides = array<i32>} : memref<332x4xf32, #tpu.memory_space<vmem>>, vector<18x4xf32>,
    %c270_228 = arith.constant 270 : index
    %c0_229 = arith.constant 0 : index
    %146 = vector.load %arg5[%c270_228, %c0_229] : memref<332x4xf32, #tpu.memory_space<vmem>>, vector<18x4xf32>
    %c306 = arith.constant 306 : index
    %c0_230 = arith.constant 0 : index
    %147 = vector.load %arg5[%c306, %c0_230] : memref<332x4xf32, #tpu.memory_space<vmem>>, vector<18x4xf32>
    tpu.vector_store %arg5[%c306, %c0_230], %146 {strides = array<i32>} : memref<332x4xf32, #tpu.memory_space<vmem>>, vector<18x4xf32>,
    %cst = arith.constant 0.000000e+00 : f32
    %148 = vector.broadcast %cst : f32 to vector<8x4xf32>
    %c324 = arith.constant 324 : index
    %c0_231 = arith.constant 0 : index
    %149 = vector.load %arg5[%c324, %c0_231] : memref<332x4xf32, #tpu.memory_space<vmem>>, vector<8x4xf32>
    tpu.vector_store %arg5[%c324, %c0_231], %148 {strides = array<i32>} : memref<332x4xf32, #tpu.memory_space<vmem>>, vector<8x4xf32>,
    %cst_232 = arith.constant 0.000000e+00 : f32
    %150 = vector.broadcast %cst_232 : f32 to vector<1x4xf32>
    %cst_233 = arith.constant 0.000000e+00 : f32
    %151 = vector.broadcast %cst_233 : f32 to vector<1x4xf32>
    %cst_234 = arith.constant 0.000000e+00 : f32
    %152 = vector.broadcast %cst_234 : f32 to vector<288x4xf32>
    %c0_235 = arith.constant 0 : index
    %c0_236 = arith.constant 0 : index
    %153 = vector.load %arg5[%c0_235, %c0_236] : memref<332x4xf32, #tpu.memory_space<vmem>>, vector<288x4xf32>
    %c0_237 = arith.constant 0 : index
    %c0_238 = arith.constant 0 : index
    %154 = vector.load %arg2[%c0_237, %c0_238] : memref<36x4xf32, #tpu.memory_space<vmem>>, vector<4x4xf32>
    %cst_239 = arith.constant dense<0.000000e+00> : vector<288x4xf32>
    %155 = tpu.matmul %153, %154, %cst_239 {dimension_numbers = #tpu.dot_dimension_numbers<[1], [0], [0], [1], [0, 0, 1, 1], [], []>} : vector<288x4xf32>, vector<4x4xf32>, vector<288x4xf32> -> vector<288x4xf32>
    %156 = arith.addf %152, %155 : vector<288x4xf32>
    %c1_240 = arith.constant 1 : index
    %c0_241 = arith.constant 0 : index
    %157 = vector.load %arg5[%c1_240, %c0_241] : memref<332x4xf32, #tpu.memory_space<vmem>>, vector<288x4xf32>
    %c4_242 = arith.constant 4 : index
    %c0_243 = arith.constant 0 : index
    %158 = vector.load %arg2[%c4_242, %c0_243] : memref<36x4xf32, #tpu.memory_space<vmem>>, vector<4x4xf32>
    %cst_244 = arith.constant dense<0.000000e+00> : vector<288x4xf32>
    %159 = tpu.matmul %157, %158, %cst_244 {dimension_numbers = #tpu.dot_dimension_numbers<[1], [0], [0], [1], [0, 0, 1, 1], [], []>} : vector<288x4xf32>, vector<4x4xf32>, vector<288x4xf32> -> vector<288x4xf32>
    %160 = arith.addf %156, %159 : vector<288x4xf32>
    %c2_245 = arith.constant 2 : index
    %c0_246 = arith.constant 0 : index
    %161 = vector.load %arg5[%c2_245, %c0_246] : memref<332x4xf32, #tpu.memory_space<vmem>>, vector<288x4xf32>
    %c8_247 = arith.constant 8 : index
    %c0_248 = arith.constant 0 : index
    %162 = vector.load %arg2[%c8_247, %c0_248] : memref<36x4xf32, #tpu.memory_space<vmem>>, vector<4x4xf32>
    %cst_249 = arith.constant dense<0.000000e+00> : vector<288x4xf32>
    %163 = tpu.matmul %161, %162, %cst_249 {dimension_numbers = #tpu.dot_dimension_numbers<[1], [0], [0], [1], [0, 0, 1, 1], [], []>} : vector<288x4xf32>, vector<4x4xf32>, vector<288x4xf32> -> vector<288x4xf32>
    %164 = arith.addf %160, %163 : vector<288x4xf32>
    %c18_250 = arith.constant 18 : index
    %c0_251 = arith.constant 0 : index
    %165 = vector.load %arg5[%c18_250, %c0_251] : memref<332x4xf32, #tpu.memory_space<vmem>>, vector<288x4xf32>
    %c12_252 = arith.constant 12 : index
    %c0_253 = arith.constant 0 : index
    %166 = vector.load %arg2[%c12_252, %c0_253] : memref<36x4xf32, #tpu.memory_space<vmem>>, vector<4x4xf32>
    %cst_254 = arith.constant dense<0.000000e+00> : vector<288x4xf32>
    %167 = tpu.matmul %165, %166, %cst_254 {dimension_numbers = #tpu.dot_dimension_numbers<[1], [0], [0], [1], [0, 0, 1, 1], [], []>} : vector<288x4xf32>, vector<4x4xf32>, vector<288x4xf32> -> vector<288x4xf32>
    %168 = arith.addf %164, %167 : vector<288x4xf32>
    %c19_255 = arith.constant 19 : index
    %c0_256 = arith.constant 0 : index
    %169 = vector.load %arg5[%c19_255, %c0_256] : memref<332x4xf32, #tpu.memory_space<vmem>>, vector<288x4xf32>
    %c16 = arith.constant 16 : index
    %c0_257 = arith.constant 0 : index
    %170 = vector.load %arg2[%c16, %c0_257] : memref<36x4xf32, #tpu.memory_space<vmem>>, vector<4x4xf32>
    %cst_258 = arith.constant dense<0.000000e+00> : vector<288x4xf32>
    %171 = tpu.matmul %169, %170, %cst_258 {dimension_numbers = #tpu.dot_dimension_numbers<[1], [0], [0], [1], [0, 0, 1, 1], [], []>} : vector<288x4xf32>, vector<4x4xf32>, vector<288x4xf32> -> vector<288x4xf32>
    %172 = arith.addf %168, %171 : vector<288x4xf32>
    %c20 = arith.constant 20 : index
    %c0_259 = arith.constant 0 : index
    %173 = vector.load %arg5[%c20, %c0_259] : memref<332x4xf32, #tpu.memory_space<vmem>>, vector<288x4xf32>
    %c20_260 = arith.constant 20 : index
    %c0_261 = arith.constant 0 : index
    %174 = vector.load %arg2[%c20_260, %c0_261] : memref<36x4xf32, #tpu.memory_space<vmem>>, vector<4x4xf32>
    %cst_262 = arith.constant dense<0.000000e+00> : vector<288x4xf32>
    %175 = tpu.matmul %173, %174, %cst_262 {dimension_numbers = #tpu.dot_dimension_numbers<[1], [0], [0], [1], [0, 0, 1, 1], [], []>} : vector<288x4xf32>, vector<4x4xf32>, vector<288x4xf32> -> vector<288x4xf32>
    %176 = arith.addf %172, %175 : vector<288x4xf32>
    %c36_263 = arith.constant 36 : index
    %c0_264 = arith.constant 0 : index
    %177 = vector.load %arg5[%c36_263, %c0_264] : memref<332x4xf32, #tpu.memory_space<vmem>>, vector<288x4xf32>
    %c24 = arith.constant 24 : index
    %c0_265 = arith.constant 0 : index
    %178 = vector.load %arg2[%c24, %c0_265] : memref<36x4xf32, #tpu.memory_space<vmem>>, vector<4x4xf32>
    %cst_266 = arith.constant dense<0.000000e+00> : vector<288x4xf32>
    %179 = tpu.matmul %177, %178, %cst_266 {dimension_numbers = #tpu.dot_dimension_numbers<[1], [0], [0], [1], [0, 0, 1, 1], [], []>} : vector<288x4xf32>, vector<4x4xf32>, vector<288x4xf32> -> vector<288x4xf32>
    %180 = arith.addf %176, %179 : vector<288x4xf32>
    %c37_267 = arith.constant 37 : index
    %c0_268 = arith.constant 0 : index
    %181 = vector.load %arg5[%c37_267, %c0_268] : memref<332x4xf32, #tpu.memory_space<vmem>>, vector<288x4xf32>
    %c28 = arith.constant 28 : index
    %c0_269 = arith.constant 0 : index
    %182 = vector.load %arg2[%c28, %c0_269] : memref<36x4xf32, #tpu.memory_space<vmem>>, vector<4x4xf32>
    %cst_270 = arith.constant dense<0.000000e+00> : vector<288x4xf32>
    %183 = tpu.matmul %181, %182, %cst_270 {dimension_numbers = #tpu.dot_dimension_numbers<[1], [0], [0], [1], [0, 0, 1, 1], [], []>} : vector<288x4xf32>, vector<4x4xf32>, vector<288x4xf32> -> vector<288x4xf32>
    %184 = arith.addf %180, %183 : vector<288x4xf32>
    %c38 = arith.constant 38 : index
    %c0_271 = arith.constant 0 : index
    %185 = vector.load %arg5[%c38, %c0_271] : memref<332x4xf32, #tpu.memory_space<vmem>>, vector<288x4xf32>
    %c32 = arith.constant 32 : index
    %c0_272 = arith.constant 0 : index
    %186 = vector.load %arg2[%c32, %c0_272] : memref<36x4xf32, #tpu.memory_space<vmem>>, vector<4x4xf32>
    %cst_273 = arith.constant dense<0.000000e+00> : vector<288x4xf32>
    %187 = tpu.matmul %185, %186, %cst_273 {dimension_numbers = #tpu.dot_dimension_numbers<[1], [0], [0], [1], [0, 0, 1, 1], [], []>} : vector<288x4xf32>, vector<4x4xf32>, vector<288x4xf32> -> vector<288x4xf32>
    %188 = arith.addf %184, %187 : vector<288x4xf32>
    %189 = tpu.iota {dimensions = array<i32: 0>} : vector<288x1xi32>
    %c18_i32 = arith.constant 18 : i32
    %c0_i32 = arith.constant 0 : i32
    %190 = arith.cmpi eq, %c18_i32, %c0_i32 : i32
    %c1_i32 = arith.constant 1 : i32
    %191 = arith.select %190, %c1_i32, %c18_i32 : i32
    %192 = vector.broadcast %191 : i32 to vector<288x1xi32>
    %193 = arith.remsi %189, %192 : vector<288x1xi32>
    %c0_i32_274 = arith.constant 0 : i32
    %194 = vector.broadcast %c0_i32_274 : i32 to vector<288x1xi32>
    %195 = arith.cmpi ne, %193, %194 : vector<288x1xi32>
    %c0_i32_275 = arith.constant 0 : i32
    %196 = vector.broadcast %c0_i32_275 : i32 to vector<288x1xi32>
    %197 = arith.cmpi slt, %193, %196 : vector<288x1xi32>
    %c0_i32_276 = arith.constant 0 : i32
    %198 = arith.cmpi slt, %191, %c0_i32_276 : i32
    %199 = vector.broadcast %198 : i1 to vector<288x1xi1>
    %200 = vector.broadcast %199 : vector<288x1xi1> to vector<288x1xi1>
    %201 = arith.xori %197, %200 : vector<288x1xi1>
    %202 = arith.andi %201, %195 : vector<288x1xi1>
    %203 = vector.broadcast %191 : i32 to vector<288x1xi32>
    %204 = arith.addi %193, %203 : vector<288x1xi32>
    %205 = arith.select %202, %204, %193 : vector<288x1xi1>, vector<288x1xi32>
    %c16_i32 = arith.constant 16 : i32
    %206 = vector.broadcast %c16_i32 : i32 to vector<288x1xi32>
    %207 = arith.cmpi slt, %205, %206 : vector<288x1xi32>
    %cst_277 = arith.constant 0.000000e+00 : f32
    %208 = vector.shape_cast %207 : vector<288x1xi1> to vector<288x1xi1>
    %209 = vector.broadcast %208 : vector<288x1xi1> to vector<288x4xi1>
    %210 = vector.broadcast %cst_277 : f32 to vector<288x4xf32>
    %211 = arith.select %209, %188, %210 : vector<288x4xi1>, vector<288x4xf32>
    %cst_278 = arith.constant dense<0.000000e+00> : vector<4xf32>
    %212 = vector.multi_reduction <add>, %211, %cst_278 [0] : vector<288x4xf32> to vector<4xf32>
    %213 = vector.shape_cast %212 : vector<4xf32> to vector<1x4xf32>
    %214 = arith.addf %150, %213 : vector<1x4xf32>
    %215 = arith.mulf %211, %211 : vector<288x4xf32>
    %cst_279 = arith.constant dense<0.000000e+00> : vector<4xf32>
    %216 = vector.multi_reduction <add>, %215, %cst_279 [0] : vector<288x4xf32> to vector<4xf32>
    %217 = vector.shape_cast %216 : vector<4xf32> to vector<1x4xf32>
    %218 = arith.addf %151, %217 : vector<1x4xf32>
    %c0_280 = arith.constant 0 : index
    %c19_281 = arith.constant 19 : index
    %c0_282 = arith.constant 0 : index
    %219 = vector.load %arg3[%c0_280, %c19_281, %c0_282] : memref<1x332x4xf32, #tpu.memory_space<vmem>>, vector<1x288x4xf32>
    %220 = vector.shape_cast %219 : vector<1x288x4xf32> to vector<288x4xf32>
    %221 = vector.shape_cast %188 : vector<288x4xf32> to vector<1x288x4xf32>
    tpu.vector_store %arg3[%c0_280, %c19_281, %c0_282], %221 {strides = array<i32>} : memref<1x332x4xf32, #tpu.memory_space<vmem>>, vector<1x288x4xf32>,
    %c0_283 = arith.constant 0 : index
    %c20_284 = arith.constant 20 : index
    %c0_285 = arith.constant 0 : index
    %222 = vector.load %arg3[%c0_283, %c20_284, %c0_285] : memref<1x332x4xf32, #tpu.memory_space<vmem>>, vector<1x1x4xf32>
    %223 = vector.shape_cast %222 : vector<1x1x4xf32> to vector<1x4xf32>
    %c0_286 = arith.constant 0 : index
    %c18_287 = arith.constant 18 : index
    %c0_288 = arith.constant 0 : index
    %224 = vector.load %arg3[%c0_286, %c18_287, %c0_288] : memref<1x332x4xf32, #tpu.memory_space<vmem>>, vector<1x1x4xf32>
    %225 = vector.shape_cast %224 : vector<1x1x4xf32> to vector<1x4xf32>
    %226 = vector.shape_cast %223 : vector<1x4xf32> to vector<1x1x4xf32>
    tpu.vector_store %arg3[%c0_286, %c18_287, %c0_288], %226 {strides = array<i32>} : memref<1x332x4xf32, #tpu.memory_space<vmem>>, vector<1x1x4xf32>,
    %c0_289 = arith.constant 0 : index
    %c33 = arith.constant 33 : index
    %c0_290 = arith.constant 0 : index
    %227 = vector.load %arg3[%c0_289, %c33, %c0_290] : memref<1x332x4xf32, #tpu.memory_space<vmem>>, vector<1x1x4xf32>
    %228 = vector.shape_cast %227 : vector<1x1x4xf32> to vector<1x4xf32>
    %c0_291 = arith.constant 0 : index
    %c35_292 = arith.constant 35 : index
    %c0_293 = arith.constant 0 : index
    %229 = vector.load %arg3[%c0_291, %c35_292, %c0_293] : memref<1x332x4xf32, #tpu.memory_space<vmem>>, vector<1x1x4xf32>
    %230 = vector.shape_cast %229 : vector<1x1x4xf32> to vector<1x4xf32>
    %231 = vector.shape_cast %228 : vector<1x4xf32> to vector<1x1x4xf32>
    tpu.vector_store %arg3[%c0_291, %c35_292, %c0_293], %231 {strides = array<i32>} : memref<1x332x4xf32, #tpu.memory_space<vmem>>, vector<1x1x4xf32>,
    %c0_294 = arith.constant 0 : index
    %c38_295 = arith.constant 38 : index
    %c0_296 = arith.constant 0 : index
    %232 = vector.load %arg3[%c0_294, %c38_295, %c0_296] : memref<1x332x4xf32, #tpu.memory_space<vmem>>, vector<1x1x4xf32>
    %233 = vector.shape_cast %232 : vector<1x1x4xf32> to vector<1x4xf32>
    %c0_297 = arith.constant 0 : index
    %c36_298 = arith.constant 36 : index
    %c0_299 = arith.constant 0 : index
    %234 = vector.load %arg3[%c0_297, %c36_298, %c0_299] : memref<1x332x4xf32, #tpu.memory_space<vmem>>, vector<1x1x4xf32>
    %235 = vector.shape_cast %234 : vector<1x1x4xf32> to vector<1x4xf32>
    %236 = vector.shape_cast %233 : vector<1x4xf32> to vector<1x1x4xf32>
    tpu.vector_store %arg3[%c0_297, %c36_298, %c0_299], %236 {strides = array<i32>} : memref<1x332x4xf32, #tpu.memory_space<vmem>>, vector<1x1x4xf32>,
    %c0_300 = arith.constant 0 : index
    %c51 = arith.constant 51 : index
    %c0_301 = arith.constant 0 : index
    %237 = vector.load %arg3[%c0_300, %c51, %c0_301] : memref<1x332x4xf32, #tpu.memory_space<vmem>>, vector<1x1x4xf32>
    %238 = vector.shape_cast %237 : vector<1x1x4xf32> to vector<1x4xf32>
    %c0_302 = arith.constant 0 : index
    %c53_303 = arith.constant 53 : index
    %c0_304 = arith.constant 0 : index
    %239 = vector.load %arg3[%c0_302, %c53_303, %c0_304] : memref<1x332x4xf32, #tpu.memory_space<vmem>>, vector<1x1x4xf32>
    %240 = vector.shape_cast %239 : vector<1x1x4xf32> to vector<1x4xf32>
    %241 = vector.shape_cast %238 : vector<1x4xf32> to vector<1x1x4xf32>
    tpu.vector_store %arg3[%c0_302, %c53_303, %c0_304], %241 {strides = array<i32>} : memref<1x332x4xf32, #tpu.memory_space<vmem>>, vector<1x1x4xf32>,
    %c0_305 = arith.constant 0 : index
    %c56 = arith.constant 56 : index
    %c0_306 = arith.constant 0 : index
    %242 = vector.load %arg3[%c0_305, %c56, %c0_306] : memref<1x332x4xf32, #tpu.memory_space<vmem>>, vector<1x1x4xf32>
    %243 = vector.shape_cast %242 : vector<1x1x4xf32> to vector<1x4xf32>
    %c0_307 = arith.constant 0 : index
    %c54_308 = arith.constant 54 : index
    %c0_309 = arith.constant 0 : index
    %244 = vector.load %arg3[%c0_307, %c54_308, %c0_309] : memref<1x332x4xf32, #tpu.memory_space<vmem>>, vector<1x1x4xf32>
    %245 = vector.shape_cast %244 : vector<1x1x4xf32> to vector<1x4xf32>
    %246 = vector.shape_cast %243 : vector<1x4xf32> to vector<1x1x4xf32>
    tpu.vector_store %arg3[%c0_307, %c54_308, %c0_309], %246 {strides = array<i32>} : memref<1x332x4xf32, #tpu.memory_space<vmem>>, vector<1x1x4xf32>,
    %c0_310 = arith.constant 0 : index
    %c69 = arith.constant 69 : index
    %c0_311 = arith.constant 0 : index
    %247 = vector.load %arg3[%c0_310, %c69, %c0_311] : memref<1x332x4xf32, #tpu.memory_space<vmem>>, vector<1x1x4xf32>
    %248 = vector.shape_cast %247 : vector<1x1x4xf32> to vector<1x4xf32>
    %c0_312 = arith.constant 0 : index
    %c71_313 = arith.constant 71 : index
    %c0_314 = arith.constant 0 : index
    %249 = vector.load %arg3[%c0_312, %c71_313, %c0_314] : memref<1x332x4xf32, #tpu.memory_space<vmem>>, vector<1x1x4xf32>
    %250 = vector.shape_cast %249 : vector<1x1x4xf32> to vector<1x4xf32>
    %251 = vector.shape_cast %248 : vector<1x4xf32> to vector<1x1x4xf32>
    tpu.vector_store %arg3[%c0_312, %c71_313, %c0_314], %251 {strides = array<i32>} : memref<1x332x4xf32, #tpu.memory_space<vmem>>, vector<1x1x4xf32>,
    %c0_315 = arith.constant 0 : index
    %c74 = arith.constant 74 : index
    %c0_316 = arith.constant 0 : index
    %252 = vector.load %arg3[%c0_315, %c74, %c0_316] : memref<1x332x4xf32, #tpu.memory_space<vmem>>, vector<1x1x4xf32>
    %253 = vector.shape_cast %252 : vector<1x1x4xf32> to vector<1x4xf32>
    %c0_317 = arith.constant 0 : index
    %c72_318 = arith.constant 72 : index
    %c0_319 = arith.constant 0 : index
    %254 = vector.load %arg3[%c0_317, %c72_318, %c0_319] : memref<1x332x4xf32, #tpu.memory_space<vmem>>, vector<1x1x4xf32>
    %255 = vector.shape_cast %254 : vector<1x1x4xf32> to vector<1x4xf32>
    %256 = vector.shape_cast %253 : vector<1x4xf32> to vector<1x1x4xf32>
    tpu.vector_store %arg3[%c0_317, %c72_318, %c0_319], %256 {strides = array<i32>} : memref<1x332x4xf32, #tpu.memory_space<vmem>>, vector<1x1x4xf32>,
    %c0_320 = arith.constant 0 : index
    %c87 = arith.constant 87 : index
    %c0_321 = arith.constant 0 : index
    %257 = vector.load %arg3[%c0_320, %c87, %c0_321] : memref<1x332x4xf32, #tpu.memory_space<vmem>>, vector<1x1x4xf32>
    %258 = vector.shape_cast %257 : vector<1x1x4xf32> to vector<1x4xf32>
    %c0_322 = arith.constant 0 : index
    %c89_323 = arith.constant 89 : index
    %c0_324 = arith.constant 0 : index
    %259 = vector.load %arg3[%c0_322, %c89_323, %c0_324] : memref<1x332x4xf32, #tpu.memory_space<vmem>>, vector<1x1x4xf32>
    %260 = vector.shape_cast %259 : vector<1x1x4xf32> to vector<1x4xf32>
    %261 = vector.shape_cast %258 : vector<1x4xf32> to vector<1x1x4xf32>
    tpu.vector_store %arg3[%c0_322, %c89_323, %c0_324], %261 {strides = array<i32>} : memref<1x332x4xf32, #tpu.memory_space<vmem>>, vector<1x1x4xf32>,
    %c0_325 = arith.constant 0 : index
    %c92 = arith.constant 92 : index
    %c0_326 = arith.constant 0 : index
    %262 = vector.load %arg3[%c0_325, %c92, %c0_326] : memref<1x332x4xf32, #tpu.memory_space<vmem>>, vector<1x1x4xf32>
    %263 = vector.shape_cast %262 : vector<1x1x4xf32> to vector<1x4xf32>
    %c0_327 = arith.constant 0 : index
    %c90_328 = arith.constant 90 : index
    %c0_329 = arith.constant 0 : index
    %264 = vector.load %arg3[%c0_327, %c90_328, %c0_329] : memref<1x332x4xf32, #tpu.memory_space<vmem>>, vector<1x1x4xf32>
    %265 = vector.shape_cast %264 : vector<1x1x4xf32> to vector<1x4xf32>
    %266 = vector.shape_cast %263 : vector<1x4xf32> to vector<1x1x4xf32>
    tpu.vector_store %arg3[%c0_327, %c90_328, %c0_329], %266 {strides = array<i32>} : memref<1x332x4xf32, #tpu.memory_space<vmem>>, vector<1x1x4xf32>,
    %c0_330 = arith.constant 0 : index
    %c105 = arith.constant 105 : index
    %c0_331 = arith.constant 0 : index
    %267 = vector.load %arg3[%c0_330, %c105, %c0_331] : memref<1x332x4xf32, #tpu.memory_space<vmem>>, vector<1x1x4xf32>
    %268 = vector.shape_cast %267 : vector<1x1x4xf32> to vector<1x4xf32>
    %c0_332 = arith.constant 0 : index
    %c107_333 = arith.constant 107 : index
    %c0_334 = arith.constant 0 : index
    %269 = vector.load %arg3[%c0_332, %c107_333, %c0_334] : memref<1x332x4xf32, #tpu.memory_space<vmem>>, vector<1x1x4xf32>
    %270 = vector.shape_cast %269 : vector<1x1x4xf32> to vector<1x4xf32>
    %271 = vector.shape_cast %268 : vector<1x4xf32> to vector<1x1x4xf32>
    tpu.vector_store %arg3[%c0_332, %c107_333, %c0_334], %271 {strides = array<i32>} : memref<1x332x4xf32, #tpu.memory_space<vmem>>, vector<1x1x4xf32>,
    %c0_335 = arith.constant 0 : index
    %c110 = arith.constant 110 : index
    %c0_336 = arith.constant 0 : index
    %272 = vector.load %arg3[%c0_335, %c110, %c0_336] : memref<1x332x4xf32, #tpu.memory_space<vmem>>, vector<1x1x4xf32>
    %273 = vector.shape_cast %272 : vector<1x1x4xf32> to vector<1x4xf32>
    %c0_337 = arith.constant 0 : index
    %c108_338 = arith.constant 108 : index
    %c0_339 = arith.constant 0 : index
    %274 = vector.load %arg3[%c0_337, %c108_338, %c0_339] : memref<1x332x4xf32, #tpu.memory_space<vmem>>, vector<1x1x4xf32>
    %275 = vector.shape_cast %274 : vector<1x1x4xf32> to vector<1x4xf32>
    %276 = vector.shape_cast %273 : vector<1x4xf32> to vector<1x1x4xf32>
    tpu.vector_store %arg3[%c0_337, %c108_338, %c0_339], %276 {strides = array<i32>} : memref<1x332x4xf32, #tpu.memory_space<vmem>>, vector<1x1x4xf32>,
    %c0_340 = arith.constant 0 : index
    %c123 = arith.constant 123 : index
    %c0_341 = arith.constant 0 : index
    %277 = vector.load %arg3[%c0_340, %c123, %c0_341] : memref<1x332x4xf32, #tpu.memory_space<vmem>>, vector<1x1x4xf32>
    %278 = vector.shape_cast %277 : vector<1x1x4xf32> to vector<1x4xf32>
    %c0_342 = arith.constant 0 : index
    %c125_343 = arith.constant 125 : index
    %c0_344 = arith.constant 0 : index
    %279 = vector.load %arg3[%c0_342, %c125_343, %c0_344] : memref<1x332x4xf32, #tpu.memory_space<vmem>>, vector<1x1x4xf32>
    %280 = vector.shape_cast %279 : vector<1x1x4xf32> to vector<1x4xf32>
    %281 = vector.shape_cast %278 : vector<1x4xf32> to vector<1x1x4xf32>
    tpu.vector_store %arg3[%c0_342, %c125_343, %c0_344], %281 {strides = array<i32>} : memref<1x332x4xf32, #tpu.memory_space<vmem>>, vector<1x1x4xf32>,
    %c0_345 = arith.constant 0 : index
    %c128 = arith.constant 128 : index
    %c0_346 = arith.constant 0 : index
    %282 = vector.load %arg3[%c0_345, %c128, %c0_346] : memref<1x332x4xf32, #tpu.memory_space<vmem>>, vector<1x1x4xf32>
    %283 = vector.shape_cast %282 : vector<1x1x4xf32> to vector<1x4xf32>
    %c0_347 = arith.constant 0 : index
    %c126_348 = arith.constant 126 : index
    %c0_349 = arith.constant 0 : index
    %284 = vector.load %arg3[%c0_347, %c126_348, %c0_349] : memref<1x332x4xf32, #tpu.memory_space<vmem>>, vector<1x1x4xf32>
    %285 = vector.shape_cast %284 : vector<1x1x4xf32> to vector<1x4xf32>
    %286 = vector.shape_cast %283 : vector<1x4xf32> to vector<1x1x4xf32>
    tpu.vector_store %arg3[%c0_347, %c126_348, %c0_349], %286 {strides = array<i32>} : memref<1x332x4xf32, #tpu.memory_space<vmem>>, vector<1x1x4xf32>,
    %c0_350 = arith.constant 0 : index
    %c141 = arith.constant 141 : index
    %c0_351 = arith.constant 0 : index
    %287 = vector.load %arg3[%c0_350, %c141, %c0_351] : memref<1x332x4xf32, #tpu.memory_space<vmem>>, vector<1x1x4xf32>
    %288 = vector.shape_cast %287 : vector<1x1x4xf32> to vector<1x4xf32>
    %c0_352 = arith.constant 0 : index
    %c143_353 = arith.constant 143 : index
    %c0_354 = arith.constant 0 : index
    %289 = vector.load %arg3[%c0_352, %c143_353, %c0_354] : memref<1x332x4xf32, #tpu.memory_space<vmem>>, vector<1x1x4xf32>
    %290 = vector.shape_cast %289 : vector<1x1x4xf32> to vector<1x4xf32>
    %291 = vector.shape_cast %288 : vector<1x4xf32> to vector<1x1x4xf32>
    tpu.vector_store %arg3[%c0_352, %c143_353, %c0_354], %291 {strides = array<i32>} : memref<1x332x4xf32, #tpu.memory_space<vmem>>, vector<1x1x4xf32>,
    %c0_355 = arith.constant 0 : index
    %c146 = arith.constant 146 : index
    %c0_356 = arith.constant 0 : index
    %292 = vector.load %arg3[%c0_355, %c146, %c0_356] : memref<1x332x4xf32, #tpu.memory_space<vmem>>, vector<1x1x4xf32>
    %293 = vector.shape_cast %292 : vector<1x1x4xf32> to vector<1x4xf32>
    %c0_357 = arith.constant 0 : index
    %c144_358 = arith.constant 144 : index
    %c0_359 = arith.constant 0 : index
    %294 = vector.load %arg3[%c0_357, %c144_358, %c0_359] : memref<1x332x4xf32, #tpu.memory_space<vmem>>, vector<1x1x4xf32>
    %295 = vector.shape_cast %294 : vector<1x1x4xf32> to vector<1x4xf32>
    %296 = vector.shape_cast %293 : vector<1x4xf32> to vector<1x1x4xf32>
    tpu.vector_store %arg3[%c0_357, %c144_358, %c0_359], %296 {strides = array<i32>} : memref<1x332x4xf32, #tpu.memory_space<vmem>>, vector<1x1x4xf32>,
    %c0_360 = arith.constant 0 : index
    %c159 = arith.constant 159 : index
    %c0_361 = arith.constant 0 : index
    %297 = vector.load %arg3[%c0_360, %c159, %c0_361] : memref<1x332x4xf32, #tpu.memory_space<vmem>>, vector<1x1x4xf32>
    %298 = vector.shape_cast %297 : vector<1x1x4xf32> to vector<1x4xf32>
    %c0_362 = arith.constant 0 : index
    %c161_363 = arith.constant 161 : index
    %c0_364 = arith.constant 0 : index
    %299 = vector.load %arg3[%c0_362, %c161_363, %c0_364] : memref<1x332x4xf32, #tpu.memory_space<vmem>>, vector<1x1x4xf32>
    %300 = vector.shape_cast %299 : vector<1x1x4xf32> to vector<1x4xf32>
    %301 = vector.shape_cast %298 : vector<1x4xf32> to vector<1x1x4xf32>
    tpu.vector_store %arg3[%c0_362, %c161_363, %c0_364], %301 {strides = array<i32>} : memref<1x332x4xf32, #tpu.memory_space<vmem>>, vector<1x1x4xf32>,
    %c0_365 = arith.constant 0 : index
    %c164 = arith.constant 164 : index
    %c0_366 = arith.constant 0 : index
    %302 = vector.load %arg3[%c0_365, %c164, %c0_366] : memref<1x332x4xf32, #tpu.memory_space<vmem>>, vector<1x1x4xf32>
    %303 = vector.shape_cast %302 : vector<1x1x4xf32> to vector<1x4xf32>
    %c0_367 = arith.constant 0 : index
    %c162_368 = arith.constant 162 : index
    %c0_369 = arith.constant 0 : index
    %304 = vector.load %arg3[%c0_367, %c162_368, %c0_369] : memref<1x332x4xf32, #tpu.memory_space<vmem>>, vector<1x1x4xf32>
    %305 = vector.shape_cast %304 : vector<1x1x4xf32> to vector<1x4xf32>
    %306 = vector.shape_cast %303 : vector<1x4xf32> to vector<1x1x4xf32>
    tpu.vector_store %arg3[%c0_367, %c162_368, %c0_369], %306 {strides = array<i32>} : memref<1x332x4xf32, #tpu.memory_space<vmem>>, vector<1x1x4xf32>,
    %c0_370 = arith.constant 0 : index
    %c177 = arith.constant 177 : index
    %c0_371 = arith.constant 0 : index
    %307 = vector.load %arg3[%c0_370, %c177, %c0_371] : memref<1x332x4xf32, #tpu.memory_space<vmem>>, vector<1x1x4xf32>
    %308 = vector.shape_cast %307 : vector<1x1x4xf32> to vector<1x4xf32>
    %c0_372 = arith.constant 0 : index
    %c179_373 = arith.constant 179 : index
    %c0_374 = arith.constant 0 : index
    %309 = vector.load %arg3[%c0_372, %c179_373, %c0_374] : memref<1x332x4xf32, #tpu.memory_space<vmem>>, vector<1x1x4xf32>
    %310 = vector.shape_cast %309 : vector<1x1x4xf32> to vector<1x4xf32>
    %311 = vector.shape_cast %308 : vector<1x4xf32> to vector<1x1x4xf32>
    tpu.vector_store %arg3[%c0_372, %c179_373, %c0_374], %311 {strides = array<i32>} : memref<1x332x4xf32, #tpu.memory_space<vmem>>, vector<1x1x4xf32>,
    %c0_375 = arith.constant 0 : index
    %c182 = arith.constant 182 : index
    %c0_376 = arith.constant 0 : index
    %312 = vector.load %arg3[%c0_375, %c182, %c0_376] : memref<1x332x4xf32, #tpu.memory_space<vmem>>, vector<1x1x4xf32>
    %313 = vector.shape_cast %312 : vector<1x1x4xf32> to vector<1x4xf32>
    %c0_377 = arith.constant 0 : index
    %c180_378 = arith.constant 180 : index
    %c0_379 = arith.constant 0 : index
    %314 = vector.load %arg3[%c0_377, %c180_378, %c0_379] : memref<1x332x4xf32, #tpu.memory_space<vmem>>, vector<1x1x4xf32>
    %315 = vector.shape_cast %314 : vector<1x1x4xf32> to vector<1x4xf32>
    %316 = vector.shape_cast %313 : vector<1x4xf32> to vector<1x1x4xf32>
    tpu.vector_store %arg3[%c0_377, %c180_378, %c0_379], %316 {strides = array<i32>} : memref<1x332x4xf32, #tpu.memory_space<vmem>>, vector<1x1x4xf32>,
    %c0_380 = arith.constant 0 : index
    %c195 = arith.constant 195 : index
    %c0_381 = arith.constant 0 : index
    %317 = vector.load %arg3[%c0_380, %c195, %c0_381] : memref<1x332x4xf32, #tpu.memory_space<vmem>>, vector<1x1x4xf32>
    %318 = vector.shape_cast %317 : vector<1x1x4xf32> to vector<1x4xf32>
    %c0_382 = arith.constant 0 : index
    %c197_383 = arith.constant 197 : index
    %c0_384 = arith.constant 0 : index
    %319 = vector.load %arg3[%c0_382, %c197_383, %c0_384] : memref<1x332x4xf32, #tpu.memory_space<vmem>>, vector<1x1x4xf32>
    %320 = vector.shape_cast %319 : vector<1x1x4xf32> to vector<1x4xf32>
    %321 = vector.shape_cast %318 : vector<1x4xf32> to vector<1x1x4xf32>
    tpu.vector_store %arg3[%c0_382, %c197_383, %c0_384], %321 {strides = array<i32>} : memref<1x332x4xf32, #tpu.memory_space<vmem>>, vector<1x1x4xf32>,
    %c0_385 = arith.constant 0 : index
    %c200 = arith.constant 200 : index
    %c0_386 = arith.constant 0 : index
    %322 = vector.load %arg3[%c0_385, %c200, %c0_386] : memref<1x332x4xf32, #tpu.memory_space<vmem>>, vector<1x1x4xf32>
    %323 = vector.shape_cast %322 : vector<1x1x4xf32> to vector<1x4xf32>
    %c0_387 = arith.constant 0 : index
    %c198_388 = arith.constant 198 : index
    %c0_389 = arith.constant 0 : index
    %324 = vector.load %arg3[%c0_387, %c198_388, %c0_389] : memref<1x332x4xf32, #tpu.memory_space<vmem>>, vector<1x1x4xf32>
    %325 = vector.shape_cast %324 : vector<1x1x4xf32> to vector<1x4xf32>
    %326 = vector.shape_cast %323 : vector<1x4xf32> to vector<1x1x4xf32>
    tpu.vector_store %arg3[%c0_387, %c198_388, %c0_389], %326 {strides = array<i32>} : memref<1x332x4xf32, #tpu.memory_space<vmem>>, vector<1x1x4xf32>,
    %c0_390 = arith.constant 0 : index
    %c213 = arith.constant 213 : index
    %c0_391 = arith.constant 0 : index
    %327 = vector.load %arg3[%c0_390, %c213, %c0_391] : memref<1x332x4xf32, #tpu.memory_space<vmem>>, vector<1x1x4xf32>
    %328 = vector.shape_cast %327 : vector<1x1x4xf32> to vector<1x4xf32>
    %c0_392 = arith.constant 0 : index
    %c215_393 = arith.constant 215 : index
    %c0_394 = arith.constant 0 : index
    %329 = vector.load %arg3[%c0_392, %c215_393, %c0_394] : memref<1x332x4xf32, #tpu.memory_space<vmem>>, vector<1x1x4xf32>
    %330 = vector.shape_cast %329 : vector<1x1x4xf32> to vector<1x4xf32>
    %331 = vector.shape_cast %328 : vector<1x4xf32> to vector<1x1x4xf32>
    tpu.vector_store %arg3[%c0_392, %c215_393, %c0_394], %331 {strides = array<i32>} : memref<1x332x4xf32, #tpu.memory_space<vmem>>, vector<1x1x4xf32>,
    %c0_395 = arith.constant 0 : index
    %c218 = arith.constant 218 : index
    %c0_396 = arith.constant 0 : index
    %332 = vector.load %arg3[%c0_395, %c218, %c0_396] : memref<1x332x4xf32, #tpu.memory_space<vmem>>, vector<1x1x4xf32>
    %333 = vector.shape_cast %332 : vector<1x1x4xf32> to vector<1x4xf32>
    %c0_397 = arith.constant 0 : index
    %c216_398 = arith.constant 216 : index
    %c0_399 = arith.constant 0 : index
    %334 = vector.load %arg3[%c0_397, %c216_398, %c0_399] : memref<1x332x4xf32, #tpu.memory_space<vmem>>, vector<1x1x4xf32>
    %335 = vector.shape_cast %334 : vector<1x1x4xf32> to vector<1x4xf32>
    %336 = vector.shape_cast %333 : vector<1x4xf32> to vector<1x1x4xf32>
    tpu.vector_store %arg3[%c0_397, %c216_398, %c0_399], %336 {strides = array<i32>} : memref<1x332x4xf32, #tpu.memory_space<vmem>>, vector<1x1x4xf32>,
    %c0_400 = arith.constant 0 : index
    %c231 = arith.constant 231 : index
    %c0_401 = arith.constant 0 : index
    %337 = vector.load %arg3[%c0_400, %c231, %c0_401] : memref<1x332x4xf32, #tpu.memory_space<vmem>>, vector<1x1x4xf32>
    %338 = vector.shape_cast %337 : vector<1x1x4xf32> to vector<1x4xf32>
    %c0_402 = arith.constant 0 : index
    %c233_403 = arith.constant 233 : index
    %c0_404 = arith.constant 0 : index
    %339 = vector.load %arg3[%c0_402, %c233_403, %c0_404] : memref<1x332x4xf32, #tpu.memory_space<vmem>>, vector<1x1x4xf32>
    %340 = vector.shape_cast %339 : vector<1x1x4xf32> to vector<1x4xf32>
    %341 = vector.shape_cast %338 : vector<1x4xf32> to vector<1x1x4xf32>
    tpu.vector_store %arg3[%c0_402, %c233_403, %c0_404], %341 {strides = array<i32>} : memref<1x332x4xf32, #tpu.memory_space<vmem>>, vector<1x1x4xf32>,
    %c0_405 = arith.constant 0 : index
    %c236 = arith.constant 236 : index
    %c0_406 = arith.constant 0 : index
    %342 = vector.load %arg3[%c0_405, %c236, %c0_406] : memref<1x332x4xf32, #tpu.memory_space<vmem>>, vector<1x1x4xf32>
    %343 = vector.shape_cast %342 : vector<1x1x4xf32> to vector<1x4xf32>
    %c0_407 = arith.constant 0 : index
    %c234_408 = arith.constant 234 : index
    %c0_409 = arith.constant 0 : index
    %344 = vector.load %arg3[%c0_407, %c234_408, %c0_409] : memref<1x332x4xf32, #tpu.memory_space<vmem>>, vector<1x1x4xf32>
    %345 = vector.shape_cast %344 : vector<1x1x4xf32> to vector<1x4xf32>
    %346 = vector.shape_cast %343 : vector<1x4xf32> to vector<1x1x4xf32>
    tpu.vector_store %arg3[%c0_407, %c234_408, %c0_409], %346 {strides = array<i32>} : memref<1x332x4xf32, #tpu.memory_space<vmem>>, vector<1x1x4xf32>,
    %c0_410 = arith.constant 0 : index
    %c249 = arith.constant 249 : index
    %c0_411 = arith.constant 0 : index
    %347 = vector.load %arg3[%c0_410, %c249, %c0_411] : memref<1x332x4xf32, #tpu.memory_space<vmem>>, vector<1x1x4xf32>
    %348 = vector.shape_cast %347 : vector<1x1x4xf32> to vector<1x4xf32>
    %c0_412 = arith.constant 0 : index
    %c251_413 = arith.constant 251 : index
    %c0_414 = arith.constant 0 : index
    %349 = vector.load %arg3[%c0_412, %c251_413, %c0_414] : memref<1x332x4xf32, #tpu.memory_space<vmem>>, vector<1x1x4xf32>
    %350 = vector.shape_cast %349 : vector<1x1x4xf32> to vector<1x4xf32>
    %351 = vector.shape_cast %348 : vector<1x4xf32> to vector<1x1x4xf32>
    tpu.vector_store %arg3[%c0_412, %c251_413, %c0_414], %351 {strides = array<i32>} : memref<1x332x4xf32, #tpu.memory_space<vmem>>, vector<1x1x4xf32>,
    %c0_415 = arith.constant 0 : index
    %c254 = arith.constant 254 : index
    %c0_416 = arith.constant 0 : index
    %352 = vector.load %arg3[%c0_415, %c254, %c0_416] : memref<1x332x4xf32, #tpu.memory_space<vmem>>, vector<1x1x4xf32>
    %353 = vector.shape_cast %352 : vector<1x1x4xf32> to vector<1x4xf32>
    %c0_417 = arith.constant 0 : index
    %c252_418 = arith.constant 252 : index
    %c0_419 = arith.constant 0 : index
    %354 = vector.load %arg3[%c0_417, %c252_418, %c0_419] : memref<1x332x4xf32, #tpu.memory_space<vmem>>, vector<1x1x4xf32>
    %355 = vector.shape_cast %354 : vector<1x1x4xf32> to vector<1x4xf32>
    %356 = vector.shape_cast %353 : vector<1x4xf32> to vector<1x1x4xf32>
    tpu.vector_store %arg3[%c0_417, %c252_418, %c0_419], %356 {strides = array<i32>} : memref<1x332x4xf32, #tpu.memory_space<vmem>>, vector<1x1x4xf32>,
    %c0_420 = arith.constant 0 : index
    %c267 = arith.constant 267 : index
    %c0_421 = arith.constant 0 : index
    %357 = vector.load %arg3[%c0_420, %c267, %c0_421] : memref<1x332x4xf32, #tpu.memory_space<vmem>>, vector<1x1x4xf32>
    %358 = vector.shape_cast %357 : vector<1x1x4xf32> to vector<1x4xf32>
    %c0_422 = arith.constant 0 : index
    %c269_423 = arith.constant 269 : index
    %c0_424 = arith.constant 0 : index
    %359 = vector.load %arg3[%c0_422, %c269_423, %c0_424] : memref<1x332x4xf32, #tpu.memory_space<vmem>>, vector<1x1x4xf32>
    %360 = vector.shape_cast %359 : vector<1x1x4xf32> to vector<1x4xf32>
    %361 = vector.shape_cast %358 : vector<1x4xf32> to vector<1x1x4xf32>
    tpu.vector_store %arg3[%c0_422, %c269_423, %c0_424], %361 {strides = array<i32>} : memref<1x332x4xf32, #tpu.memory_space<vmem>>, vector<1x1x4xf32>,
    %c0_425 = arith.constant 0 : index
    %c272 = arith.constant 272 : index
    %c0_426 = arith.constant 0 : index
    %362 = vector.load %arg3[%c0_425, %c272, %c0_426] : memref<1x332x4xf32, #tpu.memory_space<vmem>>, vector<1x1x4xf32>
    %363 = vector.shape_cast %362 : vector<1x1x4xf32> to vector<1x4xf32>
    %c0_427 = arith.constant 0 : index
    %c270_428 = arith.constant 270 : index
    %c0_429 = arith.constant 0 : index
    %364 = vector.load %arg3[%c0_427, %c270_428, %c0_429] : memref<1x332x4xf32, #tpu.memory_space<vmem>>, vector<1x1x4xf32>
    %365 = vector.shape_cast %364 : vector<1x1x4xf32> to vector<1x4xf32>
    %366 = vector.shape_cast %363 : vector<1x4xf32> to vector<1x1x4xf32>
    tpu.vector_store %arg3[%c0_427, %c270_428, %c0_429], %366 {strides = array<i32>} : memref<1x332x4xf32, #tpu.memory_space<vmem>>, vector<1x1x4xf32>,
    %c0_430 = arith.constant 0 : index
    %c285 = arith.constant 285 : index
    %c0_431 = arith.constant 0 : index
    %367 = vector.load %arg3[%c0_430, %c285, %c0_431] : memref<1x332x4xf32, #tpu.memory_space<vmem>>, vector<1x1x4xf32>
    %368 = vector.shape_cast %367 : vector<1x1x4xf32> to vector<1x4xf32>
    %c0_432 = arith.constant 0 : index
    %c287_433 = arith.constant 287 : index
    %c0_434 = arith.constant 0 : index
    %369 = vector.load %arg3[%c0_432, %c287_433, %c0_434] : memref<1x332x4xf32, #tpu.memory_space<vmem>>, vector<1x1x4xf32>
    %370 = vector.shape_cast %369 : vector<1x1x4xf32> to vector<1x4xf32>
    %371 = vector.shape_cast %368 : vector<1x4xf32> to vector<1x1x4xf32>
    tpu.vector_store %arg3[%c0_432, %c287_433, %c0_434], %371 {strides = array<i32>} : memref<1x332x4xf32, #tpu.memory_space<vmem>>, vector<1x1x4xf32>,
    %c0_435 = arith.constant 0 : index
    %c290 = arith.constant 290 : index
    %c0_436 = arith.constant 0 : index
    %372 = vector.load %arg3[%c0_435, %c290, %c0_436] : memref<1x332x4xf32, #tpu.memory_space<vmem>>, vector<1x1x4xf32>
    %373 = vector.shape_cast %372 : vector<1x1x4xf32> to vector<1x4xf32>
    %c0_437 = arith.constant 0 : index
    %c288_438 = arith.constant 288 : index
    %c0_439 = arith.constant 0 : index
    %374 = vector.load %arg3[%c0_437, %c288_438, %c0_439] : memref<1x332x4xf32, #tpu.memory_space<vmem>>, vector<1x1x4xf32>
    %375 = vector.shape_cast %374 : vector<1x1x4xf32> to vector<1x4xf32>
    %376 = vector.shape_cast %373 : vector<1x4xf32> to vector<1x1x4xf32>
    tpu.vector_store %arg3[%c0_437, %c288_438, %c0_439], %376 {strides = array<i32>} : memref<1x332x4xf32, #tpu.memory_space<vmem>>, vector<1x1x4xf32>,
    %c0_440 = arith.constant 0 : index
    %c303 = arith.constant 303 : index
    %c0_441 = arith.constant 0 : index
    %377 = vector.load %arg3[%c0_440, %c303, %c0_441] : memref<1x332x4xf32, #tpu.memory_space<vmem>>, vector<1x1x4xf32>
    %378 = vector.shape_cast %377 : vector<1x1x4xf32> to vector<1x4xf32>
    %c0_442 = arith.constant 0 : index
    %c305_443 = arith.constant 305 : index
    %c0_444 = arith.constant 0 : index
    %379 = vector.load %arg3[%c0_442, %c305_443, %c0_444] : memref<1x332x4xf32, #tpu.memory_space<vmem>>, vector<1x1x4xf32>
    %380 = vector.shape_cast %379 : vector<1x1x4xf32> to vector<1x4xf32>
    %381 = vector.shape_cast %378 : vector<1x4xf32> to vector<1x1x4xf32>
    tpu.vector_store %arg3[%c0_442, %c305_443, %c0_444], %381 {strides = array<i32>} : memref<1x332x4xf32, #tpu.memory_space<vmem>>, vector<1x1x4xf32>,
    %c0_445 = arith.constant 0 : index
    %c36_446 = arith.constant 36 : index
    %c0_447 = arith.constant 0 : index
    %382 = vector.load %arg3[%c0_445, %c36_446, %c0_447] : memref<1x332x4xf32, #tpu.memory_space<vmem>>, vector<1x18x4xf32>
    %383 = vector.shape_cast %382 : vector<1x18x4xf32> to vector<18x4xf32>
    %c0_448 = arith.constant 0 : index
    %c0_449 = arith.constant 0 : index
    %c0_450 = arith.constant 0 : index
    %384 = vector.load %arg3[%c0_448, %c0_449, %c0_450] : memref<1x332x4xf32, #tpu.memory_space<vmem>>, vector<1x18x4xf32>
    %385 = vector.shape_cast %384 : vector<1x18x4xf32> to vector<18x4xf32>
    %386 = vector.shape_cast %383 : vector<18x4xf32> to vector<1x18x4xf32>
    tpu.vector_store %arg3[%c0_448, %c0_449, %c0_450], %386 {strides = array<i32>} : memref<1x332x4xf32, #tpu.memory_space<vmem>>, vector<1x18x4xf32>,
    %c0_451 = arith.constant 0 : index
    %c270_452 = arith.constant 270 : index
    %c0_453 = arith.constant 0 : index
    %387 = vector.load %arg3[%c0_451, %c270_452, %c0_453] : memref<1x332x4xf32, #tpu.memory_space<vmem>>, vector<1x18x4xf32>
    %388 = vector.shape_cast %387 : vector<1x18x4xf32> to vector<18x4xf32>
    %c0_454 = arith.constant 0 : index
    %c306_455 = arith.constant 306 : index
    %c0_456 = arith.constant 0 : index
    %389 = vector.load %arg3[%c0_454, %c306_455, %c0_456] : memref<1x332x4xf32, #tpu.memory_space<vmem>>, vector<1x18x4xf32>
    %390 = vector.shape_cast %389 : vector<1x18x4xf32> to vector<18x4xf32>
    %391 = vector.shape_cast %388 : vector<18x4xf32> to vector<1x18x4xf32>
    tpu.vector_store %arg3[%c0_454, %c306_455, %c0_456], %391 {strides = array<i32>} : memref<1x332x4xf32, #tpu.memory_space<vmem>>, vector<1x18x4xf32>,
    %cst_457 = arith.constant 0.000000e+00 : f32
    %392 = vector.broadcast %cst_457 : f32 to vector<8x4xf32>
    %c0_458 = arith.constant 0 : index
    %c324_459 = arith.constant 324 : index
    %c0_460 = arith.constant 0 : index
    %393 = vector.load %arg3[%c0_458, %c324_459, %c0_460] : memref<1x332x4xf32, #tpu.memory_space<vmem>>, vector<1x8x4xf32>
    %394 = vector.shape_cast %393 : vector<1x8x4xf32> to vector<8x4xf32>
    %395 = vector.shape_cast %392 : vector<8x4xf32> to vector<1x8x4xf32>
    tpu.vector_store %arg3[%c0_458, %c324_459, %c0_460], %395 {strides = array<i32>} : memref<1x332x4xf32, #tpu.memory_space<vmem>>, vector<1x8x4xf32>,
    %c0_461 = arith.constant 0 : index
    %c0_462 = arith.constant 0 : index
    %c0_463 = arith.constant 0 : index
    %396 = vector.load %arg4[%c0_461, %c0_462, %c0_463] : memref<1x2x4xf32, #tpu.memory_space<vmem>>, vector<1x1x4xf32>
    %397 = vector.shape_cast %396 : vector<1x1x4xf32> to vector<1x4xf32>
    %398 = vector.shape_cast %214 : vector<1x4xf32> to vector<1x1x4xf32>
    tpu.vector_store %arg4[%c0_461, %c0_462, %c0_463], %398 {strides = array<i32>} : memref<1x2x4xf32, #tpu.memory_space<vmem>>, vector<1x1x4xf32>,
    %c0_464 = arith.constant 0 : index
    %c1_465 = arith.constant 1 : index
    %c0_466 = arith.constant 0 : index
    %399 = vector.load %arg4[%c0_464, %c1_465, %c0_466] : memref<1x2x4xf32, #tpu.memory_space<vmem>>, vector<1x1x4xf32>
    %400 = vector.shape_cast %399 : vector<1x1x4xf32> to vector<1x4xf32>
    %401 = vector.shape_cast %218 : vector<1x4xf32> to vector<1x1x4xf32>
    tpu.vector_store %arg4[%c0_464, %c1_465, %c0_466], %401 {strides = array<i32>} : memref<1x2x4xf32, #tpu.memory_space<vmem>>, vector<1x1x4xf32>,
    return
  }
  func.func @transform_0(%arg0: i32) -> (i32, i32, i32, i32) {
    %c0_i32 = arith.constant 0 : i32
    %c0_i32_0 = arith.constant 0 : i32
    %c0_i32_1 = arith.constant 0 : i32
    %c0_i32_2 = arith.constant 0 : i32
    return %arg0, %c0_i32, %c0_i32_0, %c0_i32_1 : i32, i32, i32, i32
  }
  func.func @transform_1(%arg0: i32) -> (i32, i32) {
    %c0_i32 = arith.constant 0 : i32
    %c0_i32_0 = arith.constant 0 : i32
    %c0_i32_1 = arith.constant 0 : i32
    return %c0_i32, %c0_i32_0 : i32, i32
  }
  func.func @transform_2(%arg0: i32) -> (i32, i32, i32) {
    %c0_i32 = arith.constant 0 : i32
    %c0_i32_0 = arith.constant 0 : i32
    %c0_i32_1 = arith.constant 0 : i32
    return %arg0, %c0_i32, %c0_i32_0 : i32, i32, i32
  }
  func.func @transform_3(%arg0: i32) -> (i32, i32, i32) {
    %c0_i32 = arith.constant 0 : i32
    %c0_i32_0 = arith.constant 0 : i32
    %c0_i32_1 = arith.constant 0 : i32
    return %arg0, %c0_i32, %c0_i32_0 : i32, i32, i32
  }
}

module attributes {stable_mosaic.version = 11 : i64} {
  func.func @bn2_residual_relu_kernel(%arg0: i32, %arg1: memref<1x16x16x4xf32, #tpu.memory_space<vmem>>, %arg2: memref<1x16x16x4xf32, #tpu.memory_space<vmem>>, %arg3: memref<2x4xf32, #tpu.memory_space<vmem>>, %arg4: memref<1x16x16x4xf32, #tpu.memory_space<vmem>>) attributes {dimension_semantics = [#tpu.dimension_semantics<parallel>], iteration_bounds = array<i64: 2>, scalar_prefetch = 0 : i64, scratch_operands = 0 : i64, tpu.core_type = #tpu.core_type<tc>, window_params = [{transform_indices = @transform_0, window_bounds = array<i64: 1, 16, 16, 4>}, {transform_indices = @transform_1, window_bounds = array<i64: 1, 16, 16, 4>}, {pipeline_mode = #tpu.pipeline_mode<synchronous>, transform_indices = @transform_2, window_bounds = array<i64: 2, 4>}, {transform_indices = @transform_3, window_bounds = array<i64: 1, 16, 16, 4>}]} {
    %c0 = arith.constant 0 : index
    %c0_0 = arith.constant 0 : index
    %0 = vector.load %arg3[%c0, %c0_0] : memref<2x4xf32, #tpu.memory_space<vmem>>, vector<1x4xf32>
    %1 = vector.shape_cast %0 : vector<1x4xf32> to vector<1x1x4xf32>
    %c1 = arith.constant 1 : index
    %c0_1 = arith.constant 0 : index
    %2 = vector.load %arg3[%c1, %c0_1] : memref<2x4xf32, #tpu.memory_space<vmem>>, vector<1x4xf32>
    %3 = vector.shape_cast %2 : vector<1x4xf32> to vector<1x1x4xf32>
    %c0_2 = arith.constant 0 : index
    %c0_3 = arith.constant 0 : index
    %c0_4 = arith.constant 0 : index
    %c0_5 = arith.constant 0 : index
    %4 = vector.load %arg2[%c0_2, %c0_3, %c0_4, %c0_5] : memref<1x16x16x4xf32, #tpu.memory_space<vmem>>, vector<1x16x16x4xf32>
    %5 = vector.shape_cast %4 : vector<1x16x16x4xf32> to vector<16x16x4xf32>
    %c0_6 = arith.constant 0 : index
    %c0_7 = arith.constant 0 : index
    %c0_8 = arith.constant 0 : index
    %c0_9 = arith.constant 0 : index
    %6 = vector.load %arg1[%c0_6, %c0_7, %c0_8, %c0_9] : memref<1x16x16x4xf32, #tpu.memory_space<vmem>>, vector<1x16x16x4xf32>
    %7 = vector.shape_cast %6 : vector<1x16x16x4xf32> to vector<16x16x4xf32>
    %8 = vector.broadcast %1 : vector<1x1x4xf32> to vector<16x16x4xf32>
    %9 = arith.mulf %7, %8 : vector<16x16x4xf32>
    %10 = arith.addf %5, %9 : vector<16x16x4xf32>
    %11 = vector.broadcast %3 : vector<1x1x4xf32> to vector<16x16x4xf32>
    %12 = arith.addf %10, %11 : vector<16x16x4xf32>
    %cst = arith.constant 0.000000e+00 : f32
    %13 = vector.broadcast %cst : f32 to vector<16x16x4xf32>
    %14 = arith.maximumf %12, %13 : vector<16x16x4xf32>
    %c0_10 = arith.constant 0 : index
    %c0_11 = arith.constant 0 : index
    %c0_12 = arith.constant 0 : index
    %c0_13 = arith.constant 0 : index
    %15 = vector.load %arg4[%c0_10, %c0_11, %c0_12, %c0_13] : memref<1x16x16x4xf32, #tpu.memory_space<vmem>>, vector<1x16x16x4xf32>
    %16 = vector.shape_cast %15 : vector<1x16x16x4xf32> to vector<16x16x4xf32>
    %17 = vector.shape_cast %14 : vector<16x16x4xf32> to vector<1x16x16x4xf32>
    tpu.vector_store %arg4[%c0_10, %c0_11, %c0_12, %c0_13], %17 {strides = array<i32>} : memref<1x16x16x4xf32, #tpu.memory_space<vmem>>, vector<1x16x16x4xf32>,
    return
  }
  func.func @transform_0(%arg0: i32) -> (i32, i32, i32, i32) {
    %c0_i32 = arith.constant 0 : i32
    %c0_i32_0 = arith.constant 0 : i32
    %c0_i32_1 = arith.constant 0 : i32
    %c0_i32_2 = arith.constant 0 : i32
    return %arg0, %c0_i32, %c0_i32_0, %c0_i32_1 : i32, i32, i32, i32
  }
  func.func @transform_1(%arg0: i32) -> (i32, i32, i32, i32) {
    %c0_i32 = arith.constant 0 : i32
    %c0_i32_0 = arith.constant 0 : i32
    %c0_i32_1 = arith.constant 0 : i32
    %c0_i32_2 = arith.constant 0 : i32
    return %arg0, %c0_i32, %c0_i32_0, %c0_i32_1 : i32, i32, i32, i32
  }
  func.func @transform_2(%arg0: i32) -> (i32, i32) {
    %c0_i32 = arith.constant 0 : i32
    %c0_i32_0 = arith.constant 0 : i32
    %c0_i32_1 = arith.constant 0 : i32
    return %c0_i32, %c0_i32_0 : i32, i32
  }
  func.func @transform_3(%arg0: i32) -> (i32, i32, i32, i32) {
    %c0_i32 = arith.constant 0 : i32
    %c0_i32_0 = arith.constant 0 : i32
    %c0_i32_1 = arith.constant 0 : i32
    %c0_i32_2 = arith.constant 0 : i32
    return %arg0, %c0_i32, %c0_i32_0, %c0_i32_1 : i32, i32, i32, i32
  }
}

module attributes {stable_mosaic.version = 11 : i64} {
  func.func @bn1_relu_conv2_kernel(%arg0: i32, %arg1: memref<1x332x4xf32, #tpu.memory_space<vmem>>, %arg2: memref<2x4xf32, #tpu.memory_space<vmem>>, %arg3: memref<36x4xf32, #tpu.memory_space<vmem>>, %arg4: memref<1x16x16x4xf32, #tpu.memory_space<vmem>>, %arg5: memref<1x2x4xf32, #tpu.memory_space<vmem>>, %arg6: memref<332x4xf32, #tpu.memory_space<vmem>>) attributes {dimension_semantics = [#tpu.dimension_semantics<parallel>], iteration_bounds = array<i64: 2>, scalar_prefetch = 0 : i64, scratch_operands = 1 : i64, tpu.core_type = #tpu.core_type<tc>, window_params = [{transform_indices = @transform_0, window_bounds = array<i64: 1, 332, 4>}, {pipeline_mode = #tpu.pipeline_mode<synchronous>, transform_indices = @transform_1, window_bounds = array<i64: 2, 4>}, {pipeline_mode = #tpu.pipeline_mode<synchronous>, transform_indices = @transform_2, window_bounds = array<i64: 36, 4>}, {transform_indices = @transform_3, window_bounds = array<i64: 1, 16, 16, 4>}, {transform_indices = @transform_4, window_bounds = array<i64: 1, 2, 4>}]} {
    %c0 = arith.constant 0 : index
    %c0_0 = arith.constant 0 : index
    %0 = vector.load %arg2[%c0, %c0_0] : memref<2x4xf32, #tpu.memory_space<vmem>>, vector<1x4xf32>
    %c1 = arith.constant 1 : index
    %c0_1 = arith.constant 0 : index
    %1 = vector.load %arg2[%c1, %c0_1] : memref<2x4xf32, #tpu.memory_space<vmem>>, vector<1x4xf32>
    %c0_2 = arith.constant 0 : index
    %c0_3 = arith.constant 0 : index
    %c0_4 = arith.constant 0 : index
    %2 = vector.load %arg1[%c0_2, %c0_3, %c0_4] : memref<1x332x4xf32, #tpu.memory_space<vmem>>, vector<1x332x4xf32>
    %3 = vector.shape_cast %2 : vector<1x332x4xf32> to vector<332x4xf32>
    %4 = vector.broadcast %0 : vector<1x4xf32> to vector<332x4xf32>
    %5 = arith.mulf %3, %4 : vector<332x4xf32>
    %6 = vector.broadcast %1 : vector<1x4xf32> to vector<332x4xf32>
    %7 = arith.addf %5, %6 : vector<332x4xf32>
    %cst = arith.constant 0.000000e+00 : f32
    %8 = vector.broadcast %cst : f32 to vector<332x4xf32>
    %9 = arith.maximumf %7, %8 : vector<332x4xf32>
    %c0_5 = arith.constant 0 : index
    %c0_6 = arith.constant 0 : index
    %10 = vector.load %arg6[%c0_5, %c0_6] : memref<332x4xf32, #tpu.memory_space<vmem>>, vector<332x4xf32>
    tpu.vector_store %arg6[%c0_5, %c0_6], %9 {strides = array<i32>} : memref<332x4xf32, #tpu.memory_space<vmem>>, vector<332x4xf32>,
    %cst_7 = arith.constant 0.000000e+00 : f32
    %11 = vector.broadcast %cst_7 : f32 to vector<8x4xf32>
    %c324 = arith.constant 324 : index
    %c0_8 = arith.constant 0 : index
    %12 = vector.load %arg6[%c324, %c0_8] : memref<332x4xf32, #tpu.memory_space<vmem>>, vector<8x4xf32>
    tpu.vector_store %arg6[%c324, %c0_8], %11 {strides = array<i32>} : memref<332x4xf32, #tpu.memory_space<vmem>>, vector<8x4xf32>,
    %cst_9 = arith.constant 0.000000e+00 : f32
    %13 = vector.broadcast %cst_9 : f32 to vector<1x4xf32>
    %cst_10 = arith.constant 0.000000e+00 : f32
    %14 = vector.broadcast %cst_10 : f32 to vector<1x4xf32>
    %cst_11 = arith.constant 0.000000e+00 : f32
    %15 = vector.broadcast %cst_11 : f32 to vector<288x4xf32>
    %c0_12 = arith.constant 0 : index
    %c0_13 = arith.constant 0 : index
    %16 = vector.load %arg6[%c0_12, %c0_13] : memref<332x4xf32, #tpu.memory_space<vmem>>, vector<288x4xf32>
    %c0_14 = arith.constant 0 : index
    %c0_15 = arith.constant 0 : index
    %17 = vector.load %arg3[%c0_14, %c0_15] : memref<36x4xf32, #tpu.memory_space<vmem>>, vector<4x4xf32>
    %cst_16 = arith.constant dense<0.000000e+00> : vector<288x4xf32>
    %18 = tpu.matmul %16, %17, %cst_16 {dimension_numbers = #tpu.dot_dimension_numbers<[1], [0], [0], [1], [0, 0, 1, 1], [], []>} : vector<288x4xf32>, vector<4x4xf32>, vector<288x4xf32> -> vector<288x4xf32>
    %19 = arith.addf %15, %18 : vector<288x4xf32>
    %c1_17 = arith.constant 1 : index
    %c0_18 = arith.constant 0 : index
    %20 = vector.load %arg6[%c1_17, %c0_18] : memref<332x4xf32, #tpu.memory_space<vmem>>, vector<288x4xf32>
    %c4 = arith.constant 4 : index
    %c0_19 = arith.constant 0 : index
    %21 = vector.load %arg3[%c4, %c0_19] : memref<36x4xf32, #tpu.memory_space<vmem>>, vector<4x4xf32>
    %cst_20 = arith.constant dense<0.000000e+00> : vector<288x4xf32>
    %22 = tpu.matmul %20, %21, %cst_20 {dimension_numbers = #tpu.dot_dimension_numbers<[1], [0], [0], [1], [0, 0, 1, 1], [], []>} : vector<288x4xf32>, vector<4x4xf32>, vector<288x4xf32> -> vector<288x4xf32>
    %23 = arith.addf %19, %22 : vector<288x4xf32>
    %c2 = arith.constant 2 : index
    %c0_21 = arith.constant 0 : index
    %24 = vector.load %arg6[%c2, %c0_21] : memref<332x4xf32, #tpu.memory_space<vmem>>, vector<288x4xf32>
    %c8 = arith.constant 8 : index
    %c0_22 = arith.constant 0 : index
    %25 = vector.load %arg3[%c8, %c0_22] : memref<36x4xf32, #tpu.memory_space<vmem>>, vector<4x4xf32>
    %cst_23 = arith.constant dense<0.000000e+00> : vector<288x4xf32>
    %26 = tpu.matmul %24, %25, %cst_23 {dimension_numbers = #tpu.dot_dimension_numbers<[1], [0], [0], [1], [0, 0, 1, 1], [], []>} : vector<288x4xf32>, vector<4x4xf32>, vector<288x4xf32> -> vector<288x4xf32>
    %27 = arith.addf %23, %26 : vector<288x4xf32>
    %c18 = arith.constant 18 : index
    %c0_24 = arith.constant 0 : index
    %28 = vector.load %arg6[%c18, %c0_24] : memref<332x4xf32, #tpu.memory_space<vmem>>, vector<288x4xf32>
    %c12 = arith.constant 12 : index
    %c0_25 = arith.constant 0 : index
    %29 = vector.load %arg3[%c12, %c0_25] : memref<36x4xf32, #tpu.memory_space<vmem>>, vector<4x4xf32>
    %cst_26 = arith.constant dense<0.000000e+00> : vector<288x4xf32>
    %30 = tpu.matmul %28, %29, %cst_26 {dimension_numbers = #tpu.dot_dimension_numbers<[1], [0], [0], [1], [0, 0, 1, 1], [], []>} : vector<288x4xf32>, vector<4x4xf32>, vector<288x4xf32> -> vector<288x4xf32>
    %31 = arith.addf %27, %30 : vector<288x4xf32>
    %c19 = arith.constant 19 : index
    %c0_27 = arith.constant 0 : index
    %32 = vector.load %arg6[%c19, %c0_27] : memref<332x4xf32, #tpu.memory_space<vmem>>, vector<288x4xf32>
    %c16 = arith.constant 16 : index
    %c0_28 = arith.constant 0 : index
    %33 = vector.load %arg3[%c16, %c0_28] : memref<36x4xf32, #tpu.memory_space<vmem>>, vector<4x4xf32>
    %cst_29 = arith.constant dense<0.000000e+00> : vector<288x4xf32>
    %34 = tpu.matmul %32, %33, %cst_29 {dimension_numbers = #tpu.dot_dimension_numbers<[1], [0], [0], [1], [0, 0, 1, 1], [], []>} : vector<288x4xf32>, vector<4x4xf32>, vector<288x4xf32> -> vector<288x4xf32>
    %35 = arith.addf %31, %34 : vector<288x4xf32>
    %c20 = arith.constant 20 : index
    %c0_30 = arith.constant 0 : index
    %36 = vector.load %arg6[%c20, %c0_30] : memref<332x4xf32, #tpu.memory_space<vmem>>, vector<288x4xf32>
    %c20_31 = arith.constant 20 : index
    %c0_32 = arith.constant 0 : index
    %37 = vector.load %arg3[%c20_31, %c0_32] : memref<36x4xf32, #tpu.memory_space<vmem>>, vector<4x4xf32>
    %cst_33 = arith.constant dense<0.000000e+00> : vector<288x4xf32>
    %38 = tpu.matmul %36, %37, %cst_33 {dimension_numbers = #tpu.dot_dimension_numbers<[1], [0], [0], [1], [0, 0, 1, 1], [], []>} : vector<288x4xf32>, vector<4x4xf32>, vector<288x4xf32> -> vector<288x4xf32>
    %39 = arith.addf %35, %38 : vector<288x4xf32>
    %c36 = arith.constant 36 : index
    %c0_34 = arith.constant 0 : index
    %40 = vector.load %arg6[%c36, %c0_34] : memref<332x4xf32, #tpu.memory_space<vmem>>, vector<288x4xf32>
    %c24 = arith.constant 24 : index
    %c0_35 = arith.constant 0 : index
    %41 = vector.load %arg3[%c24, %c0_35] : memref<36x4xf32, #tpu.memory_space<vmem>>, vector<4x4xf32>
    %cst_36 = arith.constant dense<0.000000e+00> : vector<288x4xf32>
    %42 = tpu.matmul %40, %41, %cst_36 {dimension_numbers = #tpu.dot_dimension_numbers<[1], [0], [0], [1], [0, 0, 1, 1], [], []>} : vector<288x4xf32>, vector<4x4xf32>, vector<288x4xf32> -> vector<288x4xf32>
    %43 = arith.addf %39, %42 : vector<288x4xf32>
    %c37 = arith.constant 37 : index
    %c0_37 = arith.constant 0 : index
    %44 = vector.load %arg6[%c37, %c0_37] : memref<332x4xf32, #tpu.memory_space<vmem>>, vector<288x4xf32>
    %c28 = arith.constant 28 : index
    %c0_38 = arith.constant 0 : index
    %45 = vector.load %arg3[%c28, %c0_38] : memref<36x4xf32, #tpu.memory_space<vmem>>, vector<4x4xf32>
    %cst_39 = arith.constant dense<0.000000e+00> : vector<288x4xf32>
    %46 = tpu.matmul %44, %45, %cst_39 {dimension_numbers = #tpu.dot_dimension_numbers<[1], [0], [0], [1], [0, 0, 1, 1], [], []>} : vector<288x4xf32>, vector<4x4xf32>, vector<288x4xf32> -> vector<288x4xf32>
    %47 = arith.addf %43, %46 : vector<288x4xf32>
    %c38 = arith.constant 38 : index
    %c0_40 = arith.constant 0 : index
    %48 = vector.load %arg6[%c38, %c0_40] : memref<332x4xf32, #tpu.memory_space<vmem>>, vector<288x4xf32>
    %c32 = arith.constant 32 : index
    %c0_41 = arith.constant 0 : index
    %49 = vector.load %arg3[%c32, %c0_41] : memref<36x4xf32, #tpu.memory_space<vmem>>, vector<4x4xf32>
    %cst_42 = arith.constant dense<0.000000e+00> : vector<288x4xf32>
    %50 = tpu.matmul %48, %49, %cst_42 {dimension_numbers = #tpu.dot_dimension_numbers<[1], [0], [0], [1], [0, 0, 1, 1], [], []>} : vector<288x4xf32>, vector<4x4xf32>, vector<288x4xf32> -> vector<288x4xf32>
    %51 = arith.addf %47, %50 : vector<288x4xf32>
    %52 = tpu.iota {dimensions = array<i32: 0>} : vector<288x1xi32>
    %c18_i32 = arith.constant 18 : i32
    %c0_i32 = arith.constant 0 : i32
    %53 = arith.cmpi eq, %c18_i32, %c0_i32 : i32
    %c1_i32 = arith.constant 1 : i32
    %54 = arith.select %53, %c1_i32, %c18_i32 : i32
    %55 = vector.broadcast %54 : i32 to vector<288x1xi32>
    %56 = arith.remsi %52, %55 : vector<288x1xi32>
    %c0_i32_43 = arith.constant 0 : i32
    %57 = vector.broadcast %c0_i32_43 : i32 to vector<288x1xi32>
    %58 = arith.cmpi ne, %56, %57 : vector<288x1xi32>
    %c0_i32_44 = arith.constant 0 : i32
    %59 = vector.broadcast %c0_i32_44 : i32 to vector<288x1xi32>
    %60 = arith.cmpi slt, %56, %59 : vector<288x1xi32>
    %c0_i32_45 = arith.constant 0 : i32
    %61 = arith.cmpi slt, %54, %c0_i32_45 : i32
    %62 = vector.broadcast %61 : i1 to vector<288x1xi1>
    %63 = vector.broadcast %62 : vector<288x1xi1> to vector<288x1xi1>
    %64 = arith.xori %60, %63 : vector<288x1xi1>
    %65 = arith.andi %64, %58 : vector<288x1xi1>
    %66 = vector.broadcast %54 : i32 to vector<288x1xi32>
    %67 = arith.addi %56, %66 : vector<288x1xi32>
    %68 = arith.select %65, %67, %56 : vector<288x1xi1>, vector<288x1xi32>
    %c16_i32 = arith.constant 16 : i32
    %69 = vector.broadcast %c16_i32 : i32 to vector<288x1xi32>
    %70 = arith.cmpi slt, %68, %69 : vector<288x1xi32>
    %cst_46 = arith.constant 0.000000e+00 : f32
    %71 = vector.shape_cast %70 : vector<288x1xi1> to vector<288x1xi1>
    %72 = vector.broadcast %71 : vector<288x1xi1> to vector<288x4xi1>
    %73 = vector.broadcast %cst_46 : f32 to vector<288x4xf32>
    %74 = arith.select %72, %51, %73 : vector<288x4xi1>, vector<288x4xf32>
    %cst_47 = arith.constant dense<0.000000e+00> : vector<4xf32>
    %75 = vector.multi_reduction <add>, %74, %cst_47 [0] : vector<288x4xf32> to vector<4xf32>
    %76 = vector.shape_cast %75 : vector<4xf32> to vector<1x4xf32>
    %77 = arith.addf %13, %76 : vector<1x4xf32>
    %78 = arith.mulf %74, %74 : vector<288x4xf32>
    %cst_48 = arith.constant dense<0.000000e+00> : vector<4xf32>
    %79 = vector.multi_reduction <add>, %78, %cst_48 [0] : vector<288x4xf32> to vector<4xf32>
    %80 = vector.shape_cast %79 : vector<4xf32> to vector<1x4xf32>
    %81 = arith.addf %14, %80 : vector<1x4xf32>
    %82 = vector.extract_strided_slice %51 {offsets = [0, 0], sizes = [16, 4], strides = [1, 1]} : vector<288x4xf32> to vector<16x4xf32>
    %c0_49 = arith.constant 0 : index
    %c0_50 = arith.constant 0 : index
    %c0_51 = arith.constant 0 : index
    %c0_52 = arith.constant 0 : index
    %83 = vector.load %arg4[%c0_49, %c0_50, %c0_51, %c0_52] : memref<1x16x16x4xf32, #tpu.memory_space<vmem>>, vector<1x1x16x4xf32>
    %84 = vector.shape_cast %83 : vector<1x1x16x4xf32> to vector<16x4xf32>
    %85 = vector.shape_cast %82 : vector<16x4xf32> to vector<1x1x16x4xf32>
    tpu.vector_store %arg4[%c0_49, %c0_50, %c0_51, %c0_52], %85 {strides = array<i32>} : memref<1x16x16x4xf32, #tpu.memory_space<vmem>>, vector<1x1x16x4xf32>,
    %86 = vector.extract_strided_slice %51 {offsets = [18, 0], sizes = [16, 4], strides = [1, 1]} : vector<288x4xf32> to vector<16x4xf32>
    %c0_53 = arith.constant 0 : index
    %c1_54 = arith.constant 1 : index
    %c0_55 = arith.constant 0 : index
    %c0_56 = arith.constant 0 : index
    %87 = vector.load %arg4[%c0_53, %c1_54, %c0_55, %c0_56] : memref<1x16x16x4xf32, #tpu.memory_space<vmem>>, vector<1x1x16x4xf32>
    %88 = vector.shape_cast %87 : vector<1x1x16x4xf32> to vector<16x4xf32>
    %89 = vector.shape_cast %86 : vector<16x4xf32> to vector<1x1x16x4xf32>
    tpu.vector_store %arg4[%c0_53, %c1_54, %c0_55, %c0_56], %89 {strides = array<i32>} : memref<1x16x16x4xf32, #tpu.memory_space<vmem>>, vector<1x1x16x4xf32>,
    %90 = vector.extract_strided_slice %51 {offsets = [36, 0], sizes = [16, 4], strides = [1, 1]} : vector<288x4xf32> to vector<16x4xf32>
    %c0_57 = arith.constant 0 : index
    %c2_58 = arith.constant 2 : index
    %c0_59 = arith.constant 0 : index
    %c0_60 = arith.constant 0 : index
    %91 = vector.load %arg4[%c0_57, %c2_58, %c0_59, %c0_60] : memref<1x16x16x4xf32, #tpu.memory_space<vmem>>, vector<1x1x16x4xf32>
    %92 = vector.shape_cast %91 : vector<1x1x16x4xf32> to vector<16x4xf32>
    %93 = vector.shape_cast %90 : vector<16x4xf32> to vector<1x1x16x4xf32>
    tpu.vector_store %arg4[%c0_57, %c2_58, %c0_59, %c0_60], %93 {strides = array<i32>} : memref<1x16x16x4xf32, #tpu.memory_space<vmem>>, vector<1x1x16x4xf32>,
    %94 = vector.extract_strided_slice %51 {offsets = [54, 0], sizes = [16, 4], strides = [1, 1]} : vector<288x4xf32> to vector<16x4xf32>
    %c0_61 = arith.constant 0 : index
    %c3 = arith.constant 3 : index
    %c0_62 = arith.constant 0 : index
    %c0_63 = arith.constant 0 : index
    %95 = vector.load %arg4[%c0_61, %c3, %c0_62, %c0_63] : memref<1x16x16x4xf32, #tpu.memory_space<vmem>>, vector<1x1x16x4xf32>
    %96 = vector.shape_cast %95 : vector<1x1x16x4xf32> to vector<16x4xf32>
    %97 = vector.shape_cast %94 : vector<16x4xf32> to vector<1x1x16x4xf32>
    tpu.vector_store %arg4[%c0_61, %c3, %c0_62, %c0_63], %97 {strides = array<i32>} : memref<1x16x16x4xf32, #tpu.memory_space<vmem>>, vector<1x1x16x4xf32>,
    %98 = vector.extract_strided_slice %51 {offsets = [72, 0], sizes = [16, 4], strides = [1, 1]} : vector<288x4xf32> to vector<16x4xf32>
    %c0_64 = arith.constant 0 : index
    %c4_65 = arith.constant 4 : index
    %c0_66 = arith.constant 0 : index
    %c0_67 = arith.constant 0 : index
    %99 = vector.load %arg4[%c0_64, %c4_65, %c0_66, %c0_67] : memref<1x16x16x4xf32, #tpu.memory_space<vmem>>, vector<1x1x16x4xf32>
    %100 = vector.shape_cast %99 : vector<1x1x16x4xf32> to vector<16x4xf32>
    %101 = vector.shape_cast %98 : vector<16x4xf32> to vector<1x1x16x4xf32>
    tpu.vector_store %arg4[%c0_64, %c4_65, %c0_66, %c0_67], %101 {strides = array<i32>} : memref<1x16x16x4xf32, #tpu.memory_space<vmem>>, vector<1x1x16x4xf32>,
    %102 = vector.extract_strided_slice %51 {offsets = [90, 0], sizes = [16, 4], strides = [1, 1]} : vector<288x4xf32> to vector<16x4xf32>
    %c0_68 = arith.constant 0 : index
    %c5 = arith.constant 5 : index
    %c0_69 = arith.constant 0 : index
    %c0_70 = arith.constant 0 : index
    %103 = vector.load %arg4[%c0_68, %c5, %c0_69, %c0_70] : memref<1x16x16x4xf32, #tpu.memory_space<vmem>>, vector<1x1x16x4xf32>
    %104 = vector.shape_cast %103 : vector<1x1x16x4xf32> to vector<16x4xf32>
    %105 = vector.shape_cast %102 : vector<16x4xf32> to vector<1x1x16x4xf32>
    tpu.vector_store %arg4[%c0_68, %c5, %c0_69, %c0_70], %105 {strides = array<i32>} : memref<1x16x16x4xf32, #tpu.memory_space<vmem>>, vector<1x1x16x4xf32>,
    %106 = vector.extract_strided_slice %51 {offsets = [108, 0], sizes = [16, 4], strides = [1, 1]} : vector<288x4xf32> to vector<16x4xf32>
    %c0_71 = arith.constant 0 : index
    %c6 = arith.constant 6 : index
    %c0_72 = arith.constant 0 : index
    %c0_73 = arith.constant 0 : index
    %107 = vector.load %arg4[%c0_71, %c6, %c0_72, %c0_73] : memref<1x16x16x4xf32, #tpu.memory_space<vmem>>, vector<1x1x16x4xf32>
    %108 = vector.shape_cast %107 : vector<1x1x16x4xf32> to vector<16x4xf32>
    %109 = vector.shape_cast %106 : vector<16x4xf32> to vector<1x1x16x4xf32>
    tpu.vector_store %arg4[%c0_71, %c6, %c0_72, %c0_73], %109 {strides = array<i32>} : memref<1x16x16x4xf32, #tpu.memory_space<vmem>>, vector<1x1x16x4xf32>,
    %110 = vector.extract_strided_slice %51 {offsets = [126, 0], sizes = [16, 4], strides = [1, 1]} : vector<288x4xf32> to vector<16x4xf32>
    %c0_74 = arith.constant 0 : index
    %c7 = arith.constant 7 : index
    %c0_75 = arith.constant 0 : index
    %c0_76 = arith.constant 0 : index
    %111 = vector.load %arg4[%c0_74, %c7, %c0_75, %c0_76] : memref<1x16x16x4xf32, #tpu.memory_space<vmem>>, vector<1x1x16x4xf32>
    %112 = vector.shape_cast %111 : vector<1x1x16x4xf32> to vector<16x4xf32>
    %113 = vector.shape_cast %110 : vector<16x4xf32> to vector<1x1x16x4xf32>
    tpu.vector_store %arg4[%c0_74, %c7, %c0_75, %c0_76], %113 {strides = array<i32>} : memref<1x16x16x4xf32, #tpu.memory_space<vmem>>, vector<1x1x16x4xf32>,
    %114 = vector.extract_strided_slice %51 {offsets = [144, 0], sizes = [16, 4], strides = [1, 1]} : vector<288x4xf32> to vector<16x4xf32>
    %c0_77 = arith.constant 0 : index
    %c8_78 = arith.constant 8 : index
    %c0_79 = arith.constant 0 : index
    %c0_80 = arith.constant 0 : index
    %115 = vector.load %arg4[%c0_77, %c8_78, %c0_79, %c0_80] : memref<1x16x16x4xf32, #tpu.memory_space<vmem>>, vector<1x1x16x4xf32>
    %116 = vector.shape_cast %115 : vector<1x1x16x4xf32> to vector<16x4xf32>
    %117 = vector.shape_cast %114 : vector<16x4xf32> to vector<1x1x16x4xf32>
    tpu.vector_store %arg4[%c0_77, %c8_78, %c0_79, %c0_80], %117 {strides = array<i32>} : memref<1x16x16x4xf32, #tpu.memory_space<vmem>>, vector<1x1x16x4xf32>,
    %118 = vector.extract_strided_slice %51 {offsets = [162, 0], sizes = [16, 4], strides = [1, 1]} : vector<288x4xf32> to vector<16x4xf32>
    %c0_81 = arith.constant 0 : index
    %c9 = arith.constant 9 : index
    %c0_82 = arith.constant 0 : index
    %c0_83 = arith.constant 0 : index
    %119 = vector.load %arg4[%c0_81, %c9, %c0_82, %c0_83] : memref<1x16x16x4xf32, #tpu.memory_space<vmem>>, vector<1x1x16x4xf32>
    %120 = vector.shape_cast %119 : vector<1x1x16x4xf32> to vector<16x4xf32>
    %121 = vector.shape_cast %118 : vector<16x4xf32> to vector<1x1x16x4xf32>
    tpu.vector_store %arg4[%c0_81, %c9, %c0_82, %c0_83], %121 {strides = array<i32>} : memref<1x16x16x4xf32, #tpu.memory_space<vmem>>, vector<1x1x16x4xf32>,
    %122 = vector.extract_strided_slice %51 {offsets = [180, 0], sizes = [16, 4], strides = [1, 1]} : vector<288x4xf32> to vector<16x4xf32>
    %c0_84 = arith.constant 0 : index
    %c10 = arith.constant 10 : index
    %c0_85 = arith.constant 0 : index
    %c0_86 = arith.constant 0 : index
    %123 = vector.load %arg4[%c0_84, %c10, %c0_85, %c0_86] : memref<1x16x16x4xf32, #tpu.memory_space<vmem>>, vector<1x1x16x4xf32>
    %124 = vector.shape_cast %123 : vector<1x1x16x4xf32> to vector<16x4xf32>
    %125 = vector.shape_cast %122 : vector<16x4xf32> to vector<1x1x16x4xf32>
    tpu.vector_store %arg4[%c0_84, %c10, %c0_85, %c0_86], %125 {strides = array<i32>} : memref<1x16x16x4xf32, #tpu.memory_space<vmem>>, vector<1x1x16x4xf32>,
    %126 = vector.extract_strided_slice %51 {offsets = [198, 0], sizes = [16, 4], strides = [1, 1]} : vector<288x4xf32> to vector<16x4xf32>
    %c0_87 = arith.constant 0 : index
    %c11 = arith.constant 11 : index
    %c0_88 = arith.constant 0 : index
    %c0_89 = arith.constant 0 : index
    %127 = vector.load %arg4[%c0_87, %c11, %c0_88, %c0_89] : memref<1x16x16x4xf32, #tpu.memory_space<vmem>>, vector<1x1x16x4xf32>
    %128 = vector.shape_cast %127 : vector<1x1x16x4xf32> to vector<16x4xf32>
    %129 = vector.shape_cast %126 : vector<16x4xf32> to vector<1x1x16x4xf32>
    tpu.vector_store %arg4[%c0_87, %c11, %c0_88, %c0_89], %129 {strides = array<i32>} : memref<1x16x16x4xf32, #tpu.memory_space<vmem>>, vector<1x1x16x4xf32>,
    %130 = vector.extract_strided_slice %51 {offsets = [216, 0], sizes = [16, 4], strides = [1, 1]} : vector<288x4xf32> to vector<16x4xf32>
    %c0_90 = arith.constant 0 : index
    %c12_91 = arith.constant 12 : index
    %c0_92 = arith.constant 0 : index
    %c0_93 = arith.constant 0 : index
    %131 = vector.load %arg4[%c0_90, %c12_91, %c0_92, %c0_93] : memref<1x16x16x4xf32, #tpu.memory_space<vmem>>, vector<1x1x16x4xf32>
    %132 = vector.shape_cast %131 : vector<1x1x16x4xf32> to vector<16x4xf32>
    %133 = vector.shape_cast %130 : vector<16x4xf32> to vector<1x1x16x4xf32>
    tpu.vector_store %arg4[%c0_90, %c12_91, %c0_92, %c0_93], %133 {strides = array<i32>} : memref<1x16x16x4xf32, #tpu.memory_space<vmem>>, vector<1x1x16x4xf32>,
    %134 = vector.extract_strided_slice %51 {offsets = [234, 0], sizes = [16, 4], strides = [1, 1]} : vector<288x4xf32> to vector<16x4xf32>
    %c0_94 = arith.constant 0 : index
    %c13 = arith.constant 13 : index
    %c0_95 = arith.constant 0 : index
    %c0_96 = arith.constant 0 : index
    %135 = vector.load %arg4[%c0_94, %c13, %c0_95, %c0_96] : memref<1x16x16x4xf32, #tpu.memory_space<vmem>>, vector<1x1x16x4xf32>
    %136 = vector.shape_cast %135 : vector<1x1x16x4xf32> to vector<16x4xf32>
    %137 = vector.shape_cast %134 : vector<16x4xf32> to vector<1x1x16x4xf32>
    tpu.vector_store %arg4[%c0_94, %c13, %c0_95, %c0_96], %137 {strides = array<i32>} : memref<1x16x16x4xf32, #tpu.memory_space<vmem>>, vector<1x1x16x4xf32>,
    %138 = vector.extract_strided_slice %51 {offsets = [252, 0], sizes = [16, 4], strides = [1, 1]} : vector<288x4xf32> to vector<16x4xf32>
    %c0_97 = arith.constant 0 : index
    %c14 = arith.constant 14 : index
    %c0_98 = arith.constant 0 : index
    %c0_99 = arith.constant 0 : index
    %139 = vector.load %arg4[%c0_97, %c14, %c0_98, %c0_99] : memref<1x16x16x4xf32, #tpu.memory_space<vmem>>, vector<1x1x16x4xf32>
    %140 = vector.shape_cast %139 : vector<1x1x16x4xf32> to vector<16x4xf32>
    %141 = vector.shape_cast %138 : vector<16x4xf32> to vector<1x1x16x4xf32>
    tpu.vector_store %arg4[%c0_97, %c14, %c0_98, %c0_99], %141 {strides = array<i32>} : memref<1x16x16x4xf32, #tpu.memory_space<vmem>>, vector<1x1x16x4xf32>,
    %142 = vector.extract_strided_slice %51 {offsets = [270, 0], sizes = [16, 4], strides = [1, 1]} : vector<288x4xf32> to vector<16x4xf32>
    %c0_100 = arith.constant 0 : index
    %c15 = arith.constant 15 : index
    %c0_101 = arith.constant 0 : index
    %c0_102 = arith.constant 0 : index
    %143 = vector.load %arg4[%c0_100, %c15, %c0_101, %c0_102] : memref<1x16x16x4xf32, #tpu.memory_space<vmem>>, vector<1x1x16x4xf32>
    %144 = vector.shape_cast %143 : vector<1x1x16x4xf32> to vector<16x4xf32>
    %145 = vector.shape_cast %142 : vector<16x4xf32> to vector<1x1x16x4xf32>
    tpu.vector_store %arg4[%c0_100, %c15, %c0_101, %c0_102], %145 {strides = array<i32>} : memref<1x16x16x4xf32, #tpu.memory_space<vmem>>, vector<1x1x16x4xf32>,
    %c0_103 = arith.constant 0 : index
    %c0_104 = arith.constant 0 : index
    %c0_105 = arith.constant 0 : index
    %146 = vector.load %arg5[%c0_103, %c0_104, %c0_105] : memref<1x2x4xf32, #tpu.memory_space<vmem>>, vector<1x1x4xf32>
    %147 = vector.shape_cast %146 : vector<1x1x4xf32> to vector<1x4xf32>
    %148 = vector.shape_cast %77 : vector<1x4xf32> to vector<1x1x4xf32>
    tpu.vector_store %arg5[%c0_103, %c0_104, %c0_105], %148 {strides = array<i32>} : memref<1x2x4xf32, #tpu.memory_space<vmem>>, vector<1x1x4xf32>,
    %c0_106 = arith.constant 0 : index
    %c1_107 = arith.constant 1 : index
    %c0_108 = arith.constant 0 : index
    %149 = vector.load %arg5[%c0_106, %c1_107, %c0_108] : memref<1x2x4xf32, #tpu.memory_space<vmem>>, vector<1x1x4xf32>
    %150 = vector.shape_cast %149 : vector<1x1x4xf32> to vector<1x4xf32>
    %151 = vector.shape_cast %81 : vector<1x4xf32> to vector<1x1x4xf32>
    tpu.vector_store %arg5[%c0_106, %c1_107, %c0_108], %151 {strides = array<i32>} : memref<1x2x4xf32, #tpu.memory_space<vmem>>, vector<1x1x4xf32>,
    return
  }
  func.func @transform_0(%arg0: i32) -> (i32, i32, i32) {
    %c0_i32 = arith.constant 0 : i32
    %c0_i32_0 = arith.constant 0 : i32
    %c0_i32_1 = arith.constant 0 : i32
    return %arg0, %c0_i32, %c0_i32_0 : i32, i32, i32
  }
  func.func @transform_1(%arg0: i32) -> (i32, i32) {
    %c0_i32 = arith.constant 0 : i32
    %c0_i32_0 = arith.constant 0 : i32
    %c0_i32_1 = arith.constant 0 : i32
    return %c0_i32, %c0_i32_0 : i32, i32
  }
  func.func @transform_2(%arg0: i32) -> (i32, i32) {
    %c0_i32 = arith.constant 0 : i32
    %c0_i32_0 = arith.constant 0 : i32
    %c0_i32_1 = arith.constant 0 : i32
    return %c0_i32, %c0_i32_0 : i32, i32
  }
  func.func @transform_3(%arg0: i32) -> (i32, i32, i32, i32) {
    %c0_i32 = arith.constant 0 : i32
    %c0_i32_0 = arith.constant 0 : i32
    %c0_i32_1 = arith.constant 0 : i32
    %c0_i32_2 = arith.constant 0 : i32
    return %arg0, %c0_i32, %c0_i32_0, %c0_i32_1 : i32, i32, i32, i32
  }
  func.func @transform_4(%arg0: i32) -> (i32, i32, i32) {
    %c0_i32 = arith.constant 0 : i32
    %c0_i32_0 = arith.constant 0 : i32
    %c0_i32_1 = arith.constant 0 : i32
    return %arg0, %c0_i32, %c0_i32_0 : i32, i32, i32
  }
}

</mosaic_0001>

<bundles_post_ra>
// kernel: resnet_block_forward.5
= control target key start
LH: loop header
LB: loop body
LE: loop exit
PB: predicated region body
PF: predicated region fallthrough
CT: control target
= control target key end

     0   :  { %s547_s12 = smov 0   ;;  %s780_s0 = inlined_call_operand.vmem [shape: f32[2,16,16,4], index: 0, kind: input, shape index: {}]   ;;  %s781_s1 = inlined_call_operand.vmem [shape: f32[2,16,16,4], index: 1, kind: input, shape index: {}]   ;;  %s782_s2 = inlined_call_operand.vmem [shape: f32[2,4], index: 2, kind: input, shape index: {}]   ;;  %s783_s3 = inlined_call_operand.vmem [shape: f32[2,16,16,4], index: 3, kind: output, shape index: {}]  }
   0x1 LB: > { %s493_s13 = sadd.s32 4294967295, %s525_s12   ;;  %p497_p0 = scmp.ge.s32.totalorder %s525_s12, 1  ;;  %s525_s12 = sphi %s547_s12, %s13_s12  }
   0x2   : > { %p147_p1 = scmp.lt.s32.totalorder %s525_s12, 3 }
   0x4   : > { %p148_p2 = pnand %p497_p0, %p147_p1 }
   0x5   : > { %p176_p3 = scmp.lt.s32.totalorder (!%p148_p2), %s493_s13, 1  ;;  %v560_v0 = vld [vmem:[%s782_s2] ss:$0 sm:$0xff] (!%p148_p2)  ;;  %v577_v1 = vld [vmem:[%s782_s2 + $0x1] ss:$0 sm:$0xff] (!%p148_p2)  ;;  %vm393_vm0 = vcmask (!%p148_p2), 31744  }
   0x6   : > { %151 = sbr.rel (%p148_p2) target bundleno = 56 (0x38), region = 32 }
   0xd   : > { %s785_s13 = smov (!%p176_p3, %s493_s13), 1 }
   0xe   : > { %s555_s14 = sshll.u32 %s785_s13, 8 }
   0xf   : > { %s566_s19 = scalar_lea.vmem %s780_s0, %s555_s14  ;;  %s572_s22 = scalar_lea.vmem %s781_s1, %s555_s14 }
  0x10   : > { %v193_v2 = vld [vmem:[%s572_s22] sm:$0xff]  ;;  %v194_v4 = vld [vmem:[%s572_s22 + $0x8] sm:$0xff]  ;;  %v195_v7 = vld [vmem:[%s572_s22 + $0x10] sm:$0xff]  ;;  %s606_s27 = scalar_lea.vmem %s783_s3, %s555_s14 }
  0x11   : > { %v225_v3 = vld [vmem:[%s566_s19] sm:$0xff]  ;;  %v226_v6 = vld [vmem:[%s566_s19 + $0x8] sm:$0xff]  ;;  %v227_v8 = vld [vmem:[%s566_s19 + $0x10] sm:$0xff] }
  0x12   : > { %v261_v5 = vmul.f32 %v560_v0, %v225_v3  ;;  %v262_v9 = vmul.f32 %v560_v0, %v226_v6  ;;  %v263_v10 = vmul.f32 %v560_v0, %v227_v8  ;;  %v196_v11 = vld [vmem:[%s572_s22 + $0x18] sm:$0xff]  ;;  %v197_v13 = vld [vmem:[%s572_s22 + $0x20] sm:$0xff]  ;;  %v198_v17 = vld [vmem:[%s572_s22 + $0x28] sm:$0xff] }
  0x13   : > { %v228_v12 = vld [vmem:[%s566_s19 + $0x18] sm:$0xff]  ;;  %v229_v16 = vld [vmem:[%s566_s19 + $0x20] sm:$0xff]  ;;  %v230_v18 = vld [vmem:[%s566_s19 + $0x28] sm:$0xff] }
  0x14   : > { %v293_v14 = vadd.f32 %v261_v5, %v193_v2  ;;  %v264_v15 = vmul.f32 %v560_v0, %v228_v12  ;;  %v294_v19 = vadd.f32 %v262_v9, %v194_v4  ;;  %v295_v20 = vadd.f32 %v263_v10, %v195_v7  ;;  %v199_v23 = vld [vmem:[%s572_s22 + $0x30] sm:$0xff]  ;;  %v232_v28 = vld [vmem:[%s566_s19 + $0x38] sm:$0xff]  ;;  %v233_v34 = vld [vmem:[%s566_s19 + $0x40] sm:$0xff] }
  0x15   : > { %v265_v21 = vmul.f32 %v560_v0, %v229_v16  ;;  %v266_v22 = vmul.f32 %v560_v0, %v230_v18  ;;  %v231_v24 = vld [vmem:[%s566_s19 + $0x30] sm:$0xff]  ;;  %v200_v33 = vld [vmem:[%s572_s22 + $0x38] sm:$0xff]  ;;  %v268_v38 = vmul.f32 %v560_v0, %v232_v28  ;;  %v234_v39 = vld [vmem:[%s566_s19 + $0x48] sm:$0xff]  ;;  %v269_v51 = vmul.f32 %v560_v0, %v233_v34 }
  0x16   : > { %v329_v25 = vadd.f32 %v577_v1, %v293_v14  ;;  %v296_v26 = vadd.f32 %v264_v15, %v196_v11  ;;  %v267_v27 = vmul.f32 %v560_v0, %v231_v24  ;;  %v330_v29 = vadd.f32 %v577_v1, %v294_v19  ;;  %v235_v40 = vld [vmem:[%s566_s19 + $0x50] sm:$0xff]  ;;  %v201_v45 = vld [vmem:[%s572_s22 + $0x40] sm:$0xff]  ;;  %v202_v46 = vld [vmem:[%s572_s22 + $0x48] sm:$0xff] }
  0x17   : > { %v331_v30 = vadd.f32 %v577_v1, %v295_v20  ;;  %v297_v31 = vadd.f32 %v265_v21, %v197_v13  ;;  %v298_v32 = vadd.f32 %v266_v22, %v198_v17  ;;  %v236_v47 = vld [vmem:[%s566_s19 + $0x58] sm:$0xff]  ;;  %v300_v50 = vadd.f32 %v268_v38, %v200_v33  ;;  %v203_v52 = vld [vmem:[%s572_s22 + $0x50] sm:$0xff]  ;;  %v237_v53 = vld [vmem:[%s566_s19 + $0x60] sm:$0xff] }
  0x18   : > { %v361_v35 = vmax.f32 %v329_v25, 0.0  ;;  %v332_v36 = vadd.f32 %v577_v1, %v296_v26  ;;  %v299_v37 = vadd.f32 %v267_v27, %v199_v23  ;;  %v362_v41 = vmax.f32 %v330_v29, 0.0  ;;  %v238_v54 = vld [vmem:[%s566_s19 + $0x68] sm:$0xff]  ;;  %v204_v59 = vld [vmem:[%s572_s22 + $0x58] sm:$0xff]  ;;  %v239_v60 = vld [vmem:[%s566_s19 + $0x70] sm:$0xff] }
  0x19   : > { %v363_v42 = vmax.f32 %v331_v30, 0.0  ;;  %v333_v43 = vadd.f32 %v577_v1, %v297_v31  ;;  %v334_v44 = vadd.f32 %v577_v1, %v298_v32  ;;  %v270_v57 = vmul.f32 %v560_v0, %v234_v39  ;;  %v205_v3 = vld [vmem:[%s572_s22 + $0x60] sm:$0xff]  ;;  %v206_v4 = vld [vmem:[%s572_s22 + $0x68] sm:$0xff]  ;;  %v207_v9 = vld [vmem:[%s572_s22 + $0x70] sm:$0xff] }
  0x1a   : > { %394 = vst.msk [vmem:[%s606_s27] sm:$0xff] %vm393_vm0, %v361_v35  ;;  %v364_v48 = vmax.f32 %v332_v36, 0.0  ;;  %v335_v49 = vadd.f32 %v577_v1, %v299_v37  ;;  %395 = vst.msk [vmem:[%s606_s27 + $0x8] sm:$0xff] %vm393_vm0, %v362_v41  ;;  %v271_v58 = vmul.f32 %v560_v0, %v235_v40  ;;  %v336_v62 = vadd.f32 %v577_v1, %v300_v50  ;;  %v240_v10 = vld [vmem:[%s566_s19 + $0x78] sm:$0xff]  ;;  %v241_v20 = vld [vmem:[%s566_s19 + $0x80] sm:$0xff] }
  0x1b   : > { %396 = vst.msk [vmem:[%s606_s27 + $0x10] sm:$0xff] %vm393_vm0, %v363_v42  ;;  %v365_v55 = vmax.f32 %v333_v43, 0.0  ;;  %v366_v56 = vmax.f32 %v334_v44, 0.0  ;;  %v301_v63 = vadd.f32 %v269_v51, %v201_v45  ;;  %v272_v2 = vmul.f32 %v560_v0, %v236_v47  ;;  %v208_v19 = vld [vmem:[%s572_s22 + $0x78] sm:$0xff]  ;;  %v242_v25 = vld [vmem:[%s566_s19 + $0x88] sm:$0xff]  ;;  %v243_v26 = vld [vmem:[%s566_s19 + $0x90] sm:$0xff] }
  0x1c   : > { %397 = vst.msk [vmem:[%s606_s27 + $0x18] sm:$0xff] %vm393_vm0, %v364_v48  ;;  %v367_v61 = vmax.f32 %v335_v49, 0.0  ;;  %v302_v5 = vadd.f32 %v270_v57, %v202_v46  ;;  %v303_v6 = vadd.f32 %v271_v58, %v203_v52  ;;  %v273_v7 = vmul.f32 %v560_v0, %v237_v53  ;;  %v209_v31 = vld [vmem:[%s572_s22 + $0x80] sm:$0xff]  ;;  %v210_v32 = vld [vmem:[%s572_s22 + $0x88] sm:$0xff]  ;;  %v244_v33 = vld [vmem:[%s566_s19 + $0x98] sm:$0xff] }
  0x1d   : > { %398 = vst.msk [vmem:[%s606_s27 + $0x20] sm:$0xff] %vm393_vm0, %v365_v55  ;;  %399 = vst.msk [vmem:[%s606_s27 + $0x28] sm:$0xff] %vm393_vm0, %v366_v56  ;;  %v274_v8 = vmul.f32 %v560_v0, %v238_v54  ;;  %v368_v11 = vmax.f32 %v336_v62, 0.0  ;;  %v337_v12 = vadd.f32 %v577_v1, %v301_v63  ;;  %v304_v13 = vadd.f32 %v272_v2, %v204_v59  ;;  %v211_v38 = vld [vmem:[%s572_s22 + $0x90] sm:$0xff]  ;;  %v245_v39 = vld [vmem:[%s566_s19 + $0xa0] sm:$0xff] }
  0x1e   : > { %400 = vst.msk [vmem:[%s606_s27 + $0x30] sm:$0xff] %vm393_vm0, %v367_v61  ;;  %v275_v14 = vmul.f32 %v560_v0, %v239_v60  ;;  %v338_v15 = vadd.f32 %v577_v1, %v302_v5  ;;  %v339_v16 = vadd.f32 %v577_v1, %v303_v6  ;;  %v305_v17 = vadd.f32 %v273_v7, %v205_v3  ;;  %v246_v40 = vld [vmem:[%s566_s19 + $0xa8] sm:$0xff]  ;;  %v212_v45 = vld [vmem:[%s572_s22 + $0x98] sm:$0xff]  ;;  %v247_v46 = vld [vmem:[%s566_s19 + $0xb0] sm:$0xff] }
  0x1f   : > { %v306_v18 = vadd.f32 %v274_v8, %v206_v4  ;;  %401 = vst.msk [vmem:[%s606_s27 + $0x38] sm:$0xff] %vm393_vm0, %v368_v11  ;;  %v369_v21 = vmax.f32 %v337_v12, 0.0  ;;  %v340_v22 = vadd.f32 %v577_v1, %v304_v13  ;;  %v276_v24 = vmul.f32 %v560_v0, %v240_v10  ;;  %v213_v51 = vld [vmem:[%s572_s22 + $0xa0] sm:$0xff]  ;;  %v214_v52 = vld [vmem:[%s572_s22 + $0xa8] sm:$0xff]  ;;  %v215_v57 = vld [vmem:[%s572_s22 + $0xb0] sm:$0xff] }
  0x20   : > { %v307_v23 = vadd.f32 %v275_v14, %v207_v9  ;;  %v370_v27 = vmax.f32 %v338_v15, 0.0  ;;  %v371_v28 = vmax.f32 %v339_v16, 0.0  ;;  %v341_v29 = vadd.f32 %v577_v1, %v305_v17  ;;  %v248_v58 = vld [vmem:[%s566_s19 + $0xb8] sm:$0xff]  ;;  %v249_v6 = vld [vmem:[%s566_s19 + $0xc0] sm:$0xff]  ;;  %v250_v11 = vld [vmem:[%s566_s19 + $0xc8] sm:$0xff] }
  0x21   : > { %v342_v30 = vadd.f32 %v577_v1, %v306_v18  ;;  %402 = vst.msk [vmem:[%s606_s27 + $0x40] sm:$0xff] %vm393_vm0, %v369_v21  ;;  %v372_v34 = vmax.f32 %v340_v22, 0.0  ;;  %v308_v36 = vadd.f32 %v276_v24, %v208_v19  ;;  %v277_v37 = vmul.f32 %v560_v0, %v241_v20  ;;  %v216_v5 = vld [vmem:[%s572_s22 + $0xb8] sm:$0xff]  ;;  %v251_v12 = vld [vmem:[%s566_s19 + $0xd0] sm:$0xff]  ;;  %v217_v17 = vld [vmem:[%s572_s22 + $0xc0] sm:$0xff] }
  0x22   : > { %v343_v35 = vadd.f32 %v577_v1, %v307_v23  ;;  %403 = vst.msk [vmem:[%s606_s27 + $0x48] sm:$0xff] %vm393_vm0, %v370_v27  ;;  %404 = vst.msk [vmem:[%s606_s27 + $0x50] sm:$0xff] %vm393_vm0, %v371_v28  ;;  %v373_v41 = vmax.f32 %v341_v29, 0.0  ;;  %v278_v43 = vmul.f32 %v560_v0, %v242_v25  ;;  %v279_v44 = vmul.f32 %v560_v0, %v243_v26  ;;  %v218_v18 = vld [vmem:[%s572_s22 + $0xc8] sm:$0xff]  ;;  %v252_v19 = vld [vmem:[%s566_s19 + $0xd8] sm:$0xff] }
  0x23   : > { %v374_v42 = vmax.f32 %v342_v30, 0.0  ;;  %405 = vst.msk [vmem:[%s606_s27 + $0x58] sm:$0xff] %vm393_vm0, %v372_v34  ;;  %v344_v48 = vadd.f32 %v577_v1, %v308_v36  ;;  %v309_v49 = vadd.f32 %v277_v37, %v209_v31  ;;  %v280_v50 = vmul.f32 %v560_v0, %v244_v33  ;;  %v219_v24 = vld [vmem:[%s572_s22 + $0xd0] sm:$0xff]  ;;  %v253_v25 = vld [vmem:[%s566_s19 + $0xe0] sm:$0xff]  ;;  %v254_v26 = vld [vmem:[%s566_s19 + $0xe8] sm:$0xff] }
  0x24   : > { %v375_v47 = vmax.f32 %v343_v35, 0.0  ;;  %406 = vst.msk [vmem:[%s606_s27 + $0x60] sm:$0xff] %vm393_vm0, %v373_v41  ;;  %v310_v53 = vadd.f32 %v278_v43, %v210_v32  ;;  %v311_v54 = vadd.f32 %v279_v44, %v211_v38  ;;  %v281_v55 = vmul.f32 %v560_v0, %v245_v39  ;;  %v220_v31 = vld [vmem:[%s572_s22 + $0xd8] sm:$0xff]  ;;  %v255_v32 = vld [vmem:[%s566_s19 + $0xf0] sm:$0xff]  ;;  %v221_v37 = vld [vmem:[%s572_s22 + $0xe0] sm:$0xff] }
  0x25   : > { %407 = vst.msk [vmem:[%s606_s27 + $0x68] sm:$0xff] %vm393_vm0, %v374_v42  ;;  %v282_v56 = vmul.f32 %v560_v0, %v246_v40  ;;  %v376_v59 = vmax.f32 %v344_v48, 0.0  ;;  %v345_v60 = vadd.f32 %v577_v1, %v309_v49  ;;  %v312_v61 = vadd.f32 %v280_v50, %v212_v45  ;;  %v222_v38 = vld [vmem:[%s572_s22 + $0xe8] sm:$0xff]  ;;  %v223_v43 = vld [vmem:[%s572_s22 + $0xf0] sm:$0xff]  ;;  %v256_v44 = vld [vmem:[%s566_s19 + $0xf8] sm:$0xff] }
  0x26   : > { %408 = vst.msk [vmem:[%s606_s27 + $0x70] sm:$0xff] %vm393_vm0, %v375_v47  ;;  %v283_v62 = vmul.f32 %v560_v0, %v247_v46  ;;  %v346_v63 = vadd.f32 %v577_v1, %v310_v53  ;;  %v347_v2 = vadd.f32 %v577_v1, %v311_v54  ;;  %v313_v3 = vadd.f32 %v281_v55, %v213_v51  ;;  %v224_v53 = vld [vmem:[%s572_s22 + $0xf8] sm:$0xff] }
  0x27   : > { %v314_v4 = vadd.f32 %v282_v56, %v214_v52  ;;  %409 = vst.msk [vmem:[%s606_s27 + $0x78] sm:$0xff] %vm393_vm0, %v376_v59  ;;  %v377_v7 = vmax.f32 %v345_v60, 0.0  ;;  %v348_v8 = vadd.f32 %v577_v1, %v312_v61  ;;  %v284_v10 = vmul.f32 %v560_v0, %v248_v58 }
  0x28   : > { %v315_v9 = vadd.f32 %v283_v62, %v215_v57  ;;  %v378_v13 = vmax.f32 %v346_v63, 0.0  ;;  %v379_v14 = vmax.f32 %v347_v2, 0.0  ;;  %v349_v15 = vadd.f32 %v577_v1, %v313_v3 }
  0x29   : > { %v350_v16 = vadd.f32 %v577_v1, %v314_v4  ;;  %410 = vst.msk [vmem:[%s606_s27 + $0x80] sm:$0xff] %vm393_vm0, %v377_v7  ;;  %v380_v20 = vmax.f32 %v348_v8, 0.0  ;;  %v316_v22 = vadd.f32 %v284_v10, %v216_v5  ;;  %v285_v23 = vmul.f32 %v560_v0, %v249_v6 }
  0x2a   : > { %v351_v21 = vadd.f32 %v577_v1, %v315_v9  ;;  %411 = vst.msk [vmem:[%s606_s27 + $0x88] sm:$0xff] %vm393_vm0, %v378_v13  ;;  %412 = vst.msk [vmem:[%s606_s27 + $0x90] sm:$0xff] %vm393_vm0, %v379_v14  ;;  %v381_v27 = vmax.f32 %v349_v15, 0.0  ;;  %v286_v29 = vmul.f32 %v560_v0, %v250_v11  ;;  %v287_v30 = vmul.f32 %v560_v0, %v251_v12 }
  0x2b   : > { %v382_v28 = vmax.f32 %v350_v16, 0.0  ;;  %413 = vst.msk [vmem:[%s606_s27 + $0x98] sm:$0xff] %vm393_vm0, %v380_v20  ;;  %v352_v34 = vadd.f32 %v577_v1, %v316_v22  ;;  %v317_v35 = vadd.f32 %v285_v23, %v217_v17  ;;  %v288_v36 = vmul.f32 %v560_v0, %v252_v19 }
  0x2c   : > { %v383_v33 = vmax.f32 %v351_v21, 0.0  ;;  %414 = vst.msk [vmem:[%s606_s27 + $0xa0] sm:$0xff] %vm393_vm0, %v381_v27  ;;  %v318_v39 = vadd.f32 %v286_v29, %v218_v18  ;;  %v319_v40 = vadd.f32 %v287_v30, %v219_v24  ;;  %v289_v41 = vmul.f32 %v560_v0, %v253_v25 }
  0x2d   : > { %415 = vst.msk [vmem:[%s606_s27 + $0xa8] sm:$0xff] %vm393_vm0, %v382_v28  ;;  %v290_v42 = vmul.f32 %v560_v0, %v254_v26  ;;  %v384_v45 = vmax.f32 %v352_v34, 0.0  ;;  %v353_v46 = vadd.f32 %v577_v1, %v317_v35  ;;  %v320_v47 = vadd.f32 %v288_v36, %v220_v31 }
  0x2e   : > { %416 = vst.msk [vmem:[%s606_s27 + $0xb0] sm:$0xff] %vm393_vm0, %v383_v33  ;;  %v291_v48 = vmul.f32 %v560_v0, %v255_v32  ;;  %v354_v49 = vadd.f32 %v577_v1, %v318_v39  ;;  %v355_v50 = vadd.f32 %v577_v1, %v319_v40  ;;  %v321_v51 = vadd.f32 %v289_v41, %v221_v37 }
  0x2f   : > { %v322_v52 = vadd.f32 %v290_v42, %v222_v38  ;;  %417 = vst.msk [vmem:[%s606_s27 + $0xb8] sm:$0xff] %vm393_vm0, %v384_v45  ;;  %v385_v54 = vmax.f32 %v353_v46, 0.0  ;;  %v356_v55 = vadd.f32 %v577_v1, %v320_v47  ;;  %v292_v57 = vmul.f32 %v560_v0, %v256_v44 }
  0x30   : > { %v323_v56 = vadd.f32 %v291_v48, %v223_v43  ;;  %v386_v58 = vmax.f32 %v354_v49, 0.0  ;;  %v387_v59 = vmax.f32 %v355_v50, 0.0  ;;  %v357_v60 = vadd.f32 %v577_v1, %v321_v51 }
  0x31   : > { %v358_v61 = vadd.f32 %v577_v1, %v322_v52  ;;  %418 = vst.msk [vmem:[%s606_s27 + $0xc0] sm:$0xff] %vm393_vm0, %v385_v54  ;;  %v388_v62 = vmax.f32 %v356_v55, 0.0  ;;  %v324_v2 = vadd.f32 %v292_v57, %v224_v53 }
  0x32   : > { %v359_v63 = vadd.f32 %v577_v1, %v323_v56  ;;  %419 = vst.msk [vmem:[%s606_s27 + $0xc8] sm:$0xff] %vm393_vm0, %v386_v58  ;;  %420 = vst.msk [vmem:[%s606_s27 + $0xd0] sm:$0xff] %vm393_vm0, %v387_v59  ;;  %v389_v0 = vmax.f32 %v357_v60, 0.0 }
  0x33   : > { %v390_v3 = vmax.f32 %v358_v61, 0.0  ;;  %421 = vst.msk [vmem:[%s606_s27 + $0xd8] sm:$0xff] %vm393_vm0, %v388_v62  ;;  %v360_v5 = vadd.f32 %v577_v1, %v324_v2 }
  0x34   : > { %v391_v4 = vmax.f32 %v359_v63, 0.0  ;;  %422 = vst.msk [vmem:[%s606_s27 + $0xe0] sm:$0xff] %vm393_vm0, %v389_v0 }
  0x35   : > { %423 = vst.msk [vmem:[%s606_s27 + $0xe8] sm:$0xff] %vm393_vm0, %v390_v3  ;;  %v392_v6 = vmax.f32 %v360_v5, 0.0 }
  0x36   : > { %424 = vst.msk [vmem:[%s606_s27 + $0xf0] sm:$0xff] %vm393_vm0, %v391_v4 }
  0x37   : > { %425 = vst.msk [vmem:[%s606_s27 + $0xf8] sm:$0xff] %vm393_vm0, %v392_v6 }
  0x38 PF: > { %s13_s12 = sadd.s32 1, %s525_s12  }
  0x39   : > { %p10_p4 = scmp.ge.s32.totalorder %s13_s12, 4  }
  0x3b   :  { %12 = sbr.rel (!%p10_p4) target bundleno = 1 (0x1), region = 65 }

// kernel: resnet_block_forward.4
= control target key start
LH: loop header
LB: loop body
LE: loop exit
PB: predicated region body
PF: predicated region fallthrough
CT: control target
= control target key end

     0   :  { %s6957_s15 = smov 0   ;;  %s9407_s0 = inlined_call_operand.vmem [shape: f32[2,332,4], index: 0, kind: input, shape index: {}]   ;;  %s9408_s1 = inlined_call_operand.vmem [shape: f32[2,4], index: 1, kind: input, shape index: {}]   ;;  %s9409_s2 = inlined_call_operand.vmem [shape: f32[36,4], index: 2, kind: input, shape index: {}]   ;;  %s9410_s3 = inlined_call_operand.vmem [shape: f32[2,16,16,4], index: 3, kind: output, shape index: {0}]   ;;  %s9411_s4 = inlined_call_operand.vmem [shape: f32[2,2,4], index: 4, kind: output, shape index: {1}]  }
   0x1 LB: > { %s5324_s16 = sadd.s32 4294967295, %s6929_s15   ;;  %p5328_p0 = scmp.ge.s32.totalorder %s6929_s15, 1  ;;  %s6929_s15 = sphi %s6957_s15, %s15_s15  }
   0x2   : > { %p165_p1 = scmp.lt.s32.totalorder %s6929_s15, 3 }
   0x4   : > { %p166_p2 = pnand %p5328_p0, %p165_p1 }
   0x6   : > { %169 = sbr.rel (%p166_p2) target bundleno = 617 (0x269), region = 32 }
   0xd   : > { %v505_v0 = vld [vmem:[%s9409_s2 + $0x4] sm:$0xf]  ;;  %vm614_vm0 = vcmask 1043456   ;;  %v2113_v1 = vld [vmem:[%s9409_s2 + $0x10] sm:$0xf]  ;;  %p195_p3 = scmp.lt.s32.totalorder %s5324_s16, 1 }
   0xe   : > { %6046 = vmatprep.subr.msk.mxu1 %vm614_vm0, %v505_v0  ;;  %6270 = vmatprep.subr.msk.mxu0 %vm614_vm0, %v2113_v1  ;;  %v6980_v2 = vld [vmem:[%s9409_s2] sm:$0xf]  ;;  %v6985_v3 = vld [vmem:[%s9409_s2 + $0x14] sm:$0xf]  ;;  %vm9412_vm1 = vcmask 31744  }
   0xf   : > { %6047 = vmatpush3.msk.msra.mxu1 %vm614_vm0, %v505_v0  ;;  %6271 = vmatpush3.msk.msra.mxu0 %vm614_vm0, %v2113_v1  ;;  %s9938_s16 = smov (!%p195_p3, %s5324_s16), 1  ;;  %v6995_v4 = vld [vmem:[%s9408_s1] ss:$0 sm:$0xff]  ;;  %v7005_v5 = vld [vmem:[%s9408_s1 + $0x1] ss:$0 sm:$0xff] }
  0x10   : > { %6102 = vmatprep.subr.msk.mxu1 %vm614_vm0, %v6980_v2  ;;  %6326 = vmatprep.subr.msk.mxu0 %vm614_vm0, %v6985_v3  ;;  %s6840_s25 = smul.u32 336, %s9938_s16  ;;  %s5712_s21 = sshll.u32 %s9938_s16, 8 }
  0x11   : > { %s8699_s24 = scalar_lea.vmem %s9410_s3, %s5712_s21 }
  0x12   : > { %s7000_s30 = scalar_lea.vmem %s9407_s0, %s6840_s25  ;;  %s5332_s25 = sshll.u32 %s9938_s16, 1 }
  0x13   : > { %v211_v6 = vld [vmem:[%s7000_s30] sm:$0xff]  ;;  %v212_v7 = vld [vmem:[%s7000_s30 + $0x8] sm:$0xff]  ;;  %v213_v8 = vld [vmem:[%s7000_s30 + $0x10] sm:$0xff]  ;;  %s208_s28 = scalar_lea.vmem %s9411_s4, %s5332_s25 }
  0x14   : > { %v257_v9 = vmul.f32 %v6995_v4, %v211_v6  ;;  %v258_v10 = vmul.f32 %v6995_v4, %v212_v7  ;;  %v214_v11 = vld [vmem:[%s7000_s30 + $0x18] sm:$0xff]  ;;  %v259_v12 = vmul.f32 %v6995_v4, %v213_v8  ;;  %v215_v13 = vld [vmem:[%s7000_s30 + $0x20] sm:$0xff]  ;;  %v216_v14 = vld [vmem:[%s7000_s30 + $0x28] sm:$0xff] }
  0x15   : > { %v260_v15 = vmul.f32 %v6995_v4, %v214_v11  ;;  %v261_v16 = vmul.f32 %v6995_v4, %v215_v13  ;;  %v262_v17 = vmul.f32 %v6995_v4, %v216_v14  ;;  %v217_v18 = vld [vmem:[%s7000_s30 + $0x30] sm:$0xff]  ;;  %v218_v19 = vld [vmem:[%s7000_s30 + $0x38] sm:$0xff]  ;;  %v219_v28 = vld [vmem:[%s7000_s30 + $0x40] sm:$0xff] }
  0x16   : > { %v303_v20 = vadd.f32 %v7005_v5, %v257_v9  ;;  %v304_v21 = vadd.f32 %v7005_v5, %v258_v10  ;;  %v305_v22 = vadd.f32 %v7005_v5, %v259_v12  ;;  %v263_v23 = vmul.f32 %v6995_v4, %v217_v18  ;;  %v220_v29 = vld [vmem:[%s7000_s30 + $0x48] sm:$0xff]  ;;  %v221_v30 = vld [vmem:[%s7000_s30 + $0x50] sm:$0xff]  ;;  %v222_v35 = vld [vmem:[%s7000_s30 + $0x58] sm:$0xff] }
  0x17   : > { %v306_v24 = vadd.f32 %v7005_v5, %v260_v15  ;;  %v307_v25 = vadd.f32 %v7005_v5, %v261_v16  ;;  %v308_v26 = vadd.f32 %v7005_v5, %v262_v17  ;;  %v264_v27 = vmul.f32 %v6995_v4, %v218_v19  ;;  %v223_v36 = vld [vmem:[%s7000_s30 + $0x60] sm:$0xff]  ;;  %v224_v37 = vld [vmem:[%s7000_s30 + $0x68] sm:$0xff]  ;;  %v225_v42 = vld [vmem:[%s7000_s30 + $0x70] sm:$0xff] }
  0x18   : > { %v345_v31 = vmax.f32 %v303_v20, 0.0  ;;  %v346_v32 = vmax.f32 %v304_v21, 0.0  ;;  %v347_v33 = vmax.f32 %v305_v22, 0.0  ;;  %v309_v34 = vadd.f32 %v7005_v5, %v263_v23  ;;  %v226_v47 = vld [vmem:[%s7000_s30 + $0x78] sm:$0xff]  ;;  %v227_v60 = vld [vmem:[%s7000_s30 + $0x80] sm:$0xff]  ;;  %v228_v61 = vld [vmem:[%s7000_s30 + $0x88] sm:$0xff] }
  0x19   : > { %v348_v38 = vmax.f32 %v306_v24, 0.0  ;;  %v349_v39 = vmax.f32 %v307_v25, 0.0  ;;  %v350_v40 = vmax.f32 %v308_v26, 0.0  ;;  %v310_v41 = vadd.f32 %v7005_v5, %v264_v27  ;;  %v229_v62 = vld [vmem:[%s7000_s30 + $0x90] sm:$0xff]  ;;  %v230_v7 = vld [vmem:[%s7000_s30 + $0x98] sm:$0xff]  ;;  %v231_v8 = vld [vmem:[%s7000_s30 + $0xa0] sm:$0xff] }
  0x1a   : > { %388 = vst.msk [vmem:[#allocation2] sm:$0xff] %vm9412_vm1, %v345_v31  ;;  %389 = vst.msk [vmem:[#allocation2 + $0x8] sm:$0xff] %vm9412_vm1, %v346_v32  ;;  %v351_v43 = vmax.f32 %v309_v34, 0.0  ;;  %v265_v44 = vmul.f32 %v6995_v4, %v219_v28  ;;  %v266_v45 = vmul.f32 %v6995_v4, %v220_v29  ;;  %v267_v46 = vmul.f32 %v6995_v4, %v221_v30  ;;  %v232_v9 = vld [vmem:[%s7000_s30 + $0xa8] sm:$0xff]  ;;  %v233_v14 = vld [vmem:[%s7000_s30 + $0xb0] sm:$0xff] }
  0x1b   : > { %390 = vst.msk [vmem:[#allocation2 + $0x10] sm:$0xff] %vm9412_vm1, %v347_v33  ;;  %391 = vst.msk [vmem:[#allocation2 + $0x18] sm:$0xff] %vm9412_vm1, %v348_v38  ;;  %v352_v48 = vmax.f32 %v310_v41, 0.0  ;;  %v268_v49 = vmul.f32 %v6995_v4, %v222_v35  ;;  %v269_v50 = vmul.f32 %v6995_v4, %v223_v36  ;;  %v270_v51 = vmul.f32 %v6995_v4, %v224_v37  ;;  %v234_v19 = vld [vmem:[%s7000_s30 + $0xb8] sm:$0xff]  ;;  %v235_v27 = vld [vmem:[%s7000_s30 + $0xc0] sm:$0xff] }
  0x1c   : > { %392 = vst.msk [vmem:[#allocation2 + $0x20] sm:$0xff] %vm9412_vm1, %v349_v39  ;;  %393 = vst.msk [vmem:[#allocation2 + $0x28] sm:$0xff] %vm9412_vm1, %v350_v40  ;;  %v311_v52 = vadd.f32 %v7005_v5, %v265_v44  ;;  %v312_v53 = vadd.f32 %v7005_v5, %v266_v45  ;;  %v313_v54 = vadd.f32 %v7005_v5, %v267_v46  ;;  %v7085_v25 = vld [vmem:[%s9409_s2 + $0x18] sm:$0xf]  ;;  %v236_v28 = vld [vmem:[%s7000_s30 + $0xc8] sm:$0xff] }
  0x1d   : > { %394 = vst.msk [vmem:[#allocation2 + $0x30] sm:$0xff] %vm9412_vm1, %v351_v43  ;;  %v271_v55 = vmul.f32 %v6995_v4, %v225_v42  ;;  %395 = vst.msk [vmem:[#allocation2 + $0x38] sm:$0xff] %vm9412_vm1, %v352_v48  ;;  %v314_v56 = vadd.f32 %v7005_v5, %v268_v49  ;;  %v315_v57 = vadd.f32 %v7005_v5, %v269_v50  ;;  %v237_v40 = vld [vmem:[%s7000_s30 + $0xd0] sm:$0xff]  ;;  %v238_v41 = vld [vmem:[%s7000_s30 + $0xd8] sm:$0xff] }
  0x1e   : > { %v316_v58 = vadd.f32 %v7005_v5, %v270_v51  ;;  %v272_v59 = vmul.f32 %v6995_v4, %v226_v47  ;;  %v353_v63 = vmax.f32 %v311_v52, 0.0  ;;  %v354_v0 = vmax.f32 %v312_v53, 0.0  ;;  %v239_v47 = vld [vmem:[%s7000_s30 + $0xe0] sm:$0xff]  ;;  %v240_v48 = vld [vmem:[%s7000_s30 + $0xe8] sm:$0xff] }
  0x1f   : > { %v355_v1 = vmax.f32 %v313_v54, 0.0  ;;  %v317_v6 = vadd.f32 %v7005_v5, %v271_v55  ;;  %v356_v10 = vmax.f32 %v314_v56, 0.0  ;;  %v357_v11 = vmax.f32 %v315_v57, 0.0 }
  0x20   : > { %v358_v12 = vmax.f32 %v316_v58, 0.0  ;;  %v318_v13 = vadd.f32 %v7005_v5, %v272_v59  ;;  %396 = vst.msk [vmem:[#allocation2 + $0x40] sm:$0xff] %vm9412_vm1, %v353_v63  ;;  %397 = vst.msk [vmem:[#allocation2 + $0x48] sm:$0xff] %vm9412_vm1, %v354_v0  ;;  %v273_v16 = vmul.f32 %v6995_v4, %v227_v60  ;;  %v274_v17 = vmul.f32 %v6995_v4, %v228_v61  ;;  %v7126_v58 = vld [vmem:[%s9409_s2 + $0x8] sm:$0xf]  ;;  %v241_v63 = vld [vmem:[%s7000_s30 + $0xf0] sm:$0xff] }
  0x21   : > { %398 = vst.msk [vmem:[#allocation2 + $0x50] sm:$0xff] %vm9412_vm1, %v355_v1  ;;  %v359_v15 = vmax.f32 %v317_v6, 0.0  ;;  %v275_v18 = vmul.f32 %v6995_v4, %v229_v62  ;;  %v469_v20 = vld [vmem:[#allocation2 + $0x1] sm:$0xff]  ;;  %399 = vst.msk [vmem:[#allocation2 + $0x58] sm:$0xff] %vm9412_vm1, %v356_v10  ;;  %v276_v23 = vmul.f32 %v6995_v4, %v230_v7  ;;  %v277_v24 = vmul.f32 %v6995_v4, %v231_v8  ;;  %v242_v0 = vld [vmem:[%s7000_s30 + $0xf8] sm:$0xff] }
  0x22   : > { %v470_v21 = vld [vmem:[#allocation2 + $0x9] sm:$0xff]  ;;  %400 = vst.msk [vmem:[#allocation2 + $0x60] sm:$0xff] %vm9412_vm1, %v357_v11  ;;  %401 = vst.msk [vmem:[#allocation2 + $0x68] sm:$0xff] %vm9412_vm1, %v358_v12  ;;  %v360_v22 = vmax.f32 %v318_v13, 0.0  ;;  %v278_v26 = vmul.f32 %v6995_v4, %v232_v9  ;;  %6048 = vmatprep.mubr.msk.f32.mxu1 %vm9412_vm1, %v469_v20  ;;  %v2077_v29 = vld [vmem:[#allocation2 + $0x13] sm:$0xff]  ;;  %v319_v32 = vadd.f32 %v7005_v5, %v273_v16 }
  0x23   : > { %v2078_v30 = vld [vmem:[#allocation2 + $0x1b] sm:$0xff]  ;;  %v471_v31 = vld [vmem:[#allocation2 + $0x11] sm:$0xff]  ;;  %402 = vst.msk [vmem:[#allocation2 + $0x70] sm:$0xff] %vm9412_vm1, %v359_v15  ;;  %v320_v33 = vadd.f32 %v7005_v5, %v274_v17  ;;  %v321_v34 = vadd.f32 %v7005_v5, %v275_v18  ;;  %v279_v35 = vmul.f32 %v6995_v4, %v233_v14  ;;  %6272 = vmatprep.mubr.msk.f32.mxu0 %vm9412_vm1, %v2077_v29  ;;  %v2079_v36 = vld [vmem:[#allocation2 + $0x23] sm:$0xff] }
  0x24   : > { %6049 = vmatmul.mubr.msk.f32.vlgmr.msra.gmra.mrb[0].mxu1 %vm9412_vm1, %v470_v21  ;;  %403 = vst.msk [vmem:[#allocation2 + $0x78] sm:$0xff] %vm9412_vm1, %v360_v22  ;;  %v322_v37 = vadd.f32 %v7005_v5, %v276_v23  ;;  %v323_v38 = vadd.f32 %v7005_v5, %v277_v24  ;;  %v324_v39 = vadd.f32 %v7005_v5, %v278_v26  ;;  %v472_v42 = vld [vmem:[#allocation2 + $0x19] sm:$0xff]  ;;  %v361_v43 = vmax.f32 %v319_v32, 0.0  ;;  %v2080_v49 = vld [vmem:[#allocation2 + $0x2b] sm:$0xff]  ;;  %v473_v50 = vld [vmem:[#allocation2 + $0x21] sm:$0xff] }
  0x25   : > { %6103 = vmatpush3.msk.msra.mxu1 %vm614_vm0, %v6980_v2  ;;  %6273 = vmatmul.mubr.msk.f32.vlgmr.msra.gmra.mrb[0].mxu0 %vm9412_vm1, %v2078_v30  ;;  %v362_v44 = vmax.f32 %v320_v33, 0.0  ;;  %v363_v45 = vmax.f32 %v321_v34, 0.0  ;;  %v325_v46 = vadd.f32 %v7005_v5, %v279_v35  ;;  %v280_v53 = vmul.f32 %v6995_v4, %v234_v19  ;;  %v2081_v54 = vld [vmem:[#allocation2 + $0x33] sm:$0xff]  ;;  %v474_v1 = vld [vmem:[#allocation2 + $0x29] sm:$0xff]  ;;  %v243_v9 = vld [vmem:[%s7000_s30 + $0x100] sm:$0xff] }
  0x26   : > { %6327 = vmatpush3.msk.msra.mxu0 %vm614_vm0, %v6985_v3  ;;  %6051 = vmatprep.mubr.msk.f32.mxu1 %vm9412_vm1, %v471_v31  ;;  %v364_v51 = vmax.f32 %v322_v37, 0.0  ;;  %v365_v52 = vmax.f32 %v323_v38, 0.0  ;;  %v366_v2 = vmax.f32 %v324_v39, 0.0  ;;  %404 = vst.msk [vmem:[#allocation2 + $0x80] sm:$0xff] %vm9412_vm1, %v361_v43  ;;  %v281_v55 = vmul.f32 %v6995_v4, %v235_v27  ;;  %v244_v10 = vld [vmem:[%s7000_s30 + $0x108] sm:$0xff]  ;;  %v475_v12 = vld [vmem:[#allocation2 + $0x31] sm:$0xff] }
  0x27   : > { %6275 = vmatprep.mubr.msk.f32.mxu0 %vm9412_vm1, %v2079_v36  ;;  %405 = vst.msk [vmem:[#allocation2 + $0x88] sm:$0xff] %vm9412_vm1, %v362_v44  ;;  %406 = vst.msk [vmem:[#allocation2 + $0x90] sm:$0xff] %vm9412_vm1, %v363_v45  ;;  %6382 = vmatprep.subr.msk.mxu0 %vm614_vm0, %v7085_v25  ;;  %v367_v3 = vmax.f32 %v325_v46, 0.0  ;;  %v282_v56 = vmul.f32 %v6995_v4, %v236_v28  ;;  %v283_v57 = vmul.f32 %v6995_v4, %v237_v40  ;;  %v2082_v11 = vld [vmem:[#allocation2 + $0x3b] sm:$0xff]  ;;  %v245_v17 = vld [vmem:[%s7000_s30 + $0x110] sm:$0xff] }
  0x28   : > { %6052 = vmatmul.mubr.msk.f32.gmra.mrb[2].mxu1 %vm9412_vm1, %v472_v42  ;;  %407 = vst.msk [vmem:[#allocation2 + $0x98] sm:$0xff] %vm9412_vm1, %v364_v51  ;;  %408 = vst.msk [vmem:[#allocation2 + $0xa0] sm:$0xff] %vm9412_vm1, %v365_v52  ;;  %v326_v59 = vadd.f32 %v7005_v5, %v280_v53  ;;  %v284_v60 = vmul.f32 %v6995_v4, %v238_v41  ;;  %v285_v61 = vmul.f32 %v6995_v4, %v239_v47  ;;  %v2083_v18 = vld [vmem:[#allocation2 + $0x43] sm:$0xff]  ;;  %v246_v23 = vld [vmem:[%s7000_s30 + $0x118] sm:$0xff] }
  0x29   : > { %409 = vst.msk [vmem:[#allocation2 + $0xa8] sm:$0xff] %vm9412_vm1, %v366_v2  ;;  %v286_v62 = vmul.f32 %v6995_v4, %v240_v48  ;;  %6276 = vmatmul.mubr.msk.f32.gmra.mrb[2].mxu0 %vm9412_vm1, %v2080_v49  ;;  %6054 = vmatprep.mubr.msk.f32.mxu1 %vm9412_vm1, %v473_v50  ;;  %410 = vst.msk [vmem:[#allocation2 + $0xb0] sm:$0xff] %vm9412_vm1, %v367_v3  ;;  %v327_v6 = vadd.f32 %v7005_v5, %v281_v55  ;;  %v247_v24 = vld [vmem:[%s7000_s30 + $0x120] sm:$0xff]  ;;  %v248_v30 = vld [vmem:[%s7000_s30 + $0x128] sm:$0xff] }
  0x2a   : > { %v328_v7 = vadd.f32 %v7005_v5, %v282_v56  ;;  %v329_v8 = vadd.f32 %v7005_v5, %v283_v57  ;;  %6278 = vmatprep.mubr.msk.f32.mxu0 %vm9412_vm1, %v2081_v54  ;;  %v368_v13 = vmax.f32 %v326_v59, 0.0  ;;  %v330_v14 = vadd.f32 %v7005_v5, %v284_v60  ;;  %6158 = vmatprep.subr.msk.mxu1 %vm614_vm0, %v7126_v58  ;;  %v476_v31 = vld [vmem:[#allocation2 + $0x39] sm:$0xff]  ;;  %v2084_v35 = vld [vmem:[#allocation2 + $0x4b] sm:$0xff]  ;;  %v477_v36 = vld [vmem:[#allocation2 + $0x41] sm:$0xff] }
  0x2b   : > { %v331_v15 = vadd.f32 %v7005_v5, %v285_v61  ;;  %v332_v16 = vadd.f32 %v7005_v5, %v286_v62  ;;  %v369_v19 = vmax.f32 %v327_v6, 0.0  ;;  %v287_v22 = vmul.f32 %v6995_v4, %v241_v63  ;;  %v249_v41 = vld [vmem:[%s7000_s30 + $0x130] sm:$0xff]  ;;  %v2086_v3 = vld [vmem:[#allocation2 + $0x5b] sm:$0xff]  ;;  %v2087_v60 = vld [vmem:[#allocation2 + $0x63] sm:$0xff] }
  0x2c   : > { %v370_v20 = vmax.f32 %v328_v7, 0.0  ;;  %v371_v21 = vmax.f32 %v329_v8, 0.0  ;;  %6055 = vmatmul.mubr.msk.f32.gmra.mrb[4].mxu1 %vm9412_vm1, %v474_v1  ;;  %411 = vst.msk [vmem:[#allocation2 + $0xb8] sm:$0xff] %vm9412_vm1, %v368_v13  ;;  %v372_v26 = vmax.f32 %v330_v14, 0.0  ;;  %v288_v29 = vmul.f32 %v6995_v4, %v242_v0  ;;  %v2085_v42 = vld [vmem:[#allocation2 + $0x53] sm:$0xff]  ;;  %v478_v51 = vld [vmem:[#allocation2 + $0x49] sm:$0xff] }
  0x2d   : > { %v373_v27 = vmax.f32 %v331_v15, 0.0  ;;  %v374_v28 = vmax.f32 %v332_v16, 0.0  ;;  %6279 = vmatmul.mubr.msk.f32.gmra.mrb[4].mxu0 %vm9412_vm1, %v2082_v11  ;;  %6057 = vmatprep.mubr.msk.f32.mxu1 %vm9412_vm1, %v475_v12  ;;  %412 = vst.msk [vmem:[#allocation2 + $0xc0] sm:$0xff] %vm9412_vm1, %v369_v19  ;;  %v333_v32 = vadd.f32 %v7005_v5, %v287_v22  ;;  %v289_v33 = vmul.f32 %v6995_v4, %v243_v9  ;;  %v479_v55 = vld [vmem:[#allocation2 + $0x51] sm:$0xff]  ;;  %v480_v63 = vld [vmem:[#allocation2 + $0x59] sm:$0xff]  ;;  %v481_v6 = vld [vmem:[#allocation2 + $0x61] sm:$0xff] }
  0x2e   : > { %413 = vst.msk [vmem:[#allocation2 + $0xc8] sm:$0xff] %vm9412_vm1, %v370_v20  ;;  %414 = vst.msk [vmem:[#allocation2 + $0xd0] sm:$0xff] %vm9412_vm1, %v371_v21  ;;  %v290_v34 = vmul.f32 %v6995_v4, %v244_v10  ;;  %6281 = vmatprep.mubr.msk.f32.mxu0 %vm9412_vm1, %v2083_v18  ;;  %v334_v37 = vadd.f32 %v7005_v5, %v288_v29  ;;  %v291_v38 = vmul.f32 %v6995_v4, %v245_v17  ;;  %v2088_v1 = vld [vmem:[#allocation2 + $0x6b] sm:$0xff]  ;;  %v2089_v7 = vld [vmem:[#allocation2 + $0x73] sm:$0xff] }
  0x2f   : > { %415 = vst.msk [vmem:[#allocation2 + $0xd8] sm:$0xff] %vm9412_vm1, %v372_v26  ;;  %416 = vst.msk [vmem:[#allocation2 + $0xe0] sm:$0xff] %vm9412_vm1, %v373_v27  ;;  %v292_v39 = vmul.f32 %v6995_v4, %v246_v23  ;;  %v293_v40 = vmul.f32 %v6995_v4, %v247_v24  ;;  %v375_v43 = vmax.f32 %v333_v32, 0.0  ;;  %v335_v44 = vadd.f32 %v7005_v5, %v289_v33  ;;  %v482_v8 = vld [vmem:[#allocation2 + $0x69] sm:$0xff]  ;;  %v2090_v9 = vld [vmem:[#allocation2 + $0x7b] sm:$0xff] }
  0x30   : > { %417 = vst.msk [vmem:[#allocation2 + $0xe8] sm:$0xff] %vm9412_vm1, %v374_v28  ;;  %v336_v45 = vadd.f32 %v7005_v5, %v290_v34  ;;  %v294_v46 = vmul.f32 %v6995_v4, %v248_v30  ;;  %6058 = vmatmul.mubr.msk.f32.gmra.mrb[6].mxu1 %vm9412_vm1, %v476_v31  ;;  %v376_v47 = vmax.f32 %v334_v37, 0.0  ;;  %v337_v48 = vadd.f32 %v7005_v5, %v291_v38  ;;  %v483_v10 = vld [vmem:[#allocation2 + $0x71] sm:$0xff]  ;;  %v2091_v11 = vld [vmem:[#allocation2 + $0x83] sm:$0xff]  ;;  %v484_v12 = vld [vmem:[#allocation2 + $0x79] sm:$0xff] }
  0x31   : > { %v338_v49 = vadd.f32 %v7005_v5, %v292_v39  ;;  %v339_v50 = vadd.f32 %v7005_v5, %v293_v40  ;;  %6282 = vmatmul.mubr.msk.f32.gmra.mrb[6].mxu0 %vm9412_vm1, %v2084_v35  ;;  %6060 = vmatprep.mubr.msk.f32.mxu1 %vm9412_vm1, %v477_v36  ;;  %418 = vst.msk [vmem:[#allocation2 + $0xf0] sm:$0xff] %vm9412_vm1, %v375_v43  ;;  %v377_v52 = vmax.f32 %v335_v44, 0.0  ;;  %v2092_v13 = vld [vmem:[#allocation2 + $0x8b] sm:$0xff]  ;;  %v485_v14 = vld [vmem:[#allocation2 + $0x81] sm:$0xff]  ;;  %v2093_v15 = vld [vmem:[#allocation2 + $0x93] sm:$0xff] }
  0x32   : > { %v378_v2 = vmax.f32 %v336_v45, 0.0  ;;  %v340_v53 = vadd.f32 %v7005_v5, %v294_v46  ;;  %v295_v54 = vmul.f32 %v6995_v4, %v249_v41  ;;  %6284 = vmatprep.mubr.msk.f32.mxu0 %vm9412_vm1, %v2085_v42  ;;  %419 = vst.msk [vmem:[#allocation2 + $0xf8] sm:$0xff] %vm9412_vm1, %v376_v47  ;;  %v379_v56 = vmax.f32 %v337_v48, 0.0  ;;  %v486_v16 = vld [vmem:[#allocation2 + $0x89] sm:$0xff]  ;;  %v2094_v17 = vld [vmem:[#allocation2 + $0x9b] sm:$0xff]  ;;  %v487_v18 = vld [vmem:[#allocation2 + $0x91] sm:$0xff] }
  0x33   : > { %v380_v57 = vmax.f32 %v338_v49, 0.0  ;;  %v381_v59 = vmax.f32 %v339_v50, 0.0  ;;  %420 = vst.msk [vmem:[#allocation2 + $0x100] sm:$0xff] %vm9412_vm1, %v377_v52  ;;  %v2506_v19 = vld [vmem:[#allocation2 + $0x14] sm:$0xff]  ;;  %v2507_v21 = vld [vmem:[#allocation2 + $0x1c] sm:$0xff]  ;;  %v7219_v23 = vld [vmem:[#allocation2 + $0x24] sm:$0xff] }
  0x34   : > { %421 = vst.msk [vmem:[#allocation2 + $0x108] sm:$0xff] %vm9412_vm1, %v378_v2  ;;  %v382_v61 = vmax.f32 %v340_v53, 0.0  ;;  %v341_v62 = vadd.f32 %v7005_v5, %v295_v54  ;;  %6061 = vmatmul.mubr.msk.f32.gmra.mrb[8].mxu1 %vm9412_vm1, %v478_v51  ;;  %422 = vst.msk [vmem:[#allocation2 + $0x110] sm:$0xff] %vm9412_vm1, %v379_v56  ;;  %v488_v20 = vld [vmem:[#allocation2 + $0x99] sm:$0xff]  ;;  %v489_v22 = vld [vmem:[#allocation2 + $0xa1] sm:$0xff] }
  0x35   : > { %423 = vst.msk [vmem:[#allocation2 + $0x118] sm:$0xff] %vm9412_vm1, %v380_v57  ;;  %424 = vst.msk [vmem:[#allocation2 + $0x120] sm:$0xff] %vm9412_vm1, %v381_v59  ;;  %6285 = vmatmul.mubr.msk.f32.gmra.mrb[8].mxu0 %vm9412_vm1, %v2086_v3  ;;  %6063 = vmatprep.mubr.msk.f32.mxu1 %vm9412_vm1, %v479_v55  ;;  %v7225_v24 = vld [vmem:[%s9409_s2 + $0x1c] sm:$0xf]  ;;  %v490_v26 = vld [vmem:[#allocation2 + $0xa9] sm:$0xff] }
  0x36   : > { %425 = vst.msk [vmem:[#allocation2 + $0x128] sm:$0xff] %vm9412_vm1, %v382_v61  ;;  %v383_v0 = vmax.f32 %v341_v62, 0.0  ;;  %6287 = vmatprep.mubr.msk.f32.mxu0 %vm9412_vm1, %v2087_v60  ;;  %v7233_v27 = vld [vmem:[#allocation2 + $0x2c] sm:$0xff]  ;;  %v7235_v29 = vld [vmem:[#allocation2 + $0x34] sm:$0xff]  ;;  %v7245_v30 = vld [vmem:[#allocation2 + $0x3c] sm:$0xff] }
  0x37   : > { %v491_v28 = vld [vmem:[#allocation2 + $0xb1] sm:$0xff]  ;;  %v493_v31 = vld [vmem:[#allocation2 + $0xc1] sm:$0xff]  ;;  %v494_v33 = vld [vmem:[#allocation2 + $0xc9] sm:$0xff] }
  0x38   : > { %426 = vst.msk [vmem:[#allocation2 + $0x130] sm:$0xff] %vm9412_vm1, %v383_v0  ;;  %6064 = vmatmul.mubr.msk.f32.gmra.mrb[10].mxu1 %vm9412_vm1, %v480_v63  ;;  %v7247_v32 = vld [vmem:[#allocation2 + $0x44] sm:$0xff]  ;;  %v7253_v34 = vld [vmem:[#allocation2 + $0x4c] sm:$0xff]  ;;  %v250_v36 = vld [vmem:[%s7000_s30 + $0x138] sm:$0xff] }
  0x39   : > { %6288 = vmatmul.mubr.msk.f32.gmra.mrb[10].mxu0 %vm9412_vm1, %v2088_v1  ;;  %6066 = vmatprep.mubr.msk.f32.mxu1 %vm9412_vm1, %v481_v6  ;;  %v495_v35 = vld [vmem:[#allocation2 + $0xd1] sm:$0xff]  ;;  %v251_v37 = vld [vmem:[%s7000_s30 + $0x140] sm:$0xff]  ;;  %v296_v39 = vmul.f32 %v6995_v4, %v250_v36  ;;  %v498_v48 = vld [vmem:[#allocation2 + $0xe9] sm:$0xff] }
  0x3a   : > { %6290 = vmatprep.mubr.msk.f32.mxu0 %vm9412_vm1, %v2089_v7  ;;  %v7259_v38 = vld [vmem:[#allocation2 + $0x54] sm:$0xff]  ;;  %v297_v40 = vmul.f32 %v6995_v4, %v251_v37  ;;  %v7271_v44 = vld [vmem:[#allocation2 + $0x5c] sm:$0xff]  ;;  %v7273_v46 = vld [vmem:[#allocation2 + $0x64] sm:$0xff] }
  0x3b   : > { %v496_v41 = vld [vmem:[#allocation2 + $0xd9] sm:$0xff]  ;;  %v342_v42 = vadd.f32 %v7005_v5, %v296_v39  ;;  %v497_v45 = vld [vmem:[#allocation2 + $0xe1] sm:$0xff]  ;;  %v499_v49 = vld [vmem:[#allocation2 + $0xf1] sm:$0xff] }
  0x3c   : > { %6067 = vmatmul.mubr.msk.f32.gmra.mrb[12].mxu1 %vm9412_vm1, %v482_v8  ;;  %v343_v43 = vadd.f32 %v7005_v5, %v297_v40  ;;  %v7283_v5 = vld [vmem:[#allocation2 + $0x6c] sm:$0xff]  ;;  %v7285_v50 = vld [vmem:[#allocation2 + $0x74] sm:$0xff]  ;;  %v7293_v52 = vld [vmem:[#allocation2 + $0x7c] sm:$0xff] }
  0x3d   : > { %6291 = vmatmul.mubr.msk.f32.gmra.mrb[12].mxu0 %vm9412_vm1, %v2090_v9  ;;  %6069 = vmatprep.mubr.msk.f32.mxu1 %vm9412_vm1, %v483_v10  ;;  %v384_v4 = vmax.f32 %v342_v42, 0.0  ;;  %v500_v51 = vld [vmem:[#allocation2 + $0xf9] sm:$0xff]  ;;  %v501_v2 = vld [vmem:[#allocation2 + $0x101] sm:$0xff]  ;;  %v502_v54 = vld [vmem:[#allocation2 + $0x109] sm:$0xff] }
  0x3e   : > { %6293 = vmatprep.mubr.msk.f32.mxu0 %vm9412_vm1, %v2091_v11  ;;  %v385_v47 = vmax.f32 %v343_v43, 0.0  ;;  %v7295_v53 = vld [vmem:[#allocation2 + $0x84] sm:$0xff]  ;;  %v7303_v3 = vld [vmem:[#allocation2 + $0x8c] sm:$0xff]  ;;  %v7305_v56 = vld [vmem:[#allocation2 + $0x94] sm:$0xff] }
  0x3f   : > { %427 = vst.msk [vmem:[#allocation2 + $0x138] sm:$0xff] %vm9412_vm1, %v384_v4  ;;  %v503_v55 = vld [vmem:[#allocation2 + $0x111] sm:$0xff]  ;;  %v504_v57 = vld [vmem:[#allocation2 + $0x119] sm:$0xff]  ;;  %v7315_v61 = vld [vmem:[#allocation2 + $0xa4] sm:$0xff] }
  0x40   : > { %6070 = vmatmul.mubr.msk.f32.gmra.mrb[14].mxu1 %vm9412_vm1, %v484_v12  ;;  %428 = vst.msk [vmem:[#allocation2 + $0x140] sm:$0xff] %vm9412_vm1, %v385_v47  ;;  %v7313_v59 = vld [vmem:[#allocation2 + $0x9c] sm:$0xff]  ;;  %v433_v62 = vld [vmem:[#allocation2 + $0x8] sm:$0xff]  ;;  %v434_v0 = vld [vmem:[#allocation2 + $0x10] sm:$0xff] }
  0x41   : > { %6294 = vmatmul.mubr.msk.f32.gmra.mrb[14].mxu0 %vm9412_vm1, %v2092_v13  ;;  %6072 = vmatprep.mubr.msk.f32.mxu1 %vm9412_vm1, %v485_v14  ;;  %v432_v60 = vld [vmem:[#allocation2] sm:$0xff]  ;;  %v7323_v63 = vld [vmem:[#allocation2 + $0xac] sm:$0xff]  ;;  %v7325_v1 = vld [vmem:[#allocation2 + $0xb4] sm:$0xff] }
  0x42   : > { %6296 = vmatprep.mubr.msk.f32.mxu0 %vm9412_vm1, %v2093_v15  ;;  %v7331_v6 = vld [vmem:[%s9409_s2 + $0xc] sm:$0xf]  ;;  %v435_v7 = vld [vmem:[#allocation2 + $0x18] sm:$0xff]  ;;  %v436_v9 = vld [vmem:[#allocation2 + $0x20] sm:$0xff] }
  0x43   : > { %v7340_v8 = vld [vmem:[#allocation2 + $0xbc] sm:$0xff]  ;;  %v7342_v10 = vld [vmem:[#allocation2 + $0xc4] sm:$0xff]  ;;  %v7352_v11 = vld [vmem:[#allocation2 + $0xcc] sm:$0xff] }
  0x44   : > { %6073 = vmatmul.mubr.msk.f32.gmra.mrb[16].mxu1 %vm9412_vm1, %v486_v16  ;;  %v438_v12 = vld [vmem:[#allocation2 + $0x30] sm:$0xff]  ;;  %v439_v14 = vld [vmem:[#allocation2 + $0x38] sm:$0xff]  ;;  %v440_v16 = vld [vmem:[#allocation2 + $0x40] sm:$0xff] }
  0x45   : > { %6297 = vmatmul.mubr.msk.f32.gmra.mrb[16].mxu0 %vm9412_vm1, %v2094_v17  ;;  %6075 = vmatprep.mubr.msk.f32.mxu1 %vm9412_vm1, %v487_v18  ;;  %v7354_v13 = vld [vmem:[#allocation2 + $0xd4] sm:$0xff]  ;;  %v7362_v15 = vld [vmem:[#allocation2 + $0xdc] sm:$0xff]  ;;  %v7364_v17 = vld [vmem:[#allocation2 + $0xe4] sm:$0xff] }
  0x46   : > { %6328 = vmatprep.mubr.msk.f32.mxu0 %vm9412_vm1, %v2506_v19  ;;  %v441_v18 = vld [vmem:[#allocation2 + $0x48] sm:$0xff]  ;;  %v7394_v36 = vld [vmem:[#allocation2 + $0x114] sm:$0xff]  ;;  %v7402_v39 = vld [vmem:[#allocation2 + $0x11c] sm:$0xff] }
  0x47   : > { %v7372_v19 = vld [vmem:[#allocation2 + $0xec] sm:$0xff]  ;;  %v447_v37 = vld [vmem:[#allocation2 + $0x78] sm:$0xff]  ;;  %v448_v40 = vld [vmem:[#allocation2 + $0x80] sm:$0xff] }
  0x48   : > { %6076 = vmatmul.mubr.msk.f32.gmra.mrb[18].mxu1 %vm9412_vm1, %v488_v20  ;;  %v442_v20 = vld [vmem:[#allocation2 + $0x50] sm:$0xff]  ;;  %v449_v42 = vld [vmem:[#allocation2 + $0x88] sm:$0xff]  ;;  %v451_v4 = vld [vmem:[#allocation2 + $0x98] sm:$0xff] }
  0x49   : > { %6329 = vmatmul.mubr.msk.f32.vlgmr.msra.gmra.mrb[0].mxu0 %vm9412_vm1, %v2507_v21  ;;  %6078 = vmatprep.mubr.msk.f32.mxu1 %vm9412_vm1, %v489_v22  ;;  %v7374_v21 = vld [vmem:[#allocation2 + $0xf4] sm:$0xff]  ;;  %v7412_v43 = vld [vmem:[#allocation2 + $0x12c] sm:$0xff]  ;;  %v452_v47 = vld [vmem:[#allocation2 + $0xa0] sm:$0xff] }
  0x4a   : > { %6383 = vmatpush3.msk.msra.mxu0 %vm614_vm0, %v7085_v25  ;;  %6331 = vmatprep.mubr.msk.f32.mxu0 %vm9412_vm1, %v7219_v23  ;;  %v492_v25 = vld [vmem:[#allocation2 + $0xb9] sm:$0xff] }
  0x4b   : > { %6438 = vmatprep.subr.msk.mxu0 %vm614_vm0, %v7225_v24  ;;  %v443_v22 = vld [vmem:[#allocation2 + $0x58] sm:$0xff] }
  0x4c   : > { %6079 = vmatmul.mubr.msk.f32.gmra.mrb[20].mxu1 %vm9412_vm1, %v490_v26  ;;  %v7382_v26 = vld [vmem:[#allocation2 + $0xfc] sm:$0xff] }
  0x4d   : > { %6332 = vmatmul.mubr.msk.f32.gmra.mrb[2].mxu0 %vm9412_vm1, %v7233_v27  ;;  %6081 = vmatprep.mubr.msk.f32.mxu1 %vm9412_vm1, %v491_v28  ;;  %v444_v28 = vld [vmem:[#allocation2 + $0x60] sm:$0xff] }
  0x4e   : > { %6334 = vmatprep.mubr.msk.f32.mxu0 %vm9412_vm1, %v7235_v29 }
  0x50   : > { %6082 = vmatmul.mubr.msk.f32.gmra.mrb[22].mxu1 %vm9412_vm1, %v492_v25  ;;  %v7384_v25 = vld [vmem:[#allocation2 + $0x104] sm:$0xff] }
  0x51   : > { %6335 = vmatmul.mubr.msk.f32.gmra.mrb[4].mxu0 %vm9412_vm1, %v7245_v30  ;;  %6084 = vmatprep.mubr.msk.f32.mxu1 %vm9412_vm1, %v493_v31  ;;  %v445_v31 = vld [vmem:[#allocation2 + $0x68] sm:$0xff] }
  0x52   : > { %6337 = vmatprep.mubr.msk.f32.mxu0 %vm9412_vm1, %v7247_v32 }
  0x54   : > { %6085 = vmatmul.mubr.msk.f32.gmra.mrb[24].mxu1 %vm9412_vm1, %v494_v33  ;;  %v7392_v33 = vld [vmem:[#allocation2 + $0x10c] sm:$0xff] }
  0x55   : > { %6338 = vmatmul.mubr.msk.f32.gmra.mrb[6].mxu0 %vm9412_vm1, %v7253_v34  ;;  %6087 = vmatprep.mubr.msk.f32.mxu1 %vm9412_vm1, %v495_v35  ;;  %v446_v35 = vld [vmem:[#allocation2 + $0x70] sm:$0xff] }
  0x56   : > { %6340 = vmatprep.mubr.msk.f32.mxu0 %vm9412_vm1, %v7259_v38 }
  0x58   : > { %6088 = vmatmul.mubr.msk.f32.gmra.mrb[26].mxu1 %vm9412_vm1, %v496_v41  ;;  %v7404_v41 = vld [vmem:[#allocation2 + $0x124] sm:$0xff] }
  0x59   : > { %6341 = vmatmul.mubr.msk.f32.gmra.mrb[8].mxu0 %vm9412_vm1, %v7271_v44  ;;  %6090 = vmatprep.mubr.msk.f32.mxu1 %vm9412_vm1, %v497_v45  ;;  %v450_v45 = vld [vmem:[#allocation2 + $0x90] sm:$0xff] }
  0x5a   : > { %6343 = vmatprep.mubr.msk.f32.mxu0 %vm9412_vm1, %v7273_v46 }
  0x5c   : > { %6091 = vmatmul.mubr.msk.f32.gmra.mrb[28].mxu1 %vm9412_vm1, %v498_v48  ;;  %v7424_v48 = vld [vmem:[%s9409_s2 + $0x20] sm:$0xf] }
  0x5d   : > { %6344 = vmatmul.mubr.msk.f32.gmra.mrb[10].mxu0 %vm9412_vm1, %v7283_v5  ;;  %6093 = vmatprep.mubr.msk.f32.mxu1 %vm9412_vm1, %v499_v49  ;;  %v453_v49 = vld [vmem:[#allocation2 + $0xa8] sm:$0xff] }
  0x5e   : > { %6346 = vmatprep.mubr.msk.f32.mxu0 %vm9412_vm1, %v7285_v50 }
  0x60   : > { %6094 = vmatmul.mubr.msk.f32.gmra.mrb[30].mxu1 %vm9412_vm1, %v500_v51  ;;  %v6931_v51 = vmov 0.0  }
  0x61   : > { %6347 = vmatmul.mubr.msk.f32.gmra.mrb[12].mxu0 %vm9412_vm1, %v7293_v52  ;;  %6096 = vmatprep.mubr.msk.f32.mxu1 %vm9412_vm1, %v501_v2  ;;  %431 = vst.msk [vmem:[#allocation2 + $0x144] sm:$0xff] %vm9412_vm1, %v6931_v51  ;;  %v460_v2 = vld [vmem:[#allocation2 + $0xe0] sm:$0xff]  ;;  %v7666_v51 = vld [vmem:[#allocation2 + $0x10a] sm:$0xff] }
  0x62   : > { %6349 = vmatprep.mubr.msk.f32.mxu0 %vm9412_vm1, %v7295_v53 }
  0x64   : > { %6097 = vmatmul.mubr.msk.f32.gmra.mrb[32].mxu1 %vm9412_vm1, %v502_v54  ;;  %v1220_v54 = vld [vmem:[#allocation2 + $0xa] sm:$0xff] }
  0x65   : > { %6350 = vmatmul.mubr.msk.f32.gmra.mrb[14].mxu0 %vm9412_vm1, %v7303_v3  ;;  %6099 = vmatprep.mubr.msk.f32.mxu1 %vm9412_vm1, %v503_v55  ;;  %v7491_v55 = vld [vmem:[#allocation2 + $0x1a] sm:$0xff] }
  0x66   : > { %6352 = vmatprep.mubr.msk.f32.mxu0 %vm9412_vm1, %v7305_v56 }
  0x68   : > { %6100 = vmatmul.mubr.msk.f32.gmra.mrb[34].mxu1 %vm9412_vm1, %v504_v57  ;;  %v7502_v57 = vld [vmem:[%s9409_s2 + $0x10] sm:$0xf] }
  0x69   : > { %6353 = vmatmul.mubr.msk.f32.gmra.mrb[16].mxu0 %vm9412_vm1, %v7313_v59  ;;  %6104 = vmatprep.mubr.msk.f32.mxu1 %vm9412_vm1, %v432_v60  ;;  %v7516_v60 = vld [vmem:[#allocation2 + $0x32] sm:$0xff] }
  0x6a   : > { %6355 = vmatprep.mubr.msk.f32.mxu0 %vm9412_vm1, %v7315_v61 }
  0x6c   : > { %6105 = vmatmul.mubr.msk.f32.vlgmr.msra.gmra.mrb[0].mxu1 %vm9412_vm1, %v433_v62  ;;  %v7528_v62 = vld [vmem:[#allocation2 + $0x42] sm:$0xff] }
  0x6d   : > { %6159 = vmatpush3.msk.msra.mxu1 %vm614_vm0, %v7126_v58  ;;  %6356 = vmatmul.mubr.msk.f32.gmra.mrb[18].mxu0 %vm9412_vm1, %v7323_v63  ;;  %v437_v58 = vld [vmem:[#allocation2 + $0x28] sm:$0xff] }
  0x6e   : > { %6107 = vmatprep.mubr.msk.f32.mxu1 %vm9412_vm1, %v434_v0  ;;  %6358 = vmatprep.mubr.msk.f32.mxu0 %vm9412_vm1, %v7325_v1  ;;  %v7540_v0 = vld [vmem:[#allocation2 + $0x52] sm:$0xff] }
  0x6f   : > { %6214 = vmatprep.subr.msk.mxu1 %vm614_vm0, %v7331_v6 }
  0x70   : > { %6108 = vmatmul.mubr.msk.f32.gmra.mrb[2].mxu1 %vm9412_vm1, %v435_v7  ;;  %v7560_v7 = vld [vmem:[#allocation2 + $0x6a] sm:$0xff] }
  0x71   : > { %6359 = vmatmul.mubr.msk.f32.gmra.mrb[20].mxu0 %vm9412_vm1, %v7340_v8  ;;  %6110 = vmatprep.mubr.msk.f32.mxu1 %vm9412_vm1, %v436_v9  ;;  %v7572_v9 = vld [vmem:[#allocation2 + $0x7a] sm:$0xff] }
  0x72   : > { %6361 = vmatprep.mubr.msk.f32.mxu0 %vm9412_vm1, %v7342_v10 }
  0x74   : > { %6111 = vmatmul.mubr.msk.f32.gmra.mrb[4].mxu1 %vm9412_vm1, %v437_v58  ;;  %v2969_v58 = vld [vmem:[#allocation2 + $0x134] sm:$0xff] }
  0x75   : > { %6362 = vmatmul.mubr.msk.f32.gmra.mrb[22].mxu0 %vm9412_vm1, %v7352_v11  ;;  %6113 = vmatprep.mubr.msk.f32.mxu1 %vm9412_vm1, %v438_v12  ;;  %v2970_v12 = vld [vmem:[#allocation2 + $0x13c] sm:$0xff] }
  0x76   : > { %6364 = vmatprep.mubr.msk.f32.mxu0 %vm9412_vm1, %v7354_v13 }
  0x78   : > { %6114 = vmatmul.mubr.msk.f32.gmra.mrb[6].mxu1 %vm9412_vm1, %v439_v14  ;;  %v3364_v14 = vld [vmem:[#allocation2 + $0x25] sm:$0xff] }
  0x79   : > { %6365 = vmatmul.mubr.msk.f32.gmra.mrb[24].mxu0 %vm9412_vm1, %v7362_v15  ;;  %6116 = vmatprep.mubr.msk.f32.mxu1 %vm9412_vm1, %v440_v16  ;;  %v3365_v16 = vld [vmem:[#allocation2 + $0x2d] sm:$0xff] }
  0x7a   : > { %6367 = vmatprep.mubr.msk.f32.mxu0 %vm9412_vm1, %v7364_v17 }
  0x7c   : > { %6117 = vmatmul.mubr.msk.f32.gmra.mrb[8].mxu1 %vm9412_vm1, %v441_v18  ;;  %v3366_v18 = vld [vmem:[#allocation2 + $0x35] sm:$0xff] }
  0x7d   : > { %6368 = vmatmul.mubr.msk.f32.gmra.mrb[26].mxu0 %vm9412_vm1, %v7372_v19  ;;  %6119 = vmatprep.mubr.msk.f32.mxu1 %vm9412_vm1, %v442_v20  ;;  %v3367_v20 = vld [vmem:[#allocation2 + $0x3d] sm:$0xff] }
  0x7e   : > { %6370 = vmatprep.mubr.msk.f32.mxu0 %vm9412_vm1, %v7374_v21 }
  0x80   : > { %6120 = vmatmul.mubr.msk.f32.gmra.mrb[10].mxu1 %vm9412_vm1, %v443_v22  ;;  %v3368_v22 = vld [vmem:[#allocation2 + $0x45] sm:$0xff] }
  0x81   : > { %6371 = vmatmul.mubr.msk.f32.gmra.mrb[28].mxu0 %vm9412_vm1, %v7382_v26  ;;  %6122 = vmatprep.mubr.msk.f32.mxu1 %vm9412_vm1, %v444_v28  ;;  %v3369_v28 = vld [vmem:[#allocation2 + $0x4d] sm:$0xff] }
  0x82   : > { %6373 = vmatprep.mubr.msk.f32.mxu0 %vm9412_vm1, %v7384_v25 }
  0x84   : > { %6123 = vmatmul.mubr.msk.f32.gmra.mrb[12].mxu1 %vm9412_vm1, %v445_v31  ;;  %v3370_v31 = vld [vmem:[#allocation2 + $0x55] sm:$0xff] }
  0x85   : > { %6374 = vmatmul.mubr.msk.f32.gmra.mrb[30].mxu0 %vm9412_vm1, %v7392_v33  ;;  %6125 = vmatprep.mubr.msk.f32.mxu1 %vm9412_vm1, %v446_v35  ;;  %v3371_v35 = vld [vmem:[#allocation2 + $0x5d] sm:$0xff] }
  0x86   : > { %6376 = vmatprep.mubr.msk.f32.mxu0 %vm9412_vm1, %v7394_v36 }
  0x88   : > { %6126 = vmatmul.mubr.msk.f32.gmra.mrb[14].mxu1 %vm9412_vm1, %v447_v37  ;;  %v3372_v37 = vld [vmem:[#allocation2 + $0x65] sm:$0xff] }
  0x89   : > { %6377 = vmatmul.mubr.msk.f32.gmra.mrb[32].mxu0 %vm9412_vm1, %v7402_v39  ;;  %6128 = vmatprep.mubr.msk.f32.mxu1 %vm9412_vm1, %v448_v40  ;;  %v3373_v40 = vld [vmem:[#allocation2 + $0x6d] sm:$0xff] }
  0x8a   : > { %6379 = vmatprep.mubr.msk.f32.mxu0 %vm9412_vm1, %v7404_v41 }
  0x8c   : > { %6129 = vmatmul.mubr.msk.f32.gmra.mrb[16].mxu1 %vm9412_vm1, %v449_v42  ;;  %v3374_v42 = vld [vmem:[#allocation2 + $0x75] sm:$0xff] }
  0x8d   : > { %6380 = vmatmul.mubr.msk.f32.gmra.mrb[34].mxu0 %vm9412_vm1, %v7412_v43  ;;  %6131 = vmatprep.mubr.msk.f32.mxu1 %vm9412_vm1, %v450_v45  ;;  %v3375_v45 = vld [vmem:[#allocation2 + $0x7d] sm:$0xff] }
  0x8e   : > { %6384 = vmatprep.mubr.msk.f32.mxu0 %vm9412_vm1, %v7219_v23  ;;  %v454_v23 = vld [vmem:[#allocation2 + $0xb0] sm:$0xff] }
  0x90   : > { %6132 = vmatmul.mubr.msk.f32.gmra.mrb[18].mxu1 %vm9412_vm1, %v451_v4  ;;  %v7649_v4 = vld [vmem:[#allocation2 + $0xf2] sm:$0xff] }
  0x91   : > { %6385 = vmatmul.mubr.msk.f32.vlgmr.msra.gmra.mrb[0].mxu0 %vm9412_vm1, %v7233_v27  ;;  %6134 = vmatprep.mubr.msk.f32.mxu1 %vm9412_vm1, %v452_v47  ;;  %v455_v27 = vld [vmem:[#allocation2 + $0xb8] sm:$0xff]  ;;  %v3376_v47 = vld [vmem:[#allocation2 + $0x85] sm:$0xff] }
  0x92   : > { %6439 = vmatpush3.msk.msra.mxu0 %vm614_vm0, %v7225_v24  ;;  %6387 = vmatprep.mubr.msk.f32.mxu0 %vm9412_vm1, %v7235_v29  ;;  %v456_v24 = vld [vmem:[#allocation2 + $0xc0] sm:$0xff]  ;;  %v457_v29 = vld [vmem:[#allocation2 + $0xc8] sm:$0xff] }
  0x93   : > { %6494 = vmatprep.subr.msk.mxu0 %vm614_vm0, %v7424_v48 }
  0x94   : > { %6135 = vmatmul.mubr.msk.f32.gmra.mrb[20].mxu1 %vm9412_vm1, %v453_v49  ;;  %v3377_v49 = vld [vmem:[#allocation2 + $0x8d] sm:$0xff] }
  0x95   : > { %6388 = vmatmul.mubr.msk.f32.gmra.mrb[2].mxu0 %vm9412_vm1, %v7245_v30  ;;  %6137 = vmatprep.mubr.msk.f32.mxu1 %vm9412_vm1, %v454_v23  ;;  %v458_v30 = vld [vmem:[#allocation2 + $0xd0] sm:$0xff]  ;;  %v7659_v23 = vld [vmem:[#allocation2 + $0x102] sm:$0xff] }
  0x96   : > { %6390 = vmatprep.mubr.msk.f32.mxu0 %vm9412_vm1, %v7247_v32  ;;  %v459_v32 = vld [vmem:[#allocation2 + $0xd8] sm:$0xff] }
  0x98   : > { %6138 = vmatmul.mubr.msk.f32.gmra.mrb[22].mxu1 %vm9412_vm1, %v455_v27  ;;  %v3378_v27 = vld [vmem:[#allocation2 + $0x95] sm:$0xff] }
  0x99   : > { %6391 = vmatmul.mubr.msk.f32.gmra.mrb[4].mxu0 %vm9412_vm1, %v7253_v34  ;;  %6140 = vmatprep.mubr.msk.f32.mxu1 %vm9412_vm1, %v456_v24  ;;  %v461_v34 = vld [vmem:[#allocation2 + $0xe8] sm:$0xff]  ;;  %v3379_v24 = vld [vmem:[#allocation2 + $0x9d] sm:$0xff] }
  0x9a   : > { %6393 = vmatprep.mubr.msk.f32.mxu0 %vm9412_vm1, %v7259_v38  ;;  %v462_v38 = vld [vmem:[#allocation2 + $0xf0] sm:$0xff] }
  0x9c   : > { %6141 = vmatmul.mubr.msk.f32.gmra.mrb[24].mxu1 %vm9412_vm1, %v457_v29  ;;  %v7669_v29 = vld [vmem:[#allocation2 + $0x112] sm:$0xff] }
  0x9d   : > { %6394 = vmatmul.mubr.msk.f32.gmra.mrb[6].mxu0 %vm9412_vm1, %v7271_v44  ;;  %6143 = vmatprep.mubr.msk.f32.mxu1 %vm9412_vm1, %v458_v30  ;;  %v463_v44 = vld [vmem:[#allocation2 + $0xf8] sm:$0xff]  ;;  %v3380_v30 = vld [vmem:[#allocation2 + $0xa5] sm:$0xff] }
  0x9e   : > { %6396 = vmatprep.mubr.msk.f32.mxu0 %vm9412_vm1, %v7273_v46  ;;  %v464_v46 = vld [vmem:[#allocation2 + $0x100] sm:$0xff] }
  0xa0   : > { %6144 = vmatmul.mubr.msk.f32.gmra.mrb[26].mxu1 %vm9412_vm1, %v459_v32  ;;  %v7676_v32 = vld [vmem:[#allocation2 + $0x11a] sm:$0xff] }
  0xa1   : > { %6397 = vmatmul.mubr.msk.f32.gmra.mrb[8].mxu0 %vm9412_vm1, %v7283_v5  ;;  %6146 = vmatprep.mubr.msk.f32.mxu1 %vm9412_vm1, %v460_v2  ;;  %v465_v5 = vld [vmem:[#allocation2 + $0x108] sm:$0xff] }
  0xa2   : > { %6399 = vmatprep.mubr.msk.f32.mxu0 %vm9412_vm1, %v7285_v50  ;;  %v466_v50 = vld [vmem:[#allocation2 + $0x110] sm:$0xff] }
  0xa3   : > { %v3381_v2 = vld [vmem:[#allocation2 + $0xad] sm:$0xff] }
  0xa4   : > { %6147 = vmatmul.mubr.msk.f32.gmra.mrb[28].mxu1 %vm9412_vm1, %v461_v34  ;;  %v3382_v34 = vld [vmem:[#allocation2 + $0xb5] sm:$0xff] }
  0xa5   : > { %6400 = vmatmul.mubr.msk.f32.gmra.mrb[10].mxu0 %vm9412_vm1, %v7293_v52  ;;  %6149 = vmatprep.mubr.msk.f32.mxu1 %vm9412_vm1, %v462_v38  ;;  %v467_v52 = vld [vmem:[#allocation2 + $0x118] sm:$0xff] }
  0xa6   : > { %6402 = vmatprep.mubr.msk.f32.mxu0 %vm9412_vm1, %v7295_v53  ;;  %v1219_v53 = vld [vmem:[#allocation2 + $0x2] sm:$0xff] }
  0xa7   : > { %v3383_v38 = vld [vmem:[#allocation2 + $0xbd] sm:$0xff] }
  0xa8   : > { %6150 = vmatmul.mubr.msk.f32.gmra.mrb[30].mxu1 %vm9412_vm1, %v463_v44  ;;  %v3384_v44 = vld [vmem:[#allocation2 + $0xc5] sm:$0xff] }
  0xa9   : > { %6403 = vmatmul.mubr.msk.f32.gmra.mrb[12].mxu0 %vm9412_vm1, %v7303_v3  ;;  %6152 = vmatprep.mubr.msk.f32.mxu1 %vm9412_vm1, %v464_v46  ;;  %v7484_v3 = vld [vmem:[#allocation2 + $0x12] sm:$0xff] }
  0xaa   : > { %6405 = vmatprep.mubr.msk.f32.mxu0 %vm9412_vm1, %v7305_v56  ;;  %v7497_v56 = vld [vmem:[#allocation2 + $0x22] sm:$0xff]  ;;  %v3385_v46 = vld [vmem:[#allocation2 + $0xcd] sm:$0xff] }
  0xac   : > { %6153 = vmatmul.mubr.msk.f32.gmra.mrb[32].mxu1 %vm9412_vm1, %v465_v5  ;;  %v3386_v5 = vld [vmem:[#allocation2 + $0xd5] sm:$0xff] }
  0xad   : > { %6406 = vmatmul.mubr.msk.f32.gmra.mrb[14].mxu0 %vm9412_vm1, %v7313_v59  ;;  %6155 = vmatprep.mubr.msk.f32.mxu1 %vm9412_vm1, %v466_v50  ;;  %v7512_v59 = vld [vmem:[#allocation2 + $0x2a] sm:$0xff]  ;;  %v3387_v50 = vld [vmem:[#allocation2 + $0xdd] sm:$0xff] }
  0xae   : > { %6408 = vmatprep.mubr.msk.f32.mxu0 %vm9412_vm1, %v7315_v61  ;;  %v7524_v61 = vld [vmem:[#allocation2 + $0x3a] sm:$0xff] }
  0xb0   : > { %6156 = vmatmul.mubr.msk.f32.gmra.mrb[34].mxu1 %vm9412_vm1, %v467_v52  ;;  %v3388_v52 = vld [vmem:[#allocation2 + $0xe5] sm:$0xff] }
  0xb1   : > { %6409 = vmatmul.mubr.msk.f32.gmra.mrb[16].mxu0 %vm9412_vm1, %v7323_v63  ;;  %6160 = vmatprep.mubr.msk.f32.mxu1 %vm9412_vm1, %v1219_v53  ;;  %v7536_v63 = vld [vmem:[#allocation2 + $0x4a] sm:$0xff] }
  0xb2   : > { %6411 = vmatprep.mubr.msk.f32.mxu0 %vm9412_vm1, %v7325_v1  ;;  %v7548_v1 = vld [vmem:[#allocation2 + $0x5a] sm:$0xff]  ;;  %v3389_v53 = vld [vmem:[#allocation2 + $0xed] sm:$0xff] }
  0xb4   : > { %6161 = vmatmul.mubr.msk.f32.vlgmr.msra.gmra.mrb[0].mxu1 %vm9412_vm1, %v1220_v54  ;;  %v3390_v54 = vld [vmem:[#allocation2 + $0xf5] sm:$0xff] }
  0xb5   : > { %6215 = vmatpush3.msk.msra.mxu1 %vm614_vm0, %v7331_v6  ;;  %6412 = vmatmul.mubr.msk.f32.gmra.mrb[18].mxu0 %vm9412_vm1, %v7340_v8  ;;  %v7552_v6 = vld [vmem:[#allocation2 + $0x62] sm:$0xff]  ;;  %v7564_v8 = vld [vmem:[#allocation2 + $0x72] sm:$0xff] }
  0xb6   : > { %6163 = vmatprep.mubr.msk.f32.mxu1 %vm9412_vm1, %v7484_v3  ;;  %6414 = vmatprep.mubr.msk.f32.mxu0 %vm9412_vm1, %v7342_v10  ;;  %v7576_v10 = vld [vmem:[#allocation2 + $0x82] sm:$0xff] }
  0xb7   : > { %6550 = vmatprep.subr.msk.mxu1 %vm614_vm0, %v7502_v57 }
  0xb8   : > { %6164 = vmatmul.mubr.msk.f32.gmra.mrb[2].mxu1 %vm9412_vm1, %v7491_v55 }
  0xb9   : > { %6415 = vmatmul.mubr.msk.f32.gmra.mrb[20].mxu0 %vm9412_vm1, %v7352_v11  ;;  %6166 = vmatprep.mubr.msk.f32.mxu1 %vm9412_vm1, %v7497_v56  ;;  %v7584_v11 = vld [vmem:[#allocation2 + $0x8a] sm:$0xff] }
  0xba   : > { %6417 = vmatprep.mubr.msk.f32.mxu0 %vm9412_vm1, %v7354_v13  ;;  %v7587_v13 = vld [vmem:[#allocation2 + $0x92] sm:$0xff] }
  0xbc   : > { %6167 = vmatmul.mubr.msk.f32.gmra.mrb[4].mxu1 %vm9412_vm1, %v7512_v59 }
  0xbd   : > { %6418 = vmatmul.mubr.msk.f32.gmra.mrb[22].mxu0 %vm9412_vm1, %v7362_v15  ;;  %6169 = vmatprep.mubr.msk.f32.mxu1 %vm9412_vm1, %v7516_v60  ;;  %v7594_v15 = vld [vmem:[#allocation2 + $0x9a] sm:$0xff] }
  0xbe   : > { %6420 = vmatprep.mubr.msk.f32.mxu0 %vm9412_vm1, %v7364_v17  ;;  %v7597_v17 = vld [vmem:[#allocation2 + $0xa2] sm:$0xff] }
  0xc0   : > { %6170 = vmatmul.mubr.msk.f32.gmra.mrb[6].mxu1 %vm9412_vm1, %v7524_v61 }
  0xc1   : > { %6421 = vmatmul.mubr.msk.f32.gmra.mrb[24].mxu0 %vm9412_vm1, %v7372_v19  ;;  %6172 = vmatprep.mubr.msk.f32.mxu1 %vm9412_vm1, %v7528_v62  ;;  %v7604_v19 = vld [vmem:[#allocation2 + $0xaa] sm:$0xff] }
  0xc2   : > { %6423 = vmatprep.mubr.msk.f32.mxu0 %vm9412_vm1, %v7374_v21  ;;  %v7609_v21 = vld [vmem:[#allocation2 + $0xb2] sm:$0xff] }
  0xc4   : > { %6173 = vmatmul.mubr.msk.f32.gmra.mrb[8].mxu1 %vm9412_vm1, %v7536_v63 }
  0xc5   : > { %6424 = vmatmul.mubr.msk.f32.gmra.mrb[26].mxu0 %vm9412_vm1, %v7382_v26  ;;  %6175 = vmatprep.mubr.msk.f32.mxu1 %vm9412_vm1, %v7540_v0  ;;  %v7616_v26 = vld [vmem:[#allocation2 + $0xba] sm:$0xff] }
  0xc6   : > { %6426 = vmatprep.mubr.msk.f32.mxu0 %vm9412_vm1, %v7384_v25  ;;  %v7619_v25 = vld [vmem:[#allocation2 + $0xc2] sm:$0xff] }
  0xc8   : > { %6176 = vmatmul.mubr.msk.f32.gmra.mrb[10].mxu1 %vm9412_vm1, %v7548_v1 }
  0xc9   : > { %6427 = vmatmul.mubr.msk.f32.gmra.mrb[28].mxu0 %vm9412_vm1, %v7392_v33  ;;  %6178 = vmatprep.mubr.msk.f32.mxu1 %vm9412_vm1, %v7552_v6  ;;  %v7626_v33 = vld [vmem:[#allocation2 + $0xca] sm:$0xff] }
  0xca   : > { %6429 = vmatprep.mubr.msk.f32.mxu0 %vm9412_vm1, %v7394_v36  ;;  %v7629_v36 = vld [vmem:[#allocation2 + $0xd2] sm:$0xff] }
  0xcc   : > { %6179 = vmatmul.mubr.msk.f32.gmra.mrb[12].mxu1 %vm9412_vm1, %v7560_v7 }
  0xcd   : > { %6430 = vmatmul.mubr.msk.f32.gmra.mrb[30].mxu0 %vm9412_vm1, %v7402_v39  ;;  %6181 = vmatprep.mubr.msk.f32.mxu1 %vm9412_vm1, %v7564_v8  ;;  %v7636_v39 = vld [vmem:[#allocation2 + $0xda] sm:$0xff] }
  0xce   : > { %6432 = vmatprep.mubr.msk.f32.mxu0 %vm9412_vm1, %v7404_v41  ;;  %v7639_v41 = vld [vmem:[#allocation2 + $0xe2] sm:$0xff] }
  0xd0   : > { %6182 = vmatmul.mubr.msk.f32.gmra.mrb[14].mxu1 %vm9412_vm1, %v7572_v9 }
  0xd1   : > { %6433 = vmatmul.mubr.msk.f32.gmra.mrb[32].mxu0 %vm9412_vm1, %v7412_v43  ;;  %6184 = vmatprep.mubr.msk.f32.mxu1 %vm9412_vm1, %v7576_v10  ;;  %v7646_v43 = vld [vmem:[#allocation2 + $0xea] sm:$0xff] }
  0xd2   : > { %6435 = vmatprep.mubr.msk.f32.mxu0 %vm9412_vm1, %v2969_v58  ;;  %v3800_v58 = vld [vmem:[#allocation2 + $0x5e] sm:$0xff] }
  0xd4   : > { %6185 = vmatmul.mubr.msk.f32.gmra.mrb[16].mxu1 %vm9412_vm1, %v7584_v11 }
  0xd5   : > { %6436 = vmatmul.mubr.msk.f32.gmra.mrb[34].mxu0 %vm9412_vm1, %v2970_v12  ;;  %6187 = vmatprep.mubr.msk.f32.mxu1 %vm9412_vm1, %v7587_v13  ;;  %v3802_v12 = vld [vmem:[#allocation2 + $0x6e] sm:$0xff] }
  0xd6   : > { %6440 = vmatprep.mubr.msk.f32.mxu0 %vm9412_vm1, %v3364_v14  ;;  %v3804_v14 = vld [vmem:[#allocation2 + $0x7e] sm:$0xff] }
  0xd8   : > { %6188 = vmatmul.mubr.msk.f32.gmra.mrb[18].mxu1 %vm9412_vm1, %v7594_v15 }
  0xd9   : > { %6441 = vmatmul.mubr.msk.f32.vlgmr.msra.gmra.mrb[0].mxu0 %vm9412_vm1, %v3365_v16  ;;  %6190 = vmatprep.mubr.msk.f32.mxu1 %vm9412_vm1, %v7597_v17  ;;  %v3806_v16 = vld [vmem:[#allocation2 + $0x8e] sm:$0xff] }
  0xda   : > { %6495 = vmatpush3.msk.msra.mxu0 %vm614_vm0, %v7424_v48  ;;  %6443 = vmatprep.mubr.msk.f32.mxu0 %vm9412_vm1, %v3366_v18  ;;  %v7656_v48 = vld [vmem:[#allocation2 + $0xfa] sm:$0xff] }
  0xdb   : > { %v3808_v18 = vld [vmem:[#allocation2 + $0x9e] sm:$0xff] }
  0xdc   : > { %6191 = vmatmul.mubr.msk.f32.gmra.mrb[20].mxu1 %vm9412_vm1, %v7604_v19 }
  0xdd   : > { %6444 = vmatmul.mubr.msk.f32.gmra.mrb[2].mxu0 %vm9412_vm1, %v3367_v20  ;;  %6193 = vmatprep.mubr.msk.f32.mxu1 %vm9412_vm1, %v7609_v21  ;;  %v3809_v20 = vld [vmem:[#allocation2 + $0xa6] sm:$0xff] }
  0xde   : > { %6446 = vmatprep.mubr.msk.f32.mxu0 %vm9412_vm1, %v3368_v22  ;;  %v3810_v22 = vld [vmem:[#allocation2 + $0xae] sm:$0xff] }
  0xe0   : > { %6194 = vmatmul.mubr.msk.f32.gmra.mrb[22].mxu1 %vm9412_vm1, %v7616_v26 }
  0xe1   : > { %6447 = vmatmul.mubr.msk.f32.gmra.mrb[4].mxu0 %vm9412_vm1, %v3369_v28  ;;  %6196 = vmatprep.mubr.msk.f32.mxu1 %vm9412_vm1, %v7619_v25  ;;  %v3811_v28 = vld [vmem:[#allocation2 + $0xb6] sm:$0xff] }
  0xe2   : > { %6449 = vmatprep.mubr.msk.f32.mxu0 %vm9412_vm1, %v3370_v31  ;;  %v3812_v31 = vld [vmem:[#allocation2 + $0xbe] sm:$0xff] }
  0xe4   : > { %6197 = vmatmul.mubr.msk.f32.gmra.mrb[24].mxu1 %vm9412_vm1, %v7626_v33 }
  0xe5   : > { %6450 = vmatmul.mubr.msk.f32.gmra.mrb[6].mxu0 %vm9412_vm1, %v3371_v35  ;;  %6199 = vmatprep.mubr.msk.f32.mxu1 %vm9412_vm1, %v7629_v36  ;;  %v3813_v35 = vld [vmem:[#allocation2 + $0xc6] sm:$0xff] }
  0xe6   : > { %6452 = vmatprep.mubr.msk.f32.mxu0 %vm9412_vm1, %v3372_v37  ;;  %v3814_v37 = vld [vmem:[#allocation2 + $0xce] sm:$0xff] }
  0xe8   : > { %6200 = vmatmul.mubr.msk.f32.gmra.mrb[26].mxu1 %vm9412_vm1, %v7636_v39 }
  0xe9   : > { %6453 = vmatmul.mubr.msk.f32.gmra.mrb[8].mxu0 %vm9412_vm1, %v3373_v40  ;;  %6202 = vmatprep.mubr.msk.f32.mxu1 %vm9412_vm1, %v7639_v41  ;;  %v3815_v40 = vld [vmem:[#allocation2 + $0xd6] sm:$0xff] }
  0xea   : > { %6455 = vmatprep.mubr.msk.f32.mxu0 %vm9412_vm1, %v3374_v42  ;;  %v3816_v42 = vld [vmem:[#allocation2 + $0xde] sm:$0xff] }
  0xec   : > { %6203 = vmatmul.mubr.msk.f32.gmra.mrb[28].mxu1 %vm9412_vm1, %v7646_v43 }
  0xed   : > { %6456 = vmatmul.mubr.msk.f32.gmra.mrb[10].mxu0 %vm9412_vm1, %v3375_v45  ;;  %6205 = vmatprep.mubr.msk.f32.mxu1 %vm9412_vm1, %v7649_v4  ;;  %v3817_v45 = vld [vmem:[#allocation2 + $0xe6] sm:$0xff] }
  0xee   : > { %6458 = vmatprep.mubr.msk.f32.mxu0 %vm9412_vm1, %v3376_v47  ;;  %v3818_v47 = vld [vmem:[#allocation2 + $0xee] sm:$0xff] }
  0xf0   : > { %6206 = vmatmul.mubr.msk.f32.gmra.mrb[30].mxu1 %vm9412_vm1, %v7656_v48 }
  0xf1   : > { %6459 = vmatmul.mubr.msk.f32.gmra.mrb[12].mxu0 %vm9412_vm1, %v3377_v49  ;;  %6208 = vmatprep.mubr.msk.f32.mxu1 %vm9412_vm1, %v7659_v23  ;;  %v3819_v49 = vld [vmem:[#allocation2 + $0xf6] sm:$0xff] }
  0xf2   : > { %6461 = vmatprep.mubr.msk.f32.mxu0 %vm9412_vm1, %v3378_v27  ;;  %v3820_v27 = vld [vmem:[#allocation2 + $0xfe] sm:$0xff] }
  0xf4   : > { %6209 = vmatmul.mubr.msk.f32.gmra.mrb[32].mxu1 %vm9412_vm1, %v7666_v51 }
  0xf5   : > { %6462 = vmatmul.mubr.msk.f32.gmra.mrb[14].mxu0 %vm9412_vm1, %v3379_v24  ;;  %6211 = vmatprep.mubr.msk.f32.mxu1 %vm9412_vm1, %v7669_v29  ;;  %v3821_v24 = vld [vmem:[#allocation2 + $0x106] sm:$0xff] }
  0xf6   : > { %6464 = vmatprep.mubr.msk.f32.mxu0 %vm9412_vm1, %v3380_v30  ;;  %v3822_v30 = vld [vmem:[#allocation2 + $0x10e] sm:$0xff] }
  0xf8   : > { %6212 = vmatmul.mubr.msk.f32.gmra.mrb[34].mxu1 %vm9412_vm1, %v7676_v32 }
  0xf9   : > { %6465 = vmatmul.mubr.msk.f32.gmra.mrb[16].mxu0 %vm9412_vm1, %v3381_v2  ;;  %6216 = vmatprep.mubr.msk.f32.mxu1 %vm9412_vm1, %v7484_v3  ;;  %v3391_v3 = vld [vmem:[#allocation2 + $0xfd] sm:$0xff] }
  0xfa   : > { %6467 = vmatprep.mubr.msk.f32.mxu0 %vm9412_vm1, %v3382_v34  ;;  %v3823_v2 = vld [vmem:[#allocation2 + $0x116] sm:$0xff]  ;;  %v2108_v34 = vld [vmem:[#allocation2 + $0x10b] sm:$0xff] }
  0xfc   : > { %6217 = vmatmul.mubr.msk.f32.vlgmr.msra.gmra.mrb[0].mxu1 %vm9412_vm1, %v7491_v55  ;;  %v3392_v55 = vld [vmem:[#allocation2 + $0x105] sm:$0xff] }
  0xfd   : > { %6551 = vmatpush3.msk.msra.mxu1 %vm614_vm0, %v7502_v57  ;;  %6468 = vmatmul.mubr.msk.f32.gmra.mrb[18].mxu0 %vm9412_vm1, %v3383_v38  ;;  %v3394_v57 = vld [vmem:[#allocation2 + $0x115] sm:$0xff]  ;;  %v3824_v38 = vld [vmem:[#allocation2 + $0x11e] sm:$0xff] }
  0xfe   : > { %6219 = vmatprep.mubr.msk.f32.mxu1 %vm9412_vm1, %v7497_v56  ;;  %6470 = vmatprep.mubr.msk.f32.mxu0 %vm9412_vm1, %v3384_v44  ;;  %v3393_v56 = vld [vmem:[#allocation2 + $0x10d] sm:$0xff] }
  0xff   : > { %v2109_v44 = vld [vmem:[#allocation2 + $0x113] sm:$0xff] }
 0x100   : > { %6220 = vmatmul.mubr.msk.f32.gmra.mrb[2].mxu1 %vm9412_vm1, %v7512_v59  ;;  %v3395_v59 = vld [vmem:[#allocation2 + $0x11d] sm:$0xff] }
 0x101   : > { %6471 = vmatmul.mubr.msk.f32.gmra.mrb[20].mxu0 %vm9412_vm1, %v3385_v46  ;;  %6222 = vmatprep.mubr.msk.f32.mxu1 %vm9412_vm1, %v7516_v60  ;;  %v3396_v60 = vld [vmem:[#allocation2 + $0x125] sm:$0xff] }
 0x102   : > { %6473 = vmatprep.mubr.msk.f32.mxu0 %vm9412_vm1, %v3386_v5  ;;  %v3825_v46 = vld [vmem:[#allocation2 + $0x126] sm:$0xff]  ;;  %v2110_v5 = vld [vmem:[#allocation2 + $0x11b] sm:$0xff] }
 0x104   : > { %6223 = vmatmul.mubr.msk.f32.gmra.mrb[4].mxu1 %vm9412_vm1, %v7524_v61  ;;  %v3397_v61 = vld [vmem:[#allocation2 + $0x12d] sm:$0xff] }
 0x105   : > { %6474 = vmatmul.mubr.msk.f32.gmra.mrb[22].mxu0 %vm9412_vm1, %v3387_v50  ;;  %6225 = vmatprep.mubr.msk.f32.mxu1 %vm9412_vm1, %v7528_v62  ;;  %v3398_v62 = vld [vmem:[#allocation2 + $0x135] sm:$0xff] }
 0x106   : > { %6476 = vmatprep.mubr.msk.f32.mxu0 %vm9412_vm1, %v3388_v52  ;;  %v3826_v50 = vld [vmem:[#allocation2 + $0x12e] sm:$0xff]  ;;  %v2111_v52 = vld [vmem:[#allocation2 + $0x123] sm:$0xff] }
 0x108   : > { %6226 = vmatmul.mubr.msk.f32.gmra.mrb[6].mxu1 %vm9412_vm1, %v7536_v63  ;;  %v3399_v63 = vld [vmem:[#allocation2 + $0x13d] sm:$0xff] }
 0x109   : > { %6477 = vmatmul.mubr.msk.f32.gmra.mrb[24].mxu0 %vm9412_vm1, %v3389_v53  ;;  %6228 = vmatprep.mubr.msk.f32.mxu1 %vm9412_vm1, %v7540_v0  ;;  %v3793_v0 = vld [vmem:[#allocation2 + $0x26] sm:$0xff]  ;;  %v3827_v53 = vld [vmem:[#allocation2 + $0x136] sm:$0xff] }
 0x10a   : > { %6479 = vmatprep.mubr.msk.f32.mxu0 %vm9412_vm1, %v3390_v54  ;;  %v2112_v54 = vld [vmem:[#allocation2 + $0x12b] sm:$0xff] }
 0x10c   : > { %6229 = vmatmul.mubr.msk.f32.gmra.mrb[8].mxu1 %vm9412_vm1, %v7548_v1  ;;  %v3794_v1 = vld [vmem:[#allocation2 + $0x2e] sm:$0xff] }
 0x10d   : > { %6480 = vmatmul.mubr.msk.f32.gmra.mrb[26].mxu0 %vm9412_vm1, %v3391_v3  ;;  %6231 = vmatprep.mubr.msk.f32.mxu1 %vm9412_vm1, %v7552_v6  ;;  %v3795_v6 = vld [vmem:[#allocation2 + $0x36] sm:$0xff]  ;;  %v3828_v3 = vld [vmem:[#allocation2 + $0x13e] sm:$0xff] }
 0x10e   : > { %6482 = vmatprep.mubr.msk.f32.mxu0 %vm9412_vm1, %v3392_v55  ;;  %v4222_v55 = vlaneseq }
 0x110   : > { %6232 = vmatmul.mubr.msk.f32.gmra.mrb[10].mxu1 %vm9412_vm1, %v7560_v7  ;;  %v3796_v7 = vld [vmem:[#allocation2 + $0x3e] sm:$0xff] }
 0x111   : > { %6483 = vmatmul.mubr.msk.f32.gmra.mrb[28].mxu0 %vm9412_vm1, %v3393_v56  ;;  %6234 = vmatprep.mubr.msk.f32.mxu1 %vm9412_vm1, %v7564_v8  ;;  %v3797_v8 = vld [vmem:[#allocation2 + $0x46] sm:$0xff]  ;;  %v7826_v56 = vshrl.u32 %v4222_v55, 7 }
 0x112   : > { %6485 = vmatprep.mubr.msk.f32.mxu0 %vm9412_vm1, %v3394_v57 }
 0x113   : > { %v4224_v57 = vadd.s32 8, %v7826_v56 }
 0x114   : > { %6235 = vmatmul.mubr.msk.f32.gmra.mrb[12].mxu1 %vm9412_vm1, %v7572_v9  ;;  %v3798_v9 = vld [vmem:[#allocation2 + $0x4e] sm:$0xff] }
 0x115   : > { %6486 = vmatmul.mubr.msk.f32.gmra.mrb[30].mxu0 %vm9412_vm1, %v3395_v59  ;;  %6237 = vmatprep.mubr.msk.f32.mxu1 %vm9412_vm1, %v7576_v10  ;;  %v3799_v10 = vld [vmem:[#allocation2 + $0x56] sm:$0xff]  ;;  %v4226_v59 = vadd.s32 24, %v7826_v56 }
 0x116   : > { %6488 = vmatprep.mubr.msk.f32.mxu0 %vm9412_vm1, %v3396_v60 }
 0x118   : > { %6238 = vmatmul.mubr.msk.f32.gmra.mrb[14].mxu1 %vm9412_vm1, %v7584_v11  ;;  %v3801_v11 = vld [vmem:[#allocation2 + $0x66] sm:$0xff] }
 0x119   : > { %6489 = vmatmul.mubr.msk.f32.gmra.mrb[32].mxu0 %vm9412_vm1, %v3397_v61  ;;  %6240 = vmatprep.mubr.msk.f32.mxu1 %vm9412_vm1, %v7587_v13  ;;  %v3803_v13 = vld [vmem:[#allocation2 + $0x76] sm:$0xff]  ;;  %v7830_v60 = vmul.u32.u64.low 3817748708, %v4224_v57  ;;  %v7831_v61 = vmul.u32.u64.high 3817748708, %v4224_v57, %v7830_v60 }
 0x11a   : > { %6491 = vmatprep.mubr.msk.f32.mxu0 %vm9412_vm1, %v3398_v62  ;;  %v4225_v62 = vadd.s32 16, %v7826_v56 }
 0x11c   : > { %6241 = vmatmul.mubr.msk.f32.gmra.mrb[16].mxu1 %vm9412_vm1, %v7594_v15  ;;  %v3805_v15 = vld [vmem:[#allocation2 + $0x86] sm:$0xff] }
 0x11d   : > { %6492 = vmatmul.mubr.msk.f32.gmra.mrb[34].mxu0 %vm9412_vm1, %v3399_v63  ;;  %6243 = vmatprep.mubr.msk.f32.mxu1 %vm9412_vm1, %v7597_v17  ;;  %v3807_v17 = vld [vmem:[#allocation2 + $0x96] sm:$0xff] }
 0x11e   : > { %6496 = vmatprep.mubr.msk.f32.mxu0 %vm9412_vm1, %v3793_v0  ;;  %v7835_v63 = vmul.u32.u64.low 3817748708, %v7826_v56  ;;  %v7836_v0 = vmul.u32.u64.high 3817748708, %v7826_v56, %v7835_v63 }
 0x120   : > { %6244 = vmatmul.mubr.msk.f32.gmra.mrb[18].mxu1 %vm9412_vm1, %v7604_v19  ;;  %v1682_v19 = vld [vmem:[#allocation2 + $0x122] sm:$0xff] }
 0x121   : > { %6497 = vmatmul.mubr.msk.f32.vlgmr.msra.gmra.mrb[0].mxu0 %vm9412_vm1, %v3794_v1  ;;  %6246 = vmatprep.mubr.msk.f32.mxu1 %vm9412_vm1, %v7609_v21  ;;  %v1683_v21 = vld [vmem:[#allocation2 + $0x12a] sm:$0xff] }
 0x122   : > { %6499 = vmatprep.mubr.msk.f32.mxu0 %vm9412_vm1, %v3795_v6  ;;  %v7838_v1 = vmul.u32.u64.low 3817748708, %v4226_v59  ;;  %v7839_v6 = vmul.u32.u64.high 3817748708, %v4226_v59, %v7838_v1 }
 0x124   : > { %6247 = vmatmul.mubr.msk.f32.gmra.mrb[20].mxu1 %vm9412_vm1, %v7616_v26  ;;  %v2095_v26 = vld [vmem:[#allocation2 + $0xa3] sm:$0xff] }
 0x125   : > { %6500 = vmatmul.mubr.msk.f32.gmra.mrb[2].mxu0 %vm9412_vm1, %v3796_v7  ;;  %6249 = vmatprep.mubr.msk.f32.mxu1 %vm9412_vm1, %v7619_v25  ;;  %v2096_v25 = vld [vmem:[#allocation2 + $0xab] sm:$0xff]  ;;  %v4228_v7 = vadd.s32 40, %v7826_v56 }
 0x126   : > { %6502 = vmatprep.mubr.msk.f32.mxu0 %vm9412_vm1, %v3797_v8 }
 0x128   : > { %6250 = vmatmul.mubr.msk.f32.gmra.mrb[22].mxu1 %vm9412_vm1, %v7626_v33  ;;  %v2097_v33 = vld [vmem:[#allocation2 + $0xb3] sm:$0xff] }
 0x129   : > { %6503 = vmatmul.mubr.msk.f32.gmra.mrb[4].mxu0 %vm9412_vm1, %v3798_v9  ;;  %6252 = vmatprep.mubr.msk.f32.mxu1 %vm9412_vm1, %v7629_v36  ;;  %v2098_v36 = vld [vmem:[#allocation2 + $0xbb] sm:$0xff]  ;;  %v7842_v8 = vmul.u32.u64.low 3817748708, %v4225_v62  ;;  %v7843_v9 = vmul.u32.u64.high 3817748708, %v4225_v62, %v7842_v8 }
 0x12a   : > { %6505 = vmatprep.mubr.msk.f32.mxu0 %vm9412_vm1, %v3799_v10 }
 0x12c   : > { %6253 = vmatmul.mubr.msk.f32.gmra.mrb[24].mxu1 %vm9412_vm1, %v7636_v39  ;;  %v2099_v39 = vld [vmem:[#allocation2 + $0xc3] sm:$0xff] }
 0x12d   : > { %6506 = vmatmul.mubr.msk.f32.gmra.mrb[6].mxu0 %vm9412_vm1, %v3800_v58  ;;  %6255 = vmatprep.mubr.msk.f32.mxu1 %vm9412_vm1, %v7639_v41  ;;  %v2100_v41 = vld [vmem:[#allocation2 + $0xcb] sm:$0xff]  ;;  %v7845_v10 = vmul.u32.u64.low 3817748708, %v4228_v7  ;;  %v7846_v58 = vmul.u32.u64.high 3817748708, %v4228_v7, %v7845_v10 }
 0x12e   : > { %6508 = vmatprep.mubr.msk.f32.mxu0 %vm9412_vm1, %v3801_v11  ;;  %v4227_v11 = vadd.s32 32, %v7826_v56 }
 0x130   : > { %6256 = vmatmul.mubr.msk.f32.gmra.mrb[26].mxu1 %vm9412_vm1, %v7646_v43  ;;  %v2101_v43 = vld [vmem:[#allocation2 + $0xd3] sm:$0xff] }
 0x131   : > { %6509 = vmatmul.mubr.msk.f32.gmra.mrb[8].mxu0 %vm9412_vm1, %v3802_v12  ;;  %6258 = vmatprep.mubr.msk.f32.mxu1 %vm9412_vm1, %v7649_v4  ;;  %v2102_v4 = vld [vmem:[#allocation2 + $0xdb] sm:$0xff]  ;;  %v4276_v12 = vshrl.u32 %v7831_v61, 4 }
 0x132   : > { %6511 = vmatprep.mubr.msk.f32.mxu0 %vm9412_vm1, %v3803_v13  ;;  %v4265_v13 = vshrl.u32 %v7836_v0, 4 }
 0x134   : > { %6259 = vmatmul.mubr.msk.f32.gmra.mrb[28].mxu1 %vm9412_vm1, %v7656_v48  ;;  %v2103_v48 = vld [vmem:[#allocation2 + $0xe3] sm:$0xff] }
 0x135   : > { %6512 = vmatmul.mubr.msk.f32.gmra.mrb[10].mxu0 %vm9412_vm1, %v3804_v14  ;;  %6261 = vmatprep.mubr.msk.f32.mxu1 %vm9412_vm1, %v7659_v23  ;;  %v2104_v23 = vld [vmem:[#allocation2 + $0xeb] sm:$0xff]  ;;  %v4298_v14 = vshrl.u32 %v7839_v6, 4 }
 0x136   : > { %6514 = vmatprep.mubr.msk.f32.mxu0 %vm9412_vm1, %v3805_v15 }
 0x138   : > { %6262 = vmatmul.mubr.msk.f32.gmra.mrb[30].mxu1 %vm9412_vm1, %v7666_v51  ;;  %v2105_v51 = vld [vmem:[#allocation2 + $0xf3] sm:$0xff] }
 0x139   : > { %6515 = vmatmul.mubr.msk.f32.gmra.mrb[12].mxu0 %vm9412_vm1, %v3806_v16  ;;  %6264 = vmatprep.mubr.msk.f32.mxu1 %vm9412_vm1, %v7669_v29  ;;  %v2106_v29 = vld [vmem:[#allocation2 + $0xfb] sm:$0xff]  ;;  %v7852_v15 = vmul.u32.u64.low 3817748708, %v4227_v11  ;;  %v7853_v16 = vmul.u32.u64.high 3817748708, %v4227_v11, %v7852_v15 }
 0x13a   : > { %6517 = vmatprep.mubr.msk.f32.mxu0 %vm9412_vm1, %v3807_v17  ;;  %v7856_v17 = vadd.s32 56, %v7826_v56 }
 0x13c   : > { %6265 = vmatmul.mubr.msk.f32.gmra.mrb[32].mxu1 %vm9412_vm1, %v7676_v32  ;;  %v2107_v32 = vld [vmem:[#allocation2 + $0x103] sm:$0xff] }
 0x13d   : > { %6518 = vmatmul.mubr.msk.f32.gmra.mrb[14].mxu0 %vm9412_vm1, %v3808_v18  ;;  %6267 = vmatprep.mubr.msk.f32.mxu1 %vm9412_vm1, %v1682_v19  ;;  %v7859_v18 = vadd.s32 48, %v7826_v56  ;;  %v4277_v19 = vmul.u32 18, %v4276_v12 }
 0x13e   : > { %6520 = vmatprep.mubr.msk.f32.mxu0 %vm9412_vm1, %v3809_v20  ;;  %v4287_v20 = vshrl.u32 %v7843_v9, 4  ;;  %v7981_v9 = vadd.s32 120, %v7826_v56 }
 0x140   : > { %6268 = vmatmul.mubr.msk.f32.gmra.mrb[34].mxu1 %vm9412_vm1, %v1683_v21  ;;  %v4266_v21 = vmul.u32 18, %v4265_v13 }
 0x141   : > { %6521 = vmatmul.mubr.msk.f32.gmra.mrb[16].mxu0 %vm9412_vm1, %v3810_v22  ;;  %6299 = vmatprep.mubr.msk.f32.mxu1 %vm9412_vm1, %v2095_v26  ;;  %v4299_v22 = vmul.u32 18, %v4298_v14  ;;  %v4320_v26 = vshrl.u32 %v7846_v58, 4  ;;  %v8727_v14 = vadd.s32 272, %v7826_v56 }
 0x142   : > { %6523 = vmatprep.mubr.msk.f32.mxu0 %vm9412_vm1, %v3811_v28 }
 0x144   : > { %6300 = vmatmul.mubr.msk.f32.vlgmr.msra.gmra.mrb[18].mxu1 %vm9412_vm1, %v2096_v25  ;;  %v7864_v28 = vmul.u32.u64.low 3817748708, %v7856_v17  ;;  %v7865_v25 = vmul.u32.u64.high 3817748708, %v7856_v17, %v7864_v28 }
 0x145   : > { %6524 = vmatmul.mubr.msk.f32.gmra.mrb[18].mxu0 %vm9412_vm1, %v3812_v31  ;;  %6302 = vmatprep.mubr.msk.f32.mxu1 %vm9412_vm1, %v2097_v33  ;;  %v7868_v31 = vmul.u32.u64.low 3817748708, %v7859_v18  ;;  %v7869_v33 = vmul.u32.u64.high 3817748708, %v7859_v18, %v7868_v31 }
 0x146   : > { %6526 = vmatprep.mubr.msk.f32.mxu0 %vm9412_vm1, %v3813_v35  ;;  %v7872_v35 = vadd.s32 72, %v7826_v56  ;;  %v9535_v31 = vmov 0 }
 0x148   : > { %6303 = vmatmul.mubr.msk.f32.gmra.mrb[20].mxu1 %vm9412_vm1, %v2098_v36  ;;  %v7875_v36 = vadd.s32 64, %v7826_v56 }
 0x149   : > { %6527 = vmatmul.mubr.msk.f32.gmra.mrb[20].mxu0 %vm9412_vm1, %v3814_v37  ;;  %6305 = vmatprep.mubr.msk.f32.mxu1 %vm9412_vm1, %v2099_v39  ;;  %v7877_v37 = vsub.s32 %v4224_v57, %v4277_v19  ;;  %v4288_v39 = vmul.u32 18, %v4287_v20 }
 0x14a   : > { %6529 = vmatprep.mubr.msk.f32.mxu0 %vm9412_vm1, %v3815_v40  ;;  %v7880_v40 = vadd.s32 88, %v7826_v56 }
 0x14b   : > { %vm4656_vm3 = vcmp.ne.s32.totalorder %v7877_v37, 0  ;;  %vm4692_vm4 = vcmp.lt.s32.totalorder %v7877_v37, 0 }
 0x14c   : > { %6306 = vmatmul.mubr.msk.f32.gmra.mrb[22].mxu1 %vm9412_vm1, %v2100_v41  ;;  %v7883_v41 = vsub.s32 %v7826_v56, %v4266_v21  ;;  %vm7924_vm9 = vmand %vm4692_vm4, %vm4656_vm3 }
 0x14d   : > { %6530 = vmatmul.mubr.msk.f32.gmra.mrb[22].mxu0 %vm9412_vm1, %v3816_v42  ;;  %6308 = vmatprep.mubr.msk.f32.mxu1 %vm9412_vm1, %v2101_v43  ;;  %v7885_v42 = vsub.s32 %v4226_v59, %v4299_v22  ;;  %v4321_v43 = vmul.u32 18, %v4320_v26 }
 0x14e   : > { %6532 = vmatprep.mubr.msk.f32.mxu0 %vm9412_vm1, %v3817_v45  ;;  %v4309_v45 = vshrl.u32 %v7853_v16, 4  ;;  %vm4655_vm5 = vcmp.ne.s32.totalorder %v7883_v41, 0  ;;  %vm4691_vm6 = vcmp.lt.s32.totalorder %v7883_v41, 0  ;;  %v8013_v16 = vadd.s32 112, %v7826_v56 }
 0x14f   : > { %vm4658_vm7 = vcmp.ne.s32.totalorder %v7885_v42, 0  ;;  %vm4694_vm8 = vcmp.lt.s32.totalorder %v7885_v42, 0  ;;  %vm7940_vm12 = vmand %vm4691_vm6, %vm4655_vm5 }
 0x150   : > { %6309 = vmatmul.mubr.msk.f32.gmra.mrb[24].mxu1 %vm9412_vm1, %v2102_v4  ;;  %v7889_v4 = vadd.s32 80, %v7826_v56  ;;  %vm7958_vm13 = vmand %vm4694_vm8, %vm4658_vm7 }
 0x151   : > { %6533 = vmatmul.mubr.msk.f32.gmra.mrb[24].mxu0 %vm9412_vm1, %v3818_v47  ;;  %6311 = vmatprep.mubr.msk.f32.mxu1 %vm9412_vm1, %v2103_v48  ;;  %v7892_v47 = vmul.u32.u64.low 3817748708, %v7872_v35  ;;  %v7893_v48 = vmul.u32.u64.high 3817748708, %v7872_v35, %v7892_v47 }
 0x152   : > { %6535 = vmatprep.mubr.msk.f32.mxu0 %vm9412_vm1, %v3819_v49  ;;  %v8042_v47 = vadd.s32 128, %v7826_v56 }
 0x153   : > { %v4364_v0 = vshrl.u32 %v7893_v48, 4 }
 0x154   : > { %6312 = vmatmul.mubr.msk.f32.gmra.mrb[26].mxu1 %vm9412_vm1, %v2104_v23  ;;  %v7896_v49 = vmul.u32.u64.low 3817748708, %v7875_v36  ;;  %v7897_v23 = vmul.u32.u64.high 3817748708, %v7875_v36, %v7896_v49 }
 0x155   : > { %6536 = vmatmul.mubr.msk.f32.gmra.mrb[26].mxu0 %vm9412_vm1, %v3820_v27  ;;  %6314 = vmatprep.mubr.msk.f32.mxu1 %vm9412_vm1, %v2105_v51  ;;  %v7900_v27 = vsub.s32 %v4225_v62, %v4288_v39  ;;  %v4365_v20 = vmul.u32 18, %v4364_v0  ;;  %v8035_v39 = vadd.s32 136, %v7826_v56 }
 0x156   : > { %6538 = vmatprep.mubr.msk.f32.mxu0 %vm9412_vm1, %v3821_v24  ;;  %v7903_v51 = vmul.u32.u64.low 3817748708, %v7880_v40  ;;  %v7904_v24 = vmul.u32.u64.high 3817748708, %v7880_v40, %v7903_v51  ;;  %v4353_v1 = vshrl.u32 %v7897_v23, 4 }
 0x157   : > { %vm4657_vm10 = vcmp.ne.s32.totalorder %v7900_v27, 0  ;;  %vm4693_vm11 = vcmp.lt.s32.totalorder %v7900_v27, 0  ;;  %v7963_v59 = vadd.s32 18, %v7900_v27  ;;  %v8047_v48 = vsub.s32 %v7872_v35, %v4365_v20 }
 0x158   : > { %6315 = vmatmul.mubr.msk.f32.gmra.mrb[28].mxu1 %vm9412_vm1, %v2106_v29  ;;  %v7910_v29 = vadd.s32 104, %v7826_v56  ;;  %vm7969_vm0 = vmand %vm4693_vm11, %vm4657_vm10  ;;  %v4386_v6 = vshrl.u32 %v7904_v24, 4  ;;  %v4354_v21 = vmul.u32 18, %v4353_v1  ;;  %v8065_v35 = vadd.s32 152, %v7826_v56 }
 0x159   : > { %6539 = vmatmul.mubr.msk.f32.gmra.mrb[28].mxu0 %vm9412_vm1, %v3822_v30  ;;  %6317 = vmatprep.mubr.msk.f32.mxu1 %vm9412_vm1, %v2107_v32  ;;  %v7912_v30 = vsub.s32 %v4228_v7, %v4321_v43  ;;  %v4310_v32 = vmul.u32 18, %v4309_v45  ;;  %v8038_v43 = vmul.u32.u64.low 3817748708, %v8013_v16  ;;  %v8039_v45 = vmul.u32.u64.high 3817748708, %v8013_v16, %v8038_v43  ;;  %9499 = vst [vmem:[#allocation5_spill] sm:$0xff] %v8047_v48 }
 0x15a   : > { %6541 = vmatprep.mubr.msk.f32.mxu0 %vm9412_vm1, %v3823_v2  ;;  %v4387_v26 = vmul.u32 18, %v4386_v6  ;;  %v8050_v49 = vsub.s32 %v7875_v36, %v4354_v21  ;;  %v8111_v1 = vmul.u32.u64.low 3817748708, %v8065_v35  ;;  %v8112_v6 = vmul.u32.u64.high 3817748708, %v8065_v35, %v8111_v1 }
 0x15b   : > { %vm4660_vm14 = vcmp.ne.s32.totalorder %v7912_v30, 0  ;;  %vm4696_vm15 = vcmp.lt.s32.totalorder %v7912_v30, 0  ;;  %v7967_v60 = vsub.s32 %v4227_v11, %v4310_v32  ;;  %v7996_v12 = vadd.s32 18, %v7912_v30 }
 0x15c   : > { %6318 = vmatmul.mubr.msk.f32.gmra.mrb[30].mxu1 %vm9412_vm1, %v2108_v34  ;;  %v7915_v2 = vmul.u32.u64.low 3817748708, %v7889_v4  ;;  %v7916_v34 = vmul.u32.u64.high 3817748708, %v7889_v4, %v7915_v2  ;;  %vm8006_vm3 = vmand %vm4696_vm15, %vm4660_vm14  ;;  %9500 = vst [vmem:[#allocation6_spill] sm:$0xff] %v8050_v49  ;;  %v8057_v51 = vsub.s32 %v7880_v40, %v4387_v26  ;;  %v9504_v40 = vmov 0 }
 0x15d   : > { %6542 = vmatmul.mubr.msk.f32.gmra.mrb[30].mxu0 %vm9412_vm1, %v3824_v38  ;;  %6320 = vmatprep.mubr.msk.f32.mxu1 %vm9412_vm1, %v2109_v44  ;;  %v4342_v38 = vshrl.u32 %v7865_v25, 4  ;;  %v4331_v44 = vshrl.u32 %v7869_v33, 4  ;;  %vm4659_vm4 = vcmp.ne.s32.totalorder %v7967_v60, 0  ;;  %vm4695_vm5 = vcmp.lt.s32.totalorder %v7967_v60, 0 }
 0x15e   : > { %6544 = vmatprep.mubr.msk.f32.mxu0 %vm9412_vm1, %v3825_v46  ;;  %v4375_v15 = vshrl.u32 %v7916_v34, 4  ;;  %v8023_v28 = vmul.u32.u64.low 3817748708, %v7981_v9  ;;  %v8024_v25 = vmul.u32.u64.high 3817748708, %v7981_v9, %v8023_v28  ;;  %v8031_v33 = vadd.s32 18, %v7967_v60  ;;  %9502 = vst [vmem:[#allocation8_spill] sm:$0xff] %v8057_v51  ;;  %vm8079_vm11 = vmand %vm4695_vm5, %vm4659_vm4 }
 0x15f   : > { %v4343_v62 = vmul.u32 18, %v4342_v38  ;;  %v4332_v63 = vmul.u32 18, %v4331_v44  ;;  %v9505_v40 = vsel %vm8079_vm11, 4294967295, %v9504_v40  ;;  %vm4700_vm15 = vcmp.lt.s32.totalorder %v8047_v48, 0 }
 0x160   : > { %6321 = vmatmul.mubr.msk.f32.gmra.mrb[32].mxu1 %vm9412_vm1, %v2110_v5  ;;  %v7929_v5 = vadd.s32 18, %v7877_v37  ;;  %v8061_v2 = vmul.u32.u64.low 3817748708, %v8035_v39  ;;  %v8062_v34 = vmul.u32.u64.high 3817748708, %v8035_v39, %v8061_v2  ;;  %vm4699_vm4 = vcmp.lt.s32.totalorder %v8050_v49, 0 }
 0x161   : > { %6545 = vmatmul.mubr.msk.f32.gmra.mrb[32].mxu0 %vm9412_vm1, %v3826_v50  ;;  %6323 = vmatprep.mubr.msk.f32.mxu1 %vm9412_vm1, %v2111_v52  ;;  %v7934_v50 = vadd.s32 96, %v7826_v56  ;;  %v8017_v19 = vsub.s32 %v7856_v17, %v4343_v62  ;;  %v8020_v22 = vsub.s32 %v7859_v18, %v4332_v63  ;;  %v4376_v18 = vmul.u32 18, %v4375_v15 }
 0x162   : > { %6547 = vmatprep.mubr.msk.f32.mxu0 %vm9412_vm1, %v3827_v53  ;;  %v7945_v53 = vadd.s32 18, %v7883_v41  ;;  %v8072_v38 = vmul.u32.u64.low 3817748708, %v8042_v47  ;;  %v8073_v44 = vmul.u32.u64.high 3817748708, %v8042_v47, %v8072_v38  ;;  %v9508_v62 = vmov 0 }
 0x163   : > { %v7977_v7 = vmul.u32.u64.low 3817748708, %v7934_v50  ;;  %v7978_v8 = vmul.u32.u64.high 3817748708, %v7934_v50, %v7977_v7  ;;  %9497 = vst [vmem:[#allocation3_spill] sm:$0xff] %v8017_v19  ;;  %9498 = vst [vmem:[#allocation4_spill] sm:$0xff] %v8020_v22  ;;  %vm4662_vm6 = vcmp.ne.s32.totalorder %v8017_v19, 0  ;;  %vm4698_vm7 = vcmp.lt.s32.totalorder %v8017_v19, 0 }
 0x164   : > { %6324 = vmatmul.mubr.msk.f32.gmra.mrb[34].mxu1 %vm9412_vm1, %v2112_v54  ;;  %v7948_v54 = vadd.s32 18, %v7885_v42  ;;  %v8053_v23 = vadd.s32 18, %v8017_v19  ;;  %vm4661_vm8 = vcmp.ne.s32.totalorder %v8020_v22, 0  ;;  %vm4697_vm10 = vcmp.lt.s32.totalorder %v8020_v22, 0 }
 0x165   : > { %6548 = vmatmul.mubr.msk.f32.gmra.mrb[34].mxu0 %vm9412_vm1, %v3828_v3  ;;  %v7951_v3 = vmul.u32.u64.low 3817748708, %v7910_v29  ;;  %v7952_v55 = vmul.u32.u64.high 3817748708, %v7910_v29, %v7951_v3  ;;  %v4397_v24 = vshrl.u32 %v7978_v8, 4  ;;  %v8069_v36 = vsub.s32 %v7889_v4, %v4376_v18  ;;  %vm8093_vm1 = vmand %vm4698_vm7, %vm4662_vm6 }
 0x166   : > { %9501 = vst [vmem:[#allocation7_spill] sm:$0xff] %v8053_v23  ;;  %v8087_v4 = vadd.s32 144, %v7826_v56  ;;  %v9506_v3 = vmov 0  ;;  %vm8103_vm2 = vmand %vm4697_vm10, %vm4661_vm8  ;;  %v8115_v7 = vadd.s32 18, %v8020_v22  ;;  %vm9513_vm6 = vcmp.ne.s32.totalorder %v8047_v48, 0 }
 0x167   : > { %v4408_v17 = vshrl.u32 %v7952_v55, 4  ;;  %9503 = vst [vmem:[#allocation9_spill] sm:$0xff] %v8069_v36  ;;  %v9507_v3 = vsel %vm8093_vm1, 4294967295, %v9506_v3  ;;  %v4430_v55 = vshrl.u32 %v8024_v25, 4  ;;  %v9509_v62 = vsel %vm8103_vm2, 4294967295, %v9508_v62  ;;  %vm8119_vm7 = vmand %vm4700_vm15, %vm9513_vm6 }
 0x168   : > { %9510 = vst [vmem:[#allocation10_spill] sm:$0xff] %v9509_v62  ;;  %v4398_v0 = vmul.u32 18, %v4397_v24  ;;  %9512 = vst [vmem:[#allocation12_spill] sm:$0xff] %v8115_v7  ;;  %v9514_v8 = vmov 0  ;;  %vm4665_vm8 = vcmp.ne.s32.totalorder %v8069_v36, 0  ;;  %vm4701_vm10 = vcmp.lt.s32.totalorder %v8069_v36, 0 }
 0x169   : > { %v4409_v32 = vmul.u32 18, %v4408_v17  ;;  %v9515_v8 = vsel %vm8119_vm7, 4294967295, %v9514_v8  ;;  %v8127_v15 = vadd.s32 18, %v8047_v48  ;;  %vm9518_vm14 = vcmp.ne.s32.totalorder %v8050_v49, 0 }
 0x16a   : > { %9516 = vst [vmem:[#allocation13_spill] sm:$0xff] %v9515_v8  ;;  %vm8133_vm5 = vmand %vm4699_vm4, %vm9518_vm14  ;;  %v9519_v20 = vmov 0  ;;  %v8138_v21 = vadd.s32 18, %v8050_v49  ;;  %v8141_v26 = vmul.u32.u64.low 3817748708, %v8087_v4  ;;  %v8142_v28 = vmul.u32.u64.high 3817748708, %v8087_v4, %v8141_v26 }
 0x16b   : > { %v8108_v63 = vsub.s32 %v7910_v29, %v4409_v32  ;;  %v4419_v29 = vshrl.u32 %v8039_v45, 4  ;;  %9517 = vst [vmem:[#allocation14_spill] sm:$0xff] %v8127_v15  ;;  %v9520_v20 = vsel %vm8133_vm5, 4294967295, %v9519_v20  ;;  %vm9523_vm15 = vcmp.ne.s32.totalorder %v8057_v51, 0  ;;  %vm8166_vm4 = vmand %vm4701_vm10, %vm4665_vm8 }
 0x16c   : > { %9521 = vst [vmem:[#allocation15_spill] sm:$0xff] %v9520_v20  ;;  %9522 = vst [vmem:[#allocation16_spill] sm:$0xff] %v8138_v21  ;;  %vm9524_vm6 = vcmp.lt.s32.totalorder %v8057_v51, 0  ;;  %v9525_v17 = vmov 0  ;;  %v8157_v18 = vadd.s32 18, %v8057_v51  ;;  %v8160_v43 = vadd.s32 18, %v8069_v36 }
 0x16d   : > { %9511 = vst [vmem:[#allocation11_spill] sm:$0xff] %v8108_v63  ;;  %vm8152_vm14 = vmand %vm9524_vm6, %vm9523_vm15  ;;  %v4431_v45 = vmul.u32 18, %v4430_v55  ;;  %v9530_v32 = vmov 0  ;;  %vm4668_vm15 = vcmp.ne.s32.totalorder %v8108_v63, 0  ;;  %v8172_v2 = vsub.s32 %v7934_v50, %v4398_v0 }
 0x16e   : > { %v9526_v17 = vsel %vm8152_vm14, 4294967295, %v9525_v17  ;;  %9528 = vst [vmem:[#allocation18_spill] sm:$0xff] %v8157_v18  ;;  %9529 = vst [vmem:[#allocation19_spill] sm:$0xff] %v8160_v43  ;;  %v9531_v32 = vsel %vm8166_vm4, 4294967295, %v9530_v32  ;;  %v4452_v38 = vshrl.u32 %v8062_v34, 4  ;;  %vm4704_vm6 = vcmp.lt.s32.totalorder %v8108_v63, 0 }
 0x16f   : > { %9527 = vst [vmem:[#allocation17_spill] sm:$0xff] %v9526_v17  ;;  %9532 = vst [vmem:[#allocation20_spill] sm:$0xff] %v9531_v32  ;;  %v4420_v1 = vmul.u32 18, %v4419_v29  ;;  %v4441_v55 = vshrl.u32 %v8073_v44, 4  ;;  %v8178_v26 = vadd.s32 168, %v7826_v56  ;;  %v8193_v44 = vadd.s32 160, %v7826_v56 }
 0x170   : > { %v8206_v24 = vadd.s32 18, %v8108_v63  ;;  %v8209_v34 = vsub.s32 %v7981_v9, %v4431_v45  ;;  %vm8217_vm8 = vmand %vm4704_vm6, %vm4668_vm15  ;;  %vm4667_vm10 = vcmp.ne.s32.totalorder %v8172_v2, 0  ;;  %v8224_v50 = vadd.s32 18, %v8172_v2 }
 0x171   : > { %v9536_v31 = vsel %vm8217_vm8, 4294967295, %v9535_v31  ;;  %v4453_v29 = vmul.u32 18, %v4452_v38  ;;  %v4474_v9 = vshrl.u32 %v8112_v6, 4  ;;  %v8228_v45 = vsub.s32 %v8013_v16, %v4420_v1 }
 0x172   : > { %9533 = vst [vmem:[#allocation21_spill] sm:$0xff] %v8206_v24  ;;  %9534 = vst [vmem:[#allocation22_spill] sm:$0xff] %v8209_v34  ;;  %v4442_v13 = vmul.u32 18, %v4441_v55  ;;  %v8231_v11 = vmul.u32.u64.low 3817748708, %v8178_v26  ;;  %v8232_v58 = vmul.u32.u64.high 3817748708, %v8178_v26, %v8231_v11  ;;  %v4463_v10 = vshrl.u32 %v8142_v28, 4 }
 0x173   : > { %9537 = vst [vmem:[#allocation23_spill] sm:$0xff] %v9536_v31  ;;  %9538 = vst [vmem:[#allocation24_spill] sm:$0xff] %v8228_v45  ;;  %v8236_v36 = vmul.u32.u64.low 3817748708, %v8193_v44  ;;  %v8237_v43 = vmul.u32.u64.high 3817748708, %v8193_v44, %v8236_v36  ;;  %v8240_v32 = vadd.s32 184, %v7826_v56  ;;  %v8250_v11 = vadd.s32 176, %v7826_v56 }
 0x174   : > { %v8253_v6 = vadd.s32 200, %v7826_v56  ;;  %v8259_v36 = vadd.s32 18, %v8209_v34  ;;  %v4475_v1 = vmul.u32 18, %v4474_v9  ;;  %v8262_v55 = vadd.s32 192, %v7826_v56 }
 0x175   : > { %v8267_v16 = vsub.s32 %v8035_v39, %v4453_v29  ;;  %v8270_v63 = vsub.s32 %v8042_v47, %v4442_v13  ;;  %v4464_v24 = vmul.u32 18, %v4463_v10  ;;  %v8277_v9 = vadd.s32 216, %v7826_v56 }
 0x176   : > { %9541 = vst [vmem:[#allocation27_spill] sm:$0xff] %v8259_v36  ;;  %v8273_v31 = vmul.u32.u64.low 3817748708, %v8240_v32  ;;  %v8274_v51 = vmul.u32.u64.high 3817748708, %v8240_v32, %v8273_v31  ;;  %v8282_v17 = vmul.u32.u64.low 3817748708, %v8250_v11  ;;  %v8283_v49 = vmul.u32.u64.high 3817748708, %v8250_v11, %v8282_v17 }
 0x177   : > { %9542 = vst [vmem:[#allocation28_spill] sm:$0xff] %v8267_v16  ;;  %v8286_v39 = vmul.u32.u64.low 3817748708, %v8253_v6  ;;  %v8287_v29 = vmul.u32.u64.high 3817748708, %v8253_v6, %v8286_v39  ;;  %v8292_v10 = vsub.s32 %v8065_v35, %v4475_v1  ;;  %v8299_v21 = vadd.s32 208, %v7826_v56 }
 0x178   : > { %v8295_v31 = vmul.u32.u64.low 3817748708, %v8262_v55  ;;  %v8296_v47 = vmul.u32.u64.high 3817748708, %v8262_v55, %v8295_v31  ;;  %v8302_v20 = vadd.s32 18, %v8228_v45  ;;  %v4496_v17 = vshrl.u32 %v8232_v58, 4 }
 0x179   : > { %9545 = vst [vmem:[#allocation31_spill] sm:$0xff] %v8292_v10  ;;  %v8307_v39 = vadd.s32 232, %v7826_v56  ;;  %v8310_v35 = vsub.s32 %v8087_v4, %v4464_v24  ;;  %v4485_v1 = vshrl.u32 %v8237_v43, 4  ;;  %vm9549_vm15 = vcmp.lt.s32.totalorder %v8172_v2, 0 }
 0x17a   : > { %9546 = vst [vmem:[#allocation32_spill] sm:$0xff] %v8302_v20  ;;  %vm8323_vm4 = vmand %vm9549_vm15, %vm4667_vm10  ;;  %v9550_v58 = vmov 0  ;;  %v8329_v4 = vadd.s32 18, %v8267_v16  ;;  %vm9553_vm5 = vcmp.ne.s32.totalorder %v8209_v34, 0  ;;  %vm9554_vm7 = vcmp.lt.s32.totalorder %v8209_v34, 0 }
 0x17b   : > { %9547 = vst [vmem:[#allocation33_spill] sm:$0xff] %v8310_v35  ;;  %v9551_v58 = vsel %vm8323_vm4, 4294967295, %v9550_v58  ;;  %vm8339_vm2 = vmand %vm9554_vm7, %vm9553_vm5  ;;  %v9555_v24 = vmov 0  ;;  %vm9558_vm14 = vcmp.ne.s32.totalorder %v8228_v45, 0  ;;  %vm9559_vm8 = vcmp.lt.s32.totalorder %v8228_v45, 0 }
 0x17c   : > { %v9556_v24 = vsel %vm8339_vm2, 4294967295, %v9555_v24  ;;  %vm8353_vm6 = vmand %vm9559_vm8, %vm9558_vm14  ;;  %v4497_v48 = vmul.u32 18, %v4496_v17  ;;  %v8358_v15 = vmul.u32.u64.low 3817748708, %v8307_v39  ;;  %v8359_v8 = vmul.u32.u64.high 3817748708, %v8307_v39, %v8358_v15 }
 0x17d   : > { %9557 = vst [vmem:[#allocation36_spill] sm:$0xff] %v9556_v24  ;;  %v8362_v22 = vadd.s32 224, %v7826_v56  ;;  %vm9563_vm5 = vcmp.ne.s32.totalorder %v8267_v16, 0  ;;  %vm9564_vm7 = vcmp.lt.s32.totalorder %v8267_v16, 0  ;;  %vm4673_vm14 = vcmp.ne.s32.totalorder %v8310_v35, 0 }
 0x17e   : > { %vm8368_vm15 = vmand %vm9564_vm7, %vm9563_vm5  ;;  %vm4709_vm8 = vcmp.lt.s32.totalorder %v8310_v35, 0  ;;  %v4486_v17 = vmul.u32 18, %v4485_v1  ;;  %v4518_v7 = vshrl.u32 %v8274_v51, 4  ;;  %vm9568_vm10 = vcmp.ne.s32.totalorder %v8270_v63, 0 }
 0x17f   : > { %vm9569_vm1 = vcmp.lt.s32.totalorder %v8270_v63, 0  ;;  %v9570_v15 = vmov 0  ;;  %v4507_v1 = vshrl.u32 %v8283_v49, 4  ;;  %v4540_v51 = vshrl.u32 %v8287_v29, 4  ;;  %vm8423_vm7 = vmand %vm4709_vm8, %vm4673_vm14 }
 0x180   : > { %vm8381_vm11 = vmand %vm9569_vm1, %vm9568_vm10  ;;  %vm9574_vm1 = vcmp.ne.s32.totalorder %v8292_v10, 0  ;;  %vm9575_vm10 = vcmp.lt.s32.totalorder %v8292_v10, 0  ;;  %v9576_v49 = vmov 0  ;;  %v8412_v29 = vadd.s32 18, %v8310_v35 }
 0x181   : > { %v9571_v15 = vsel %vm8381_vm11, 4294967295, %v9570_v15  ;;  %vm8407_vm5 = vmand %vm9575_vm10, %vm9574_vm1  ;;  %v9580_v23 = vmov 0  ;;  %v8428_v34 = vsub.s32 %v8178_v26, %v4497_v48  ;;  %v4519_v45 = vmul.u32 18, %v4518_v7 }
 0x182   : > { %v9577_v49 = vsel %vm8407_vm5, 4294967295, %v9576_v49  ;;  %9579 = vst [vmem:[#allocation42_spill] sm:$0xff] %v8412_v29  ;;  %v9581_v23 = vsel %vm8423_vm7, 4294967295, %v9580_v23  ;;  %v8431_v36 = vmul.u32.u64.low 3817748708, %v8362_v22  ;;  %v8432_v24 = vmul.u32.u64.high 3817748708, %v8362_v22, %v8431_v36 }
 0x183   : > { %9578 = vst [vmem:[#allocation41_spill] sm:$0xff] %v9577_v49  ;;  %9582 = vst [vmem:[#allocation43_spill] sm:$0xff] %v9581_v23  ;;  %v4508_v36 = vmul.u32 18, %v4507_v1  ;;  %vm4676_vm14 = vcmp.ne.s32.totalorder %v8428_v34, 0  ;;  %vm4712_vm8 = vcmp.lt.s32.totalorder %v8428_v34, 0  ;;  %v4584_v1 = vshrl.u32 %v8359_v8, 4 }
 0x184   : > { %v8469_v26 = vadd.s32 18, %v8428_v34  ;;  %vm8515_vm7 = vmand %vm4712_vm8, %vm4676_vm14 }
 0x185   : > { %v8482_v8 = vsub.s32 %v8250_v11, %v4508_v36 }
 0x187   : > { %9585 = vst [vmem:[#allocation46_spill] sm:$0xff] %v8482_v8 }
 0x1cf   : > { %v8195_v0 = vpop.f32.mrb[0].mxu1 }
 0x1d0   : > { %v8211_v25 = vpop.f32.mrb[1].mxu1 }
 0x1d3   : > { %v8242_v38 = vpop.f32.mrb[2].mxu1 }
 0x1d4   : > { %9539 = vst [vmem:[#allocation25_spill] sm:$0xff] %v8242_v38  ;;  %v8255_v28 = vpop.f32.mrb[3].mxu1  ;;  %v8389_v38 = vadd.s32 18, %v8292_v10  ;;  %v4585_v10 = vmul.u32 18, %v4584_v1  ;;  %v9595_v1 = vmov 0 }
 0x1d5   : > { %9540 = vst [vmem:[#allocation26_spill] sm:$0xff] %v8255_v28  ;;  %v8386_v28 = vadd.s32 18, %v8270_v63 }
 0x1d6   : > { %9572 = vst [vmem:[#allocation39_spill] sm:$0xff] %v8389_v38  ;;  %v4573_v38 = vshrl.u32 %v8432_v24, 4  ;;  %v9588_v24 = vmov 0  ;;  %v8574_v52 = vsub.s32 %v8307_v39, %v4585_v10  ;;  %v9617_v39 = vsel %vm7958_vm13, %v7948_v54, %v7885_v42 }
 0x1d7   : > { %v8279_v18 = vpop.f32.mrb[4].mxu1  ;;  %v9589_v24 = vsel %vm8515_vm7, 4294967295, %v9588_v24  ;;  %v9623_v54 = vsel %vm7969_vm0, %v7963_v59, %v7900_v27 }
 0x1d8   : > { %9543 = vst [vmem:[#allocation29_spill] sm:$0xff] %v8279_v18  ;;  %v8289_v13 = vpop.f32.mrb[5].mxu1  ;;  %9606 = vst [vmem:[#allocation51_spill] sm:$0xff] %v8574_v52  ;;  %vm8645_vm13 = vcmp.lt.s32.totalorder %v9623_v54, 16  ;;  %vm4720_vm4 = vcmp.lt.s32.totalorder %v8574_v52, 0 }
 0x1d9   : > { %9544 = vst [vmem:[#allocation30_spill] sm:$0xff] %v8289_v13  ;;  %v8314_v31 = vmul.u32.u64.low 3817748708, %v8277_v9  ;;  %v8315_v13 = vmul.u32.u64.high 3817748708, %v8277_v9, %v8314_v31 }
 0x1db   : > { %v8317_v18 = vpop.f32.mrb[6].mxu1  ;;  %v4562_v20 = vshrl.u32 %v8315_v13, 4 }
 0x1dc   : > { %9548 = vst [vmem:[#allocation34_spill] sm:$0xff] %v8317_v18  ;;  %v8333_v43 = vpop.f32.mrb[7].mxu1  ;;  %v8346_v31 = vmul.u32.u64.low 3817748708, %v8299_v21  ;;  %v8347_v18 = vmul.u32.u64.high 3817748708, %v8299_v21, %v8346_v31 }
 0x1dd   : > { %9552 = vst [vmem:[#allocation35_spill] sm:$0xff] %v8333_v43  ;;  %v9560_v43 = vmov 0  ;;  %v9565_v31 = vmov 0 }
 0x1de   : > { %v9561_v43 = vsel %vm8353_vm6, 4294967295, %v9560_v43  ;;  %v9566_v31 = vsel %vm8368_vm15, 4294967295, %v9565_v31  ;;  %v4551_v13 = vshrl.u32 %v8347_v18, 4  ;;  %v4563_v18 = vmul.u32 18, %v4562_v20 }
 0x1df   : > { %9562 = vst [vmem:[#allocation37_spill] sm:$0xff] %v9561_v43  ;;  %v8375_v62 = vpop.f32.mrb[8].mxu1  ;;  %vm9608_vm6 = vcmp.lt.s32.totalorder %v8482_v8, 0 }
 0x1e0   : > { %9567 = vst [vmem:[#allocation38_spill] sm:$0xff] %v8375_v62  ;;  %v8393_v19 = vpop.f32.mrb[9].mxu1  ;;  %v8439_v62 = vsub.s32 %v8193_v44, %v4486_v17  ;;  %v8460_v17 = vadd.s32 248, %v7826_v56 }
 0x1e1   : > { %9573 = vst [vmem:[#allocation40_spill] sm:$0xff] %v8393_v19  ;;  %v4529_v19 = vshrl.u32 %v8296_v47, 4  ;;  %v4541_v47 = vmul.u32 18, %v4540_v51  ;;  %v8466_v51 = vadd.s32 240, %v7826_v56 }
 0x1e2   : > { %9583 = vst [vmem:[#allocation44_spill] sm:$0xff] %v8439_v62  ;;  %v8479_v48 = vadd.s32 18, %v8439_v62  ;;  %vm9593_vm8 = vcmp.ne.s32.totalorder %v8439_v62, 0  ;;  %vm9594_vm1 = vcmp.lt.s32.totalorder %v8439_v62, 0  ;;  %v9620_v62 = vmov 0 }
 0x1e3   : > { %v8442_v43 = vpop.f32.mrb[10].mxu1  ;;  %v4530_v44 = vmul.u32 18, %v4529_v19  ;;  %v8473_v19 = vsub.s32 %v8240_v32, %v4519_v45  ;;  %v8485_v35 = vsub.s32 %v8253_v6, %v4541_v47  ;;  %v4552_v32 = vmul.u32 18, %v4551_v13  ;;  %vm8542_vm5 = vmand %vm9594_vm1, %vm9593_vm8 }
 0x1e4   : > { %v8452_v16 = vpop.f32.mrb[11].mxu1  ;;  %9584 = vst [vmem:[#allocation45_spill] sm:$0xff] %v8479_v48  ;;  %v8493_v20 = vmul.u32.u64.low 3817748708, %v8460_v17  ;;  %v8494_v45 = vmul.u32.u64.high 3817748708, %v8460_v17, %v8493_v20  ;;  %v8498_v49 = vmul.u32.u64.low 3817748708, %v8466_v51  ;;  %v8499_v11 = vmul.u32.u64.high 3817748708, %v8466_v51, %v8498_v49 }
 0x1e5   : > { %9586 = vst [vmem:[#allocation47_spill] sm:$0xff] %v8485_v35  ;;  %v8490_v23 = vsub.s32 %v8262_v55, %v4530_v44  ;;  %v8504_v6 = vsub.s32 %v8277_v9, %v4563_v18  ;;  %v8507_v55 = vadd.s32 264, %v7826_v56  ;;  %v8520_v49 = vadd.s32 18, %v8473_v19 }
 0x1e6   : > { %v8525_v9 = vadd.s32 18, %v8482_v8  ;;  %v9590_v44 = vsel %vm7924_vm9, %v7929_v5, %v7877_v37  ;;  %v9596_v1 = vsel %vm8542_vm5, 4294967295, %v9595_v1  ;;  %v8549_v46 = vadd.s32 18, %v8485_v35 }
 0x1e7   : > { %v8475_v7 = vpop.f32.mrb[12].mxu1  ;;  %9587 = vst [vmem:[#allocation48_spill] sm:$0xff] %v8504_v6  ;;  %vm8534_vm14 = vcmp.lt.s32.totalorder %v9590_v44, 16  ;;  %v8552_v37 = vsub.s32 %v8299_v21, %v4552_v32  ;;  %v9599_v5 = vsel %vm7940_vm12, %v7945_v53, %v7883_v41  ;;  %vm9602_vm1 = vcmp.ne.s32.totalorder %v8473_v19, 0 }
 0x1e8   : > { %v8487_v29 = vpop.f32.mrb[13].mxu1  ;;  %9597 = vst [vmem:[#allocation49_spill] sm:$0xff] %v8549_v46  ;;  %vm8559_vm9 = vcmp.lt.s32.totalorder %v9599_v5, 16  ;;  %vm9603_vm8 = vcmp.lt.s32.totalorder %v8473_v19, 0  ;;  %vm4679_vm10 = vcmp.ne.s32.totalorder %v8490_v23, 0  ;;  %vm4715_vm15 = vcmp.lt.s32.totalorder %v8490_v23, 0 }
 0x1e9   : > { %9598 = vst [vmem:[#allocation50_spill] sm:$0xff] %v8552_v37  ;;  %vm8567_vm11 = vmand %vm9603_vm8, %vm9602_vm1  ;;  %v4574_v41 = vmul.u32 18, %v4573_v38  ;;  %vm9607_vm12 = vcmp.ne.s32.totalorder %v8482_v8, 0  ;;  %v8587_v21 = vmul.u32.u64.low 3817748708, %v8507_v55  ;;  %v8588_v32 = vmul.u32.u64.high 3817748708, %v8507_v55, %v8587_v21 }
 0x1ea   : > { %vm8580_vm2 = vmand %vm9608_vm6, %vm9607_vm12  ;;  %vm9612_vm6 = vcmp.ne.s32.totalorder %v8485_v35, 0  ;;  %vm9613_vm12 = vcmp.lt.s32.totalorder %v8485_v35, 0  ;;  %v9614_v44 = vmov 0  ;;  %v8609_v5 = vadd.s32 18, %v8490_v23 }
 0x1eb   : > { %v8509_v47 = vpop.f32.mrb[14].mxu1  ;;  %vm8604_vm8 = vmand %vm9613_vm12, %vm9612_vm6  ;;  %v8612_v21 = vadd.s32 256, %v7826_v56  ;;  %vm8621_vm1 = vcmp.lt.s32.totalorder %v9617_v39, 16  ;;  %v8634_v48 = vadd.s32 18, %v8504_v6  ;;  %v4606_v42 = vshrl.u32 %v8494_v45, 4 }
 0x1ec   : > { %v8527_v36 = vpop.f32.mrb[15].mxu1  ;;  %v9615_v44 = vsel %vm8604_vm8, 4294967295, %v9614_v44  ;;  %vm8629_vm6 = vmand %vm4715_vm15, %vm4679_vm10  ;;  %vm9626_vm10 = vcmp.ne.s32.totalorder %v8504_v6, 0  ;;  %vm9627_vm7 = vcmp.lt.s32.totalorder %v8504_v6, 0  ;;  %v9628_v39 = vmov 0 }
 0x1ed   : > { %9616 = vst [vmem:[#allocation53_spill] sm:$0xff] %v9615_v44  ;;  %v9621_v62 = vsel %vm8629_vm6, 4294967295, %v9620_v62  ;;  %9622 = vst [vmem:[#allocation54_spill] sm:$0xff] %v8634_v48  ;;  %vm4684_vm5 = vcmp.ne.s32.totalorder %v8574_v52, 0  ;;  %v8660_v61 = vsub.s32 %v8362_v22, %v4574_v41  ;;  %v4595_v27 = vshrl.u32 %v8499_v11, 4 }
 0x1ee   : > { %vm8653_vm12 = vmand %vm9627_vm7, %vm9626_vm10  ;;  %v8676_v22 = vadd.s32 280, %v7826_v56  ;;  %vm9632_vm0 = vcmp.ne.s32.totalorder %v8552_v37, 0  ;;  %vm9633_vm7 = vcmp.lt.s32.totalorder %v8552_v37, 0  ;;  %v9634_v11 = vmov 0 }
 0x1ef   : > { %v8590_v10 = vpop.f32.mrb[16].mxu1  ;;  %v9629_v39 = vsel %vm8653_vm12, 4294967295, %v9628_v39  ;;  %9631 = vst [vmem:[#allocation56_spill] sm:$0xff] %v8660_v61  ;;  %vm8682_vm10 = vmand %vm9633_vm7, %vm9632_vm0  ;;  %v8687_v41 = vadd.s32 18, %v8552_v37  ;;  %v8690_v45 = vadd.s32 18, %v8574_v52  ;;  %v9639_v46 = vsel %vm8006_vm3, %v7996_v12, %v7912_v30 }
 0x1f0   : > { %9611 = vst [vmem:[#allocation52_spill] sm:$0xff] %v8590_v10  ;;  %v8614_v38 = vpop.f32.mrb[17].mxu1  ;;  %9630 = vst [vmem:[#allocation55_spill] sm:$0xff] %v9629_v39  ;;  %v9635_v11 = vsel %vm8682_vm10, 4294967295, %v9634_v11  ;;  %v8693_v59 = vmul.u32.u64.low 3817748708, %v8612_v21  ;;  %v8694_v54 = vmul.u32.u64.high 3817748708, %v8612_v21, %v8693_v59  ;;  %v9817_v56 = vsel %vm8567_vm11, %v8520_v49, %v8473_v19 }
 0x1f1   : > { %9636 = vst [vmem:[#allocation57_spill] sm:$0xff] %v9635_v11  ;;  %9637 = vst [vmem:[#allocation58_spill] sm:$0xff] %v8687_v41  ;;  %vm8706_vm0 = vcmp.lt.s32.totalorder %v9639_v46, 16  ;;  %v9642_v30 = vmov 0  ;;  %v4607_v12 = vmul.u32 18, %v4606_v42  ;;  %vm4683_vm12 = vcmp.ne.s32.totalorder %v8660_v61, 0 }
 0x1f2   : > { %9638 = vst [vmem:[#allocation59_spill] sm:$0xff] %v8690_v45  ;;  %vm8722_vm3 = vmand %vm4720_vm4, %vm4684_vm5  ;;  %vm4719_vm6 = vcmp.lt.s32.totalorder %v8660_v61, 0  ;;  %v4596_v8 = vmul.u32 18, %v4595_v27  ;;  %vm9645_vm4 = vnez %v9505_v40  ;;  %vm9649_vm15 = vcmask 31744   ;;  %v9665_v41 = vld [vmem:[#allocation10_spill] sm:$0xff]  ;;  %v9667_v11 = vld [vmem:[#allocation12_spill] sm:$0xff] }
 0x1f3   : > { %v9643_v30 = vsel %vm8722_vm3, 4294967295, %v9642_v30  ;;  %v9646_v42 = vsel %vm9645_vm4, %v8031_v33, %v7967_v60  ;;  %v8760_v40 = vadd.s32 18, %v8660_v61  ;;  %vm9651_vm4 = vmmov %vm9649_vm15  ;;  %v9659_v18 = vmov 0  ;;  %v9676_v10 = vld [vmem:[#allocation14_spill] sm:$0xff]  ;;  %v9709_v61 = vld [vmem:[#allocation19_spill] sm:$0xff] }
 0x1f4   : > { %v6498_v35 = vpop.f32.mrb[0].mxu0  ;;  %9644 = vst [vmem:[#allocation60_spill] sm:$0xff] %v9643_v30  ;;  %vm8738_vm5 = vcmp.lt.s32.totalorder %v9646_v42, 16  ;;  %v9655_v42 = vld [vmem:[#allocation3_spill] sm:$0xff]  ;;  %v8790_v33 = vsub.s32 %v8466_v51, %v4596_v8  ;;  %v9664_v30 = vld [vmem:[#allocation26_spill] sm:$0xff]  ;;  %vm9694_vm3 = vcmask 31748  }
 0x1f5   : > { %v6552_v46 = vadd.f32 %v6498_v35, %v8195_v0  ;;  %v4007_v59 = vpop.f32.mrb[1].mxu0  ;;  %v4628_v0 = vshrl.u32 %v8588_v32, 4  ;;  %v8744_v35 = vmul.u32.u64.low 3817748708, %v8676_v22  ;;  %v8745_v48 = vmul.u32.u64.high 3817748708, %v8676_v22, %v8744_v35  ;;  %9650 = vst [vmem:[#allocation61_spill] sm:$0xff] %v8760_v40  ;;  %v9707_v8 = vld [vmem:[#allocation20_spill] sm:$0xff] }
 0x1f6   : > { %v6553_v6 = vadd.f32 %v4007_v59, %v8211_v25  ;;  %v9710_v40 = vld [vmem:[#allocation9_spill] sm:$0xff] }
 0x1f7   : > { %v4944_v27 = vsel %vm8534_vm14, %v6552_v46, 0.0  ;;  %5172 = vst.msk [vmem:[%s8699_s24 + $0x8] sm:$0xff] %vm9649_vm15, %v6552_v46  ;;  %vm9652_vm14 = vmmov %vm9651_vm4  ;;  %vm9653_vm15 = vnez %v9507_v3  ;;  %v9654_v46 = vld [vmem:[#allocation7_spill] sm:$0xff] }
 0x1f8   : > { %v4980_v25 = vsel %vm9651_vm4, %v4944_v27, 0.0  ;;  %v5058_v32 = vmul.f32 %v4944_v27, %v4944_v27  ;;  %v4943_v13 = vsel %vm8559_vm9, %v6553_v6, 0.0  ;;  %5171 = vst.msk [vmem:[%s8699_s24] sm:$0xff] %vm9652_vm14, %v6553_v6  ;;  %v6501_v59 = vpop.f32.mrb[2].mxu0  ;;  %v9656_v35 = vsel %vm9653_vm15, %v9654_v46, %v9655_v42  ;;  %vm8780_vm4 = vmand %vm4719_vm6, %vm4683_vm12  ;;  %v9662_v46 = vld [vmem:[#allocation25_spill] sm:$0xff] }
 0x1f9   : > { %vm8772_vm7 = vcmp.lt.s32.totalorder %v9656_v35, 16  ;;  %v9660_v18 = vsel %vm8780_vm4, 4294967295, %v9659_v18  ;;  %v8785_v6 = vsub.s32 %v8460_v17, %v4607_v12  ;;  %vm9661_vm9 = vmmov %vm9652_vm14  ;;  %v5057_v27 = vmul.f32 %v4943_v13, %v4943_v13  ;;  %v4017_v35 = vpop.f32.mrb[3].mxu0  ;;  %v9668_v17 = vld [vmem:[#allocation4_spill] sm:$0xff] }
 0x1fa   : > { %v4979_v3 = vsel %vm9661_vm9, %v4943_v13, 0.0  ;;  %v6554_v42 = vadd.f32 %v6501_v59, %v9662_v46  ;;  %vm9663_vm14 = vmmov %vm9661_vm9  ;;  %v6555_v37 = vadd.f32 %v4017_v35, %v9664_v30  ;;  %vm9666_vm6 = vnez %v9665_v41  ;;  %v9683_v35 = vld [vmem:[#allocation15_spill] sm:$0xff] }
 0x1fb   : > { %v5094_v52 = vsel %vm9663_vm14, %v5058_v32, 0.0  ;;  %v4981_v45 = vadd.f32 %v4980_v25, %v4979_v3  ;;  %v9669_v12 = vsel %vm9666_vm6, %v9667_v11, %v9668_v17  ;;  %v4629_v13 = vmul.u32 18, %v4628_v0  ;;  %vm9672_vm14 = vmmov %vm9661_vm9  ;;  %v9674_v25 = vld [vmem:[#allocation13_spill] sm:$0xff]  ;;  %v9685_v17 = vld [vmem:[#allocation16_spill] sm:$0xff] }
 0x1fc   : > { %vm8799_vm12 = vcmp.lt.s32.totalorder %v9669_v12, 16  ;;  %v5093_v59 = vsel %vm9661_vm9, %v5057_v27, 0.0  ;;  %v4946_v51 = vsel %vm8621_vm1, %v6554_v42, 0.0  ;;  %5669 = vst.msk [vmem:[%s8699_s24 + $0x16] sm:$0xff] %vm9672_vm14, %v6554_v42  ;;  %v4617_v11 = vshrl.u32 %v8694_v54, 4  ;;  %v6504_v0 = vpop.f32.mrb[4].mxu0  ;;  %vm9681_vm4 = vmmov %vm9672_vm14 }
 0x1fd   : > { %v5095_v41 = vadd.f32 %v5094_v52, %v5093_v59  ;;  %v4945_v30 = vsel %vm8645_vm13, %v6555_v37, 0.0  ;;  %vm9673_vm6 = vcmask 31746   ;;  %vm9675_vm9 = vnez %v9674_v25  ;;  %v9677_v32 = vld [vmem:[#allocation5_spill] sm:$0xff]  ;;  %v4027_v42 = vpop.f32.mrb[5].mxu0  ;;  %v9686_v12 = vld [vmem:[#allocation6_spill] sm:$0xff]  ;;  %vm9691_vm15 = vmmov %vm9681_vm4 }
 0x1fe   : > { %5668 = vst.msk [vmem:[%s8699_s24 + $0xe] sm:$0xfc] %vm9673_vm6, %v6555_v37  ;;  %v9678_v3 = vsel %vm9675_vm9, %v9676_v10, %v9677_v32  ;;  %v5060_v52 = vmul.f32 %v4946_v51, %v4946_v51  ;;  %v4982_v57 = vsel %vm9681_vm4, %v4945_v30, 0.0  ;;  %v5059_v54 = vmul.f32 %v4945_v30, %v4945_v30  ;;  %v9682_v37 = vld [vmem:[#allocation29_spill] sm:$0xff]  ;;  %v9690_v32 = vld [vmem:[#allocation30_spill] sm:$0xff] }
 0x1ff   : > { %vm8822_vm1 = vcmp.lt.s32.totalorder %v9678_v3, 16  ;;  %v6556_v46 = vadd.f32 %v6504_v0, %v9682_v37  ;;  %vm9684_vm13 = vnez %v9683_v35  ;;  %v4983_v10 = vadd.f32 %v4982_v57, %v4981_v45  ;;  %v9750_v25 = vld [vmem:[#allocation37_spill] sm:$0xff] }
 0x200   : > { %v9687_v59 = vsel %vm9684_vm13, %v9685_v17, %v9686_v12  ;;  %v6557_v3 = vadd.f32 %v4027_v42, %v9690_v32  ;;  %v8841_v30 = vadd.s32 18, %v8785_v6  ;;  %v4650_v0 = vshrl.u32 %v8745_v48, 4  ;;  %vm9692_vm13 = vmmov %vm9681_vm4  ;;  %v6507_v42 = vpop.f32.mrb[6].mxu0  ;;  %v9703_v32 = vld [vmem:[#allocation8_spill] sm:$0xff] }
 0x201   : > { %vm8835_vm6 = vcmp.lt.s32.totalorder %v9687_v59, 16  ;;  %v4984_v37 = vsel %vm9681_vm4, %v4946_v51, 0.0  ;;  %v5096_v35 = vsel %vm9691_vm15, %v5059_v54, 0.0  ;;  %v4948_v17 = vsel %vm8706_vm0, %v6556_v46, 0.0  ;;  %5672 = vst.msk [vmem:[%s8699_s24 + $0x24] sm:$0xff] %vm9692_vm13, %v6556_v46  ;;  %v4037_v46 = vpop.f32.mrb[7].mxu0 }
 0x202   : > { %vm4685_vm14 = vcmp.ne.s32.totalorder %v8790_v33, 0  ;;  %v4985_v12 = vadd.f32 %v4984_v37, %v4983_v10  ;;  %v5097_v45 = vadd.f32 %v5096_v35, %v5095_v41  ;;  %v5062_v57 = vmul.f32 %v4948_v17, %v4948_v17  ;;  %5671 = vst.msk [vmem:[%s8699_s24 + $0x1c] sm:$0xf0] %vm9694_vm3, %v6557_v3  ;;  %v9699_v41 = vld [vmem:[#allocation34_spill] sm:$0xff]  ;;  %v9700_v59 = vld [vmem:[#allocation17_spill] sm:$0xff]  ;;  %v9763_v35 = vld [vmem:[#allocation28_spill] sm:$0xff] }
 0x203   : > { %vm9693_vm9 = vcmask 25600   ;;  %vm9695_vm10 = vcmp.ne.s32.totalorder %v8785_v6, 0  ;;  %vm9696_vm4 = vcmp.lt.s32.totalorder %v8785_v6, 0  ;;  %vm4721_vm0 = vcmp.lt.s32.totalorder %v8790_v33, 0  ;;  %v9702_v10 = vld [vmem:[#allocation18_spill] sm:$0xff] }
 0x204   : > { %5670 = vst.msk [vmem:[%s8699_s24 + $0x1e] sm:$0x3] %vm9693_vm9, %v6557_v3  ;;  %vm8859_vm15 = vmand %vm9696_vm4, %vm9695_vm10  ;;  %v5098_v44 = vsel %vm9692_vm13, %v5060_v52, 0.0  ;;  %v4947_v51 = vsel %vm8738_vm5, %v6557_v3, 0.0  ;;  %v6558_v54 = vadd.f32 %v6507_v42, %v9699_v41  ;;  %vm9701_vm3 = vnez %v9700_v59 }
 0x205   : > { %v9704_v37 = vsel %vm9701_vm3, %v9702_v10, %v9703_v32  ;;  %vm9708_vm10 = vnez %v9707_v8  ;;  %v8887_v3 = vadd.s32 18, %v8790_v33  ;;  %v5099_v42 = vadd.f32 %v5098_v44, %v5097_v45  ;;  %vm9714_vm5 = vmmov %vm9692_vm13 }
 0x206   : > { %vm8873_vm9 = vcmp.lt.s32.totalorder %v9704_v37, 16  ;;  %v9711_v52 = vsel %vm9708_vm10, %v9709_v61, %v9710_v40  ;;  %v4986_v41 = vsel %vm9714_vm5, %v4947_v51, 0.0  ;;  %v5061_v59 = vmul.f32 %v4947_v51, %v4947_v51  ;;  %vm9715_vm13 = vmmov %vm9714_vm5  ;;  %v9716_v40 = vld [vmem:[#allocation35_spill] sm:$0xff] }
 0x207   : > { %vm8882_vm4 = vcmp.lt.s32.totalorder %v9711_v52, 16  ;;  %v8891_v10 = vsub.s32 %v8507_v55, %v4629_v13  ;;  %v4987_v8 = vadd.f32 %v4986_v41, %v4985_v12  ;;  %v4950_v61 = vsel %vm8772_vm7, %v6558_v54, 0.0  ;;  %5675 = vst.msk [vmem:[%s8699_s24 + $0x32] sm:$0xff] %vm9715_vm13, %v6558_v54  ;;  %vm9717_vm3 = vmmov %vm9714_vm5  ;;  %v6510_v13 = vpop.f32.mrb[8].mxu0 }
 0x208   : > { %v6559_v32 = vadd.f32 %v4037_v46, %v9716_v40  ;;  %v4830_v45 = vsel %vm8859_vm15, %v8841_v30, %v8785_v6  ;;  %v4988_v44 = vsel %vm9717_vm3, %v4948_v17, 0.0  ;;  %vm9718_vm10 = vmmov %vm9717_vm3  ;;  %v4618_v12 = vmul.u32 18, %v4617_v11  ;;  %v9722_v46 = vld [vmem:[#allocation38_spill] sm:$0xff]  ;;  %v4047_v41 = vpop.f32.mrb[9].mxu0  ;;  %v9723_v17 = vld [vmem:[#allocation23_spill] sm:$0xff] }
 0x209   : > { %v5102_v51 = vsel %vm9718_vm10, %v5062_v57, 0.0  ;;  %vm9719_vm5 = vmmov %vm9717_vm3  ;;  %v4989_v54 = vadd.f32 %v4988_v44, %v4987_v8  ;;  %vm9720_vm7 = vcmask 27648   ;;  %vm9721_vm13 = vcmask 31750   ;;  %v9725_v57 = vld [vmem:[#allocation21_spill] sm:$0xff]  ;;  %v9726_v40 = vld [vmem:[#allocation11_spill] sm:$0xff] }
 0x20a   : > { %v5100_v55 = vsel %vm9719_vm5, %v5061_v59, 0.0  ;;  %v4949_v60 = vsel %vm8799_vm12, %v6559_v32, 0.0  ;;  %5673 = vst.msk [vmem:[%s8699_s24 + $0x2c] sm:$0xf] %vm9720_vm7, %v6559_v32  ;;  %v6560_v52 = vadd.f32 %v6510_v13, %v9722_v46  ;;  %vm9724_vm3 = vnez %v9723_v17  ;;  %v9778_v11 = vld [vmem:[#allocation41_spill] sm:$0xff] }
 0x20b   : > { %v5101_v37 = vadd.f32 %v5100_v55, %v5099_v42  ;;  %5674 = vst.msk [vmem:[%s8699_s24 + $0x2a] sm:$0xc0] %vm9721_vm13, %v6559_v32  ;;  %v9727_v59 = vsel %vm9724_vm3, %v9725_v57, %v9726_v40  ;;  %vm9730_vm5 = vnez %v9551_v58  ;;  %v5064_v8 = vmul.f32 %v4950_v61, %v4950_v61  ;;  %v9735_v55 = vld [vmem:[#allocation40_spill] sm:$0xff]  ;;  %vm8940_vm3 = vmand %vm4721_vm0, %vm4685_vm14  ;;  %v9830_v42 = vld [vmem:[#allocation49_spill] sm:$0xff] }
 0x20c   : > { %vm8917_vm10 = vcmp.lt.s32.totalorder %v9727_v59, 16  ;;  %v9731_v39 = vsel %vm9730_vm5, %v8224_v50, %v8172_v2  ;;  %vm9734_vm7 = vcmask 31744   ;;  %v5063_v44 = vmul.f32 %v4949_v60, %v4949_v60  ;;  %v9743_v59 = vld [vmem:[#allocation36_spill] sm:$0xff] }
 0x20d   : > { %vm8926_vm12 = vcmp.lt.s32.totalorder %v9731_v39, 16  ;;  %v4990_v32 = vsel %vm9734_vm7, %v4949_v60, 0.0  ;;  %v6561_v13 = vadd.f32 %v4047_v41, %v9735_v55  ;;  %v5103_v17 = vadd.f32 %v5102_v51, %v5101_v37  ;;  %vm9736_vm13 = vmmov %vm9734_vm7  ;;  %v6513_v37 = vpop.f32.mrb[10].mxu0  ;;  %v9746_v39 = vld [vmem:[#allocation22_spill] sm:$0xff]  ;;  %v9752_v55 = vld [vmem:[#allocation32_spill] sm:$0xff] }
 0x20e   : > { %v4991_v46 = vadd.f32 %v4990_v32, %v4989_v54  ;;  %v4952_v57 = vsel %vm8822_vm1, %v6560_v52, 0.0  ;;  %5677 = vst.msk [vmem:[%s8699_s24 + $0x40] sm:$0xff] %vm9736_vm13, %v6560_v52  ;;  %v8944_v50 = vmul.u32 18, %v4650_v0  ;;  %vm9739_vm5 = vmmov %vm9734_vm7  ;;  %vm9741_vm1 = vcmask 29696   ;;  %v4057_v0 = vpop.f32.mrb[11].mxu0 }
 0x20f   : > { %v4992_v58 = vsel %vm9739_vm5, %v4950_v61, 0.0  ;;  %vm9740_vm7 = vmmov %vm9739_vm5  ;;  %v5066_v51 = vmul.f32 %v4952_v57, %v4952_v57  ;;  %v4951_v27 = vsel %vm8835_vm6, %v6561_v13, 0.0  ;;  %5676 = vst.msk [vmem:[%s8699_s24 + $0x3a] sm:$0x3f] %vm9741_vm1, %v6561_v13  ;;  %vm9744_vm14 = vnez %v9743_v59  ;;  %v9745_v61 = vld [vmem:[#allocation27_spill] sm:$0xff]  ;;  %v9753_v13 = vld [vmem:[#allocation24_spill] sm:$0xff] }
 0x210   : > { %v5104_v60 = vsel %vm9740_vm7, %v5063_v44, 0.0  ;;  %v4993_v52 = vadd.f32 %v4992_v58, %v4991_v46  ;;  %vm9742_vm13 = vmmov %vm9739_vm5  ;;  %v5065_v40 = vmul.f32 %v4951_v27, %v4951_v27  ;;  %v9747_v32 = vsel %vm9744_vm14, %v9745_v61, %v9746_v39 }
 0x211   : > { %v5105_v54 = vadd.f32 %v5104_v60, %v5103_v17  ;;  %v4994_v41 = vsel %vm9742_vm13, %v4951_v27, 0.0  ;;  %vm8958_vm0 = vcmp.lt.s32.totalorder %v9747_v32, 16  ;;  %vm9751_vm6 = vnez %v9750_v25  ;;  %vm9757_vm1 = vmmov %vm9740_vm7 }
 0x212   : > { %v9754_v46 = vsel %vm9751_vm6, %v9752_v55, %v9753_v13  ;;  %v5106_v58 = vsel %vm9740_vm7, %v5064_v8, 0.0  ;;  %v6562_v60 = vadd.f32 %v6513_v37, %v8442_v43  ;;  %v6563_v27 = vadd.f32 %v4057_v0, %v8452_v16  ;;  %vm9758_vm14 = vmmov %vm9757_vm1  ;;  %v6516_v43 = vpop.f32.mrb[12].mxu0  ;;  %v9820_v0 = vld [vmem:[#allocation46_spill] sm:$0xff] }
 0x213   : > { %vm8967_vm5 = vcmp.lt.s32.totalorder %v9754_v46, 16  ;;  %v4829_v59 = vsel %vm8940_vm3, %v8887_v3, %v8790_v33  ;;  %v4995_v61 = vadd.f32 %v4994_v41, %v4993_v52  ;;  %v5107_v39 = vadd.f32 %v5106_v58, %v5105_v54  ;;  %vm9760_vm7 = vmmov %vm9757_vm1 }
 0x214   : > { %v5108_v32 = vsel %vm9757_vm1, %v5065_v40, 0.0  ;;  %vm4688_vm13 = vcmp.ne.s32.totalorder %v8891_v10, 0  ;;  %v4996_v25 = vsel %vm9758_vm14, %v4952_v57, 0.0  ;;  %v4954_v8 = vsel %vm8873_vm9, %v6562_v60, 0.0  ;;  %5678 = vst.msk [vmem:[%s8699_s24 + $0x48] sm:$0xff] %vm9760_vm7, %v6563_v27  ;;  %vm9761_vm15 = vmmov %vm9757_vm1  ;;  %v4067_v57 = vpop.f32.mrb[13].mxu0 }
 0x215   : > { %vm9759_vm6 = vcmask 31746   ;;  %v4953_v16 = vsel %vm8882_vm4, %v6563_v27, 0.0  ;;  %v5110_v37 = vsel %vm9761_vm15, %v5066_v51, 0.0  ;;  %v5109_v54 = vadd.f32 %v5108_v32, %v5107_v39  ;;  %vm9771_vm14 = vmmov %vm9760_vm7 }
 0x216   : > { %5679 = vst.msk [vmem:[%s8699_s24 + $0x4e] sm:$0xfc] %vm9759_vm6, %v6562_v60  ;;  %v5068_v52 = vmul.f32 %v4954_v8, %v4954_v8  ;;  %v4997_v41 = vadd.f32 %v4996_v25, %v4995_v61  ;;  %vm9762_vm9 = vnez %v9566_v31  ;;  %vm9767_vm4 = vnez %v9571_v15  ;;  %vm9772_vm6 = vmmov %vm9760_vm7  ;;  %v9780_v25 = vld [vmem:[#allocation39_spill] sm:$0xff] }
 0x217   : > { %v9764_v40 = vsel %vm9762_vm9, %v8329_v4, %v9763_v35  ;;  %v9768_v51 = vsel %vm9767_vm4, %v8386_v28, %v8270_v63  ;;  %v4998_v55 = vsel %vm9771_vm14, %v4953_v16, 0.0  ;;  %v5067_v31 = vmul.f32 %v4953_v16, %v4953_v16  ;;  %vm9773_vm7 = vmmov %vm9772_vm6 }
 0x218   : > { %vm8996_vm1 = vcmp.lt.s32.totalorder %v9764_v40, 16  ;;  %vm9005_vm15 = vcmp.lt.s32.totalorder %v9768_v51, 16  ;;  %v6564_v13 = vadd.f32 %v6516_v43, %v8475_v7  ;;  %v6565_v4 = vadd.f32 %v4067_v57, %v8487_v29  ;;  %vm9776_vm14 = vmmov %vm9772_vm6  ;;  %v6519_v7 = vpop.f32.mrb[14].mxu0  ;;  %v9785_v43 = vld [vmem:[#allocation43_spill] sm:$0xff] }
 0x219   : > { %v4999_v46 = vadd.f32 %v4998_v55, %v4997_v41  ;;  %v5111_v58 = vadd.f32 %v5110_v37, %v5109_v54  ;;  %v9013_v60 = vadd.s32 18, %v8891_v10  ;;  %v9016_v15 = vsub.s32 %v8612_v21, %v4618_v12  ;;  %vm9777_vm3 = vmmov %vm9772_vm6  ;;  %v4077_v32 = vpop.f32.mrb[15].mxu0  ;;  %v9787_v37 = vld [vmem:[#allocation42_spill] sm:$0xff]  ;;  %v9788_v54 = vld [vmem:[#allocation33_spill] sm:$0xff] }
 0x21a   : > { %v5000_v63 = vsel %vm9772_vm6, %v4954_v8, 0.0  ;;  %v5112_v28 = vsel %vm9773_vm7, %v5067_v31, 0.0  ;;  %v4956_v27 = vsel %vm8917_vm10, %v6564_v13, 0.0  ;;  %vm9774_vm9 = vcmask 25600   ;;  %5680 = vst.msk [vmem:[%s8699_s24 + $0x56] sm:$0xff] %vm9776_vm14, %v6565_v4  ;;  %v9781_v8 = vld [vmem:[#allocation31_spill] sm:$0xff] }
 0x21b   : > { %5681 = vst.msk [vmem:[%s8699_s24 + $0x5e] sm:$0x3] %vm9774_vm9, %v6564_v13  ;;  %vm9775_vm4 = vcmask 31748   ;;  %v4955_v29 = vsel %vm8926_vm12, %v6565_v4, 0.0  ;;  %v5114_v21 = vsel %vm9777_vm3, %v5068_v52, 0.0  ;;  %v5113_v12 = vadd.f32 %v5112_v28, %v5111_v58  ;;  %vm9792_vm9 = vmmov %vm9773_vm7 }
 0x21c   : > { %5682 = vst.msk [vmem:[%s8699_s24 + $0x5c] sm:$0xf0] %vm9775_vm4, %v6564_v13  ;;  %v5070_v61 = vmul.f32 %v4956_v27, %v4956_v27  ;;  %v5001_v39 = vadd.f32 %v5000_v63, %v4999_v46  ;;  %vm9779_vm10 = vnez %v9778_v11  ;;  %vm9786_vm12 = vnez %v9785_v43  ;;  %vm9793_vm4 = vmmov %vm9773_vm7 }
 0x21d   : > { %v9782_v16 = vsel %vm9779_vm10, %v9780_v25, %v9781_v8  ;;  %v9789_v52 = vsel %vm9786_vm12, %v9787_v37, %v9788_v54  ;;  %v5002_v57 = vsel %vm9773_vm7, %v4955_v29, 0.0  ;;  %v5069_v35 = vmul.f32 %v4955_v29, %v4955_v29  ;;  %vm9796_vm12 = vmmov %vm9793_vm4  ;;  %v9811_v8 = vld [vmem:[#allocation52_spill] sm:$0xff]  ;;  %v6301_v37 = vpop.f32.mrb[18].mxu1 }
 0x21e   : > { %vm9036_vm6 = vcmp.lt.s32.totalorder %v9782_v16, 16  ;;  %vm9045_vm3 = vcmp.lt.s32.totalorder %v9789_v52, 16  ;;  %v6566_v40 = vadd.f32 %v6519_v7, %v8509_v47  ;;  %v6567_v51 = vadd.f32 %v4077_v32, %v8527_v36  ;;  %v6522_v36 = vpop.f32.mrb[16].mxu0  ;;  %v9806_v32 = vld [vmem:[#allocation44_spill] sm:$0xff] }
 0x21f   : > { %v5003_v55 = vadd.f32 %v5002_v57, %v5001_v39  ;;  %v5115_v31 = vadd.f32 %v5114_v21, %v5113_v12  ;;  %v9053_v13 = vmul.u32.u64.low 3817748708, %v8727_v14  ;;  %v9054_v4 = vmul.u32.u64.high 3817748708, %v8727_v14, %v9053_v13  ;;  %v4087_v21 = vpop.f32.mrb[17].mxu0  ;;  %v9805_v39 = vld [vmem:[#allocation45_spill] sm:$0xff]  ;;  %v9847_v12 = vld [vmem:[#allocation54_spill] sm:$0xff] }
 0x220   : > { %v5004_v46 = vsel %vm9792_vm9, %v4956_v27, 0.0  ;;  %v5116_v58 = vsel %vm9793_vm4, %v5069_v35, 0.0  ;;  %v4958_v63 = vsel %vm8958_vm0, %v6566_v40, 0.0  ;;  %vm9794_vm14 = vcmask 27648   ;;  %5683 = vst.msk [vmem:[%s8699_s24 + $0x64] sm:$0xff] %vm9796_vm12, %v6567_v51  ;;  %vm9812_vm12 = vmmov %vm9793_vm4 }
 0x221   : > { %5684 = vst.msk [vmem:[%s8699_s24 + $0x6c] sm:$0xf] %vm9794_vm14, %v6566_v40  ;;  %vm9795_vm10 = vcmask 31750   ;;  %v4957_v47 = vsel %vm8967_vm5, %v6567_v51, 0.0  ;;  %vm9797_vm7 = vcmp.lt.s32.totalorder %v8891_v10, 0  ;;  %v5118_v44 = vsel %vm9793_vm4, %v5070_v61, 0.0 }
 0x222   : > { %5685 = vst.msk [vmem:[%s8699_s24 + $0x6a] sm:$0xc0] %vm9795_vm10, %v6566_v40  ;;  %vm9072_vm9 = vmand %vm9797_vm7, %vm4688_vm13  ;;  %v5117_v27 = vadd.f32 %v5116_v58, %v5115_v31  ;;  %v5072_v29 = vmul.f32 %v4958_v63, %v4958_v63  ;;  %v5005_v7 = vadd.f32 %v5004_v46, %v5003_v55  ;;  %vm9800_vm0 = vnez %v9589_v24  ;;  %v6525_v40 = vpop.f32.mrb[18].mxu0  ;;  %v2381_v51 = vpop.f32.mrb[19].mxu1  ;;  %v9852_v61 = vld [vmem:[#allocation57_spill] sm:$0xff] }
 0x223   : > { %v9801_v17 = vsel %vm9800_vm0, %v8469_v26, %v8428_v34  ;;  %vm9804_vm13 = vnez %v9596_v1  ;;  %vm9810_vm10 = vmmov %vm9793_vm4  ;;  %v5071_v24 = vmul.f32 %v4957_v47, %v4957_v47  ;;  %v6568_v16 = vadd.f32 %v6522_v36, %v9811_v8  ;;  %v4097_v13 = vpop.f32.mrb[19].mxu0 }
 0x224   : > { %vm9082_vm5 = vcmp.lt.s32.totalorder %v9801_v17, 16  ;;  %v9807_v11 = vsel %vm9804_vm13, %v9805_v39, %v9806_v32  ;;  %v5006_v25 = vsel %vm9810_vm10, %v4957_v47, 0.0  ;;  %v6569_v34 = vadd.f32 %v4087_v21, %v8614_v38  ;;  %vm9813_vm7 = vmmov %vm9793_vm4  ;;  %v6528_v21 = vpop.f32.mrb[20].mxu0 }
 0x225   : > { %vm9091_vm14 = vcmp.lt.s32.totalorder %v9807_v11, 16  ;;  %v5007_v26 = vadd.f32 %v5006_v25, %v5005_v7  ;;  %v5119_v43 = vadd.f32 %v5118_v44, %v5117_v27  ;;  %v4832_v1 = vsel %vm9072_vm9, %v9013_v60, %v8891_v10  ;;  %vm9815_vm0 = vmmov %vm9813_vm7  ;;  %v6304_v27 = vpop.f32.mrb[20].mxu1 }
 0x226   : > { %v9104_v54 = vsub.s32 %v8676_v22, %v8944_v50  ;;  %v5008_v52 = vsel %vm9812_vm12, %v4958_v63, 0.0  ;;  %v5120_v57 = vsel %vm9813_vm7, %v5071_v24, 0.0  ;;  %v4960_v35 = vsel %vm8996_vm1, %v6568_v16, 0.0  ;;  %5686 = vst.msk [vmem:[%s8699_s24 + $0x72] sm:$0xff] %vm9815_vm0, %v6569_v34  ;;  %vm9816_vm13 = vmmov %vm9815_vm0  ;;  %v2391_v17 = vpop.f32.mrb[21].mxu1  ;;  %v4107_v24 = vpop.f32.mrb[21].mxu0 }
 0x227   : > { %vm9814_vm4 = vcmask 29696   ;;  %v4959_v38 = vsel %vm9005_vm15, %v6569_v34, 0.0  ;;  %v5122_v55 = vsel %vm9816_vm13, %v5072_v29, 0.0  ;;  %v5121_v22 = vadd.f32 %v5120_v57, %v5119_v43  ;;  %vm9824_vm10 = vmmov %vm9815_vm0 }
 0x228   : > { %5687 = vst.msk [vmem:[%s8699_s24 + $0x7a] sm:$0x3f] %vm9814_vm4, %v6568_v16  ;;  %v5074_v50 = vmul.f32 %v4960_v35, %v4960_v35  ;;  %v5009_v31 = vadd.f32 %v5008_v52, %v5007_v26  ;;  %vm9122_vm1 = vcmp.lt.s32.totalorder %v9817_v56, 16  ;;  %v9821_v58 = vsel %vm8580_vm2, %v8525_v9, %v9820_v0  ;;  %vm9825_vm7 = vmmov %vm9815_vm0  ;;  %v9831_v16 = vld [vmem:[#allocation47_spill] sm:$0xff] }
 0x229   : > { %vm9131_vm15 = vcmp.lt.s32.totalorder %v9821_v58, 16  ;;  %v5010_v47 = vsel %vm9824_vm10, %v4959_v38, 0.0  ;;  %v5073_v20 = vmul.f32 %v4959_v38, %v4959_v38  ;;  %v6570_v36 = vadd.f32 %v6525_v40, %v6301_v37  ;;  %vm9826_vm2 = vmmov %vm9815_vm0 }
 0x22a   : > { %v6571_v44 = vadd.f32 %v4097_v13, %v2381_v51  ;;  %v5011_v19 = vadd.f32 %v5010_v47, %v5009_v31  ;;  %v5123_v49 = vadd.f32 %v5122_v55, %v5121_v22  ;;  %vm4687_vm11 = vcmp.ne.s32.totalorder %v9016_v15, 0  ;;  %vm9827_vm4 = vmmov %vm9815_vm0  ;;  %v6307_v51 = vpop.f32.mrb[22].mxu1  ;;  %v6531_v31 = vpop.f32.mrb[22].mxu0 }
 0x22b   : > { %vm4723_vm12 = vcmp.lt.s32.totalorder %v9016_v15, 0  ;;  %v5012_v53 = vsel %vm9825_vm7, %v4960_v35, 0.0  ;;  %v5124_v9 = vsel %vm9826_vm2, %v5073_v20, 0.0  ;;  %v4962_v29 = vsel %vm9036_vm6, %v6570_v36, 0.0  ;;  %5689 = vst.msk [vmem:[%s8699_s24 + $0x88] sm:$0xff] %vm9827_vm4, %v6570_v36  ;;  %vm9828_vm13 = vmmov %vm9815_vm0  ;;  %v2401_v13 = vpop.f32.mrb[23].mxu1 }
 0x22c   : > { %v4961_v7 = vsel %vm9045_vm3, %v6571_v44, 0.0  ;;  %5688 = vst.msk [vmem:[%s8699_s24 + $0x80] sm:$0xff] %vm9815_vm0, %v6571_v44  ;;  %v5126_v39 = vsel %vm9828_vm13, %v5074_v50, 0.0  ;;  %v5125_v32 = vadd.f32 %v5124_v9, %v5123_v49  ;;  %v5076_v11 = vmul.f32 %v4962_v29, %v4962_v29  ;;  %vm9839_vm7 = vmmov %vm9815_vm0  ;;  %v4117_v47 = vpop.f32.mrb[23].mxu0  ;;  %v9845_v20 = vld [vmem:[#allocation55_spill] sm:$0xff]  ;;  %v9848_v36 = vld [vmem:[#allocation48_spill] sm:$0xff] }
 0x22d   : > { %v5013_v25 = vadd.f32 %v5012_v53, %v5011_v19  ;;  %v9832_v34 = vsel %vm8604_vm8, %v9830_v42, %v9831_v16  ;;  %vm9835_vm3 = vnez %v9621_v62  ;;  %v5014_v37 = vsel %vm9839_vm7, %v4961_v7, 0.0  ;;  %vm9840_vm8 = vmmov %vm9815_vm0  ;;  %v9854_v49 = vld [vmem:[#allocation58_spill] sm:$0xff] }
 0x22e   : > { %vm9154_vm6 = vcmp.lt.s32.totalorder %v9832_v34, 16  ;;  %v9836_v41 = vsel %vm9835_vm3, %v8609_v5, %v8490_v23  ;;  %v5075_v52 = vmul.f32 %v4961_v7, %v4961_v7  ;;  %v6572_v57 = vadd.f32 %v6528_v21, %v6304_v27  ;;  %vm9841_vm2 = vmmov %vm9815_vm0  ;;  %v9855_v27 = vld [vmem:[#allocation50_spill] sm:$0xff] }
 0x22f   : > { %vm9163_vm10 = vcmp.lt.s32.totalorder %v9836_v41, 16  ;;  %v6573_v35 = vadd.f32 %v4107_v24, %v2391_v17  ;;  %v5015_v38 = vadd.f32 %v5014_v37, %v5013_v25  ;;  %v5127_v40 = vadd.f32 %v5126_v39, %v5125_v32  ;;  %vm9842_vm4 = vmmov %vm9815_vm0  ;;  %v6534_v41 = vpop.f32.mrb[24].mxu0 }
 0x230   : > { %v9169_v55 = vadd.s32 18, %v9016_v15  ;;  %v4639_v62 = vshrl.u32 %v9054_v4, 4  ;;  %v5016_v23 = vsel %vm9840_vm8, %v4962_v29, 0.0  ;;  %v5128_v5 = vsel %vm9841_vm2, %v5075_v52, 0.0  ;;  %5691 = vst.msk [vmem:[%s8699_s24 + $0x96] sm:$0xff] %vm9842_vm4, %v6572_v57  ;;  %vm9844_vm13 = vmmov %vm9841_vm2 }
 0x231   : > { %v4964_v22 = vsel %vm9082_vm5, %v6572_v57, 0.0  ;;  %v4963_v50 = vsel %vm9091_vm14, %v6573_v35, 0.0  ;;  %vm9843_vm0 = vcmask 31746   ;;  %v5130_v56 = vsel %vm9844_vm13, %v5076_v11, 0.0  ;;  %vm9859_vm8 = vmmov %vm9841_vm2  ;;  %v6310_v11 = vpop.f32.mrb[24].mxu1 }
 0x232   : > { %5690 = vst.msk [vmem:[%s8699_s24 + $0x8e] sm:$0xfc] %vm9843_vm0, %v6573_v35  ;;  %v5129_v0 = vadd.f32 %v5128_v5, %v5127_v40  ;;  %v5078_v4 = vmul.f32 %v4964_v22, %v4964_v22  ;;  %v5017_v58 = vadd.f32 %v5016_v23, %v5015_v38  ;;  %vm9846_vm3 = vnez %v9845_v20  ;;  %vm9860_vm4 = vmmov %vm9841_vm2  ;;  %v2411_v37 = vpop.f32.mrb[25].mxu1  ;;  %v4127_v38 = vpop.f32.mrb[25].mxu0  ;;  %v9867_v40 = vld [vmem:[#allocation60_spill] sm:$0xff] }
 0x233   : > { %v9849_v44 = vsel %vm9846_vm3, %v9847_v12, %v9848_v36  ;;  %vm9853_vm14 = vnez %v9852_v61  ;;  %v5018_v29 = vsel %vm9859_vm8, %v4963_v50, 0.0  ;;  %v5077_v7 = vmul.f32 %v4963_v50, %v4963_v50  ;;  %vm9861_vm0 = vmmov %vm9841_vm2  ;;  %v9876_v50 = vld [vmem:[#allocation56_spill] sm:$0xff]  ;;  %v6313_v12 = vpop.f32.mrb[26].mxu1 }
 0x234   : > { %vm9188_vm5 = vcmp.lt.s32.totalorder %v9849_v44, 16  ;;  %v9856_v53 = vsel %vm9853_vm14, %v9854_v49, %v9855_v27  ;;  %v6574_v21 = vadd.f32 %v6531_v31, %v6307_v51  ;;  %v6575_v17 = vadd.f32 %v4117_v47, %v2401_v13  ;;  %vm9221_vm14 = vmand %vm4723_vm12, %vm4687_vm11  ;;  %v9869_v51 = vld [vmem:[#allocation59_spill] sm:$0xff] }
 0x235   : > { %vm9197_vm7 = vcmp.lt.s32.totalorder %v9856_v53, 16  ;;  %v5019_v39 = vadd.f32 %v5018_v29, %v5017_v58  ;;  %v5131_v32 = vadd.f32 %v5130_v56, %v5129_v0  ;;  %v9203_v25 = vadd.s32 18, %v9104_v54 }
 0x236   : > { %v4640_v24 = vmul.u32 18, %v4639_v62  ;;  %v5020_v8 = vsel %vm9841_vm2, %v4964_v22, 0.0  ;;  %v5132_v42 = vsel %vm9860_vm4, %v5077_v7, 0.0  ;;  %v4966_v16 = vsel %vm9122_vm1, %v6574_v21, 0.0  ;;  %5694 = vst.msk [vmem:[%s8699_s24 + $0xa4] sm:$0xff] %vm9861_vm0, %v6574_v21  ;;  %vm9866_vm2 = vmmov %vm9861_vm0  ;;  %v9870_v62 = vld [vmem:[#allocation51_spill] sm:$0xff] }
 0x237   : > { %v4965_v34 = vsel %vm9131_vm15, %v6575_v17, 0.0  ;;  %vm9862_vm13 = vcmask 25600   ;;  %vm9863_vm3 = vcmask 31748   ;;  %vm4690_vm1 = vcmp.ne.s32.totalorder %v9104_v54, 0  ;;  %v9875_v22 = vld [vmem:[#allocation61_spill] sm:$0xff] }
 0x238   : > { %5692 = vst.msk [vmem:[%s8699_s24 + $0x9e] sm:$0x3] %vm9862_vm13, %v6575_v17  ;;  %vm4726_vm8 = vcmp.lt.s32.totalorder %v9104_v54, 0  ;;  %v5134_v46 = vsel %vm9866_vm2, %v5078_v4, 0.0  ;;  %v5021_v63 = vadd.f32 %v5020_v8, %v5019_v39  ;;  %v5133_v57 = vadd.f32 %v5132_v42, %v5131_v32  ;;  %vm9880_vm13 = vmmov %vm9861_vm0 }
 0x239   : > { %5693 = vst.msk [vmem:[%s8699_s24 + $0x9c] sm:$0xf0] %vm9863_vm3, %v6575_v17  ;;  %v5080_v35 = vmul.f32 %v4966_v16, %v4966_v16  ;;  %vm9868_vm15 = vnez %v9867_v40  ;;  %vm9874_vm12 = vnez %v9660_v18  ;;  %v5022_v56 = vsel %vm9861_vm0, %v4965_v34, 0.0  ;;  %vm9881_vm3 = vmmov %vm9861_vm0 }
 0x23a   : > { %v9871_v23 = vsel %vm9868_vm15, %v9869_v51, %v9870_v62  ;;  %v9877_v31 = vsel %vm9874_vm12, %v9875_v22, %v9876_v50  ;;  %v5079_v0 = vmul.f32 %v4965_v34, %v4965_v34  ;;  %v6576_v4 = vadd.f32 %v6534_v41, %v6310_v11  ;;  %vm9882_vm2 = vmmov %vm9861_vm0 }
 0x23b   : > { %vm9233_vm11 = vcmp.lt.s32.totalorder %v9871_v23, 16  ;;  %vm9242_vm4 = vcmp.lt.s32.totalorder %v9877_v31, 16  ;;  %v6577_v58 = vadd.f32 %v4127_v38, %v2411_v37  ;;  %v5135_v47 = vadd.f32 %v5134_v46, %v5133_v57  ;;  %vm9317_vm9 = vmand %vm4726_vm8, %vm4690_vm1 }
 0x23c   : > { %v5023_v20 = vadd.f32 %v5022_v56, %v5021_v63  ;;  %v4831_v18 = vsel %vm9221_vm14, %v9169_v55, %v9016_v15  ;;  %v9252_v36 = vsub.s32 %v8727_v14, %v4640_v24  ;;  %v5024_v44 = vsel %vm9880_vm13, %v4966_v16, 0.0  ;;  %5697 = vst.msk [vmem:[%s8699_s24 + $0xb2] sm:$0xff] %vm9882_vm2, %v6576_v4  ;;  %v6537_v15 = vpop.f32.mrb[26].mxu0  ;;  %v2421_v55 = vpop.f32.mrb[27].mxu1  ;;  %vm9885_vm14 = vmmov %vm9861_vm0 }
 0x23d   : > { %v5136_v61 = vsel %vm9881_vm3, %v5079_v0, 0.0  ;;  %v4968_v49 = vsel %vm9154_vm6, %v6576_v4, 0.0  ;;  %v4967_v27 = vsel %vm9163_vm10, %v6577_v58, 0.0  ;;  %vm9883_vm15 = vcmask 27648   ;;  %v4137_v21 = vpop.f32.mrb[27].mxu0  ;;  %vm9892_vm3 = vmmov %vm9882_vm2 }
 0x23e   : > { %5695 = vst.msk [vmem:[%s8699_s24 + $0xac] sm:$0xf] %vm9883_vm15, %v6577_v58  ;;  %vm9884_vm12 = vcmask 31750   ;;  %v5138_v14 = vsel %vm9885_vm14, %v5080_v35, 0.0  ;;  %v5137_v53 = vadd.f32 %v5136_v61, %v5135_v47  ;;  %v5082_v29 = vmul.f32 %v4968_v49, %v4968_v49  ;;  %vm9894_vm14 = vmmov %vm9892_vm3  ;;  %v6540_v11 = vpop.f32.mrb[28].mxu0 }
 0x23f   : > { %5696 = vst.msk [vmem:[%s8699_s24 + $0xaa] sm:$0xc0] %vm9884_vm12, %v6577_v58  ;;  %v5025_v7 = vadd.f32 %v5024_v44, %v5023_v20  ;;  %vm9272_vm0 = vcmp.lt.s32.totalorder %v4830_v45, 16  ;;  %vm9281_vm13 = vcmp.lt.s32.totalorder %v4829_v59, 16  ;;  %v5026_v17 = vsel %vm9892_vm3, %v4967_v27, 0.0  ;;  %v6316_v45 = vpop.f32.mrb[28].mxu1  ;;  %vm9893_vm12 = vmmov %vm9892_vm3 }
 0x240   : > { %v5081_v48 = vmul.f32 %v4967_v27, %v4967_v27  ;;  %v6578_v39 = vadd.f32 %v6537_v15, %v6313_v12  ;;  %v6579_v32 = vadd.f32 %v4137_v21, %v2421_v55  ;;  %v5139_v30 = vadd.f32 %v5138_v14, %v5137_v53  ;;  %vm9895_vm6 = vmmov %vm9892_vm3  ;;  %v2431_v24 = vpop.f32.mrb[29].mxu1  ;;  %v4147_v41 = vpop.f32.mrb[29].mxu0 }
 0x241   : > { %v5027_v6 = vadd.f32 %v5026_v17, %v5025_v7  ;;  %vm4689_vm2 = vcmp.ne.s32.totalorder %v9252_v36, 0  ;;  %vm4725_vm15 = vcmp.lt.s32.totalorder %v9252_v36, 0  ;;  %v5028_v2 = vsel %vm9893_vm12, %v4968_v49, 0.0  ;;  %v6319_v35 = vpop.f32.mrb[30].mxu1  ;;  %v6543_v62 = vpop.f32.mrb[30].mxu0  ;;  %vm9909_vm8 = vmmov %vm9892_vm3 }
 0x242   : > { %v5140_v33 = vsel %vm9894_vm14, %v5081_v48, 0.0  ;;  %v4970_v3 = vsel %vm9188_vm5, %v6578_v39, 0.0  ;;  %5699 = vst.msk [vmem:[%s8699_s24 + $0xc0] sm:$0xff] %vm9895_vm6, %v6578_v39  ;;  %v4969_v59 = vsel %vm9197_vm7, %v6579_v32, 0.0  ;;  %vm9896_vm10 = vcmask 29696   ;;  %vm9899_vm7 = vmmov %vm9892_vm3  ;;  %v2441_v23 = vpop.f32.mrb[31].mxu1 }
 0x243   : > { %5698 = vst.msk [vmem:[%s8699_s24 + $0xba] sm:$0x3f] %vm9896_vm10, %v6579_v32  ;;  %v5142_v8 = vsel %vm9892_vm3, %v5082_v29, 0.0  ;;  %v5141_v42 = vadd.f32 %v5140_v33, %v5139_v30  ;;  %v5084_v16 = vmul.f32 %v4970_v3, %v4970_v3  ;;  %v5029_v34 = vadd.f32 %v5028_v2, %v5027_v6  ;;  %vm9904_vm14 = vmmov %vm9892_vm3  ;;  %v4157_v56 = vpop.f32.mrb[31].mxu0 }
 0x244   : > { %vm9304_vm5 = vcmp.lt.s32.totalorder %v4832_v1, 16  ;;  %v5030_v9 = vsel %vm9899_vm7, %v4969_v59, 0.0  ;;  %v5083_v37 = vmul.f32 %v4969_v59, %v4969_v59  ;;  %v6580_v52 = vadd.f32 %v6540_v11, %v6316_v45  ;;  %vm9905_vm6 = vmmov %vm9892_vm3 }
 0x245   : > { %v6581_v46 = vadd.f32 %v4147_v41, %v2431_v24  ;;  %v5031_v63 = vadd.f32 %v5030_v9, %v5029_v34  ;;  %v5143_v57 = vadd.f32 %v5142_v8, %v5141_v42  ;;  %vm9309_vm12 = vcmp.lt.s32.totalorder %v4831_v18, 16  ;;  %vm9336_vm1 = vmand %vm4725_vm15, %vm4689_vm2  ;;  %v6322_v18 = vpop.f32.mrb[32].mxu1 }
 0x246   : > { %v4797_v60 = vadd.s32 18, %v9252_v36  ;;  %v5032_v28 = vsel %vm9904_vm14, %v4970_v3, 0.0  ;;  %v5144_v1 = vsel %vm9905_vm6, %v5083_v37, 0.0  ;;  %v4972_v40 = vsel %vm9233_vm11, %v6580_v52, 0.0  ;;  %vm9910_vm11 = vmmov %vm9892_vm3 }
 0x247   : > { %vm9906_vm10 = vcmask 31746   ;;  %v4971_v51 = vsel %vm9242_vm4, %v6581_v46, 0.0  ;;  %5700 = vst.msk [vmem:[%s8699_s24 + $0xc8] sm:$0xff] %vm9892_vm3, %v6581_v46  ;;  %v5146_v5 = vsel %vm9909_vm8, %v5084_v16, 0.0  ;;  %v5145_v50 = vadd.f32 %v5144_v1, %v5143_v57  ;;  %vm9911_vm4 = vmmov %vm9892_vm3 }
 0x248   : > { %5701 = vst.msk [vmem:[%s8699_s24 + $0xce] sm:$0xfc] %vm9906_vm10, %v6580_v52  ;;  %v5086_v31 = vmul.f32 %v4972_v40, %v4972_v40  ;;  %v5033_v13 = vadd.f32 %v5032_v28, %v5031_v63  ;;  %v5034_v0 = vsel %vm9910_vm11, %v4971_v51, 0.0  ;;  %v5085_v4 = vmul.f32 %v4971_v51, %v4971_v51  ;;  %vm9912_vm2 = vmmov %vm9892_vm3 }
 0x249   : > { %v6582_v58 = vadd.f32 %v6543_v62, %v6319_v35  ;;  %v6583_v47 = vadd.f32 %v4157_v56, %v2441_v23  ;;  %v5147_v12 = vadd.f32 %v5146_v5, %v5145_v50  ;;  %v4834_v44 = vsel %vm9317_vm9, %v9203_v25, %v9104_v54  ;;  %vm9915_vm14 = vmmov %vm9912_vm2  ;;  %v6546_v54 = vpop.f32.mrb[32].mxu0  ;;  %v2451_v25 = vpop.f32.mrb[33].mxu1 }
 0x24a   : > { %v5035_v20 = vadd.f32 %v5034_v0, %v5033_v13  ;;  %v4833_v61 = vsel %vm9336_vm1, %v4797_v60, %v9252_v36  ;;  %v5036_v49 = vsel %vm9911_vm4, %v4972_v40, 0.0  ;;  %v5148_v27 = vsel %vm9912_vm2, %v5085_v4, 0.0  ;;  %vm9916_vm9 = vmmov %vm9912_vm2  ;;  %v4167_v7 = vpop.f32.mrb[33].mxu0  ;;  %v6325_v32 = vpop.f32.mrb[34].mxu1 }
 0x24b   : > { %v4974_v15 = vsel %vm9272_vm0, %v6582_v58, 0.0  ;;  %vm9913_vm15 = vcmask 25600   ;;  %vm9914_vm7 = vcmask 31748   ;;  %v4973_v55 = vsel %vm9281_vm13, %v6583_v47, 0.0  ;;  %5702 = vst.msk [vmem:[%s8699_s24 + $0xd6] sm:$0xff] %vm9915_vm14, %v6583_v47  ;;  %vm9917_vm0 = vmmov %vm9912_vm2  ;;  %v6549_v59 = vpop.f32.mrb[34].mxu0 }
 0x24c   : > { %5703 = vst.msk [vmem:[%s8699_s24 + $0xde] sm:$0x3] %vm9913_vm15, %v6582_v58  ;;  %v5150_v36 = vsel %vm9916_vm9, %v5086_v31, 0.0  ;;  %v5149_v14 = vadd.f32 %v5148_v27, %v5147_v12  ;;  %v5088_v53 = vmul.f32 %v4974_v15, %v4974_v15  ;;  %v5037_v29 = vadd.f32 %v5036_v49, %v5035_v20  ;;  %vm9922_vm10 = vmmov %vm9917_vm0  ;;  %v2461_v11 = vpop.f32.mrb[35].mxu1  ;;  %v4177_v34 = vpop.f32.mrb[35].mxu0 }
 0x24d   : > { %5704 = vst.msk [vmem:[%s8699_s24 + $0xdc] sm:$0xf0] %vm9914_vm7, %v6582_v58  ;;  %v5038_v21 = vsel %vm9917_vm0, %v4973_v55, 0.0  ;;  %v5087_v26 = vmul.f32 %v4973_v55, %v4973_v55  ;;  %v6584_v17 = vadd.f32 %v6546_v54, %v6322_v18  ;;  %v6585_v48 = vadd.f32 %v4167_v7, %v2451_v25  ;;  %vm9923_vm3 = vmmov %vm9917_vm0 }
 0x24e   : > { %v5039_v43 = vadd.f32 %v5038_v21, %v5037_v29  ;;  %v5151_v39 = vadd.f32 %v5150_v36, %v5149_v14  ;;  %vm9363_vm13 = vcmp.lt.s32.totalorder %v4834_v44, 16  ;;  %vm9367_vm6 = vcmp.lt.s32.totalorder %v4833_v61, 16  ;;  %vm9926_vm11 = vmmov %vm9917_vm0 }
 0x24f   : > { %v5040_v45 = vsel %vm9922_vm10, %v4974_v15, 0.0  ;;  %v5152_v2 = vsel %vm9923_vm3, %v5087_v26, 0.0  ;;  %v4976_v33 = vsel %vm9304_vm5, %v6584_v17, 0.0  ;;  %vm9924_vm1 = vcmask 27648   ;;  %5705 = vst.msk [vmem:[%s8699_s24 + $0xe4] sm:$0xff] %vm9926_vm11, %v6585_v48  ;;  %vm9927_vm4 = vmmov %vm9917_vm0 }
 0x250   : > { %5706 = vst.msk [vmem:[%s8699_s24 + $0xec] sm:$0xf] %vm9924_vm1, %v6584_v17  ;;  %vm9925_vm8 = vcmask 31750   ;;  %v4975_v3 = vsel %vm9309_vm12, %v6585_v48, 0.0  ;;  %v5154_v24 = vsel %vm9927_vm4, %v5088_v53, 0.0  ;;  %v5153_v8 = vadd.f32 %v5152_v2, %v5151_v39  ;;  %vm9928_vm5 = vmmov %vm9917_vm0 }
 0x251   : > { %5707 = vst.msk [vmem:[%s8699_s24 + $0xea] sm:$0xc0] %vm9925_vm8, %v6584_v17  ;;  %v5090_v42 = vmul.f32 %v4976_v33, %v4976_v33  ;;  %v5041_v16 = vadd.f32 %v5040_v45, %v5039_v43  ;;  %v5042_v41 = vsel %vm9928_vm5, %v4975_v3, 0.0  ;;  %v5089_v19 = vmul.f32 %v4975_v3, %v4975_v3  ;;  %vm9929_vm12 = vmmov %vm9917_vm0 }
 0x252   : > { %v6586_v9 = vadd.f32 %v6549_v59, %v6325_v32  ;;  %v6587_v37 = vadd.f32 %v4177_v34, %v2461_v11  ;;  %v5155_v46 = vadd.f32 %v5154_v24, %v5153_v8  ;;  %v5044_v63 = vsel %vm9929_vm12, %v4976_v33, 0.0  ;;  %vm9930_vm2 = vmmov %vm9917_vm0 }
 0x253   : > { %v5043_v52 = vadd.f32 %v5042_v41, %v5041_v16  ;;  %v5156_v57 = vsel %vm9930_vm2, %v5089_v19, 0.0  ;;  %vm9931_vm15 = vcmask 29696   ;;  %vm9932_vm7 = vmmov %vm9917_vm0  ;;  %vm5235_vm10 = vcmask 24576  }
 0x254   : > { %v4978_v35 = vsel %vm9363_vm13, %v6586_v9, 0.0  ;;  %5709 = vst.msk [vmem:[%s8699_s24 + $0xfa] sm:$0x3f] %vm9931_vm15, %v6586_v9  ;;  %v4977_v38 = vsel %vm9367_vm6, %v6587_v37, 0.0  ;;  %v5157_v10 = vadd.f32 %v5156_v57, %v5155_v46  ;;  %vm9933_vm14 = vmmov %vm9917_vm0 }
 0x255   : > { %5708 = vst.msk [vmem:[%s8699_s24 + $0xf2] sm:$0xff] %vm9932_vm7, %v6587_v37  ;;  %v5045_v60 = vadd.f32 %v5044_v63, %v5043_v52  ;;  %v5158_v28 = vsel %vm9933_vm14, %v5090_v42, 0.0  ;;  %v5092_v1 = vmul.f32 %v4978_v35, %v4978_v35  ;;  %vm9934_vm9 = vmmov %vm9917_vm0  ;;  %v5091_v51 = vmul.f32 %v4977_v38, %v4977_v38 }
 0x256   : > { %v5046_v40 = vsel %vm9934_vm9, %v4977_v38, 0.0  ;;  %v5159_v23 = vadd.f32 %v5158_v28, %v5157_v10  ;;  %v5048_v22 = vsel %vm9917_vm0, %v4978_v35, 0.0  ;;  %vm9935_vm13 = vmmov %vm9917_vm0 }
 0x257   : > { %v5047_v62 = vadd.f32 %v5046_v40, %v5045_v60  ;;  %v5160_v5 = vsel %vm9935_vm13, %v5091_v51, 0.0  ;;  %vm9936_vm6 = vmmov %vm9917_vm0 }
 0x258   : > { %v5161_v31 = vadd.f32 %v5160_v5, %v5159_v23  ;;  %v5162_v13 = vsel %vm9936_vm6, %v5092_v1, 0.0 }
 0x259   : > { %v5049_v50 = vadd.f32 %v5048_v22, %v5047_v62 }
 0x25a   : > { %v5163_v0 = vadd.f32 %v5162_v13, %v5161_v31 }
 0x25b   : > { %v5050_v56 = vrot.slane %v5049_v50, 4 }
 0x25c   : > { %v5164_v58 = vrot.slane %v5163_v0, 4 }
 0x25d   : > { %v5051_v4 = vadd.f32 %v5050_v56, %v5049_v50 }
 0x25e   : > { %v5165_v20 = vadd.f32 %v5164_v58, %v5163_v0 }
 0x25f   : > { %v5052_v47 = vrot.slane %v5051_v4, 2 }
 0x260   : > { %v5166_v18 = vrot.slane %v5165_v20, 2 }
 0x261   : > { %v5053_v12 = vadd.f32 %v5052_v47, %v5051_v4 }
 0x262   : > { %v5167_v61 = vadd.f32 %v5166_v18, %v5165_v20 }
 0x263   : > { %v5054_v44 = vrot.slane %v5053_v12, 1 }
 0x264   : > { %v5168_v27 = vrot.slane %v5167_v61, 1 }
 0x265   : > { %v5055_v49 = vadd.f32 %v5054_v44, %v5053_v12 }
 0x266   : > { %v5169_v15 = vadd.f32 %v5168_v27, %v5167_v61 }
 0x267   : > { %5236 = vst.msk [vmem:[%s208_s28] sm:$0x1] %vm5235_vm10, %v5055_v49 }
 0x268   : > { %5237 = vst.msk [vmem:[%s208_s28 + $0x1] sm:$0x1] %vm5235_vm10, %v5169_v15 }
 0x269 PF: > { %s15_s15 = sadd.s32 1, %s6929_s15  }
 0x26a   : > { %p12_p4 = scmp.ge.s32.totalorder %s15_s15, 4  }
 0x26c   :  { %14 = sbr.rel (!%p12_p4) target bundleno = 1 (0x1), region = 89 }

// kernel: resnet_block_forward.3
= control target key start
LH: loop header
LB: loop body
LE: loop exit
PB: predicated region body
PF: predicated region fallthrough
CT: control target
= control target key end

     0   :  { %s6925_s12 = smov 0   ;;  %s9497_s0 = inlined_call_operand.vmem [shape: f32[2,16,16,4], index: 0, kind: input, shape index: {}]   ;;  %s9498_s1 = inlined_call_operand.vmem [shape: f32[36,4], index: 1, kind: input, shape index: {}]   ;;  %s9499_s2 = inlined_call_operand.vmem [shape: f32[2,332,4], index: 2, kind: output, shape index: {0}]   ;;  %s9500_s3 = inlined_call_operand.vmem [shape: f32[2,2,4], index: 3, kind: output, shape index: {1}]  }
   0x1 LB: > { %s5281_s13 = sadd.s32 4294967295, %s6902_s12   ;;  %p5285_p0 = scmp.ge.s32.totalorder %s6902_s12, 1  ;;  %s6902_s12 = sphi %s6925_s12, %s14_s12  }
   0x2   : > { %p140_p1 = scmp.lt.s32.totalorder %s6902_s12, 3 }
   0x4   : > { %p141_p2 = pnand %p5285_p0, %p140_p1 }
   0x6   : > { %144 = sbr.rel (%p141_p2) target bundleno = 643 (0x283), region = 28 }
   0xd   : > { %vm523_vm0 = vcmask 1043456   ;;  %v6936_v0 = vld [vmem:[%s9498_s1 + $0x10] sm:$0xf]  ;;  %p168_p3 = scmp.lt.s32.totalorder %s5281_s13, 1  ;;  %v414_v1 = vld [vmem:[%s9498_s1 + $0x4] sm:$0xf] }
   0xe   : > { %6243 = vmatprep.subr.msk.mxu0 %vm523_vm0, %v6936_v0  ;;  %v6946_v2 = vld [vmem:[%s9498_s1] sm:$0xf]  ;;  %v6951_v3 = vld [vmem:[%s9498_s1 + $0x14] sm:$0xf]  ;;  %6019 = vmatprep.subr.msk.mxu1 %vm523_vm0, %v414_v1  ;;  %vm9503_vm1 = vcmask 31744   ;;  %vm9502_vm2 = vcmask 24576  }
   0xf   : > { %6244 = vmatpush3.msk.msra.mxu0 %vm523_vm0, %v6936_v0  ;;  %s9997_s13 = smov (!%p168_p3, %s5281_s13), 1  ;;  %6020 = vmatpush3.msk.msra.mxu1 %vm523_vm0, %v414_v1  ;;  %vm9501_vm3 = vcmask 25600   ;;  %v7023_v32 = vld [vmem:[%s9498_s1 + $0x18] sm:$0xf]  ;;  %v7051_v44 = vld [vmem:[%s9498_s1 + $0x8] sm:$0xf] }
  0x10   : > { %6299 = vmatprep.subr.msk.mxu0 %vm523_vm0, %v6951_v3  ;;  %s5685_s22 = sshll.u32 %s9997_s13, 8  ;;  %6075 = vmatprep.subr.msk.mxu1 %vm523_vm0, %v6946_v2  ;;  %s6813_s9 = smul.u32 336, %s9997_s13 }
  0x11   : > { %s6967_s25 = scalar_lea.vmem %s9497_s0, %s5685_s22  ;;  %s5289_s17 = sshll.u32 %s9997_s13, 1 }
  0x12   : > { %v182_v4 = vld [vmem:[%s6967_s25] sm:$0xff]  ;;  %v183_v5 = vld [vmem:[%s6967_s25 + $0x8] sm:$0xff]  ;;  %v5290_v7 = vld [vmem:[%s6967_s25 + $0x10] sm:$0xff]  ;;  %s7377_s14 = scalar_lea.vmem %s9499_s2, %s6813_s9  ;;  %s181_s20 = scalar_lea.vmem %s9500_s3, %s5289_s17 }
  0x13   : > { %v190_v6 = vld [vmem:[%s6967_s25 + $0xe] sm:$0x1]  ;;  %185 = vst.msk [vmem:[#allocation2 + $0x13] sm:$0xff] %vm9503_vm1, %v182_v4  ;;  %186 = vst.msk [vmem:[#allocation2 + $0x1b] sm:$0xff] %vm9503_vm1, %v183_v5  ;;  %v5292_v8 = vld [vmem:[%s6967_s25 + $0x11] sm:$0x1] }
  0x14   : > { %191 = vst.msk [vmem:[#allocation2 + $0x23] sm:$0x1] %vm9502_vm2, %v190_v6  ;;  %v5291_v9 = vld [vmem:[%s6967_s25 + $0x18] sm:$0xff]  ;;  %198 = vst.msk [vmem:[#allocation2 + $0x24] sm:$0x1] %vm9502_vm2, %v5292_v8  ;;  %v5294_v11 = vld [vmem:[%s6967_s25 + $0x20] sm:$0xff] }
  0x15   : > { %195 = vst.msk [vmem:[#allocation2 + $0x25] sm:$0xff] %vm9503_vm1, %v5290_v7  ;;  %196 = vst.msk [vmem:[#allocation2 + $0x2d] sm:$0xff] %vm9503_vm1, %v5291_v9  ;;  %v5293_v10 = vld [vmem:[%s6967_s25 + $0x1e] sm:$0x1]  ;;  %v5296_v12 = vld [vmem:[%s6967_s25 + $0x21] sm:$0x1] }
  0x16   : > { %200 = vst.msk [vmem:[#allocation2 + $0x35] sm:$0x1] %vm9502_vm2, %v5293_v10  ;;  %207 = vst.msk [vmem:[#allocation2 + $0x36] sm:$0x1] %vm9502_vm2, %v5296_v12  ;;  %v5295_v13 = vld [vmem:[%s6967_s25 + $0x28] sm:$0xff]  ;;  %v5298_v16 = vld [vmem:[%s6967_s25 + $0x30] sm:$0xff] }
  0x17   : > { %204 = vst.msk [vmem:[#allocation2 + $0x37] sm:$0xff] %vm9503_vm1, %v5294_v11  ;;  %v187_v14 = vld [vmem:[%s6967_s25 + $0x1] sm:$0x1]  ;;  %v5297_v15 = vld [vmem:[%s6967_s25 + $0x2e] sm:$0x1]  ;;  %205 = vst.msk [vmem:[#allocation2 + $0x3f] sm:$0xff] %vm9503_vm1, %v5295_v13 }
  0x18   : > { %189 = vst.msk [vmem:[#allocation2 + $0x12] sm:$0x1] %vm9502_vm2, %v187_v14  ;;  %209 = vst.msk [vmem:[#allocation2 + $0x47] sm:$0x1] %vm9502_vm2, %v5297_v15  ;;  %v5300_v17 = vld [vmem:[%s6967_s25 + $0x31] sm:$0x1] }
  0x19   : > { %v5299_v18 = vld [vmem:[%s6967_s25 + $0x38] sm:$0xff]  ;;  %213 = vst.msk [vmem:[#allocation2 + $0x49] sm:$0xff] %vm9503_vm1, %v5298_v16  ;;  %v5304_v20 = vld [vmem:[%s6967_s25 + $0x41] sm:$0x1]  ;;  %v5303_v22 = vld [vmem:[%s6967_s25 + $0x48] sm:$0xff] }
  0x1a   : > { %216 = vst.msk [vmem:[#allocation2 + $0x48] sm:$0x1] %vm9502_vm2, %v5300_v17  ;;  %v5301_v19 = vld [vmem:[%s6967_s25 + $0x3e] sm:$0x1]  ;;  %v5302_v21 = vld [vmem:[%s6967_s25 + $0x40] sm:$0xff]  ;;  %v5306_v24 = vld [vmem:[%s6967_s25 + $0x50] sm:$0xff] }
  0x1b   : > { %214 = vst.msk [vmem:[#allocation2 + $0x51] sm:$0xff] %vm9503_vm1, %v5299_v18  ;;  %222 = vst.msk [vmem:[#allocation2 + $0x5b] sm:$0xff] %vm9503_vm1, %v5302_v21  ;;  %v5305_v23 = vld [vmem:[%s6967_s25 + $0x4e] sm:$0x1]  ;;  %v5308_v25 = vld [vmem:[%s6967_s25 + $0x51] sm:$0x1] }
  0x1c   : > { %218 = vst.msk [vmem:[#allocation2 + $0x59] sm:$0x1] %vm9502_vm2, %v5301_v19  ;;  %225 = vst.msk [vmem:[#allocation2 + $0x5a] sm:$0x1] %vm9502_vm2, %v5304_v20  ;;  %v5307_v26 = vld [vmem:[%s6967_s25 + $0x58] sm:$0xff]  ;;  %v1988_v30 = vld [vmem:[#allocation2 + $0x23] sm:$0xff] }
  0x1d   : > { %223 = vst.msk [vmem:[#allocation2 + $0x63] sm:$0xff] %vm9503_vm1, %v5303_v22  ;;  %231 = vst.msk [vmem:[#allocation2 + $0x6d] sm:$0xff] %vm9503_vm1, %v5306_v24  ;;  %v5309_v27 = vld [vmem:[%s6967_s25 + $0x5e] sm:$0x1]  ;;  %v1986_v28 = vld [vmem:[#allocation2 + $0x13] sm:$0xff] }
  0x1e   : > { %227 = vst.msk [vmem:[#allocation2 + $0x6b] sm:$0x1] %vm9502_vm2, %v5305_v23  ;;  %v1987_v29 = vld [vmem:[#allocation2 + $0x1b] sm:$0xff]  ;;  %234 = vst.msk [vmem:[#allocation2 + $0x6c] sm:$0x1] %vm9502_vm2, %v5308_v25  ;;  %6245 = vmatprep.mubr.msk.f32.mxu0 %vm9503_vm1, %v1986_v28  ;;  %v7018_v31 = vld [vmem:[#allocation2 + $0x24] sm:$0xff] }
  0x1f   : > { %232 = vst.msk [vmem:[#allocation2 + $0x75] sm:$0xff] %vm9503_vm1, %v5307_v26  ;;  %6246 = vmatmul.mubr.msk.f32.vlgmr.msra.gmra.mrb[0].mxu0 %vm9503_vm1, %v1987_v29  ;;  %v7026_v33 = vld [vmem:[#allocation2 + $0x2c] sm:$0xff]  ;;  %330 = vst.msk [vmem:[#allocation2] sm:$0xff] %vm9503_vm1, %v7018_v31  ;;  %v329_v34 = vld [vmem:[#allocation2 + $0x34] sm:$0x3] }
  0x20   : > { %236 = vst.msk [vmem:[#allocation2 + $0x7d] sm:$0x1] %vm9502_vm2, %v5309_v27  ;;  %6248 = vmatprep.mubr.msk.f32.mxu0 %vm9503_vm1, %v1988_v30  ;;  %v1989_v35 = vld [vmem:[#allocation2 + $0x2b] sm:$0xff]  ;;  %6300 = vmatpush3.msk.msra.mxu0 %vm523_vm0, %v6951_v3  ;;  %v1990_v36 = vld [vmem:[#allocation2 + $0x33] sm:$0xff]  ;;  %v1991_v37 = vld [vmem:[#allocation2 + $0x3b] sm:$0xff] }
  0x21   : > { %331 = vst.msk [vmem:[#allocation2 + $0x8] sm:$0xff] %vm9503_vm1, %v7026_v33  ;;  %6355 = vmatprep.subr.msk.mxu0 %vm523_vm0, %v7023_v32  ;;  %v5310_v38 = vld [vmem:[%s6967_s25 + $0x60] sm:$0xff]  ;;  %v5311_v41 = vld [vmem:[%s6967_s25 + $0x68] sm:$0xff]  ;;  %v5314_v43 = vld [vmem:[%s6967_s25 + $0x70] sm:$0xff] }
  0x22   : > { %333 = vst.msk [vmem:[#allocation2 + $0x10] sm:$0x3] %vm9501_vm3, %v329_v34  ;;  %v1992_v39 = vld [vmem:[#allocation2 + $0x43] sm:$0xff]  ;;  %v5312_v40 = vld [vmem:[%s6967_s25 + $0x61] sm:$0x1]  ;;  %v1993_v48 = vld [vmem:[#allocation2 + $0x4b] sm:$0xff] }
  0x23   : > { %6249 = vmatmul.mubr.msk.f32.gmra.mrb[2].mxu0 %vm9503_vm1, %v1989_v35  ;;  %240 = vst.msk [vmem:[#allocation2 + $0x7f] sm:$0xff] %vm9503_vm1, %v5310_v38  ;;  %241 = vst.msk [vmem:[#allocation2 + $0x87] sm:$0xff] %vm9503_vm1, %v5311_v41  ;;  %v5313_v42 = vld [vmem:[%s6967_s25 + $0x6e] sm:$0x1]  ;;  %v5316_v49 = vld [vmem:[%s6967_s25 + $0x71] sm:$0x1] }
  0x24   : > { %6251 = vmatprep.mubr.msk.f32.mxu0 %vm9503_vm1, %v1990_v36  ;;  %243 = vst.msk [vmem:[#allocation2 + $0x7e] sm:$0x1] %vm9502_vm2, %v5312_v40  ;;  %245 = vst.msk [vmem:[#allocation2 + $0x8f] sm:$0x1] %vm9502_vm2, %v5313_v42  ;;  %v5315_v50 = vld [vmem:[%s6967_s25 + $0x78] sm:$0xff]  ;;  %v382_v55 = vld [vmem:[#allocation2 + $0x21] sm:$0xff] }
  0x25   : > { %249 = vst.msk [vmem:[#allocation2 + $0x91] sm:$0xff] %vm9503_vm1, %v5314_v43  ;;  %v1994_v51 = vld [vmem:[#allocation2 + $0x53] sm:$0xff]  ;;  %250 = vst.msk [vmem:[#allocation2 + $0x99] sm:$0xff] %vm9503_vm1, %v5315_v50  ;;  %v5317_v52 = vld [vmem:[%s6967_s25 + $0x7e] sm:$0x1] }
  0x26   : > { %252 = vst.msk [vmem:[#allocation2 + $0x90] sm:$0x1] %vm9502_vm2, %v5316_v49  ;;  %v5320_v53 = vld [vmem:[%s6967_s25 + $0x81] sm:$0x1]  ;;  %v381_v54 = vld [vmem:[#allocation2 + $0x19] sm:$0xff]  ;;  %v5319_v58 = vld [vmem:[%s6967_s25 + $0x88] sm:$0xff] }
  0x27   : > { %6252 = vmatmul.mubr.msk.f32.gmra.mrb[4].mxu0 %vm9503_vm1, %v1991_v37  ;;  %254 = vst.msk [vmem:[#allocation2 + $0xa1] sm:$0x1] %vm9502_vm2, %v5317_v52  ;;  %261 = vst.msk [vmem:[#allocation2 + $0xa2] sm:$0x1] %vm9502_vm2, %v5320_v53  ;;  %v5318_v56 = vld [vmem:[%s6967_s25 + $0x80] sm:$0xff]  ;;  %v383_v60 = vld [vmem:[#allocation2 + $0x29] sm:$0xff] }
  0x28   : > { %v378_v45 = vld [vmem:[#allocation2 + $0x1] sm:$0xff]  ;;  %6254 = vmatprep.mubr.msk.f32.mxu0 %vm9503_vm1, %v1992_v39  ;;  %258 = vst.msk [vmem:[#allocation2 + $0xa3] sm:$0xff] %vm9503_vm1, %v5318_v56  ;;  %259 = vst.msk [vmem:[#allocation2 + $0xab] sm:$0xff] %vm9503_vm1, %v5319_v58  ;;  %v5321_v61 = vld [vmem:[%s6967_s25 + $0x8e] sm:$0x1] }
  0x29   : > { %v379_v46 = vld [vmem:[#allocation2 + $0x9] sm:$0xff]  ;;  %v380_v47 = vld [vmem:[#allocation2 + $0x11] sm:$0xff]  ;;  %6021 = vmatprep.mubr.msk.f32.mxu1 %vm9503_vm1, %v378_v45  ;;  %v1995_v57 = vld [vmem:[#allocation2 + $0x5b] sm:$0xff]  ;;  %263 = vst.msk [vmem:[#allocation2 + $0xb3] sm:$0x1] %vm9502_vm2, %v5321_v61 }
  0x2a   : > { %6022 = vmatmul.mubr.msk.f32.vlgmr.msra.gmra.mrb[0].mxu1 %vm9503_vm1, %v379_v46  ;;  %v1996_v59 = vld [vmem:[#allocation2 + $0x63] sm:$0xff]  ;;  %v384_v62 = vld [vmem:[#allocation2 + $0x31] sm:$0xff]  ;;  %v385_v5 = vld [vmem:[#allocation2 + $0x39] sm:$0xff] }
  0x2b   : > { %6076 = vmatpush3.msk.msra.mxu1 %vm523_vm0, %v6946_v2  ;;  %6024 = vmatprep.mubr.msk.f32.mxu1 %vm9503_vm1, %v380_v47  ;;  %v5322_v63 = vld [vmem:[%s6967_s25 + $0x90] sm:$0xff]  ;;  %v5323_v4 = vld [vmem:[%s6967_s25 + $0x98] sm:$0xff]  ;;  %v5326_v7 = vld [vmem:[%s6967_s25 + $0xa0] sm:$0xff] }
  0x2c   : > { %6255 = vmatmul.mubr.msk.f32.gmra.mrb[6].mxu0 %vm9503_vm1, %v1993_v48  ;;  %6131 = vmatprep.subr.msk.mxu1 %vm523_vm0, %v7051_v44  ;;  %v5324_v1 = vld [vmem:[%s6967_s25 + $0x91] sm:$0x1]  ;;  %267 = vst.msk [vmem:[#allocation2 + $0xb5] sm:$0xff] %vm9503_vm1, %v5322_v63  ;;  %v1998_v3 = vld [vmem:[#allocation2 + $0x73] sm:$0xff]  ;;  %268 = vst.msk [vmem:[#allocation2 + $0xbd] sm:$0xff] %vm9503_vm1, %v5323_v4 }
  0x2d   : > { %6257 = vmatprep.mubr.msk.f32.mxu0 %vm9503_vm1, %v1994_v51  ;;  %v1997_v2 = vld [vmem:[#allocation2 + $0x6b] sm:$0xff]  ;;  %270 = vst.msk [vmem:[#allocation2 + $0xb4] sm:$0x1] %vm9502_vm2, %v5324_v1  ;;  %v5325_v6 = vld [vmem:[%s6967_s25 + $0x9e] sm:$0x1]  ;;  %v386_v8 = vld [vmem:[#allocation2 + $0x41] sm:$0xff] }
  0x2e   : > { %6025 = vmatmul.mubr.msk.f32.gmra.mrb[2].mxu1 %vm9503_vm1, %v381_v54  ;;  %272 = vst.msk [vmem:[#allocation2 + $0xc5] sm:$0x1] %vm9502_vm2, %v5325_v6  ;;  %v5328_v9 = vld [vmem:[%s6967_s25 + $0xa1] sm:$0x1]  ;;  %v5327_v11 = vld [vmem:[%s6967_s25 + $0xa8] sm:$0xff]  ;;  %v5330_v16 = vld [vmem:[%s6967_s25 + $0xb0] sm:$0xff] }
  0x2f   : > { %6027 = vmatprep.mubr.msk.f32.mxu1 %vm9503_vm1, %v382_v55  ;;  %276 = vst.msk [vmem:[#allocation2 + $0xc7] sm:$0xff] %vm9503_vm1, %v5326_v7  ;;  %v1999_v10 = vld [vmem:[#allocation2 + $0x7b] sm:$0xff]  ;;  %v2000_v12 = vld [vmem:[#allocation2 + $0x83] sm:$0xff]  ;;  %277 = vst.msk [vmem:[#allocation2 + $0xcf] sm:$0xff] %vm9503_vm1, %v5327_v11 }
  0x30   : > { %6258 = vmatmul.mubr.msk.f32.gmra.mrb[8].mxu0 %vm9503_vm1, %v1995_v57  ;;  %279 = vst.msk [vmem:[#allocation2 + $0xc6] sm:$0x1] %vm9502_vm2, %v5328_v9  ;;  %v5329_v13 = vld [vmem:[%s6967_s25 + $0xae] sm:$0x1]  ;;  %v5332_v14 = vld [vmem:[%s6967_s25 + $0xb1] sm:$0x1] }
  0x31   : > { %6260 = vmatprep.mubr.msk.f32.mxu0 %vm9503_vm1, %v1996_v59  ;;  %v387_v15 = vld [vmem:[#allocation2 + $0x49] sm:$0xff]  ;;  %281 = vst.msk [vmem:[#allocation2 + $0xd7] sm:$0x1] %vm9502_vm2, %v5329_v13  ;;  %288 = vst.msk [vmem:[#allocation2 + $0xd8] sm:$0x1] %vm9502_vm2, %v5332_v14  ;;  %v5331_v17 = vld [vmem:[%s6967_s25 + $0xb8] sm:$0xff] }
  0x32   : > { %6028 = vmatmul.mubr.msk.f32.gmra.mrb[4].mxu1 %vm9503_vm1, %v383_v60  ;;  %v388_v18 = vld [vmem:[#allocation2 + $0x51] sm:$0xff]  ;;  %285 = vst.msk [vmem:[#allocation2 + $0xd9] sm:$0xff] %vm9503_vm1, %v5330_v16  ;;  %286 = vst.msk [vmem:[#allocation2 + $0xe1] sm:$0xff] %vm9503_vm1, %v5331_v17  ;;  %v5333_v19 = vld [vmem:[%s6967_s25 + $0xbe] sm:$0x1] }
  0x33   : > { %6030 = vmatprep.mubr.msk.f32.mxu1 %vm9503_vm1, %v384_v62  ;;  %v2001_v20 = vld [vmem:[#allocation2 + $0x8b] sm:$0xff]  ;;  %290 = vst.msk [vmem:[#allocation2 + $0xe9] sm:$0x1] %vm9502_vm2, %v5333_v19  ;;  %v5334_v21 = vld [vmem:[%s6967_s25 + $0xc0] sm:$0xff]  ;;  %v2002_v24 = vld [vmem:[#allocation2 + $0x93] sm:$0xff] }
  0x34   : > { %6261 = vmatmul.mubr.msk.f32.gmra.mrb[10].mxu0 %vm9503_vm1, %v1997_v2  ;;  %v5336_v22 = vld [vmem:[%s6967_s25 + $0xc1] sm:$0x1]  ;;  %v389_v23 = vld [vmem:[#allocation2 + $0x59] sm:$0xff]  ;;  %294 = vst.msk [vmem:[#allocation2 + $0xeb] sm:$0xff] %vm9503_vm1, %v5334_v21  ;;  %v5335_v25 = vld [vmem:[%s6967_s25 + $0xc8] sm:$0xff] }
  0x35   : > { %6263 = vmatprep.mubr.msk.f32.mxu0 %vm9503_vm1, %v1998_v3  ;;  %297 = vst.msk [vmem:[#allocation2 + $0xea] sm:$0x1] %vm9502_vm2, %v5336_v22  ;;  %v5337_v26 = vld [vmem:[%s6967_s25 + $0xce] sm:$0x1]  ;;  %v5338_v27 = vld [vmem:[%s6967_s25 + $0xd0] sm:$0xff]  ;;  %v390_v29 = vld [vmem:[#allocation2 + $0x61] sm:$0xff] }
  0x36   : > { %6031 = vmatmul.mubr.msk.f32.gmra.mrb[6].mxu1 %vm9503_vm1, %v385_v5  ;;  %295 = vst.msk [vmem:[#allocation2 + $0xf3] sm:$0xff] %vm9503_vm1, %v5335_v25  ;;  %v5340_v28 = vld [vmem:[%s6967_s25 + $0xd1] sm:$0x1]  ;;  %303 = vst.msk [vmem:[#allocation2 + $0xfd] sm:$0xff] %vm9503_vm1, %v5338_v27  ;;  %v5339_v30 = vld [vmem:[%s6967_s25 + $0xd8] sm:$0xff] }
  0x37   : > { %6033 = vmatprep.mubr.msk.f32.mxu1 %vm9503_vm1, %v386_v8  ;;  %299 = vst.msk [vmem:[#allocation2 + $0xfb] sm:$0x1] %vm9502_vm2, %v5337_v26  ;;  %306 = vst.msk [vmem:[#allocation2 + $0xfc] sm:$0x1] %vm9502_vm2, %v5340_v28  ;;  %v2003_v34 = vld [vmem:[#allocation2 + $0x9b] sm:$0xff]  ;;  %v391_v39 = vld [vmem:[#allocation2 + $0x69] sm:$0xff] }
  0x38   : > { %6264 = vmatmul.mubr.msk.f32.gmra.mrb[12].mxu0 %vm9503_vm1, %v1999_v10  ;;  %304 = vst.msk [vmem:[#allocation2 + $0x105] sm:$0xff] %vm9503_vm1, %v5339_v30  ;;  %v5341_v35 = vld [vmem:[%s6967_s25 + $0xde] sm:$0x1]  ;;  %v2415_v36 = vld [vmem:[#allocation2 + $0x14] sm:$0xff]  ;;  %v5342_v37 = vld [vmem:[%s6967_s25 + $0xe0] sm:$0xff] }
  0x39   : > { %6266 = vmatprep.mubr.msk.f32.mxu0 %vm9503_vm1, %v2000_v12  ;;  %308 = vst.msk [vmem:[#allocation2 + $0x10d] sm:$0x1] %vm9502_vm2, %v5341_v35  ;;  %v5344_v38 = vld [vmem:[%s6967_s25 + $0xe1] sm:$0x1]  ;;  %v392_v40 = vld [vmem:[#allocation2 + $0x71] sm:$0xff]  ;;  %v5343_v41 = vld [vmem:[%s6967_s25 + $0xe8] sm:$0xff] }
  0x3a   : > { %6034 = vmatmul.mubr.msk.f32.gmra.mrb[8].mxu1 %vm9503_vm1, %v387_v15  ;;  %312 = vst.msk [vmem:[#allocation2 + $0x10f] sm:$0xff] %vm9503_vm1, %v5342_v37  ;;  %v5345_v42 = vld [vmem:[%s6967_s25 + $0xee] sm:$0x1]  ;;  %v2416_v43 = vld [vmem:[#allocation2 + $0x1c] sm:$0xff]  ;;  %313 = vst.msk [vmem:[#allocation2 + $0x117] sm:$0xff] %vm9503_vm1, %v5343_v41 }
  0x3b   : > { %6036 = vmatprep.mubr.msk.f32.mxu1 %vm9503_vm1, %v388_v18  ;;  %315 = vst.msk [vmem:[#allocation2 + $0x10e] sm:$0x1] %vm9502_vm2, %v5344_v38  ;;  %317 = vst.msk [vmem:[#allocation2 + $0x11f] sm:$0x1] %vm9502_vm2, %v5345_v42  ;;  %v5348_v45 = vld [vmem:[%s6967_s25 + $0xf1] sm:$0x1] }
  0x3c   : > { %6267 = vmatmul.mubr.msk.f32.gmra.mrb[14].mxu0 %vm9503_vm1, %v2001_v20  ;;  %324 = vst.msk [vmem:[#allocation2 + $0x120] sm:$0x1] %vm9502_vm2, %v5348_v45  ;;  %v393_v46 = vld [vmem:[#allocation2 + $0x79] sm:$0xff]  ;;  %v394_v48 = vld [vmem:[#allocation2 + $0x81] sm:$0xff]  ;;  %v395_v50 = vld [vmem:[#allocation2 + $0x89] sm:$0xff] }
  0x3d   : > { %6269 = vmatprep.mubr.msk.f32.mxu0 %vm9503_vm1, %v2002_v24  ;;  %v7155_v47 = vld [vmem:[%s9498_s1 + $0x1c] sm:$0xf]  ;;  %v7163_v49 = vld [vmem:[#allocation2 + $0x34] sm:$0xff]  ;;  %v7175_v52 = vld [vmem:[#allocation2 + $0x44] sm:$0xff] }
  0x3e   : > { %6037 = vmatmul.mubr.msk.f32.gmra.mrb[10].mxu1 %vm9503_vm1, %v389_v23  ;;  %v396_v51 = vld [vmem:[#allocation2 + $0x91] sm:$0xff]  ;;  %v397_v53 = vld [vmem:[#allocation2 + $0x99] sm:$0xff]  ;;  %v398_v55 = vld [vmem:[#allocation2 + $0xa1] sm:$0xff] }
  0x3f   : > { %6039 = vmatprep.mubr.msk.f32.mxu1 %vm9503_vm1, %v390_v29  ;;  %v5346_v54 = vld [vmem:[%s6967_s25 + $0xf0] sm:$0xff]  ;;  %v5347_v56 = vld [vmem:[%s6967_s25 + $0xf8] sm:$0xff]  ;;  %v7205_v1 = vld [vmem:[#allocation2 + $0x64] sm:$0xff] }
  0x40   : > { %6270 = vmatmul.mubr.msk.f32.gmra.mrb[16].mxu0 %vm9503_vm1, %v2003_v34  ;;  %321 = vst.msk [vmem:[#allocation2 + $0x121] sm:$0xff] %vm9503_vm1, %v5346_v54  ;;  %v7185_v57 = vld [vmem:[#allocation2 + $0x4c] sm:$0xff]  ;;  %322 = vst.msk [vmem:[#allocation2 + $0x129] sm:$0xff] %vm9503_vm1, %v5347_v56  ;;  %v5349_v58 = vld [vmem:[%s6967_s25 + $0xfe] sm:$0x1] }
  0x41   : > { %6301 = vmatprep.mubr.msk.f32.mxu0 %vm9503_vm1, %v2415_v36  ;;  %v7192_v60 = vld [vmem:[#allocation2 + $0x54] sm:$0xff]  ;;  %326 = vst.msk [vmem:[#allocation2 + $0x131] sm:$0x1] %vm9502_vm2, %v5349_v58  ;;  %v399_v61 = vld [vmem:[#allocation2 + $0xa9] sm:$0xff]  ;;  %v7202_v63 = vld [vmem:[#allocation2 + $0x5c] sm:$0xff] }
  0x42   : > { %6040 = vmatmul.mubr.msk.f32.gmra.mrb[12].mxu1 %vm9503_vm1, %v391_v39  ;;  %v7189_v59 = vld [vmem:[#allocation2 + $0x10e] sm:$0xff]  ;;  %v401_v2 = vld [vmem:[#allocation2 + $0xb9] sm:$0xff]  ;;  %v402_v3 = vld [vmem:[#allocation2 + $0xc1] sm:$0xff] }
  0x43   : > { %6042 = vmatprep.mubr.msk.f32.mxu1 %vm9503_vm1, %v392_v40  ;;  %337 = vst.msk [vmem:[#allocation2 + $0x132] sm:$0xff] %vm9503_vm1, %v7189_v59  ;;  %v400_v62 = vld [vmem:[#allocation2 + $0xb1] sm:$0xff]  ;;  %v403_v6 = vld [vmem:[#allocation2 + $0xc9] sm:$0xff]  ;;  %v7222_v8 = vld [vmem:[#allocation2 + $0x7c] sm:$0xff] }
  0x44   : > { %6302 = vmatmul.mubr.msk.f32.vlgmr.msra.gmra.mrb[0].mxu0 %vm9503_vm1, %v2416_v43  ;;  %v7212_v4 = vld [vmem:[#allocation2 + $0x6c] sm:$0xff]  ;;  %v7215_v5 = vld [vmem:[#allocation2 + $0x74] sm:$0xff]  ;;  %v7225_v9 = vld [vmem:[#allocation2 + $0x84] sm:$0xff] }
  0x45   : > { %6304 = vmatprep.mubr.msk.f32.mxu0 %vm9503_vm1, %v7018_v31  ;;  %6356 = vmatpush3.msk.msra.mxu0 %vm523_vm0, %v7023_v32  ;;  %v7172_v32 = vld [vmem:[#allocation2 + $0x3c] sm:$0xff]  ;;  %v404_v7 = vld [vmem:[#allocation2 + $0xd1] sm:$0xff]  ;;  %v407_v16 = vld [vmem:[#allocation2 + $0xe9] sm:$0xff] }
  0x46   : > { %6043 = vmatmul.mubr.msk.f32.gmra.mrb[14].mxu1 %vm9503_vm1, %v393_v46  ;;  %6411 = vmatprep.subr.msk.mxu0 %vm523_vm0, %v7155_v47  ;;  %v7227_v10 = vld [vmem:[#allocation2 + $0x116] sm:$0xff]  ;;  %v336_v12 = vld [vmem:[#allocation2 + $0x11e] sm:$0x3]  ;;  %v406_v13 = vld [vmem:[#allocation2 + $0xe1] sm:$0xff] }
  0x47   : > { %6045 = vmatprep.mubr.msk.f32.mxu1 %vm9503_vm1, %v394_v48  ;;  %v405_v11 = vld [vmem:[#allocation2 + $0xd9] sm:$0xff]  ;;  %338 = vst.msk [vmem:[#allocation2 + $0x13a] sm:$0xff] %vm9503_vm1, %v7227_v10  ;;  %v7237_v14 = vld [vmem:[#allocation2 + $0x8c] sm:$0xff]  ;;  %v7250_v19 = vld [vmem:[#allocation2 + $0xa4] sm:$0xff] }
  0x48   : > { %6305 = vmatmul.mubr.msk.f32.gmra.mrb[2].mxu0 %vm9503_vm1, %v7026_v33  ;;  %339 = vst.msk [vmem:[#allocation2 + $0x142] sm:$0x3] %vm9501_vm3, %v336_v12  ;;  %v7240_v15 = vld [vmem:[#allocation2 + $0x94] sm:$0xff]  ;;  %v7247_v18 = vld [vmem:[#allocation2 + $0x9c] sm:$0xff]  ;;  %v7257_v22 = vld [vmem:[#allocation2 + $0xac] sm:$0xff] }
  0x49   : > { %6307 = vmatprep.mubr.msk.f32.mxu0 %vm9503_vm1, %v7163_v49  ;;  %v408_v17 = vld [vmem:[#allocation2 + $0xf1] sm:$0xff]  ;;  %v409_v20 = vld [vmem:[#allocation2 + $0xf9] sm:$0xff]  ;;  %v410_v21 = vld [vmem:[#allocation2 + $0x101] sm:$0xff] }
  0x4a   : > { %6046 = vmatmul.mubr.msk.f32.gmra.mrb[16].mxu1 %vm9503_vm1, %v395_v50  ;;  %v7260_v23 = vld [vmem:[#allocation2 + $0xb4] sm:$0xff]  ;;  %v411_v24 = vld [vmem:[#allocation2 + $0x109] sm:$0xff]  ;;  %v7267_v26 = vld [vmem:[#allocation2 + $0xbc] sm:$0xff] }
  0x4b   : > { %6048 = vmatprep.mubr.msk.f32.mxu1 %vm9503_vm1, %v396_v51  ;;  %v412_v25 = vld [vmem:[#allocation2 + $0x111] sm:$0xff]  ;;  %v7270_v27 = vld [vmem:[#allocation2 + $0xc4] sm:$0xff]  ;;  %v413_v28 = vld [vmem:[#allocation2 + $0x119] sm:$0xff] }
  0x4c   : > { %6308 = vmatmul.mubr.msk.f32.gmra.mrb[4].mxu0 %vm9503_vm1, %v7172_v32  ;;  %v341_v29 = vld [vmem:[#allocation2] sm:$0xff]  ;;  %v7277_v30 = vld [vmem:[#allocation2 + $0xcc] sm:$0xff]  ;;  %v7280_v34 = vld [vmem:[#allocation2 + $0xd4] sm:$0xff] }
  0x4d   : > { %6310 = vmatprep.mubr.msk.f32.mxu0 %vm9503_vm1, %v7175_v52  ;;  %v342_v35 = vld [vmem:[#allocation2 + $0x8] sm:$0xff]  ;;  %v343_v36 = vld [vmem:[#allocation2 + $0x10] sm:$0xff]  ;;  %v7287_v37 = vld [vmem:[#allocation2 + $0xdc] sm:$0xff] }
  0x4e   : > { %6049 = vmatmul.mubr.msk.f32.gmra.mrb[18].mxu1 %vm9503_vm1, %v397_v53  ;;  %v7292_v38 = vld [vmem:[%s9498_s1 + $0xc] sm:$0xf]  ;;  %v7295_v39 = vld [vmem:[#allocation2 + $0xe4] sm:$0xff]  ;;  %v344_v40 = vld [vmem:[#allocation2 + $0x18] sm:$0xff] }
  0x4f   : > { %6051 = vmatprep.mubr.msk.f32.mxu1 %vm9503_vm1, %v398_v55  ;;  %v345_v41 = vld [vmem:[#allocation2 + $0x20] sm:$0xff]  ;;  %v7306_v42 = vld [vmem:[#allocation2 + $0xec] sm:$0xff]  ;;  %v7309_v43 = vld [vmem:[#allocation2 + $0xf4] sm:$0xff] }
  0x50   : > { %6311 = vmatmul.mubr.msk.f32.gmra.mrb[6].mxu0 %vm9503_vm1, %v7185_v57  ;;  %v347_v45 = vld [vmem:[#allocation2 + $0x30] sm:$0xff]  ;;  %v7316_v46 = vld [vmem:[#allocation2 + $0xfc] sm:$0xff]  ;;  %v7319_v48 = vld [vmem:[#allocation2 + $0x104] sm:$0xff] }
  0x51   : > { %6313 = vmatprep.mubr.msk.f32.mxu0 %vm9503_vm1, %v7192_v60  ;;  %v348_v50 = vld [vmem:[#allocation2 + $0x38] sm:$0xff]  ;;  %v349_v51 = vld [vmem:[#allocation2 + $0x40] sm:$0xff]  ;;  %v7326_v53 = vld [vmem:[#allocation2 + $0x10c] sm:$0xff] }
  0x52   : > { %6052 = vmatmul.mubr.msk.f32.gmra.mrb[20].mxu1 %vm9503_vm1, %v399_v61  ;;  %v7329_v54 = vld [vmem:[#allocation2 + $0x114] sm:$0xff]  ;;  %v350_v55 = vld [vmem:[#allocation2 + $0x48] sm:$0xff]  ;;  %v7336_v58 = vld [vmem:[#allocation2 + $0x11c] sm:$0xff] }
  0x53   : > { %6054 = vmatprep.mubr.msk.f32.mxu1 %vm9503_vm1, %v400_v62  ;;  %v351_v56 = vld [vmem:[#allocation2 + $0x50] sm:$0xff]  ;;  %v7339_v61 = vld [vmem:[#allocation2 + $0x124] sm:$0xff]  ;;  %v352_v62 = vld [vmem:[#allocation2 + $0x58] sm:$0xff] }
  0x54   : > { %6314 = vmatmul.mubr.msk.f32.gmra.mrb[8].mxu0 %vm9503_vm1, %v7202_v63  ;;  %v7359_v12 = vld [vmem:[%s9498_s1 + $0x20] sm:$0xf] }
  0x55   : > { %6316 = vmatprep.mubr.msk.f32.mxu0 %vm9503_vm1, %v7205_v1 }
  0x56   : > { %6055 = vmatmul.mubr.msk.f32.gmra.mrb[22].mxu1 %vm9503_vm1, %v401_v2  ;;  %v353_v2 = vld [vmem:[#allocation2 + $0x60] sm:$0xff] }
  0x57   : > { %6057 = vmatprep.mubr.msk.f32.mxu1 %vm9503_vm1, %v402_v3  ;;  %v7346_v3 = vld [vmem:[#allocation2 + $0x12c] sm:$0xff] }
  0x58   : > { %6317 = vmatmul.mubr.msk.f32.gmra.mrb[10].mxu0 %vm9503_vm1, %v7212_v4 }
  0x59   : > { %6319 = vmatprep.mubr.msk.f32.mxu0 %vm9503_vm1, %v7215_v5 }
  0x5a   : > { %6058 = vmatmul.mubr.msk.f32.gmra.mrb[24].mxu1 %vm9503_vm1, %v403_v6  ;;  %v354_v6 = vld [vmem:[#allocation2 + $0x68] sm:$0xff] }
  0x5b   : > { %6060 = vmatprep.mubr.msk.f32.mxu1 %vm9503_vm1, %v404_v7  ;;  %v355_v7 = vld [vmem:[#allocation2 + $0x70] sm:$0xff] }
  0x5c   : > { %6320 = vmatmul.mubr.msk.f32.gmra.mrb[12].mxu0 %vm9503_vm1, %v7222_v8 }
  0x5d   : > { %6322 = vmatprep.mubr.msk.f32.mxu0 %vm9503_vm1, %v7225_v9 }
  0x5e   : > { %6061 = vmatmul.mubr.msk.f32.gmra.mrb[26].mxu1 %vm9503_vm1, %v405_v11  ;;  %v356_v11 = vld [vmem:[#allocation2 + $0x78] sm:$0xff] }
  0x5f   : > { %6063 = vmatprep.mubr.msk.f32.mxu1 %vm9503_vm1, %v406_v13  ;;  %v357_v13 = vld [vmem:[#allocation2 + $0x80] sm:$0xff] }
  0x60   : > { %6323 = vmatmul.mubr.msk.f32.gmra.mrb[14].mxu0 %vm9503_vm1, %v7237_v14 }
  0x61   : > { %6325 = vmatprep.mubr.msk.f32.mxu0 %vm9503_vm1, %v7240_v15 }
  0x62   : > { %6064 = vmatmul.mubr.msk.f32.gmra.mrb[28].mxu1 %vm9503_vm1, %v407_v16  ;;  %v363_v16 = vld [vmem:[#allocation2 + $0xb0] sm:$0xff] }
  0x63   : > { %6066 = vmatprep.mubr.msk.f32.mxu1 %vm9503_vm1, %v408_v17  ;;  %v374_v17 = vld [vmem:[#allocation2 + $0x108] sm:$0xff] }
  0x64   : > { %6326 = vmatmul.mubr.msk.f32.gmra.mrb[16].mxu0 %vm9503_vm1, %v7247_v18 }
  0x65   : > { %6328 = vmatprep.mubr.msk.f32.mxu0 %vm9503_vm1, %v7250_v19 }
  0x66   : > { %6067 = vmatmul.mubr.msk.f32.gmra.mrb[30].mxu1 %vm9503_vm1, %v409_v20  ;;  %v1128_v20 = vld [vmem:[#allocation2 + $0x2] sm:$0xff] }
  0x67   : > { %6069 = vmatprep.mubr.msk.f32.mxu1 %vm9503_vm1, %v410_v21  ;;  %v1129_v21 = vld [vmem:[#allocation2 + $0xa] sm:$0xff] }
  0x68   : > { %6329 = vmatmul.mubr.msk.f32.gmra.mrb[18].mxu0 %vm9503_vm1, %v7257_v22 }
  0x69   : > { %6331 = vmatprep.mubr.msk.f32.mxu0 %vm9503_vm1, %v7260_v23 }
  0x6a   : > { %6070 = vmatmul.mubr.msk.f32.gmra.mrb[32].mxu1 %vm9503_vm1, %v411_v24  ;;  %v7455_v24 = vld [vmem:[#allocation2 + $0x22] sm:$0xff] }
  0x6b   : > { %6072 = vmatprep.mubr.msk.f32.mxu1 %vm9503_vm1, %v412_v25  ;;  %v7465_v25 = vld [vmem:[#allocation2 + $0x2a] sm:$0xff] }
  0x6c   : > { %6332 = vmatmul.mubr.msk.f32.gmra.mrb[20].mxu0 %vm9503_vm1, %v7267_v26 }
  0x6d   : > { %6334 = vmatprep.mubr.msk.f32.mxu0 %vm9503_vm1, %v7270_v27 }
  0x6e   : > { %6073 = vmatmul.mubr.msk.f32.gmra.mrb[34].mxu1 %vm9503_vm1, %v413_v28  ;;  %v7489_v28 = vld [vmem:[#allocation2 + $0x4a] sm:$0xff] }
  0x6f   : > { %6077 = vmatprep.mubr.msk.f32.mxu1 %vm9503_vm1, %v341_v29  ;;  %v7493_v29 = vld [vmem:[#allocation2 + $0x52] sm:$0xff] }
  0x70   : > { %6335 = vmatmul.mubr.msk.f32.gmra.mrb[22].mxu0 %vm9503_vm1, %v7277_v30 }
  0x71   : > { %6337 = vmatprep.mubr.msk.f32.mxu0 %vm9503_vm1, %v7280_v34 }
  0x72   : > { %6078 = vmatmul.mubr.msk.f32.vlgmr.msra.gmra.mrb[0].mxu1 %vm9503_vm1, %v342_v35  ;;  %v7505_v35 = vld [vmem:[#allocation2 + $0x62] sm:$0xff] }
  0x73   : > { %6132 = vmatpush3.msk.msra.mxu1 %vm523_vm0, %v7051_v44  ;;  %6080 = vmatprep.mubr.msk.f32.mxu1 %vm9503_vm1, %v343_v36  ;;  %v346_v44 = vld [vmem:[#allocation2 + $0x28] sm:$0xff]  ;;  %v2879_v36 = vld [vmem:[#allocation2 + $0x13c] sm:$0xff] }
  0x74   : > { %6338 = vmatmul.mubr.msk.f32.gmra.mrb[24].mxu0 %vm9503_vm1, %v7287_v37  ;;  %6187 = vmatprep.subr.msk.mxu1 %vm523_vm0, %v7292_v38 }
  0x75   : > { %6340 = vmatprep.mubr.msk.f32.mxu0 %vm9503_vm1, %v7295_v39 }
  0x76   : > { %6081 = vmatmul.mubr.msk.f32.gmra.mrb[2].mxu1 %vm9503_vm1, %v344_v40  ;;  %v3274_v40 = vld [vmem:[#allocation2 + $0x2d] sm:$0xff] }
  0x77   : > { %6083 = vmatprep.mubr.msk.f32.mxu1 %vm9503_vm1, %v345_v41  ;;  %v3275_v41 = vld [vmem:[#allocation2 + $0x35] sm:$0xff] }
  0x78   : > { %6341 = vmatmul.mubr.msk.f32.gmra.mrb[26].mxu0 %vm9503_vm1, %v7306_v42 }
  0x79   : > { %6343 = vmatprep.mubr.msk.f32.mxu0 %vm9503_vm1, %v7309_v43 }
  0x7a   : > { %6084 = vmatmul.mubr.msk.f32.gmra.mrb[4].mxu1 %vm9503_vm1, %v346_v44  ;;  %v3276_v44 = vld [vmem:[#allocation2 + $0x3d] sm:$0xff] }
  0x7b   : > { %6086 = vmatprep.mubr.msk.f32.mxu1 %vm9503_vm1, %v347_v45  ;;  %v3277_v45 = vld [vmem:[#allocation2 + $0x45] sm:$0xff] }
  0x7c   : > { %6344 = vmatmul.mubr.msk.f32.gmra.mrb[28].mxu0 %vm9503_vm1, %v7316_v46 }
  0x7d   : > { %6346 = vmatprep.mubr.msk.f32.mxu0 %vm9503_vm1, %v7319_v48 }
  0x7e   : > { %6087 = vmatmul.mubr.msk.f32.gmra.mrb[6].mxu1 %vm9503_vm1, %v348_v50  ;;  %v3278_v50 = vld [vmem:[#allocation2 + $0x4d] sm:$0xff] }
  0x7f   : > { %6089 = vmatprep.mubr.msk.f32.mxu1 %vm9503_vm1, %v349_v51  ;;  %v3279_v51 = vld [vmem:[#allocation2 + $0x55] sm:$0xff] }
  0x80   : > { %6347 = vmatmul.mubr.msk.f32.gmra.mrb[30].mxu0 %vm9503_vm1, %v7326_v53 }
  0x81   : > { %6349 = vmatprep.mubr.msk.f32.mxu0 %vm9503_vm1, %v7329_v54 }
  0x82   : > { %6090 = vmatmul.mubr.msk.f32.gmra.mrb[8].mxu1 %vm9503_vm1, %v350_v55  ;;  %v3280_v55 = vld [vmem:[#allocation2 + $0x5d] sm:$0xff] }
  0x83   : > { %6092 = vmatprep.mubr.msk.f32.mxu1 %vm9503_vm1, %v351_v56  ;;  %v3281_v56 = vld [vmem:[#allocation2 + $0x65] sm:$0xff] }
  0x84   : > { %6350 = vmatmul.mubr.msk.f32.gmra.mrb[32].mxu0 %vm9503_vm1, %v7336_v58 }
  0x85   : > { %6352 = vmatprep.mubr.msk.f32.mxu0 %vm9503_vm1, %v7339_v61 }
  0x86   : > { %6093 = vmatmul.mubr.msk.f32.gmra.mrb[10].mxu1 %vm9503_vm1, %v352_v62  ;;  %v3282_v62 = vld [vmem:[#allocation2 + $0x6d] sm:$0xff] }
  0x87   : > { %6095 = vmatprep.mubr.msk.f32.mxu1 %vm9503_vm1, %v353_v2  ;;  %v3283_v2 = vld [vmem:[#allocation2 + $0x75] sm:$0xff] }
  0x88   : > { %6353 = vmatmul.mubr.msk.f32.gmra.mrb[34].mxu0 %vm9503_vm1, %v7346_v3 }
  0x89   : > { %6357 = vmatprep.mubr.msk.f32.mxu0 %vm9503_vm1, %v7018_v31  ;;  %v358_v31 = vld [vmem:[#allocation2 + $0x88] sm:$0xff] }
  0x8a   : > { %6096 = vmatmul.mubr.msk.f32.gmra.mrb[12].mxu1 %vm9503_vm1, %v354_v6  ;;  %v7567_v6 = vld [vmem:[#allocation2 + $0xc2] sm:$0xff] }
  0x8b   : > { %6098 = vmatprep.mubr.msk.f32.mxu1 %vm9503_vm1, %v355_v7  ;;  %v3284_v7 = vld [vmem:[#allocation2 + $0x7d] sm:$0xff] }
  0x8c   : > { %6358 = vmatmul.mubr.msk.f32.vlgmr.msra.gmra.mrb[0].mxu0 %vm9503_vm1, %v7026_v33  ;;  %v359_v33 = vld [vmem:[#allocation2 + $0x90] sm:$0xff] }
  0x8d   : > { %6360 = vmatprep.mubr.msk.f32.mxu0 %vm9503_vm1, %v7163_v49  ;;  %6412 = vmatpush3.msk.msra.mxu0 %vm523_vm0, %v7155_v47  ;;  %v6904_v47 = vmov 0.0   ;;  %v360_v49 = vld [vmem:[#allocation2 + $0x98] sm:$0xff] }
  0x8e   : > { %6099 = vmatmul.mubr.msk.f32.gmra.mrb[14].mxu1 %vm9503_vm1, %v356_v11  ;;  %6467 = vmatprep.subr.msk.mxu0 %vm523_vm0, %v7359_v12  ;;  %340 = vst.msk [vmem:[#allocation2 + $0x144] sm:$0xff] %vm9503_vm1, %v6904_v47  ;;  %5192 = vst.msk [vmem:[%s7377_s14 + $0x144] sm:$0xff] %vm9503_vm1, %v6904_v47  ;;  %v3285_v11 = vld [vmem:[#allocation2 + $0x85] sm:$0xff]  ;;  %v7584_v47 = vld [vmem:[#allocation2 + $0xda] sm:$0xff] }
  0x8f   : > { %6101 = vmatprep.mubr.msk.f32.mxu1 %vm9503_vm1, %v357_v13  ;;  %v7577_v13 = vld [vmem:[#allocation2 + $0xd2] sm:$0xff] }
  0x90   : > { %6361 = vmatmul.mubr.msk.f32.gmra.mrb[2].mxu0 %vm9503_vm1, %v7172_v32  ;;  %v361_v32 = vld [vmem:[#allocation2 + $0xa0] sm:$0xff] }
  0x91   : > { %6363 = vmatprep.mubr.msk.f32.mxu0 %vm9503_vm1, %v7175_v52  ;;  %v362_v52 = vld [vmem:[#allocation2 + $0xa8] sm:$0xff] }
  0x92   : > { %6102 = vmatmul.mubr.msk.f32.gmra.mrb[16].mxu1 %vm9503_vm1, %v358_v31  ;;  %v3286_v31 = vld [vmem:[#allocation2 + $0x8d] sm:$0xff] }
  0x93   : > { %6104 = vmatprep.mubr.msk.f32.mxu1 %vm9503_vm1, %v359_v33  ;;  %v3287_v33 = vld [vmem:[#allocation2 + $0x95] sm:$0xff] }
  0x94   : > { %6364 = vmatmul.mubr.msk.f32.gmra.mrb[4].mxu0 %vm9503_vm1, %v7185_v57  ;;  %v364_v57 = vld [vmem:[#allocation2 + $0xb8] sm:$0xff] }
  0x95   : > { %6366 = vmatprep.mubr.msk.f32.mxu0 %vm9503_vm1, %v7192_v60  ;;  %v365_v60 = vld [vmem:[#allocation2 + $0xc0] sm:$0xff] }
  0x96   : > { %6105 = vmatmul.mubr.msk.f32.gmra.mrb[18].mxu1 %vm9503_vm1, %v360_v49  ;;  %v7587_v49 = vld [vmem:[#allocation2 + $0xe2] sm:$0xff] }
  0x97   : > { %6107 = vmatprep.mubr.msk.f32.mxu1 %vm9503_vm1, %v361_v32  ;;  %v3288_v32 = vld [vmem:[#allocation2 + $0x9d] sm:$0xff] }
  0x98   : > { %6367 = vmatmul.mubr.msk.f32.gmra.mrb[6].mxu0 %vm9503_vm1, %v7202_v63  ;;  %v366_v63 = vld [vmem:[#allocation2 + $0xc8] sm:$0xff] }
  0x99   : > { %6369 = vmatprep.mubr.msk.f32.mxu0 %vm9503_vm1, %v7205_v1  ;;  %v367_v1 = vld [vmem:[#allocation2 + $0xd0] sm:$0xff] }
  0x9a   : > { %6108 = vmatmul.mubr.msk.f32.gmra.mrb[20].mxu1 %vm9503_vm1, %v362_v52  ;;  %v3289_v52 = vld [vmem:[#allocation2 + $0xa5] sm:$0xff] }
  0x9b   : > { %6110 = vmatprep.mubr.msk.f32.mxu1 %vm9503_vm1, %v363_v16  ;;  %v7594_v16 = vld [vmem:[#allocation2 + $0xea] sm:$0xff] }
  0x9c   : > { %6370 = vmatmul.mubr.msk.f32.gmra.mrb[8].mxu0 %vm9503_vm1, %v7212_v4  ;;  %v368_v4 = vld [vmem:[#allocation2 + $0xd8] sm:$0xff] }
  0x9d   : > { %6372 = vmatprep.mubr.msk.f32.mxu0 %vm9503_vm1, %v7215_v5  ;;  %v369_v5 = vld [vmem:[#allocation2 + $0xe0] sm:$0xff] }
  0x9e   : > { %6111 = vmatmul.mubr.msk.f32.gmra.mrb[22].mxu1 %vm9503_vm1, %v364_v57  ;;  %v7597_v57 = vld [vmem:[#allocation2 + $0xf2] sm:$0xff] }
  0x9f   : > { %6113 = vmatprep.mubr.msk.f32.mxu1 %vm9503_vm1, %v365_v60  ;;  %v3290_v60 = vld [vmem:[#allocation2 + $0xad] sm:$0xff] }
  0xa0   : > { %6373 = vmatmul.mubr.msk.f32.gmra.mrb[10].mxu0 %vm9503_vm1, %v7222_v8  ;;  %v370_v8 = vld [vmem:[#allocation2 + $0xe8] sm:$0xff] }
  0xa1   : > { %6375 = vmatprep.mubr.msk.f32.mxu0 %vm9503_vm1, %v7225_v9  ;;  %v371_v9 = vld [vmem:[#allocation2 + $0xf0] sm:$0xff] }
  0xa2   : > { %6114 = vmatmul.mubr.msk.f32.gmra.mrb[24].mxu1 %vm9503_vm1, %v366_v63  ;;  %v3291_v63 = vld [vmem:[#allocation2 + $0xb5] sm:$0xff] }
  0xa3   : > { %6116 = vmatprep.mubr.msk.f32.mxu1 %vm9503_vm1, %v367_v1  ;;  %v7604_v1 = vld [vmem:[#allocation2 + $0xfa] sm:$0xff] }
  0xa4   : > { %6376 = vmatmul.mubr.msk.f32.gmra.mrb[12].mxu0 %vm9503_vm1, %v7237_v14  ;;  %v372_v14 = vld [vmem:[#allocation2 + $0xf8] sm:$0xff] }
  0xa5   : > { %6378 = vmatprep.mubr.msk.f32.mxu0 %vm9503_vm1, %v7240_v15  ;;  %v373_v15 = vld [vmem:[#allocation2 + $0x100] sm:$0xff] }
  0xa6   : > { %6117 = vmatmul.mubr.msk.f32.gmra.mrb[26].mxu1 %vm9503_vm1, %v368_v4  ;;  %v7607_v4 = vld [vmem:[#allocation2 + $0x102] sm:$0xff] }
  0xa7   : > { %6119 = vmatprep.mubr.msk.f32.mxu1 %vm9503_vm1, %v369_v5  ;;  %v3292_v5 = vld [vmem:[#allocation2 + $0xbd] sm:$0xff] }
  0xa8   : > { %6379 = vmatmul.mubr.msk.f32.gmra.mrb[14].mxu0 %vm9503_vm1, %v7247_v18  ;;  %v375_v18 = vld [vmem:[#allocation2 + $0x110] sm:$0xff] }
  0xa9   : > { %6381 = vmatprep.mubr.msk.f32.mxu0 %vm9503_vm1, %v7250_v19  ;;  %v376_v19 = vld [vmem:[#allocation2 + $0x118] sm:$0xff] }
  0xaa   : > { %6120 = vmatmul.mubr.msk.f32.gmra.mrb[28].mxu1 %vm9503_vm1, %v370_v8  ;;  %v3293_v8 = vld [vmem:[#allocation2 + $0xc5] sm:$0xff] }
  0xab   : > { %6122 = vmatprep.mubr.msk.f32.mxu1 %vm9503_vm1, %v371_v9  ;;  %v7614_v9 = vld [vmem:[#allocation2 + $0x10a] sm:$0xff] }
  0xac   : > { %6382 = vmatmul.mubr.msk.f32.gmra.mrb[16].mxu0 %vm9503_vm1, %v7257_v22  ;;  %v7442_v22 = vld [vmem:[#allocation2 + $0x12] sm:$0xff] }
  0xad   : > { %6384 = vmatprep.mubr.msk.f32.mxu0 %vm9503_vm1, %v7260_v23  ;;  %v7451_v23 = vld [vmem:[#allocation2 + $0x1a] sm:$0xff] }
  0xae   : > { %6123 = vmatmul.mubr.msk.f32.gmra.mrb[30].mxu1 %vm9503_vm1, %v372_v14  ;;  %v7617_v14 = vld [vmem:[#allocation2 + $0x112] sm:$0xff] }
  0xaf   : > { %6125 = vmatprep.mubr.msk.f32.mxu1 %vm9503_vm1, %v373_v15  ;;  %v3294_v15 = vld [vmem:[#allocation2 + $0xcd] sm:$0xff] }
  0xb0   : > { %6385 = vmatmul.mubr.msk.f32.gmra.mrb[18].mxu0 %vm9503_vm1, %v7267_v26  ;;  %v7469_v26 = vld [vmem:[#allocation2 + $0x32] sm:$0xff] }
  0xb1   : > { %6387 = vmatprep.mubr.msk.f32.mxu0 %vm9503_vm1, %v7270_v27  ;;  %v7481_v27 = vld [vmem:[#allocation2 + $0x42] sm:$0xff] }
  0xb2   : > { %6126 = vmatmul.mubr.msk.f32.gmra.mrb[32].mxu1 %vm9503_vm1, %v374_v17  ;;  %v3295_v17 = vld [vmem:[#allocation2 + $0xd5] sm:$0xff] }
  0xb3   : > { %6128 = vmatprep.mubr.msk.f32.mxu1 %vm9503_vm1, %v375_v18  ;;  %v7624_v18 = vld [vmem:[#allocation2 + $0x11a] sm:$0xff] }
  0xb4   : > { %6388 = vmatmul.mubr.msk.f32.gmra.mrb[20].mxu0 %vm9503_vm1, %v7277_v30  ;;  %v2878_v30 = vld [vmem:[#allocation2 + $0x134] sm:$0xff] }
  0xb5   : > { %6390 = vmatprep.mubr.msk.f32.mxu0 %vm9503_vm1, %v7280_v34  ;;  %v7501_v34 = vld [vmem:[#allocation2 + $0x5a] sm:$0xff] }
  0xb6   : > { %6129 = vmatmul.mubr.msk.f32.gmra.mrb[34].mxu1 %vm9503_vm1, %v376_v19  ;;  %v3296_v19 = vld [vmem:[#allocation2 + $0xdd] sm:$0xff] }
  0xb7   : > { %6133 = vmatprep.mubr.msk.f32.mxu1 %vm9503_vm1, %v1128_v20  ;;  %v3297_v20 = vld [vmem:[#allocation2 + $0xe5] sm:$0xff] }
  0xb8   : > { %6391 = vmatmul.mubr.msk.f32.gmra.mrb[22].mxu0 %vm9503_vm1, %v7287_v37  ;;  %v3273_v37 = vld [vmem:[#allocation2 + $0x25] sm:$0xff] }
  0xb9   : > { %6393 = vmatprep.mubr.msk.f32.mxu0 %vm9503_vm1, %v7295_v39  ;;  %v7515_v39 = vld [vmem:[#allocation2 + $0x72] sm:$0xff] }
  0xba   : > { %6134 = vmatmul.mubr.msk.f32.vlgmr.msra.gmra.mrb[0].mxu1 %vm9503_vm1, %v1129_v21  ;;  %v3298_v21 = vld [vmem:[#allocation2 + $0xed] sm:$0xff] }
  0xbb   : > { %6188 = vmatpush3.msk.msra.mxu1 %vm523_vm0, %v7292_v38  ;;  %6136 = vmatprep.mubr.msk.f32.mxu1 %vm9503_vm1, %v7442_v22  ;;  %v7512_v38 = vld [vmem:[#allocation2 + $0x6a] sm:$0xff] }
  0xbc   : > { %6394 = vmatmul.mubr.msk.f32.gmra.mrb[24].mxu0 %vm9503_vm1, %v7306_v42  ;;  %6523 = vmatprep.subr.msk.mxu1 %vm523_vm0, %v6936_v0  ;;  %v7477_v0 = vld [vmem:[#allocation2 + $0x3a] sm:$0xff] }
  0xbd   : > { %6396 = vmatprep.mubr.msk.f32.mxu0 %vm9503_vm1, %v7309_v43  ;;  %v7522_v42 = vld [vmem:[#allocation2 + $0x7a] sm:$0xff]  ;;  %v7525_v43 = vld [vmem:[#allocation2 + $0x82] sm:$0xff] }
  0xbe   : > { %6137 = vmatmul.mubr.msk.f32.gmra.mrb[2].mxu1 %vm9503_vm1, %v7451_v23 }
  0xbf   : > { %6139 = vmatprep.mubr.msk.f32.mxu1 %vm9503_vm1, %v7455_v24 }
  0xc0   : > { %6397 = vmatmul.mubr.msk.f32.gmra.mrb[26].mxu0 %vm9503_vm1, %v7316_v46  ;;  %v7534_v46 = vld [vmem:[#allocation2 + $0x8a] sm:$0xff] }
  0xc1   : > { %6399 = vmatprep.mubr.msk.f32.mxu0 %vm9503_vm1, %v7319_v48  ;;  %v7537_v48 = vld [vmem:[#allocation2 + $0x92] sm:$0xff] }
  0xc2   : > { %6140 = vmatmul.mubr.msk.f32.gmra.mrb[4].mxu1 %vm9503_vm1, %v7465_v25 }
  0xc3   : > { %6142 = vmatprep.mubr.msk.f32.mxu1 %vm9503_vm1, %v7469_v26 }
  0xc4   : > { %6400 = vmatmul.mubr.msk.f32.gmra.mrb[28].mxu0 %vm9503_vm1, %v7326_v53  ;;  %v7544_v53 = vld [vmem:[#allocation2 + $0x9a] sm:$0xff] }
  0xc5   : > { %6402 = vmatprep.mubr.msk.f32.mxu0 %vm9503_vm1, %v7329_v54  ;;  %v7547_v54 = vld [vmem:[#allocation2 + $0xa2] sm:$0xff] }
  0xc6   : > { %6143 = vmatmul.mubr.msk.f32.gmra.mrb[6].mxu1 %vm9503_vm1, %v7477_v0 }
  0xc7   : > { %6145 = vmatprep.mubr.msk.f32.mxu1 %vm9503_vm1, %v7481_v27 }
  0xc8   : > { %6403 = vmatmul.mubr.msk.f32.gmra.mrb[30].mxu0 %vm9503_vm1, %v7336_v58  ;;  %v7554_v58 = vld [vmem:[#allocation2 + $0xaa] sm:$0xff] }
  0xc9   : > { %6405 = vmatprep.mubr.msk.f32.mxu0 %vm9503_vm1, %v7339_v61  ;;  %v7557_v61 = vld [vmem:[#allocation2 + $0xb2] sm:$0xff] }
  0xca   : > { %6146 = vmatmul.mubr.msk.f32.gmra.mrb[8].mxu1 %vm9503_vm1, %v7489_v28 }
  0xcb   : > { %6148 = vmatprep.mubr.msk.f32.mxu1 %vm9503_vm1, %v7493_v29 }
  0xcc   : > { %6406 = vmatmul.mubr.msk.f32.gmra.mrb[32].mxu0 %vm9503_vm1, %v7346_v3  ;;  %v7564_v3 = vld [vmem:[#allocation2 + $0xba] sm:$0xff] }
  0xcd   : > { %6408 = vmatprep.mubr.msk.f32.mxu0 %vm9503_vm1, %v2878_v30  ;;  %v3299_v30 = vld [vmem:[#allocation2 + $0xf5] sm:$0xff] }
  0xce   : > { %6149 = vmatmul.mubr.msk.f32.gmra.mrb[10].mxu1 %vm9503_vm1, %v7501_v34 }
  0xcf   : > { %6151 = vmatprep.mubr.msk.f32.mxu1 %vm9503_vm1, %v7505_v35 }
  0xd0   : > { %6409 = vmatmul.mubr.msk.f32.gmra.mrb[34].mxu0 %vm9503_vm1, %v2879_v36  ;;  %v6895_v36 = vld [vmem:[%s9498_s1 + $0x10] sm:$0xf] }
  0xd1   : > { %6413 = vmatprep.mubr.msk.f32.mxu0 %vm9503_vm1, %v3273_v37  ;;  %v3301_v37 = vld [vmem:[#allocation2 + $0x105] sm:$0xff] }
  0xd2   : > { %6152 = vmatmul.mubr.msk.f32.gmra.mrb[12].mxu1 %vm9503_vm1, %v7512_v38 }
  0xd3   : > { %6154 = vmatprep.mubr.msk.f32.mxu1 %vm9503_vm1, %v7515_v39 }
  0xd4   : > { %6414 = vmatmul.mubr.msk.f32.vlgmr.msra.gmra.mrb[0].mxu0 %vm9503_vm1, %v3274_v40  ;;  %v3707_v40 = vld [vmem:[#allocation2 + $0x4e] sm:$0xff] }
  0xd5   : > { %6416 = vmatprep.mubr.msk.f32.mxu0 %vm9503_vm1, %v3275_v41  ;;  %6468 = vmatpush3.msk.msra.mxu0 %vm523_vm0, %v7359_v12  ;;  %v7574_v12 = vld [vmem:[#allocation2 + $0xca] sm:$0xff]  ;;  %v3708_v41 = vld [vmem:[#allocation2 + $0x56] sm:$0xff] }
  0xd6   : > { %6155 = vmatmul.mubr.msk.f32.gmra.mrb[14].mxu1 %vm9503_vm1, %v7522_v42 }
  0xd7   : > { %6157 = vmatprep.mubr.msk.f32.mxu1 %vm9503_vm1, %v7525_v43 }
  0xd8   : > { %6417 = vmatmul.mubr.msk.f32.gmra.mrb[2].mxu0 %vm9503_vm1, %v3276_v44  ;;  %v3711_v44 = vld [vmem:[#allocation2 + $0x6e] sm:$0xff] }
  0xd9   : > { %6419 = vmatprep.mubr.msk.f32.mxu0 %vm9503_vm1, %v3277_v45  ;;  %v3712_v45 = vld [vmem:[#allocation2 + $0x76] sm:$0xff] }
  0xda   : > { %6158 = vmatmul.mubr.msk.f32.gmra.mrb[16].mxu1 %vm9503_vm1, %v7534_v46 }
  0xdb   : > { %6160 = vmatprep.mubr.msk.f32.mxu1 %vm9503_vm1, %v7537_v48 }
  0xdc   : > { %6420 = vmatmul.mubr.msk.f32.gmra.mrb[4].mxu0 %vm9503_vm1, %v3278_v50  ;;  %v3715_v50 = vld [vmem:[#allocation2 + $0x8e] sm:$0xff] }
  0xdd   : > { %6422 = vmatprep.mubr.msk.f32.mxu0 %vm9503_vm1, %v3279_v51  ;;  %v3716_v51 = vld [vmem:[#allocation2 + $0x96] sm:$0xff] }
  0xde   : > { %6161 = vmatmul.mubr.msk.f32.gmra.mrb[18].mxu1 %vm9503_vm1, %v7544_v53 }
  0xdf   : > { %6163 = vmatprep.mubr.msk.f32.mxu1 %vm9503_vm1, %v7547_v54 }
  0xe0   : > { %6423 = vmatmul.mubr.msk.f32.gmra.mrb[6].mxu0 %vm9503_vm1, %v3280_v55  ;;  %v3719_v55 = vld [vmem:[#allocation2 + $0xae] sm:$0xff] }
  0xe1   : > { %6425 = vmatprep.mubr.msk.f32.mxu0 %vm9503_vm1, %v3281_v56  ;;  %v3720_v56 = vld [vmem:[#allocation2 + $0xb6] sm:$0xff] }
  0xe2   : > { %6164 = vmatmul.mubr.msk.f32.gmra.mrb[20].mxu1 %vm9503_vm1, %v7554_v58 }
  0xe3   : > { %6166 = vmatprep.mubr.msk.f32.mxu1 %vm9503_vm1, %v7557_v61 }
  0xe4   : > { %6426 = vmatmul.mubr.msk.f32.gmra.mrb[8].mxu0 %vm9503_vm1, %v3282_v62  ;;  %v1591_v62 = vld [vmem:[#allocation2 + $0x122] sm:$0xff] }
  0xe5   : > { %6428 = vmatprep.mubr.msk.f32.mxu0 %vm9503_vm1, %v3283_v2  ;;  %v3723_v2 = vld [vmem:[#allocation2 + $0xce] sm:$0xff] }
  0xe6   : > { %6167 = vmatmul.mubr.msk.f32.gmra.mrb[22].mxu1 %vm9503_vm1, %v7564_v3 }
  0xe7   : > { %6169 = vmatprep.mubr.msk.f32.mxu1 %vm9503_vm1, %v7567_v6 }
  0xe8   : > { %6429 = vmatmul.mubr.msk.f32.gmra.mrb[10].mxu0 %vm9503_vm1, %v3284_v7  ;;  %v2004_v7 = vld [vmem:[#allocation2 + $0xa3] sm:$0xff] }
  0xe9   : > { %6431 = vmatprep.mubr.msk.f32.mxu0 %vm9503_vm1, %v3285_v11  ;;  %v3725_v11 = vld [vmem:[#allocation2 + $0xde] sm:$0xff] }
  0xea   : > { %6170 = vmatmul.mubr.msk.f32.gmra.mrb[24].mxu1 %vm9503_vm1, %v7574_v12 }
  0xeb   : > { %6172 = vmatprep.mubr.msk.f32.mxu1 %vm9503_vm1, %v7577_v13 }
  0xec   : > { %6432 = vmatmul.mubr.msk.f32.gmra.mrb[12].mxu0 %vm9503_vm1, %v3286_v31  ;;  %v2006_v31 = vld [vmem:[#allocation2 + $0xb3] sm:$0xff] }
  0xed   : > { %6434 = vmatprep.mubr.msk.f32.mxu0 %vm9503_vm1, %v3287_v33  ;;  %v3727_v33 = vld [vmem:[#allocation2 + $0xee] sm:$0xff] }
  0xee   : > { %6173 = vmatmul.mubr.msk.f32.gmra.mrb[26].mxu1 %vm9503_vm1, %v7584_v47 }
  0xef   : > { %6175 = vmatprep.mubr.msk.f32.mxu1 %vm9503_vm1, %v7587_v49 }
  0xf0   : > { %6435 = vmatmul.mubr.msk.f32.gmra.mrb[14].mxu0 %vm9503_vm1, %v3288_v32  ;;  %v2008_v32 = vld [vmem:[#allocation2 + $0xc3] sm:$0xff] }
  0xf1   : > { %6437 = vmatprep.mubr.msk.f32.mxu0 %vm9503_vm1, %v3289_v52  ;;  %v3729_v52 = vld [vmem:[#allocation2 + $0xfe] sm:$0xff] }
  0xf2   : > { %6176 = vmatmul.mubr.msk.f32.gmra.mrb[28].mxu1 %vm9503_vm1, %v7594_v16 }
  0xf3   : > { %6178 = vmatprep.mubr.msk.f32.mxu1 %vm9503_vm1, %v7597_v57 }
  0xf4   : > { %6438 = vmatmul.mubr.msk.f32.gmra.mrb[16].mxu0 %vm9503_vm1, %v3290_v60  ;;  %v2010_v60 = vld [vmem:[#allocation2 + $0xd3] sm:$0xff] }
  0xf5   : > { %6440 = vmatprep.mubr.msk.f32.mxu0 %vm9503_vm1, %v3291_v63  ;;  %v2011_v63 = vld [vmem:[#allocation2 + $0xdb] sm:$0xff] }
  0xf6   : > { %6179 = vmatmul.mubr.msk.f32.gmra.mrb[30].mxu1 %vm9503_vm1, %v7604_v1 }
  0xf7   : > { %6181 = vmatprep.mubr.msk.f32.mxu1 %vm9503_vm1, %v7607_v4 }
  0xf8   : > { %6441 = vmatmul.mubr.msk.f32.gmra.mrb[18].mxu0 %vm9503_vm1, %v3292_v5  ;;  %v3734_v5 = vld [vmem:[#allocation2 + $0x126] sm:$0xff] }
  0xf9   : > { %6443 = vmatprep.mubr.msk.f32.mxu0 %vm9503_vm1, %v3293_v8  ;;  %v2013_v8 = vld [vmem:[#allocation2 + $0xeb] sm:$0xff] }
  0xfa   : > { %6182 = vmatmul.mubr.msk.f32.gmra.mrb[32].mxu1 %vm9503_vm1, %v7614_v9 }
  0xfb   : > { %6184 = vmatprep.mubr.msk.f32.mxu1 %vm9503_vm1, %v7617_v14 }
  0xfc   : > { %6444 = vmatmul.mubr.msk.f32.gmra.mrb[20].mxu0 %vm9503_vm1, %v3294_v15  ;;  %v2015_v15 = vld [vmem:[#allocation2 + $0xfb] sm:$0xff] }
  0xfd   : > { %6446 = vmatprep.mubr.msk.f32.mxu0 %vm9503_vm1, %v3295_v17  ;;  %v3737_v17 = vld [vmem:[#allocation2 + $0x13e] sm:$0xff] }
  0xfe   : > { %6185 = vmatmul.mubr.msk.f32.gmra.mrb[34].mxu1 %vm9503_vm1, %v7624_v18 }
  0xff   : > { %6189 = vmatprep.mubr.msk.f32.mxu1 %vm9503_vm1, %v7442_v22  ;;  %v3300_v22 = vld [vmem:[#allocation2 + $0xfd] sm:$0xff] }
 0x100   : > { %6447 = vmatmul.mubr.msk.f32.gmra.mrb[22].mxu0 %vm9503_vm1, %v3296_v19  ;;  %v2018_v19 = vld [vmem:[#allocation2 + $0x113] sm:$0xff] }
 0x101   : > { %6449 = vmatprep.mubr.msk.f32.mxu0 %vm9503_vm1, %v3297_v20  ;;  %v2019_v20 = vld [vmem:[#allocation2 + $0x11b] sm:$0xff] }
 0x102   : > { %6190 = vmatmul.mubr.msk.f32.vlgmr.msra.gmra.mrb[0].mxu1 %vm9503_vm1, %v7451_v23  ;;  %v3302_v23 = vld [vmem:[#allocation2 + $0x10d] sm:$0xff] }
 0x103   : > { %6524 = vmatpush3.msk.msra.mxu1 %vm523_vm0, %v6895_v36  ;;  %6192 = vmatprep.mubr.msk.f32.mxu1 %vm9503_vm1, %v7455_v24  ;;  %v3303_v24 = vld [vmem:[#allocation2 + $0x115] sm:$0xff]  ;;  %v4131_v36 = vlaneseq }
 0x104   : > { %6450 = vmatmul.mubr.msk.f32.gmra.mrb[24].mxu0 %vm9503_vm1, %v3298_v21  ;;  %v2020_v21 = vld [vmem:[#allocation2 + $0x123] sm:$0xff] }
 0x105   : > { %6452 = vmatprep.mubr.msk.f32.mxu0 %vm9503_vm1, %v3299_v30  ;;  %v2021_v30 = vld [vmem:[#allocation2 + $0x12b] sm:$0xff] }
 0x106   : > { %6193 = vmatmul.mubr.msk.f32.gmra.mrb[2].mxu1 %vm9503_vm1, %v7465_v25  ;;  %v3304_v25 = vld [vmem:[#allocation2 + $0x11d] sm:$0xff] }
 0x107   : > { %6195 = vmatprep.mubr.msk.f32.mxu1 %vm9503_vm1, %v7469_v26  ;;  %v3305_v26 = vld [vmem:[#allocation2 + $0x125] sm:$0xff] }
 0x108   : > { %6453 = vmatmul.mubr.msk.f32.gmra.mrb[26].mxu0 %vm9503_vm1, %v3300_v22  ;;  %v7773_v22 = vshrl.u32 %v4131_v36, 7 }
 0x109   : > { %6455 = vmatprep.mubr.msk.f32.mxu0 %vm9503_vm1, %v3301_v37 }
 0x10a   : > { %6196 = vmatmul.mubr.msk.f32.gmra.mrb[4].mxu1 %vm9503_vm1, %v7477_v0  ;;  %v3306_v0 = vld [vmem:[#allocation2 + $0x12d] sm:$0xff]  ;;  %v4133_v37 = vadd.s32 8, %v7773_v22 }
 0x10b   : > { %6198 = vmatprep.mubr.msk.f32.mxu1 %vm9503_vm1, %v7481_v27  ;;  %v3307_v27 = vld [vmem:[#allocation2 + $0x135] sm:$0xff] }
 0x10c   : > { %6456 = vmatmul.mubr.msk.f32.gmra.mrb[28].mxu0 %vm9503_vm1, %v3302_v23 }
 0x10d   : > { %6458 = vmatprep.mubr.msk.f32.mxu0 %vm9503_vm1, %v3303_v24  ;;  %v7776_v23 = vmul.u32.u64.low 3817748708, %v4133_v37  ;;  %v7777_v24 = vmul.u32.u64.high 3817748708, %v4133_v37, %v7776_v23 }
 0x10e   : > { %6199 = vmatmul.mubr.msk.f32.gmra.mrb[6].mxu1 %vm9503_vm1, %v7489_v28  ;;  %v3308_v28 = vld [vmem:[#allocation2 + $0x13d] sm:$0xff]  ;;  %v7894_v23 = vadd.s32 96, %v7773_v22 }
 0x10f   : > { %6201 = vmatprep.mubr.msk.f32.mxu1 %vm9503_vm1, %v7493_v29  ;;  %v3702_v29 = vld [vmem:[#allocation2 + $0x26] sm:$0xff] }
 0x110   : > { %6459 = vmatmul.mubr.msk.f32.gmra.mrb[30].mxu0 %vm9503_vm1, %v3304_v25 }
 0x111   : > { %6461 = vmatprep.mubr.msk.f32.mxu0 %vm9503_vm1, %v3305_v26  ;;  %v7780_v25 = vmul.u32.u64.low 3817748708, %v7773_v22  ;;  %v7781_v26 = vmul.u32.u64.high 3817748708, %v7773_v22, %v7780_v25 }
 0x112   : > { %6202 = vmatmul.mubr.msk.f32.gmra.mrb[8].mxu1 %vm9503_vm1, %v7501_v34  ;;  %v3703_v34 = vld [vmem:[#allocation2 + $0x2e] sm:$0xff] }
 0x113   : > { %6204 = vmatprep.mubr.msk.f32.mxu1 %vm9503_vm1, %v7505_v35  ;;  %v3704_v35 = vld [vmem:[#allocation2 + $0x36] sm:$0xff] }
 0x114   : > { %6462 = vmatmul.mubr.msk.f32.gmra.mrb[32].mxu0 %vm9503_vm1, %v3306_v0  ;;  %v4135_v0 = vadd.s32 24, %v7773_v22 }
 0x115   : > { %6464 = vmatprep.mubr.msk.f32.mxu0 %vm9503_vm1, %v3307_v27  ;;  %v4134_v27 = vadd.s32 16, %v7773_v22 }
 0x116   : > { %6205 = vmatmul.mubr.msk.f32.gmra.mrb[10].mxu1 %vm9503_vm1, %v7512_v38  ;;  %v3705_v38 = vld [vmem:[#allocation2 + $0x3e] sm:$0xff] }
 0x117   : > { %6207 = vmatprep.mubr.msk.f32.mxu1 %vm9503_vm1, %v7515_v39  ;;  %v3706_v39 = vld [vmem:[#allocation2 + $0x46] sm:$0xff] }
 0x118   : > { %6465 = vmatmul.mubr.msk.f32.gmra.mrb[34].mxu0 %vm9503_vm1, %v3308_v28  ;;  %v4185_v28 = vshrl.u32 %v7777_v24, 4 }
 0x119   : > { %6469 = vmatprep.mubr.msk.f32.mxu0 %vm9503_vm1, %v3702_v29  ;;  %v4137_v29 = vadd.s32 40, %v7773_v22 }
 0x11a   : > { %6208 = vmatmul.mubr.msk.f32.gmra.mrb[12].mxu1 %vm9503_vm1, %v7522_v42  ;;  %v3709_v42 = vld [vmem:[#allocation2 + $0x5e] sm:$0xff] }
 0x11b   : > { %6210 = vmatprep.mubr.msk.f32.mxu1 %vm9503_vm1, %v7525_v43  ;;  %v3710_v43 = vld [vmem:[#allocation2 + $0x66] sm:$0xff] }
 0x11c   : > { %6470 = vmatmul.mubr.msk.f32.vlgmr.msra.gmra.mrb[0].mxu0 %vm9503_vm1, %v3703_v34  ;;  %v4174_v34 = vshrl.u32 %v7781_v26, 4 }
 0x11d   : > { %6472 = vmatprep.mubr.msk.f32.mxu0 %vm9503_vm1, %v3704_v35 }
 0x11e   : > { %6211 = vmatmul.mubr.msk.f32.gmra.mrb[14].mxu1 %vm9503_vm1, %v7534_v46  ;;  %v3713_v46 = vld [vmem:[#allocation2 + $0x7e] sm:$0xff] }
 0x11f   : > { %6213 = vmatprep.mubr.msk.f32.mxu1 %vm9503_vm1, %v7537_v48  ;;  %v3714_v48 = vld [vmem:[#allocation2 + $0x86] sm:$0xff] }
 0x120   : > { %6473 = vmatmul.mubr.msk.f32.gmra.mrb[2].mxu0 %vm9503_vm1, %v3705_v38  ;;  %v7788_v35 = vmul.u32.u64.low 3817748708, %v4135_v0  ;;  %v7789_v38 = vmul.u32.u64.high 3817748708, %v4135_v0, %v7788_v35 }
 0x121   : > { %6475 = vmatprep.mubr.msk.f32.mxu0 %vm9503_vm1, %v3706_v39  ;;  %v4136_v39 = vadd.s32 32, %v7773_v22 }
 0x122   : > { %6214 = vmatmul.mubr.msk.f32.gmra.mrb[16].mxu1 %vm9503_vm1, %v7544_v53  ;;  %v3717_v53 = vld [vmem:[#allocation2 + $0x9e] sm:$0xff] }
 0x123   : > { %6216 = vmatprep.mubr.msk.f32.mxu1 %vm9503_vm1, %v7547_v54  ;;  %v3718_v54 = vld [vmem:[#allocation2 + $0xa6] sm:$0xff] }
 0x124   : > { %6476 = vmatmul.mubr.msk.f32.gmra.mrb[4].mxu0 %vm9503_vm1, %v3707_v40 }
 0x125   : > { %6478 = vmatprep.mubr.msk.f32.mxu0 %vm9503_vm1, %v3708_v41  ;;  %v7792_v40 = vmul.u32.u64.low 3817748708, %v4134_v27  ;;  %v7793_v41 = vmul.u32.u64.high 3817748708, %v4134_v27, %v7792_v40 }
 0x126   : > { %6217 = vmatmul.mubr.msk.f32.gmra.mrb[18].mxu1 %vm9503_vm1, %v7554_v58  ;;  %v3721_v58 = vld [vmem:[#allocation2 + $0xbe] sm:$0xff] }
 0x127   : > { %6219 = vmatprep.mubr.msk.f32.mxu1 %vm9503_vm1, %v7557_v61  ;;  %v3722_v61 = vld [vmem:[#allocation2 + $0xc6] sm:$0xff] }
 0x128   : > { %6479 = vmatmul.mubr.msk.f32.gmra.mrb[6].mxu0 %vm9503_vm1, %v3709_v42  ;;  %v4186_v42 = vmul.u32 18, %v4185_v28 }
 0x129   : > { %6481 = vmatprep.mubr.msk.f32.mxu0 %vm9503_vm1, %v3710_v43 }
 0x12a   : > { %6220 = vmatmul.mubr.msk.f32.gmra.mrb[20].mxu1 %vm9503_vm1, %v7564_v3  ;;  %v3724_v3 = vld [vmem:[#allocation2 + $0xd6] sm:$0xff] }
 0x12b   : > { %6222 = vmatprep.mubr.msk.f32.mxu1 %vm9503_vm1, %v7567_v6  ;;  %v1592_v6 = vld [vmem:[#allocation2 + $0x12a] sm:$0xff] }
 0x12c   : > { %6482 = vmatmul.mubr.msk.f32.gmra.mrb[8].mxu0 %vm9503_vm1, %v3711_v44  ;;  %v7795_v43 = vmul.u32.u64.low 3817748708, %v4137_v29  ;;  %v7796_v44 = vmul.u32.u64.high 3817748708, %v4137_v29, %v7795_v43 }
 0x12d   : > { %6484 = vmatprep.mubr.msk.f32.mxu0 %vm9503_vm1, %v3712_v45  ;;  %v4175_v45 = vmul.u32 18, %v4174_v34  ;;  %v7906_v34 = vadd.s32 120, %v7773_v22 }
 0x12e   : > { %6223 = vmatmul.mubr.msk.f32.gmra.mrb[22].mxu1 %vm9503_vm1, %v7574_v12  ;;  %v3726_v12 = vld [vmem:[#allocation2 + $0xe6] sm:$0xff] }
 0x12f   : > { %6225 = vmatprep.mubr.msk.f32.mxu1 %vm9503_vm1, %v7577_v13  ;;  %v2005_v13 = vld [vmem:[#allocation2 + $0xab] sm:$0xff] }
 0x130   : > { %6485 = vmatmul.mubr.msk.f32.gmra.mrb[10].mxu0 %vm9503_vm1, %v3713_v46 }
 0x131   : > { %6487 = vmatprep.mubr.msk.f32.mxu0 %vm9503_vm1, %v3714_v48  ;;  %v7798_v46 = vmul.u32.u64.low 3817748708, %v4136_v39  ;;  %v7799_v48 = vmul.u32.u64.high 3817748708, %v4136_v39, %v7798_v46 }
 0x132   : > { %6226 = vmatmul.mubr.msk.f32.gmra.mrb[24].mxu1 %vm9503_vm1, %v7584_v47  ;;  %v3728_v47 = vld [vmem:[#allocation2 + $0xf6] sm:$0xff] }
 0x133   : > { %6228 = vmatprep.mubr.msk.f32.mxu1 %vm9503_vm1, %v7587_v49  ;;  %v2007_v49 = vld [vmem:[#allocation2 + $0xbb] sm:$0xff] }
 0x134   : > { %6488 = vmatmul.mubr.msk.f32.gmra.mrb[12].mxu0 %vm9503_vm1, %v3715_v50  ;;  %v7802_v50 = vadd.s32 56, %v7773_v22 }
 0x135   : > { %6490 = vmatprep.mubr.msk.f32.mxu0 %vm9503_vm1, %v3716_v51  ;;  %v7805_v51 = vadd.s32 48, %v7773_v22 }
 0x136   : > { %6229 = vmatmul.mubr.msk.f32.gmra.mrb[26].mxu1 %vm9503_vm1, %v7594_v16  ;;  %v3730_v16 = vld [vmem:[#allocation2 + $0x106] sm:$0xff] }
 0x137   : > { %6231 = vmatprep.mubr.msk.f32.mxu1 %vm9503_vm1, %v7597_v57  ;;  %v2009_v57 = vld [vmem:[#allocation2 + $0xcb] sm:$0xff] }
 0x138   : > { %6491 = vmatmul.mubr.msk.f32.gmra.mrb[14].mxu0 %vm9503_vm1, %v3717_v53  ;;  %v7808_v53 = vadd.s32 72, %v7773_v22 }
 0x139   : > { %6493 = vmatprep.mubr.msk.f32.mxu0 %vm9503_vm1, %v3718_v54  ;;  %v7811_v54 = vadd.s32 64, %v7773_v22 }
 0x13a   : > { %6232 = vmatmul.mubr.msk.f32.gmra.mrb[28].mxu1 %vm9503_vm1, %v7604_v1  ;;  %v2012_v1 = vld [vmem:[#allocation2 + $0xe3] sm:$0xff] }
 0x13b   : > { %6234 = vmatprep.mubr.msk.f32.mxu1 %vm9503_vm1, %v7607_v4  ;;  %v3733_v4 = vld [vmem:[#allocation2 + $0x11e] sm:$0xff] }
 0x13c   : > { %6494 = vmatmul.mubr.msk.f32.gmra.mrb[16].mxu0 %vm9503_vm1, %v3719_v55  ;;  %v7813_v55 = vsub.s32 %v4133_v37, %v4186_v42 }
 0x13d   : > { %6496 = vmatprep.mubr.msk.f32.mxu0 %vm9503_vm1, %v3720_v56  ;;  %v7816_v56 = vsub.s32 %v7773_v22, %v4175_v45 }
 0x13e   : > { %6235 = vmatmul.mubr.msk.f32.gmra.mrb[30].mxu1 %vm9503_vm1, %v7614_v9  ;;  %v2014_v9 = vld [vmem:[#allocation2 + $0xf3] sm:$0xff]  ;;  %vm4565_vm4 = vcmp.ne.s32.totalorder %v7813_v55, 0  ;;  %vm4601_vm5 = vcmp.lt.s32.totalorder %v7813_v55, 0 }
 0x13f   : > { %6237 = vmatprep.mubr.msk.f32.mxu1 %vm9503_vm1, %v7617_v14  ;;  %v3735_v14 = vld [vmem:[#allocation2 + $0x12e] sm:$0xff]  ;;  %vm4564_vm6 = vcmp.ne.s32.totalorder %v7816_v56, 0  ;;  %vm4600_vm7 = vcmp.lt.s32.totalorder %v7816_v56, 0  ;;  %vm7845_vm8 = vmand %vm4601_vm5, %vm4565_vm4 }
 0x140   : > { %6497 = vmatmul.mubr.msk.f32.gmra.mrb[18].mxu0 %vm9503_vm1, %v3721_v58  ;;  %v4207_v58 = vshrl.u32 %v7789_v38, 4  ;;  %vm7855_vm9 = vmand %vm4600_vm7, %vm4564_vm6 }
 0x141   : > { %6499 = vmatprep.mubr.msk.f32.mxu0 %vm9503_vm1, %v3722_v61 }
 0x142   : > { %6238 = vmatmul.mubr.msk.f32.gmra.mrb[32].mxu1 %vm9503_vm1, %v7624_v18  ;;  %v2017_v18 = vld [vmem:[#allocation2 + $0x10b] sm:$0xff] }
 0x143   : > { %6240 = vmatprep.mubr.msk.f32.mxu1 %vm9503_vm1, %v1591_v62  ;;  %v7820_v61 = vmul.u32.u64.low 3817748708, %v7802_v50  ;;  %v7821_v62 = vmul.u32.u64.high 3817748708, %v7802_v50, %v7820_v61 }
 0x144   : > { %6500 = vmatmul.mubr.msk.f32.gmra.mrb[20].mxu0 %vm9503_vm1, %v3723_v2 }
 0x145   : > { %6502 = vmatprep.mubr.msk.f32.mxu0 %vm9503_vm1, %v3724_v3  ;;  %v7824_v2 = vmul.u32.u64.low 3817748708, %v7805_v51  ;;  %v7825_v3 = vmul.u32.u64.high 3817748708, %v7805_v51, %v7824_v2 }
 0x146   : > { %6241 = vmatmul.mubr.msk.f32.gmra.mrb[34].mxu1 %vm9503_vm1, %v1592_v6 }
 0x147   : > { %6272 = vmatprep.mubr.msk.f32.mxu1 %vm9503_vm1, %v2004_v7  ;;  %v7828_v6 = vmul.u32.u64.low 3817748708, %v7808_v53  ;;  %v7829_v7 = vmul.u32.u64.high 3817748708, %v7808_v53, %v7828_v6 }
 0x148   : > { %6503 = vmatmul.mubr.msk.f32.gmra.mrb[22].mxu0 %vm9503_vm1, %v3725_v11 }
 0x149   : > { %6505 = vmatprep.mubr.msk.f32.mxu0 %vm9503_vm1, %v3726_v12  ;;  %v7832_v11 = vmul.u32.u64.low 3817748708, %v7811_v54  ;;  %v7833_v12 = vmul.u32.u64.high 3817748708, %v7811_v54, %v7832_v11 }
 0x14a   : > { %6273 = vmatmul.mubr.msk.f32.vlgmr.msra.gmra.mrb[18].mxu1 %vm9503_vm1, %v2005_v13  ;;  %v4196_v13 = vshrl.u32 %v7793_v41, 4 }
 0x14b   : > { %6275 = vmatprep.mubr.msk.f32.mxu1 %vm9503_vm1, %v2006_v31  ;;  %v4229_v31 = vshrl.u32 %v7796_v44, 4 }
 0x14c   : > { %6506 = vmatmul.mubr.msk.f32.gmra.mrb[24].mxu0 %vm9503_vm1, %v3727_v33  ;;  %v4208_v33 = vmul.u32 18, %v4207_v58 }
 0x14d   : > { %6508 = vmatprep.mubr.msk.f32.mxu0 %vm9503_vm1, %v3728_v47  ;;  %v4218_v47 = vshrl.u32 %v7799_v48, 4  ;;  %v7937_v46 = vmul.u32.u64.low 3817748708, %v7906_v34  ;;  %v7938_v48 = vmul.u32.u64.high 3817748708, %v7906_v34, %v7937_v46 }
 0x14e   : > { %6276 = vmatmul.mubr.msk.f32.gmra.mrb[20].mxu1 %vm9503_vm1, %v2007_v49  ;;  %v7843_v49 = vadd.s32 88, %v7773_v22 }
 0x14f   : > { %6278 = vmatprep.mubr.msk.f32.mxu1 %vm9503_vm1, %v2008_v32 }
 0x150   : > { %6509 = vmatmul.mubr.msk.f32.gmra.mrb[26].mxu0 %vm9503_vm1, %v3729_v52  ;;  %v7850_v52 = vadd.s32 18, %v7813_v55 }
 0x151   : > { %6511 = vmatprep.mubr.msk.f32.mxu0 %vm9503_vm1, %v3730_v16  ;;  %v7853_v16 = vadd.s32 18, %v7816_v56 }
 0x152   : > { %6279 = vmatmul.mubr.msk.f32.gmra.mrb[22].mxu1 %vm9503_vm1, %v2009_v57 }
 0x153   : > { %6281 = vmatprep.mubr.msk.f32.mxu1 %vm9503_vm1, %v2010_v60  ;;  %v4197_v60 = vmul.u32 18, %v4196_v13 }
 0x154   : > { %6512 = vmatmul.mubr.msk.f32.gmra.mrb[28].mxu0 %vm9503_vm1, %v7189_v59  ;;  %v3736_v59 = vld [vmem:[#allocation2 + $0x136] sm:$0xff] }
 0x155   : > { %6514 = vmatprep.mubr.msk.f32.mxu0 %vm9503_vm1, %v7227_v10  ;;  %v2016_v10 = vld [vmem:[#allocation2 + $0x103] sm:$0xff] }
 0x156   : > { %6282 = vmatmul.mubr.msk.f32.gmra.mrb[24].mxu1 %vm9503_vm1, %v2011_v63  ;;  %v4230_v63 = vmul.u32 18, %v4229_v31 }
 0x157   : > { %6284 = vmatprep.mubr.msk.f32.mxu1 %vm9503_vm1, %v2012_v1  ;;  %v7860_v1 = vadd.s32 80, %v7773_v22 }
 0x158   : > { %6515 = vmatmul.mubr.msk.f32.gmra.mrb[30].mxu0 %vm9503_vm1, %v3733_v4  ;;  %v7862_v4 = vsub.s32 %v4135_v0, %v4208_v33 }
 0x159   : > { %6517 = vmatprep.mubr.msk.f32.mxu0 %vm9503_vm1, %v3734_v5  ;;  %v4219_v5 = vmul.u32 18, %v4218_v47  ;;  %v9577_v47 = vmov 0 }
 0x15a   : > { %6285 = vmatmul.mubr.msk.f32.gmra.mrb[26].mxu1 %vm9503_vm1, %v2013_v8  ;;  %v4251_v8 = vshrl.u32 %v7821_v62, 4  ;;  %vm4567_vm10 = vcmp.ne.s32.totalorder %v7862_v4, 0  ;;  %vm4603_vm11 = vcmp.lt.s32.totalorder %v7862_v4, 0  ;;  %v7970_v62 = vadd.s32 136, %v7773_v22 }
 0x15b   : > { %6287 = vmatprep.mubr.msk.f32.mxu1 %vm9503_vm1, %v2014_v9  ;;  %v4240_v9 = vshrl.u32 %v7825_v3, 4  ;;  %v7896_v24 = vsub.s32 %v4136_v39, %v4219_v5  ;;  %v7919_v39 = vmul.u32.u64.low 3817748708, %v7894_v23  ;;  %v7920_v40 = vmul.u32.u64.high 3817748708, %v7894_v23, %v7919_v39  ;;  %vm7944_vm4 = vmand %vm4603_vm11, %vm4567_vm10 }
 0x15c   : > { %6518 = vmatmul.mubr.msk.f32.gmra.mrb[32].mxu0 %vm9503_vm1, %v3735_v14  ;;  %v4252_v37 = vmul.u32 18, %v4251_v8  ;;  %v8020_v8 = vadd.s32 128, %v7773_v22 }
 0x15d   : > { %6520 = vmatprep.mubr.msk.f32.mxu0 %vm9503_vm1, %v3736_v59  ;;  %v7867_v14 = vmul.u32.u64.low 3817748708, %v7843_v49  ;;  %v7868_v59 = vmul.u32.u64.high 3817748708, %v7843_v49, %v7867_v14  ;;  %v4241_v25 = vmul.u32 18, %v4240_v9  ;;  %vm4568_vm0 = vcmp.ne.s32.totalorder %v7896_v24, 0 }
 0x15e   : > { %6288 = vmatmul.mubr.msk.f32.gmra.mrb[28].mxu1 %vm9503_vm1, %v2015_v15  ;;  %v7871_v15 = vadd.s32 104, %v7773_v22  ;;  %v7916_v38 = vsub.s32 %v7802_v50, %v4252_v37  ;;  %vm4604_vm5 = vcmp.lt.s32.totalorder %v7896_v24, 0  ;;  %v9585_v37 = vmov 0 }
 0x15f   : > { %6290 = vmatprep.mubr.msk.f32.mxu1 %vm9503_vm1, %v2016_v10  ;;  %v7927_v42 = vsub.s32 %v7805_v51, %v4241_v25  ;;  %v4295_v43 = vshrl.u32 %v7868_v59, 4  ;;  %v7950_v51 = vadd.s32 18, %v7896_v24  ;;  %vm7989_vm3 = vmand %vm4604_vm5, %vm4568_vm0  ;;  %v9580_v59 = vmov 0 }
 0x160   : > { %6521 = vmatmul.mubr.msk.f32.gmra.mrb[34].mxu0 %vm9503_vm1, %v3737_v17  ;;  %v7899_v26 = vmul.u32.u64.low 3817748708, %v7871_v15  ;;  %v7900_v0 = vmul.u32.u64.high 3817748708, %v7871_v15, %v7899_v26  ;;  %9560 = vst [vmem:[#allocation3_spill] sm:$0xff] %v7916_v38  ;;  %vm4571_vm7 = vcmp.ne.s32.totalorder %v7916_v38, 0  ;;  %vm4607_vm10 = vcmp.lt.s32.totalorder %v7916_v38, 0 }
 0x161   : > { %9561 = vst [vmem:[#allocation4_spill] sm:$0xff] %v7927_v42  ;;  %v7967_v61 = vadd.s32 18, %v7916_v38  ;;  %v7983_v3 = vadd.s32 18, %v7927_v42  ;;  %v4296_v6 = vmul.u32 18, %v4295_v43  ;;  %v4339_v25 = vshrl.u32 %v7938_v48, 4 }
 0x162   : > { %6291 = vmatmul.mubr.msk.f32.gmra.mrb[30].mxu1 %vm9503_vm1, %v2017_v18  ;;  %v4273_v18 = vshrl.u32 %v7829_v7, 4  ;;  %v4317_v11 = vshrl.u32 %v7900_v0, 4  ;;  %v8058_v26 = vadd.s32 152, %v7773_v22  ;;  %v8151_v14 = vadd.s32 176, %v7773_v22 }
 0x163   : > { %6293 = vmatprep.mubr.msk.f32.mxu1 %vm9503_vm1, %v2018_v19  ;;  %v4262_v19 = vshrl.u32 %v7833_v12, 4  ;;  %9568 = vst [vmem:[#allocation7_spill] sm:$0xff] %v7967_v61  ;;  %9571 = vst [vmem:[#allocation8_spill] sm:$0xff] %v7983_v3  ;;  %v9574_v12 = vmov 0  ;;  %v8075_v46 = vmul.u32.u64.low 3817748708, %v8020_v8  ;;  %v8076_v48 = vmul.u32.u64.high 3817748708, %v8020_v8, %v8075_v46 }
 0x164   : > { %v4274_v28 = vmul.u32 18, %v4273_v18  ;;  %v4318_v39 = vmul.u32 18, %v4317_v11  ;;  %v8167_v9 = vadd.s32 200, %v7773_v22  ;;  %v9598_v10 = vmov 0 }
 0x165   : > { %v4340_v11 = vmul.u32 18, %v4339_v25 }
 0x166   : > { %6294 = vmatmul.mubr.msk.f32.gmra.mrb[32].mxu1 %vm9503_vm1, %v2019_v20  ;;  %v7883_v20 = vsub.s32 %v4134_v27, %v4197_v60  ;;  %v7903_v27 = vadd.s32 18, %v7862_v4  ;;  %v7931_v44 = vsub.s32 %v7808_v53, %v4274_v28  ;;  %v4306_v60 = vshrl.u32 %v7920_v40, 4 }
 0x167   : > { %6296 = vmatprep.mubr.msk.f32.mxu1 %vm9503_vm1, %v2020_v21  ;;  %v7885_v21 = vsub.s32 %v4137_v29, %v4230_v63  ;;  %v4263_v29 = vmul.u32 18, %v4262_v19  ;;  %v8016_v63 = vmul.u32.u64.low 3817748708, %v7970_v62  ;;  %v8017_v5 = vmul.u32.u64.high 3817748708, %v7970_v62, %v8016_v63 }
 0x168   : > { %vm4566_vm12 = vcmp.ne.s32.totalorder %v7883_v20, 0  ;;  %vm4602_vm13 = vcmp.lt.s32.totalorder %v7883_v20, 0  ;;  %v7911_v35 = vadd.s32 18, %v7883_v20  ;;  %9562 = vst [vmem:[#allocation5_spill] sm:$0xff] %v7931_v44  ;;  %v8037_v18 = vadd.s32 18, %v7931_v44 }
 0x169   : > { %vm4569_vm14 = vcmp.ne.s32.totalorder %v7885_v21, 0  ;;  %vm4605_vm15 = vcmp.lt.s32.totalorder %v7885_v21, 0  ;;  %v7923_v41 = vadd.s32 18, %v7885_v21  ;;  %v7934_v45 = vsub.s32 %v7811_v54, %v4263_v29  ;;  %vm7960_vm6 = vmand %vm4602_vm13, %vm4566_vm12 }
 0x16a   : > { %6297 = vmatmul.mubr.msk.f32.gmra.mrb[34].mxu1 %vm9503_vm1, %v2021_v30  ;;  %v7888_v30 = vmul.u32.u64.low 3817748708, %v7860_v1  ;;  %v7889_v36 = vmul.u32.u64.high 3817748708, %v7860_v1, %v7888_v30  ;;  %v7954_v54 = vadd.s32 112, %v7773_v22  ;;  %vm7976_vm11 = vmand %vm4605_vm15, %vm4569_vm14  ;;  %vm4570_vm12 = vcmp.ne.s32.totalorder %v7927_v42, 0  ;;  %9583 = vst [vmem:[#allocation12_spill] sm:$0xff] %v8037_v18 }
 0x16b   : > { %9563 = vst [vmem:[#allocation6_spill] sm:$0xff] %v7934_v45  ;;  %vm4606_vm13 = vcmp.lt.s32.totalorder %v7927_v42, 0  ;;  %vm4573_vm14 = vcmp.ne.s32.totalorder %v7931_v44, 0  ;;  %vm4609_vm15 = vcmp.lt.s32.totalorder %v7931_v44, 0  ;;  %vm4572_vm2 = vcmp.ne.s32.totalorder %v7934_v45, 0  ;;  %vm8001_vm1 = vmand %vm4607_vm10, %vm4571_vm7 }
 0x16c   : > { %v4284_v53 = vshrl.u32 %v7889_v36, 4  ;;  %v9575_v12 = vsel %vm8001_vm1, 4294967295, %v9574_v12  ;;  %vm4608_vm0 = vcmp.lt.s32.totalorder %v7934_v45, 0  ;;  %vm8010_vm5 = vmand %vm4606_vm13, %vm4570_vm12  ;;  %v8040_v19 = vadd.s32 18, %v7934_v45 }
 0x16d   : > { %9576 = vst [vmem:[#allocation9_spill] sm:$0xff] %v9575_v12  ;;  %v8007_v31 = vmul.u32.u64.low 3817748708, %v7954_v54  ;;  %v8008_v33 = vmul.u32.u64.high 3817748708, %v7954_v54, %v8007_v31  ;;  %v9578_v47 = vsel %vm8010_vm5, 4294967295, %v9577_v47  ;;  %vm8032_vm7 = vmand %vm4609_vm15, %vm4573_vm14  ;;  %v8069_v29 = vsub.s32 %v7843_v49, %v4296_v6 }
 0x16e   : > { %v4285_v13 = vmul.u32 18, %v4284_v53  ;;  %9579 = vst [vmem:[#allocation10_spill] sm:$0xff] %v9578_v47  ;;  %v9581_v59 = vsel %vm8032_vm7, 4294967295, %v9580_v59  ;;  %9584 = vst [vmem:[#allocation13_spill] sm:$0xff] %v8040_v19  ;;  %v4307_v43 = vmul.u32 18, %v4306_v60  ;;  %v8087_v6 = vadd.s32 144, %v7773_v22 }
 0x16f   : > { %9582 = vst [vmem:[#allocation11_spill] sm:$0xff] %v9581_v59  ;;  %vm8052_vm10 = vmand %vm4608_vm0, %vm4572_vm2  ;;  %v8097_v60 = vadd.s32 160, %v7773_v22  ;;  %vm4575_vm2 = vcmp.ne.s32.totalorder %v8069_v29, 0  ;;  %vm4611_vm12 = vcmp.lt.s32.totalorder %v8069_v29, 0  ;;  %v8102_v63 = vsub.s32 %v7871_v15, %v4318_v39 }
 0x170   : > { %v9586_v37 = vsel %vm8052_vm10, 4294967295, %v9585_v37  ;;  %v8072_v40 = vsub.s32 %v7860_v1, %v4285_v13  ;;  %v8090_v1 = vadd.s32 168, %v7773_v22  ;;  %v4328_v46 = vshrl.u32 %v8008_v33, 4  ;;  %vm8159_vm0 = vmand %vm4611_vm12, %vm4575_vm2 }
 0x171   : > { %9587 = vst [vmem:[#allocation14_spill] sm:$0xff] %v9586_v37  ;;  %v8093_v13 = vmul.u32.u64.low 3817748708, %v8058_v26  ;;  %v8094_v31 = vmul.u32.u64.high 3817748708, %v8058_v26, %v8093_v13  ;;  %v8106_v49 = vadd.s32 18, %v8069_v29  ;;  %v8110_v25 = vsub.s32 %v7894_v23, %v4307_v43 }
 0x172   : > { %9588 = vst [vmem:[#allocation15_spill] sm:$0xff] %v8072_v40  ;;  %v4361_v13 = vshrl.u32 %v8017_v5, 4  ;;  %v8114_v53 = vmul.u32.u64.low 3817748708, %v8087_v6  ;;  %v8115_v28 = vmul.u32.u64.high 3817748708, %v8087_v6, %v8114_v53  ;;  %v8125_v33 = vsub.s32 %v7906_v34, %v4340_v11 }
 0x173   : > { %9589 = vst [vmem:[#allocation16_spill] sm:$0xff] %v8110_v25  ;;  %v8118_v0 = vmul.u32.u64.low 3817748708, %v8090_v1  ;;  %v8119_v15 = vmul.u32.u64.high 3817748708, %v8090_v1, %v8118_v0  ;;  %v8128_v23 = vmul.u32.u64.low 3817748708, %v8097_v60  ;;  %v8129_v43 = vmul.u32.u64.high 3817748708, %v8097_v60, %v8128_v23 }
 0x174   : > { %9590 = vst [vmem:[#allocation17_spill] sm:$0xff] %v8125_v33  ;;  %v8134_v36 = vadd.s32 18, %v8072_v40  ;;  %v4329_v0 = vmul.u32 18, %v4328_v46  ;;  %v8139_v53 = vadd.s32 18, %v8102_v63  ;;  %v4362_v30 = vmul.u32 18, %v4361_v13 }
 0x175   : > { %v4350_v34 = vshrl.u32 %v8076_v48, 4  ;;  %v8143_v11 = vadd.s32 184, %v7773_v22  ;;  %v8148_v23 = vadd.s32 18, %v8110_v25  ;;  %v9593_v48 = vmov 0 }
 0x176   : > { %v9594_v48 = vsel %vm8159_vm0, 4294967295, %v9593_v48  ;;  %v4383_v13 = vshrl.u32 %v8094_v31, 4  ;;  %vm9596_vm15 = vcmp.ne.s32.totalorder %v8072_v40, 0  ;;  %vm9597_vm10 = vcmp.lt.s32.totalorder %v8072_v40, 0 }
 0x177   : > { %9591 = vst [vmem:[#allocation18_spill] sm:$0xff] %v8148_v23  ;;  %vm8175_vm7 = vmand %vm9597_vm10, %vm9596_vm15  ;;  %v8180_v45 = vadd.s32 18, %v8125_v33  ;;  %v8183_v19 = vsub.s32 %v7954_v54, %v4329_v0  ;;  %v8186_v31 = vadd.s32 192, %v7773_v22  ;;  %v8189_v37 = vadd.s32 216, %v7773_v22 }
 0x178   : > { %v9599_v10 = vsel %vm8175_vm7, 4294967295, %v9598_v10  ;;  %vm9603_vm2 = vcmp.ne.s32.totalorder %v8102_v63, 0  ;;  %vm9604_vm12 = vcmp.lt.s32.totalorder %v8102_v63, 0  ;;  %v9605_v44 = vmov 0 }
 0x179   : > { %9600 = vst [vmem:[#allocation21_spill] sm:$0xff] %v9599_v10  ;;  %9601 = vst [vmem:[#allocation22_spill] sm:$0xff] %v8180_v45  ;;  %v8200_v18 = vsub.s32 %v7970_v62, %v4362_v30  ;;  %v4351_v59 = vmul.u32 18, %v4350_v34  ;;  %v8203_v54 = vmul.u32.u64.low 3817748708, %v8143_v11  ;;  %v8204_v0 = vmul.u32.u64.high 3817748708, %v8143_v11, %v8203_v54 }
 0x17a   : > { %9602 = vst [vmem:[#allocation23_spill] sm:$0xff] %v8183_v19  ;;  %vm8195_vm10 = vmand %vm9604_vm12, %vm9603_vm2  ;;  %vm9608_vm15 = vcmp.ne.s32.totalorder %v8110_v25, 0  ;;  %vm9609_vm13 = vcmp.lt.s32.totalorder %v8110_v25, 0  ;;  %v4372_v42 = vshrl.u32 %v8115_v28, 4  ;;  %v4405_v3 = vshrl.u32 %v8119_v15, 4 }
 0x17b   : > { %v9606_v44 = vsel %vm8195_vm10, 4294967295, %v9605_v44  ;;  %9607 = vst [vmem:[#allocation24_spill] sm:$0xff] %v8200_v18  ;;  %vm8210_vm14 = vmand %vm9609_vm13, %vm9608_vm15  ;;  %v8217_v62 = vmul.u32.u64.low 3817748708, %v8151_v14  ;;  %v8218_v30 = vmul.u32.u64.high 3817748708, %v8151_v14, %v8217_v62  ;;  %vm9614_vm2 = vcmp.ne.s32.totalorder %v8125_v33, 0 }
 0x17c   : > { %vm9615_vm12 = vcmp.lt.s32.totalorder %v8125_v33, 0  ;;  %v9616_v54 = vmov 0  ;;  %v4384_v47 = vmul.u32 18, %v4383_v13  ;;  %v4373_v10 = vmul.u32 18, %v4372_v42 }
 0x17d   : > { %vm8226_vm5 = vmand %vm9615_vm12, %vm9614_vm2  ;;  %v8232_v28 = vmul.u32.u64.low 3817748708, %v8167_v9  ;;  %v8233_v15 = vmul.u32.u64.high 3817748708, %v8167_v9, %v8232_v28  ;;  %v8242_v61 = vmul.u32.u64.low 3817748708, %v8189_v37  ;;  %v8243_v12 = vmul.u32.u64.high 3817748708, %v8189_v37, %v8242_v61 }
 0x17e   : > { %v9617_v54 = vsel %vm8226_vm5, 4294967295, %v9616_v54  ;;  %v8283_v42 = vsub.s32 %v8058_v26, %v4384_v47  ;;  %v8286_v13 = vadd.s32 18, %v8200_v18  ;;  %v4427_v28 = vshrl.u32 %v8204_v0, 4 }
 0x17f   : > { %9618 = vst [vmem:[#allocation27_spill] sm:$0xff] %v9617_v54  ;;  %v8291_v33 = vadd.s32 232, %v7773_v22  ;;  %v8298_v54 = vsub.s32 %v8087_v6, %v4373_v10  ;;  %v4449_v0 = vshrl.u32 %v8233_v15, 4  ;;  %vm9627_vm12 = vcmp.ne.s32.totalorder %v8183_v19, 0 }
 0x180   : > { %9619 = vst [vmem:[#allocation28_spill] sm:$0xff] %v8283_v42  ;;  %vm9628_vm13 = vcmp.lt.s32.totalorder %v8183_v19, 0  ;;  %vm9646_vm10 = vcmp.ne.s32.totalorder %v8283_v42, 0  ;;  %vm9647_vm5 = vcmp.lt.s32.totalorder %v8283_v42, 0 }
 0x181   : > { %9620 = vst [vmem:[#allocation29_spill] sm:$0xff] %v8291_v33  ;;  %9621 = vst [vmem:[#allocation30_spill] sm:$0xff] %v8298_v54  ;;  %v8412_v50 = vadd.s32 18, %v8298_v54 }
 0x182   : > { %vm8332_vm2 = vmand %vm9628_vm13, %vm9627_vm12  ;;  %vm9634_vm13 = vcmp.ne.s32.totalorder %v8200_v18, 0  ;;  %vm9635_vm12 = vcmp.lt.s32.totalorder %v8200_v18, 0 }
 0x183   : > { %vm8384_vm1 = vmand %vm9647_vm5, %vm9646_vm10  ;;  %vm9654_vm5 = vcmp.ne.s32.totalorder %v8298_v54, 0  ;;  %vm9655_vm10 = vcmp.lt.s32.totalorder %v8298_v54, 0  ;;  %9659 = vst [vmem:[#allocation39_spill] sm:$0xff] %v8412_v50 }
 0x1d5   : > { %v8121_v39 = vpop.f32.mrb[0].mxu1 }
 0x1d6   : > { %v8131_v5 = vpop.f32.mrb[1].mxu1 }
 0x1d9   : > { %v8153_v46 = vpop.f32.mrb[2].mxu1 }
 0x1da   : > { %9592 = vst [vmem:[#allocation19_spill] sm:$0xff] %v8153_v46  ;;  %v8169_v17 = vpop.f32.mrb[3].mxu1  ;;  %v4394_v46 = vshrl.u32 %v8129_v43, 4  ;;  %v4406_v43 = vmul.u32 18, %v4405_v3 }
 0x1db   : > { %9595 = vst [vmem:[#allocation20_spill] sm:$0xff] %v8169_v17  ;;  %v9610_v17 = vmov 0 }
 0x1dc   : > { %v9611_v17 = vsel %vm8210_vm14, 4294967295, %v9610_v17  ;;  %v4395_v3 = vmul.u32 18, %v4394_v46  ;;  %v8301_v47 = vsub.s32 %v8090_v1, %v4406_v43  ;;  %v4416_v46 = vshrl.u32 %v8218_v30, 4  ;;  %vm8354_vm14 = vmand %vm9635_vm12, %vm9634_vm13 }
 0x1dd   : > { %9612 = vst [vmem:[#allocation25_spill] sm:$0xff] %v9611_v17  ;;  %v8220_v34 = vpop.f32.mrb[4].mxu1  ;;  %v4471_v1 = vshrl.u32 %v8243_v12, 4  ;;  %v9624_v30 = vsel %vm7845_vm8, %v7850_v52, %v7813_v55  ;;  %v4428_v12 = vmul.u32 18, %v4427_v28  ;;  %v9631_v55 = vsel %vm7855_vm9, %v7853_v16, %v7816_v56 }
 0x1de   : > { %9613 = vst [vmem:[#allocation26_spill] sm:$0xff] %v8220_v34  ;;  %v8235_v38 = vpop.f32.mrb[5].mxu1  ;;  %v8238_v62 = vmul.u32.u64.low 3817748708, %v8186_v31  ;;  %v8239_v34 = vmul.u32.u64.high 3817748708, %v8186_v31, %v8238_v62  ;;  %9622 = vst [vmem:[#allocation31_spill] sm:$0xff] %v8301_v47  ;;  %v8315_v10 = vsub.s32 %v8097_v60, %v4395_v3  ;;  %vm8324_vm15 = vcmp.lt.s32.totalorder %v9624_v30, 16 }
 0x1df   : > { %v8258_v62 = vsub.s32 %v8020_v8, %v4351_v59  ;;  %v8273_v8 = vadd.s32 18, %v8183_v19  ;;  %v8276_v59 = vadd.s32 208, %v7773_v22  ;;  %vm8346_vm8 = vcmp.lt.s32.totalorder %v9631_v55, 16  ;;  %v9783_v60 = vld [vmem:[#allocation29_spill] sm:$0xff] }
 0x1e0   : > { %9623 = vst [vmem:[#allocation32_spill] sm:$0xff] %v8315_v10  ;;  %v4438_v6 = vshrl.u32 %v8239_v34, 4  ;;  %v8359_v43 = vadd.s32 18, %v8283_v42  ;;  %v8364_v56 = vadd.s32 224, %v7773_v22  ;;  %vm4585_vm12 = vcmp.ne.s32.totalorder %v8301_v47, 0  ;;  %v9720_v42 = vld [vmem:[#allocation13_spill] sm:$0xff] }
 0x1e1   : > { %v8268_v40 = vpop.f32.mrb[6].mxu1  ;;  %v8295_v45 = vadd.s32 18, %v8258_v62  ;;  %v8308_v25 = vmul.u32.u64.low 3817748708, %v8276_v59  ;;  %v8309_v23 = vmul.u32.u64.high 3817748708, %v8276_v59, %v8308_v25  ;;  %vm9641_vm9 = vcmp.ne.s32.totalorder %v8258_v62, 0  ;;  %v9696_v52 = vld [vmem:[#allocation19_spill] sm:$0xff] }
 0x1e2   : > { %v8278_v61 = vpop.f32.mrb[7].mxu1  ;;  %v8338_v32 = vmul.u32.u64.low 3817748708, %v8291_v33  ;;  %v8339_v25 = vmul.u32.u64.high 3817748708, %v8291_v33, %v8338_v32  ;;  %9638 = vst [vmem:[#allocation33_spill] sm:$0xff] %v8359_v43  ;;  %9639 = vst [vmem:[#allocation34_spill] sm:$0xff] %v8364_v56  ;;  %vm9642_vm7 = vcmp.lt.s32.totalorder %v8258_v62, 0 }
 0x1e3   : > { %vm8372_vm13 = vmand %vm9642_vm7, %vm9641_vm9  ;;  %v4417_v28 = vmul.u32 18, %v4416_v46  ;;  %v4450_v3 = vmul.u32 18, %v4449_v0  ;;  %v9648_v32 = vmov 0  ;;  %vm4584_vm7 = vcmp.ne.s32.totalorder %v8315_v10, 0  ;;  %v9721_v43 = vld [vmem:[#allocation6_spill] sm:$0xff] }
 0x1e4   : > { %v9649_v32 = vsel %vm8384_vm1, 4294967295, %v9648_v32  ;;  %v4439_v55 = vmul.u32 18, %v4438_v6  ;;  %v4472_v33 = vmul.u32 18, %v4471_v1  ;;  %v9651_v46 = vsel %vm7944_vm4, %v7903_v27, %v7862_v4  ;;  %vm8407_vm9 = vmand %vm9655_vm10, %vm9654_vm5 }
 0x1e5   : > { %v8303_v26 = vpop.f32.mrb[8].mxu1  ;;  %9650 = vst [vmem:[#allocation37_spill] sm:$0xff] %v9649_v32  ;;  %vm8395_vm0 = vcmp.lt.s32.totalorder %v9651_v46, 16  ;;  %v9656_v6 = vmov 0  ;;  %v8415_v4 = vadd.s32 18, %v8301_v47  ;;  %v8418_v27 = vsub.s32 %v8143_v11, %v4428_v12  ;;  %v9713_v46 = vld [vmem:[#allocation12_spill] sm:$0xff] }
 0x1e6   : > { %v8311_v17 = vpop.f32.mrb[9].mxu1  ;;  %v9657_v6 = vsel %vm8407_vm9, 4294967295, %v9656_v6  ;;  %v9661_v1 = vsel %vm7960_vm6, %v7911_v35, %v7883_v20  ;;  %vm9664_vm5 = vcmp.lt.s32.totalorder %v8301_v47, 0  ;;  %v8438_v11 = vadd.s32 18, %v8315_v10 }
 0x1e7   : > { %9658 = vst [vmem:[#allocation38_spill] sm:$0xff] %v9657_v6  ;;  %9660 = vst [vmem:[#allocation40_spill] sm:$0xff] %v8415_v4  ;;  %vm8425_vm4 = vcmp.lt.s32.totalorder %v9661_v1, 16  ;;  %v8441_v58 = vmul.u32.u64.low 3817748708, %v8364_v56  ;;  %v8442_v12 = vmul.u32.u64.high 3817748708, %v8364_v56, %v8441_v58  ;;  %v8445_v20 = vadd.s32 248, %v7773_v22 }
 0x1e8   : > { %vm8433_vm10 = vmand %vm9664_vm5, %vm4585_vm12  ;;  %9668 = vst [vmem:[#allocation42_spill] sm:$0xff] %v8438_v11  ;;  %vm9670_vm6 = vcmp.lt.s32.totalorder %v8315_v10, 0  ;;  %v8462_v58 = vsub.s32 %v8151_v14, %v4417_v28  ;;  %v8465_v56 = vsub.s32 %v8167_v9, %v4450_v3  ;;  %v8479_v14 = vsub.s32 %v8186_v31, %v4439_v55  ;;  %v9688_v1 = vld [vmem:[#allocation9_spill] sm:$0xff]  ;;  %v9699_v4 = vld [vmem:[#allocation8_spill] sm:$0xff] }
 0x1e9   : > { %v8366_v16 = vpop.f32.mrb[10].mxu1  ;;  %vm8457_vm12 = vmand %vm9670_vm6, %vm4584_vm7  ;;  %v8482_v9 = vsub.s32 %v8189_v37, %v4472_v33  ;;  %v8502_v2 = vadd.s32 18, %v8418_v27  ;;  %v9677_v55 = vsel %vm7989_vm3, %v7950_v51, %v7896_v24  ;;  %vm9682_vm3 = vcmask 31744   ;;  %v9718_v6 = vld [vmem:[#allocation14_spill] sm:$0xff] }
 0x1ea   : > { %9640 = vst [vmem:[#allocation35_spill] sm:$0xff] %v8366_v16  ;;  %v8378_v30 = vpop.f32.mrb[11].mxu1  ;;  %v9671_v16 = vmov 0  ;;  %v8527_v24 = vadd.s32 18, %v8462_v58  ;;  %v8530_v51 = vadd.s32 18, %v8465_v56  ;;  %vm9686_vm5 = vmmov %vm9682_vm3  ;;  %vm9689_vm6 = vnez %v9688_v1  ;;  %v9700_v1 = vld [vmem:[#allocation4_spill] sm:$0xff] }
 0x1eb   : > { %9645 = vst [vmem:[#allocation36_spill] sm:$0xff] %v8378_v30  ;;  %v9665_v30 = vmov 0  ;;  %v9672_v16 = vsel %vm8457_vm12, 4294967295, %v9671_v16  ;;  %vm9695_vm12 = vmmov %vm9686_vm5 }
 0x1ec   : > { %v9666_v30 = vsel %vm8433_vm10, 4294967295, %v9665_v30  ;;  %9673 = vst [vmem:[#allocation44_spill] sm:$0xff] %v9672_v16  ;;  %9680 = vst [vmem:[#allocation45_spill] sm:$0xff] %v8527_v24  ;;  %v9691_v24 = vld [vmem:[#allocation3_spill] sm:$0xff] }
 0x1ed   : > { %9667 = vst [vmem:[#allocation41_spill] sm:$0xff] %v9666_v30  ;;  %v8447_v35 = vpop.f32.mrb[12].mxu1  ;;  %9681 = vst [vmem:[#allocation46_spill] sm:$0xff] %v8530_v51  ;;  %v9690_v51 = vld [vmem:[#allocation7_spill] sm:$0xff] }
 0x1ee   : > { %9669 = vst [vmem:[#allocation43_spill] sm:$0xff] %v8447_v35  ;;  %v4460_v35 = vshrl.u32 %v8309_v23, 4  ;;  %v8468_v19 = vpop.f32.mrb[13].mxu1  ;;  %v9674_v23 = vsel %vm7976_vm11, %v7923_v41, %v7885_v21  ;;  %v4493_v21 = vshrl.u32 %v8339_v25, 4  ;;  %vm8511_vm11 = vcmp.lt.s32.totalorder %v9677_v55, 16 }
 0x1ef   : > { %v6471_v28 = vpop.f32.mrb[0].mxu0  ;;  %vm8489_vm7 = vcmp.lt.s32.totalorder %v9674_v23, 16  ;;  %v8520_v25 = vmul.u32.u64.low 3817748708, %v8445_v20  ;;  %v8521_v31 = vmul.u32.u64.high 3817748708, %v8445_v20, %v8520_v25  ;;  %v9791_v23 = vld [vmem:[#allocation24_spill] sm:$0xff] }
 0x1f0   : > { %v6525_v41 = vadd.f32 %v6471_v28, %v8121_v39  ;;  %v3916_v33 = vpop.f32.mrb[1].mxu0  ;;  %v8532_v28 = vmul.u32 18, %v4460_v35  ;;  %v8541_v25 = vadd.s32 18, %v8479_v14 }
 0x1f1   : > { %v8523_v39 = vpop.f32.mrb[14].mxu1  ;;  %v6526_v7 = vadd.f32 %v3916_v33, %v8131_v5  ;;  %v8544_v5 = vadd.s32 18, %v8482_v9  ;;  %v8547_v33 = vadd.s32 240, %v7773_v22 }
 0x1f2   : > { %v4853_v55 = vsel %vm8324_vm15, %v6525_v41, 0.0  ;;  %5081 = vst.msk [vmem:[%s7377_s14 + $0x1b] sm:$0xff] %vm9682_vm3, %v6525_v41  ;;  %v8538_v37 = vpop.f32.mrb[15].mxu1  ;;  %9683 = vst [vmem:[#allocation47_spill] sm:$0xff] %v8541_v25  ;;  %v9692_v25 = vsel %vm9689_vm6, %v9690_v51, %v9691_v24 }
 0x1f3   : > { %9684 = vst [vmem:[#allocation48_spill] sm:$0xff] %v8544_v5  ;;  %9685 = vst [vmem:[#allocation49_spill] sm:$0xff] %v8547_v33  ;;  %v4889_v18 = vsel %vm9686_vm5, %v4853_v55, 0.0  ;;  %v4967_v35 = vmul.f32 %v4853_v55, %v4853_v55  ;;  %v4852_v15 = vsel %vm8346_vm8, %v6526_v7, 0.0  ;;  %v6474_v41 = vpop.f32.mrb[2].mxu0  ;;  %v8563_v5 = vmul.u32 18, %v4493_v21 }
 0x1f4   : > { %vm9687_vm15 = vmmov %vm9682_vm3  ;;  %vm8559_vm3 = vcmp.lt.s32.totalorder %v9692_v25, 16  ;;  %v4888_v55 = vsel %vm9695_vm12, %v4852_v15, 0.0  ;;  %v4966_v11 = vmul.f32 %v4852_v15, %v4852_v15  ;;  %v6527_v16 = vadd.f32 %v6474_v41, %v9696_v52  ;;  %v3926_v47 = vpop.f32.mrb[3].mxu0  ;;  %v9704_v41 = vld [vmem:[#allocation20_spill] sm:$0xff] }
 0x1f5   : > { %5080 = vst.msk [vmem:[%s7377_s14 + $0x13] sm:$0xff] %vm9687_vm15, %v6526_v7  ;;  %v9697_v7 = vld [vmem:[#allocation10_spill] sm:$0xff]  ;;  %v4482_v21 = vshrl.u32 %v8442_v12, 4  ;;  %v5003_v51 = vsel %vm9695_vm12, %v4967_v35, 0.0  ;;  %v4890_v25 = vadd.f32 %v4889_v18, %v4888_v55  ;;  %v8580_v15 = vpop.f32.mrb[16].mxu1  ;;  %v6528_v52 = vadd.f32 %v3926_v47, %v9704_v41 }
 0x1f6   : > { %vm9698_vm8 = vnez %v9697_v7  ;;  %v4855_v7 = vsel %vm8395_vm0, %v6527_v16, 0.0  ;;  %v8594_v12 = vmul.u32.u64.low 3817748708, %v8547_v33  ;;  %v8595_v18 = vmul.u32.u64.high 3817748708, %v8547_v33, %v8594_v12  ;;  %v9710_v33 = vld [vmem:[#allocation26_spill] sm:$0xff] }
 0x1f7   : > { %v9701_v30 = vsel %vm9698_vm8, %v9699_v4, %v9700_v1  ;;  %v8584_v4 = vadd.s32 264, %v7773_v22  ;;  %vm9705_vm8 = vmmov %vm9695_vm12  ;;  %v8591_v1 = vpop.f32.mrb[17].mxu1  ;;  %v4969_v47 = vmul.f32 %v4855_v7, %v4855_v7  ;;  %v4854_v55 = vsel %vm8425_vm4, %v6528_v52, 0.0  ;;  %v6477_v0 = vpop.f32.mrb[4].mxu0  ;;  %v9714_v12 = vld [vmem:[#allocation5_spill] sm:$0xff] }
 0x1f8   : > { %vm8572_vm5 = vcmp.lt.s32.totalorder %v9701_v30, 16  ;;  %v5002_v30 = vsel %vm9705_vm8, %v4966_v11, 0.0  ;;  %vm9706_vm15 = vmmov %vm9705_vm8  ;;  %9707 = vst [vmem:[#allocation9_spill] sm:$0xff] %v8591_v1  ;;  %v4968_v41 = vmul.f32 %v4854_v55, %v4854_v55  ;;  %v6529_v54 = vadd.f32 %v6477_v0, %v9710_v33 }
 0x1f9   : > { %5083 = vst.msk [vmem:[%s7377_s14 + $0x2b] sm:$0xff] %vm9706_vm15, %v6527_v16  ;;  %v5004_v35 = vadd.f32 %v5003_v51, %v5002_v30  ;;  %vm9708_vm12 = vmmov %vm9705_vm8  ;;  %v8603_v16 = vadd.s32 256, %v7773_v22  ;;  %v3936_v51 = vpop.f32.mrb[5].mxu0  ;;  %v9711_v30 = vld [vmem:[#allocation11_spill] sm:$0xff]  ;;  %v4515_v33 = vshrl.u32 %v8521_v31, 4 }
 0x1fa   : > { %5082 = vst.msk [vmem:[%s7377_s14 + $0x23] sm:$0xff] %vm9708_vm12, %v6528_v52  ;;  %vm9709_vm0 = vmmov %vm9705_vm8  ;;  %vm9712_vm15 = vnez %v9711_v30  ;;  %vm9719_vm8 = vnez %v9718_v6  ;;  %v5118_v30 = vld [vmem:[%s7377_s14 + $0x21] sm:$0x1]  ;;  %v9770_v52 = vld [vmem:[#allocation27_spill] sm:$0xff] }
 0x1fb   : > { %v4891_v11 = vsel %vm9709_vm0, %v4854_v55, 0.0  ;;  %v9715_v50 = vsel %vm9712_vm15, %v9713_v46, %v9714_v12  ;;  %v9722_v32 = vsel %vm9719_vm8, %v9720_v42, %v9721_v43  ;;  %v6530_v46 = vadd.f32 %v3936_v51, %v8235_v38  ;;  %vm9725_vm15 = vmmov %vm9709_vm0 }
 0x1fc   : > { %vm8612_vm4 = vcmp.lt.s32.totalorder %v9715_v50, 16  ;;  %vm8621_vm12 = vcmp.lt.s32.totalorder %v9722_v32, 16  ;;  %v4892_v0 = vadd.f32 %v4891_v11, %v4890_v25  ;;  %v5116_v6 = vld [vmem:[%s7377_s14 + $0x14] sm:$0x1]  ;;  %v4893_v1 = vsel %vm9709_vm0, %v4855_v7, 0.0  ;;  %vm9727_vm6 = vmmov %vm9709_vm0  ;;  %v6480_v11 = vpop.f32.mrb[6].mxu0 }
 0x1fd   : > { %v8629_v50 = vmul.u32.u64.low 3817748708, %v8584_v4  ;;  %v8630_v12 = vmul.u32.u64.high 3817748708, %v8584_v4, %v8629_v50  ;;  %v5005_v42 = vsel %vm9725_vm15, %v4968_v41, 0.0  ;;  %vm9726_vm8 = vcmask 24576   ;;  %5085 = vst.msk [vmem:[%s7377_s14 + $0x3b] sm:$0xff] %vm9727_vm6, %v6529_v54  ;;  %vm9729_vm9 = vmmov %vm9709_vm0  ;;  %v3946_v51 = vpop.f32.mrb[7].mxu0 }
 0x1fe   : > { %5119 = vst.msk [vmem:[%s7377_s14 + $0x23] sm:$0x1] %vm9726_vm8, %v5118_v30  ;;  %v4857_v43 = vsel %vm8489_vm7, %v6529_v54, 0.0  ;;  %v8642_v32 = vmul.u32 18, %v4482_v21  ;;  %vm9728_vm10 = vmmov %vm9726_vm8  ;;  %v5007_v38 = vsel %vm9729_vm9, %v4969_v47, 0.0  ;;  %v5006_v31 = vadd.f32 %v5005_v42, %v5004_v35  ;;  %v9735_v47 = vld [vmem:[#allocation21_spill] sm:$0xff] }
 0x1ff   : > { %5117 = vst.msk [vmem:[%s7377_s14 + $0x12] sm:$0x1] %vm9728_vm10, %v5116_v6  ;;  %v4971_v25 = vmul.f32 %v4857_v43, %v4857_v43  ;;  %v4856_v7 = vsel %vm8511_vm11, %v6530_v46, 0.0  ;;  %v4894_v41 = vadd.f32 %v4893_v1, %v4892_v0  ;;  %vm9730_vm15 = vmmov %vm9709_vm0  ;;  %v6531_v21 = vadd.f32 %v6480_v11, %v8268_v40  ;;  %v9737_v1 = vld [vmem:[#allocation15_spill] sm:$0xff] }
 0x200   : > { %5084 = vst.msk [vmem:[%s7377_s14 + $0x33] sm:$0xff] %vm9709_vm0, %v6530_v46  ;;  %v4895_v3 = vsel %vm9730_vm15, %v4856_v7, 0.0  ;;  %v4970_v54 = vmul.f32 %v4856_v7, %v4856_v7  ;;  %vm9731_vm9 = vnez %v9594_v48  ;;  %vm9736_vm7 = vnez %v9735_v47  ;;  %vm9741_vm6 = vmmov %vm9709_vm0 }
 0x201   : > { %v9732_v35 = vsel %vm9731_vm9, %v8106_v49, %v8069_v29  ;;  %v9738_v0 = vsel %vm9736_vm7, %v8134_v36, %v9737_v1  ;;  %v5008_v40 = vadd.f32 %v5007_v38, %v5006_v31  ;;  %v6532_v48 = vadd.f32 %v3946_v51, %v8278_v61  ;;  %v5120_v49 = vld [vmem:[%s7377_s14 + $0x26] sm:$0x1]  ;;  %vm9742_vm8 = vmmov %vm9709_vm0  ;;  %5087 = vst.msk [vmem:[%s7377_s14 + $0x4b] sm:$0xff] %vm9709_vm0, %v6531_v21  ;;  %v9756_v51 = vld [vmem:[#allocation18_spill] sm:$0xff] }
 0x202   : > { %vm8658_vm10 = vcmp.lt.s32.totalorder %v9732_v35, 16  ;;  %vm8667_vm11 = vcmp.lt.s32.totalorder %v9738_v0, 16  ;;  %v8672_v46 = vmul.u32 18, %v4515_v33  ;;  %v8675_v29 = vadd.s32 280, %v7773_v22  ;;  %vm9744_vm9 = vmmov %vm9709_vm0  ;;  %v9757_v35 = vld [vmem:[#allocation16_spill] sm:$0xff] }
 0x203   : > { %v4897_v50 = vsel %vm9741_vm6, %v4857_v43, 0.0  ;;  %v4896_v6 = vadd.f32 %v4895_v3, %v4894_v41  ;;  %v5009_v42 = vsel %vm9742_vm8, %v4970_v54, 0.0  ;;  %v4859_v36 = vsel %vm8559_vm3, %v6531_v21, 0.0  ;;  %vm9745_vm7 = vmmov %vm9709_vm0  ;;  %v6483_v43 = vpop.f32.mrb[8].mxu0  ;;  %v9754_v21 = vld [vmem:[#allocation25_spill] sm:$0xff] }
 0x204   : > { %vm9743_vm15 = vcmask 24576   ;;  %v5011_v61 = vsel %vm9744_vm9, %v4971_v25, 0.0  ;;  %v5010_v33 = vadd.f32 %v5009_v42, %v5008_v40  ;;  %v4973_v38 = vmul.f32 %v4859_v36, %v4859_v36  ;;  %5086 = vst.msk [vmem:[%s7377_s14 + $0x43] sm:$0xff] %vm9745_vm7, %v6532_v48  ;;  %v3956_v41 = vpop.f32.mrb[9].mxu0 }
 0x205   : > { %5121 = vst.msk [vmem:[%s7377_s14 + $0x24] sm:$0x1] %vm9743_vm15, %v5120_v49  ;;  %v4858_v31 = vsel %vm8572_vm5, %v6532_v48, 0.0  ;;  %vm9746_vm6 = vcmp.ne.s32.totalorder %v8418_v27, 0  ;;  %vm9747_vm3 = vcmp.lt.s32.totalorder %v8418_v27, 0  ;;  %v4898_v25 = vadd.f32 %v4897_v50, %v4896_v6 }
 0x206   : > { %vm8695_vm8 = vmand %vm9747_vm3, %vm9746_vm6  ;;  %v4899_v7 = vsel %vm9709_vm0, %v4858_v31, 0.0  ;;  %v4972_v11 = vmul.f32 %v4858_v31, %v4858_v31  ;;  %v6533_v24 = vadd.f32 %v6483_v43, %v8303_v26  ;;  %vm9750_vm5 = vnez %v9606_v44 }
 0x207   : > { %v9751_v3 = vsel %vm9750_vm5, %v8139_v53, %v8102_v63  ;;  %vm9755_vm9 = vnez %v9754_v21  ;;  %v5012_v26 = vadd.f32 %v5011_v61, %v5010_v33  ;;  %v6534_v44 = vadd.f32 %v3956_v41, %v8311_v17  ;;  %v5122_v53 = vld [vmem:[%s7377_s14 + $0x33] sm:$0x1]  ;;  %v5124_v40 = vld [vmem:[%s7377_s14 + $0x38] sm:$0x1]  ;;  %vm9761_vm6 = vmmov %vm9709_vm0 }
 0x208   : > { %vm8706_vm15 = vcmp.lt.s32.totalorder %v9751_v3, 16  ;;  %v9758_v47 = vsel %vm9755_vm9, %v9756_v51, %v9757_v35  ;;  %v8721_v0 = vmul.u32.u64.low 3817748708, %v8603_v16  ;;  %v8722_v63 = vmul.u32.u64.high 3817748708, %v8603_v16, %v8721_v0  ;;  %v5181_v48 = vld [vmem:[%s7377_s14 + $0x2c] sm:$0xff]  ;;  %vm9762_vm3 = vmmov %vm9709_vm0 }
 0x209   : > { %vm8715_vm7 = vcmp.lt.s32.totalorder %v9758_v47, 16  ;;  %v4900_v49 = vadd.f32 %v4899_v7, %v4898_v25  ;;  %v5013_v50 = vsel %vm9761_vm6, %v4972_v11, 0.0  ;;  %5089 = vst.msk [vmem:[%s7377_s14 + $0x5b] sm:$0xff] %vm9762_vm3, %v6533_v24  ;;  %v4731_v6 = vsel %vm8695_vm8, %v8502_v2, %v8418_v27  ;;  %vm9765_vm9 = vmmov %vm9762_vm3  ;;  %v9772_v11 = vld [vmem:[#allocation22_spill] sm:$0xff]  ;;  %v9781_v47 = vld [vmem:[#allocation35_spill] sm:$0xff] }
 0x20a   : > { %v8737_v17 = vsub.s32 %v8276_v59, %v8532_v28  ;;  %vm9763_vm0 = vcmask 24576   ;;  %5184 = vst.msk [vmem:[%s7377_s14 + $0x8] sm:$0xff] %vm9765_vm9, %v5181_v48  ;;  %vm9766_vm1 = vmmov %vm9762_vm3  ;;  %v5014_v61 = vadd.f32 %v5013_v50, %v5012_v26  ;;  %v4861_v33 = vsel %vm8612_vm4, %v6533_v24, 0.0  ;;  %v6486_v59 = vpop.f32.mrb[10].mxu0  ;;  %v9773_v24 = vld [vmem:[#allocation17_spill] sm:$0xff] }
 0x20b   : > { %5123 = vst.msk [vmem:[%s7377_s14 + $0x35] sm:$0x1] %vm9763_vm0, %v5122_v53  ;;  %vm9764_vm5 = vmmov %vm9763_vm0  ;;  %v4901_v42 = vsel %vm9766_vm1, %v4859_v36, 0.0  ;;  %v4860_v31 = vsel %vm8621_vm12, %v6534_v44, 0.0  ;;  %v4975_v43 = vmul.f32 %v4861_v33, %v4861_v33  ;;  %v3966_v7 = vpop.f32.mrb[11].mxu0  ;;  %v6535_v26 = vadd.f32 %v6486_v59, %v9781_v47 }
 0x20c   : > { %5125 = vst.msk [vmem:[%s7377_s14 + $0x36] sm:$0x1] %vm9764_vm5, %v5124_v40  ;;  %vm9767_vm6 = vmmov %vm9766_vm1  ;;  %v4902_v25 = vadd.f32 %v4901_v42, %v4900_v49  ;;  %v4974_v51 = vmul.f32 %v4860_v31, %v4860_v31  ;;  %v5180_v53 = vld [vmem:[%s7377_s14 + $0x24] sm:$0xff]  ;;  %v8779_v50 = vsub.s32 %v9783_v60, %v8563_v5  ;;  %v8833_v47 = vsub.s32 %v8445_v20, %v8672_v46 }
 0x20d   : > { %5088 = vst.msk [vmem:[%s7377_s14 + $0x53] sm:$0xff] %vm9767_vm6, %v6534_v44  ;;  %vm9768_vm3 = vmmov %vm9766_vm1  ;;  %v9782_v44 = vld [vmem:[#allocation36_spill] sm:$0xff]  ;;  %v5126_v40 = vld [vmem:[%s7377_s14 + $0x45] sm:$0x1]  ;;  %v4863_v5 = vsel %vm8658_vm10, %v6535_v26, 0.0  ;;  %v4526_v30 = vshrl.u32 %v8722_v63, 4 }
 0x20e   : > { %v5015_v28 = vsel %vm9768_vm3, %v4973_v38, 0.0  ;;  %vm9769_vm0 = vmmov %vm9766_vm1  ;;  %vm9771_vm1 = vnez %v9770_v52  ;;  %v9777_v38 = vld [vmem:[#allocation23_spill] sm:$0xff]  ;;  %v6536_v0 = vadd.f32 %v3966_v7, %v9782_v44  ;;  %v5128_v48 = vld [vmem:[%s7377_s14 + $0x4a] sm:$0x1]  ;;  %5127 = vst.msk [vmem:[%s7377_s14 + $0x47] sm:$0x1] %vm9764_vm5, %v5126_v40 }
 0x20f   : > { %v4903_v36 = vsel %vm9769_vm0, %v4860_v31, 0.0  ;;  %v9774_v55 = vsel %vm9771_vm1, %v9772_v11, %v9773_v24  ;;  %v9778_v3 = vsel %vm8332_vm2, %v8273_v8, %v9777_v38  ;;  %v5016_v35 = vadd.f32 %v5015_v28, %v5014_v61  ;;  %v9784_v8 = vld [vmem:[#allocation34_spill] sm:$0xff]  ;;  %vm9785_vm2 = vmmov %vm9769_vm0  ;;  %5091 = vst.msk [vmem:[%s7377_s14 + $0x6b] sm:$0xff] %vm9769_vm0, %v6535_v26  ;;  %v6489_v28 = vpop.f32.mrb[12].mxu0 }
 0x210   : > { %vm8759_vm4 = vcmp.lt.s32.totalorder %v9774_v55, 16  ;;  %vm8768_vm12 = vcmp.lt.s32.totalorder %v9778_v3, 16  ;;  %v4904_v49 = vadd.f32 %v4903_v36, %v4902_v25  ;;  %v8783_v42 = vsub.s32 %v9784_v8, %v8642_v32  ;;  %5183 = vst.msk [vmem:[%s7377_s14] sm:$0xff] %vm9785_vm2, %v5180_v53  ;;  %vm9786_vm9 = vmmov %vm9764_vm5  ;;  %v3976_v52 = vpop.f32.mrb[13].mxu0  ;;  %v5132_v55 = vld [vmem:[%s7377_s14 + $0x5c] sm:$0x1] }
 0x211   : > { %v4504_v61 = vshrl.u32 %v8595_v18, 4  ;;  %5129 = vst.msk [vmem:[%s7377_s14 + $0x48] sm:$0x1] %vm9786_vm9, %v5128_v48  ;;  %vm9787_vm6 = vmmov %vm9769_vm0  ;;  %v4862_v32 = vsel %vm8667_vm11, %v6536_v0, 0.0  ;;  %v9792_v11 = vsel %vm8354_vm14, %v8286_v13, %v9791_v23  ;;  %v9795_v24 = vsel %vm8372_vm13, %v8295_v45, %v8258_v62  ;;  %v9799_v13 = vld [vmem:[#allocation43_spill] sm:$0xff]  ;;  %v6492_v20 = vpop.f32.mrb[14].mxu0 }
 0x212   : > { %v4905_v31 = vsel %vm9787_vm6, %v4861_v33, 0.0  ;;  %vm9788_vm3 = vmmov %vm9769_vm0  ;;  %v4977_v33 = vmul.f32 %v4863_v5, %v4863_v5  ;;  %vm8808_vm10 = vcmp.lt.s32.totalorder %v9792_v11, 16  ;;  %vm8817_vm11 = vcmp.lt.s32.totalorder %v9795_v24, 16 }
 0x213   : > { %v5017_v59 = vsel %vm9788_vm3, %v4974_v51, 0.0  ;;  %vm9789_vm1 = vmmov %vm9769_vm0  ;;  %v4906_v7 = vadd.f32 %v4905_v31, %v4904_v49  ;;  %v4976_v38 = vmul.f32 %v4862_v32, %v4862_v32  ;;  %v6537_v3 = vadd.f32 %v6489_v28, %v9799_v13  ;;  %v3986_v49 = vpop.f32.mrb[15].mxu0  ;;  %v9813_v13 = vld [vmem:[#allocation9_spill] sm:$0xff] }
 0x214   : > { %5090 = vst.msk [vmem:[%s7377_s14 + $0x63] sm:$0xff] %vm9789_vm1, %v6536_v0  ;;  %vm9790_vm2 = vmmov %vm9769_vm0  ;;  %v5018_v36 = vadd.f32 %v5017_v59, %v5016_v35  ;;  %v6538_v51 = vadd.f32 %v3976_v52, %v8468_v19  ;;  %v5182_v35 = vld [vmem:[%s7377_s14 + $0x34] sm:$0x3]  ;;  %v5130_v57 = vld [vmem:[%s7377_s14 + $0x57] sm:$0x1]  ;;  %vm4586_vm13 = vcmp.ne.s32.totalorder %v8462_v58, 0  ;;  %v6539_v8 = vadd.f32 %v6492_v20, %v8523_v39 }
 0x215   : > { %v5019_v25 = vsel %vm9790_vm2, %v4975_v43, 0.0  ;;  %vm9798_vm5 = vmmov %vm9769_vm0  ;;  %v4537_v26 = vshrl.u32 %v8630_v12, 4  ;;  %vm9801_vm6 = vcmask 25600   ;;  %v4909_v19 = vsel %vm9769_vm0, %v4863_v5, 0.0  ;;  %v6495_v52 = vpop.f32.mrb[16].mxu0 }
 0x216   : > { %v4907_v34 = vsel %vm9798_vm5, %v4862_v32, 0.0  ;;  %vm9800_vm14 = vmmov %vm9786_vm9  ;;  %v5020_v62 = vadd.f32 %v5019_v25, %v5018_v36  ;;  %vm4622_vm9 = vcmp.lt.s32.totalorder %v8462_v58, 0  ;;  %5185 = vst.msk [vmem:[%s7377_s14 + $0x10] sm:$0x3] %vm9801_vm6, %v5182_v35  ;;  %v4865_v0 = vsel %vm8706_vm15, %v6537_v3, 0.0 }
 0x217   : > { %5133 = vst.msk [vmem:[%s7377_s14 + $0x5a] sm:$0x1] %vm9800_vm14, %v5132_v55  ;;  %v4908_v45 = vadd.f32 %v4907_v34, %v4906_v7  ;;  %vm9802_vm3 = vmmov %vm9800_vm14  ;;  %v4864_v53 = vsel %vm8715_vm7, %v6538_v51, 0.0  ;;  %vm4589_vm14 = vcmp.ne.s32.totalorder %v8465_v56, 0  ;;  %vm4625_vm6 = vcmp.lt.s32.totalorder %v8465_v56, 0  ;;  %v3996_v55 = vpop.f32.mrb[17].mxu0 }
 0x218   : > { %5131 = vst.msk [vmem:[%s7377_s14 + $0x59] sm:$0x1] %vm9802_vm3, %v5130_v57  ;;  %vm9803_vm1 = vmmov %vm9769_vm0  ;;  %v4979_v48 = vmul.f32 %v4865_v0, %v4865_v0  ;;  %v4911_v1 = vsel %vm9769_vm0, %v4864_v53, 0.0  ;;  %v4978_v60 = vmul.f32 %v4864_v53, %v4864_v53  ;;  %v6540_v31 = vadd.f32 %v3986_v49, %v8538_v37  ;;  %v5136_v59 = vld [vmem:[%s7377_s14 + $0x6e] sm:$0x1]  ;;  %v9821_v49 = vld [vmem:[#allocation37_spill] sm:$0xff] }
 0x219   : > { %v5021_v44 = vsel %vm9803_vm1, %v4976_v38, 0.0  ;;  %vm9804_vm2 = vmmov %vm9769_vm0  ;;  %v4910_v54 = vadd.f32 %v4909_v19, %v4908_v45  ;;  %v8865_v25 = vmul.u32.u64.low 3817748708, %v8675_v29  ;;  %v8866_v36 = vmul.u32.u64.high 3817748708, %v8675_v29, %v8865_v25 }
 0x21a   : > { %5093 = vst.msk [vmem:[%s7377_s14 + $0x7b] sm:$0xff] %vm9804_vm2, %v6537_v3  ;;  %vm9805_vm5 = vmmov %vm9769_vm0  ;;  %v5022_v40 = vadd.f32 %v5021_v44, %v5020_v62  ;;  %v4913_v37 = vsel %vm9803_vm1, %v4865_v0, 0.0  ;;  %v4866_v7 = vsel %vm8768_vm12, %v6540_v31, 0.0  ;;  %v5027_v23 = vsel %vm9803_vm1, %v4979_v48, 0.0  ;;  %v9833_v25 = vld [vmem:[#allocation30_spill] sm:$0xff] }
 0x21b   : > { %5092 = vst.msk [vmem:[%s7377_s14 + $0x73] sm:$0xff] %vm9805_vm5, %v6538_v51  ;;  %vm9806_vm3 = vmmov %vm9769_vm0  ;;  %v5134_v5 = vld [vmem:[%s7377_s14 + $0x69] sm:$0x1]  ;;  %v4912_v32 = vadd.f32 %v4911_v1, %v4910_v54  ;;  %vm4590_vm5 = vcmp.ne.s32.totalorder %v8737_v17, 0  ;;  %vm9807_vm0 = vcmask 24576   ;;  %v4980_v34 = vmul.f32 %v4866_v7, %v4866_v7  ;;  %v9823_v1 = vld [vmem:[#allocation33_spill] sm:$0xff] }
 0x21c   : > { %v5023_v46 = vsel %vm9806_vm3, %v4977_v33, 0.0  ;;  %5137 = vst.msk [vmem:[%s7377_s14 + $0x6c] sm:$0x1] %vm9807_vm0, %v5136_v59  ;;  %vm9808_vm7 = vmmov %vm9807_vm0  ;;  %v4867_v33 = vsel %vm8759_vm4, %v6539_v8, 0.0  ;;  %vm4593_vm0 = vcmp.ne.s32.totalorder %v8779_v50, 0  ;;  %v6541_v38 = vadd.f32 %v6495_v52, %v8580_v15 }
 0x21d   : > { %v5024_v28 = vadd.f32 %v5023_v46, %v5022_v40  ;;  %5135 = vst.msk [vmem:[%s7377_s14 + $0x6b] sm:$0x1] %vm9808_vm7, %v5134_v5  ;;  %vm9809_vm2 = vmmov %vm9803_vm1  ;;  %v4981_v11 = vmul.f32 %v4867_v33, %v4867_v33  ;;  %v4914_v24 = vadd.f32 %v4913_v37, %v4912_v32  ;;  %v6542_v3 = vadd.f32 %v3996_v55, %v9813_v13  ;;  %v9830_v32 = vld [vmem:[#allocation38_spill] sm:$0xff] }
 0x21e   : > { %v5025_v39 = vsel %vm9809_vm2, %v4978_v60, 0.0  ;;  %vm9810_vm15 = vmmov %vm9803_vm1  ;;  %v4505_v62 = vmul.u32 18, %v4504_v61  ;;  %v8894_v19 = vadd.s32 272, %v7773_v22  ;;  %v4869_v0 = vsel %vm8808_vm10, %v6541_v38, 0.0  ;;  %5097 = vst.msk [vmem:[%s7377_s14 + $0x9b] sm:$0xff] %vm9803_vm1, %v6541_v38  ;;  %v8910_v22 = vpop.f32.mrb[18].mxu0 }
 0x21f   : > { %5095 = vst.msk [vmem:[%s7377_s14 + $0x8b] sm:$0xff] %vm9810_vm15, %v6539_v8  ;;  %vm9811_vm3 = vmmov %vm9803_vm1  ;;  %v5026_v41 = vadd.f32 %v5025_v39, %v5024_v28  ;;  %v4868_v18 = vsel %vm8817_vm11, %v6542_v3, 0.0  ;;  %v8912_v20 = vpop.f32.mrb[19].mxu0  ;;  %v4538_v46 = vmul.u32 18, %v4537_v26  ;;  %v4983_v43 = vmul.f32 %v4869_v0, %v4869_v0  ;;  %v9824_v60 = vld [vmem:[#allocation28_spill] sm:$0xff]  ;;  %v9832_v28 = vld [vmem:[#allocation39_spill] sm:$0xff] }
 0x220   : > { %5094 = vst.msk [vmem:[%s7377_s14 + $0x83] sm:$0xff] %vm9811_vm3, %v6540_v31  ;;  %vm9812_vm4 = vmmov %vm9803_vm1  ;;  %v4982_v54 = vmul.f32 %v4868_v18, %v4868_v18  ;;  %vm9822_vm11 = vnez %v9821_v49 }
 0x221   : > { %v4915_v21 = vsel %vm9812_vm4, %v4866_v7, 0.0  ;;  %v5138_v51 = vld [vmem:[%s7377_s14 + $0x7b] sm:$0x1]  ;;  %v5140_v35 = vld [vmem:[%s7377_s14 + $0x80] sm:$0x1]  ;;  %v5028_v45 = vadd.f32 %v5027_v23, %v5026_v41  ;;  %vm9814_vm12 = vmmov %vm9808_vm7  ;;  %v9825_v8 = vsel %vm9822_vm11, %v9823_v1, %v9824_v60 }
 0x222   : > { %v4916_v57 = vadd.f32 %v4915_v21, %v4914_v24  ;;  %5139 = vst.msk [vmem:[%s7377_s14 + $0x7d] sm:$0x1] %vm9814_vm12, %v5138_v51  ;;  %vm9815_vm15 = vmmov %vm9808_vm7  ;;  %v9839_v7 = vld [vmem:[#allocation49_spill] sm:$0xff]  ;;  %v8976_v55 = vmul.u32.u64.low 3817748708, %v8894_v19  ;;  %v8977_v21 = vmul.u32.u64.high 3817748708, %v8894_v19, %v8976_v55  ;;  %v8993_v51 = vsub.s32 %v8584_v4, %v4538_v46  ;;  %v9864_v46 = vld [vmem:[#allocation42_spill] sm:$0xff] }
 0x223   : > { %5141 = vst.msk [vmem:[%s7377_s14 + $0x7e] sm:$0x1] %vm9815_vm15, %v5140_v35  ;;  %vm9816_vm2 = vmmov %vm9803_vm1  ;;  %vm8924_vm15 = vcmp.lt.s32.totalorder %v9825_v8, 16  ;;  %v8957_v52 = vsub.s32 %v9839_v7, %v4505_v62  ;;  %v9855_v62 = vld [vmem:[#allocation31_spill] sm:$0xff]  ;;  %v4527_v4 = vmul.u32 18, %v4526_v30  ;;  %v9873_v1 = vld [vmem:[#allocation45_spill] sm:$0xff] }
 0x224   : > { %v4917_v44 = vsel %vm9816_vm2, %v4867_v33, 0.0  ;;  %vm9817_vm3 = vmmov %vm9803_vm1  ;;  %v9049_v8 = vadd.s32 18, %v8779_v50 }
 0x225   : > { %v5029_v15 = vsel %vm9817_vm3, %v4980_v34, 0.0  ;;  %vm9818_vm4 = vmmov %vm9803_vm1  ;;  %v4918_v53 = vadd.f32 %v4917_v44, %v4916_v57  ;;  %vm9831_vm3 = vnez %v9830_v32  ;;  %v9852_v57 = vld [vmem:[#allocation41_spill] sm:$0xff]  ;;  %v9076_v12 = vadd.s32 18, %v8957_v52 }
 0x226   : > { %5096 = vst.msk [vmem:[%s7377_s14 + $0x93] sm:$0xff] %vm9818_vm4, %v6542_v3  ;;  %v5030_v61 = vadd.f32 %v5029_v15, %v5028_v45  ;;  %vm9819_vm10 = vmmov %vm9803_vm1  ;;  %v5142_v63 = vld [vmem:[%s7377_s14 + $0x8d] sm:$0x1]  ;;  %v5144_v26 = vld [vmem:[%s7377_s14 + $0x92] sm:$0x1]  ;;  %v9834_v37 = vsel %vm9831_vm3, %v9832_v28, %v9833_v25  ;;  %v4559_v32 = vshrl.u32 %v8866_v36, 4  ;;  %v9107_v2 = vsub.s32 %v8603_v16, %v4527_v4 }
 0x227   : > { %v5031_v40 = vsel %vm9819_vm10, %v4981_v11, 0.0  ;;  %vm9820_vm12 = vmmov %vm9803_vm1  ;;  %vm8943_vm1 = vcmp.lt.s32.totalorder %v9834_v37, 16  ;;  %v8965_v11 = vpop.f32.mrb[20].mxu0  ;;  %v9854_v45 = vld [vmem:[#allocation40_spill] sm:$0xff]  ;;  %v6274_v28 = vpop.f32.mrb[18].mxu1  ;;  %v9884_v37 = vld [vmem:[#allocation46_spill] sm:$0xff] }
 0x228   : > { %v4919_v48 = vsel %vm9820_vm12, %v4868_v18, 0.0  ;;  %vm8932_vm2 = vmand %vm4622_vm9, %vm4586_vm13  ;;  %v5032_v5 = vadd.f32 %v5031_v40, %v5030_v61  ;;  %v4921_v23 = vsel %vm9820_vm12, %v4869_v0, 0.0  ;;  %v8979_v38 = vpop.f32.mrb[21].mxu0  ;;  %v5146_v18 = vld [vmem:[%s7377_s14 + $0x9f] sm:$0x1]  ;;  %v6543_v10 = vadd.f32 %v8910_v22, %v6274_v28 }
 0x229   : > { %v4920_v59 = vadd.f32 %v4919_v48, %v4918_v53  ;;  %vm8951_vm13 = vmand %vm4625_vm6, %vm4589_vm14  ;;  %vm9843_vm14 = vcmp.ne.s32.totalorder %v8479_v14, 0  ;;  %vm9844_vm6 = vcmp.lt.s32.totalorder %v8479_v14, 0  ;;  %v9862_v53 = vld [vmem:[#allocation44_spill] sm:$0xff]  ;;  %v9867_v48 = vmov 0  ;;  %v9042_v49 = vpop.f32.mrb[22].mxu0 }
 0x22a   : > { %vm9840_vm4 = vmmov %vm9808_vm7  ;;  %v9865_v40 = vld [vmem:[#allocation32_spill] sm:$0xff]  ;;  %v4730_v60 = vsel %vm8932_vm2, %v9873_v1, %v8462_v58  ;;  %vm9878_vm2 = vcmp.ne.s32.totalorder %v8833_v47, 0  ;;  %v4733_v7 = vsel %vm8951_vm13, %v9884_v37, %v8465_v56  ;;  %v2290_v56 = vpop.f32.mrb[19].mxu1  ;;  %v9123_v16 = vadd.s32 18, %v8993_v51 }
 0x22b   : > { %5143 = vst.msk [vmem:[%s7377_s14 + $0x8f] sm:$0x1] %vm9840_vm4, %v5142_v63  ;;  %vm9841_vm10 = vmmov %vm9840_vm4  ;;  %v8981_v13 = vadd.f32 %v4921_v23, %v4920_v59  ;;  %vm9847_vm4 = vcmp.ne.s32.totalorder %v8482_v9, 0  ;;  %v9063_v59 = vadd.s32 18, %v8833_v47  ;;  %v9885_v23 = vld [vmem:[#allocation47_spill] sm:$0xff]  ;;  %vm9110_vm13 = vcmp.lt.s32.totalorder %v4730_v60, 16 }
 0x22c   : > { %5145 = vst.msk [vmem:[%s7377_s14 + $0x90] sm:$0x1] %vm9841_vm10, %v5144_v26  ;;  %vm9842_vm11 = vmmov %vm9820_vm12  ;;  %vm9848_vm10 = vcmp.lt.s32.totalorder %v8482_v9, 0  ;;  %v9060_v26 = vadd.s32 18, %v8783_v42  ;;  %v6544_v22 = vadd.f32 %v8912_v20, %v2290_v56  ;;  %v4548_v20 = vshrl.u32 %v8977_v21, 4  ;;  %v6277_v21 = vpop.f32.mrb[20].mxu1 }
 0x22d   : > { %v5033_v41 = vsel %vm9842_vm11, %v4982_v54, 0.0  ;;  %vm8971_vm3 = vmand %vm9844_vm6, %vm9843_vm14  ;;  %vm9853_vm6 = vnez %v9852_v57  ;;  %v9028_v54 = vadd.s32 18, %v8737_v17  ;;  %v9184_v1 = vadd.s32 18, %v9107_v2 }
 0x22e   : > { %v5034_v34 = vadd.f32 %v5033_v41, %v5032_v5  ;;  %vm8987_vm12 = vmand %vm9848_vm10, %vm9847_vm4  ;;  %v9856_v44 = vsel %vm9853_vm6, %v9854_v45, %v9855_v62  ;;  %vm9859_vm4 = vcmp.lt.s32.totalorder %v8737_v17, 0  ;;  %vm9863_vm6 = vnez %v9862_v53  ;;  %v9065_v5 = vpop.f32.mrb[23].mxu0  ;;  %v2300_v53 = vpop.f32.mrb[21].mxu1 }
 0x22f   : > { %vm9851_vm14 = vmmov %vm9842_vm11  ;;  %vm9001_vm9 = vcmp.lt.s32.totalorder %v9856_v44, 16  ;;  %v4732_v36 = vsel %vm8971_vm3, %v9885_v23, %v8479_v14  ;;  %v9892_v14 = vld [vmem:[#allocation48_spill] sm:$0xff]  ;;  %v9126_v24 = vpop.f32.mrb[24].mxu0  ;;  %v4560_v45 = vmul.u32 18, %v4559_v32  ;;  %v4870_v31 = vsel %vm8943_vm1, %v6544_v22, 0.0 }
 0x230   : > { %v5035_v35 = vsel %vm9851_vm14, %v4983_v43, 0.0  ;;  %vm9009_vm10 = vmand %vm9859_vm4, %vm4590_vm5  ;;  %v9866_v43 = vsel %vm9863_vm6, %v9864_v46, %v9865_v40  ;;  %vm9869_vm5 = vcmp.lt.s32.totalorder %v8779_v50, 0  ;;  %vm9872_vm6 = vcmask 24576   ;;  %v9149_v3 = vpop.f32.mrb[25].mxu0 }
 0x231   : > { %v9016_v61 = vadd.f32 %v5035_v35, %v5034_v34  ;;  %vm9023_vm7 = vcmp.lt.s32.totalorder %v9866_v43, 16  ;;  %vm9034_vm4 = vmand %vm9869_vm5, %vm4593_vm0  ;;  %5147 = vst.msk [vmem:[%s7377_s14 + $0xa1] sm:$0x1] %vm9872_vm6, %v5146_v18  ;;  %vm9874_vm0 = vcmp.ne.s32.totalorder %v8783_v42, 0  ;;  %vm9875_vm5 = vcmp.lt.s32.totalorder %v8783_v42, 0 }
 0x232   : > { %v9868_v48 = vsel %vm9023_vm7, 4294967295, %v9867_v48  ;;  %vm9055_vm7 = vmand %vm9875_vm5, %vm9874_vm0  ;;  %vm9879_vm6 = vcmp.lt.s32.totalorder %v8833_v47, 0  ;;  %vm4597_vm0 = vcmp.ne.s32.totalorder %v8993_v51, 0  ;;  %vm4633_vm5 = vcmp.lt.s32.totalorder %v8993_v51, 0 }
 0x233   : > { %vm9071_vm11 = vmand %vm9879_vm6, %vm9878_vm2  ;;  %vm9086_vm14 = vcmp.lt.s32.totalorder %v4731_v6, 16  ;;  %vm9886_vm2 = vcmp.ne.s32.totalorder %v8957_v52, 0  ;;  %vm9887_vm6 = vcmp.lt.s32.totalorder %v8957_v52, 0  ;;  %v4735_v33 = vsel %vm8987_vm12, %v9892_v14, %v8482_v9 }
 0x234   : > { %vm9102_vm8 = vmand %vm9887_vm6, %vm9886_vm2  ;;  %v4734_v41 = vsel %vm9009_vm10, %v9028_v54, %v8737_v17  ;;  %v4737_v55 = vsel %vm9034_vm4, %v9049_v8, %v8779_v50  ;;  %v4736_v9 = vsel %vm9055_vm7, %v9060_v26, %v8783_v42  ;;  %v4871_v34 = vsel %vm8924_vm15, %v6543_v10, 0.0  ;;  %v9181_v54 = vpop.f32.mrb[26].mxu0 }
 0x235   : > { %vm9140_vm3 = vmand %vm4633_vm5, %vm4597_vm0  ;;  %vm9895_vm12 = vcmask 31744   ;;  %v4739_v35 = vsel %vm9071_vm11, %v9063_v59, %v8833_v47  ;;  %v4738_v57 = vsel %vm9102_vm8, %v9076_v12, %v8957_v52  ;;  %v4985_v62 = vmul.f32 %v4871_v34, %v4871_v34  ;;  %v9192_v37 = vpop.f32.mrb[27].mxu0 }
 0x236   : > { %5099 = vst.msk [vmem:[%s7377_s14 + $0xab] sm:$0xff] %vm9895_vm12, %v6543_v10  ;;  %vm9896_vm15 = vmmov %vm9895_vm12  ;;  %vm9163_vm10 = vcmp.lt.s32.totalorder %v4733_v7, 16  ;;  %vm4596_vm0 = vcmp.ne.s32.totalorder %v9107_v2, 0  ;;  %vm4632_vm5 = vcmp.lt.s32.totalorder %v9107_v2, 0  ;;  %v4984_v4 = vmul.f32 %v4870_v31, %v4870_v31  ;;  %v6280_v10 = vpop.f32.mrb[22].mxu1 }
 0x237   : > { %5098 = vst.msk [vmem:[%s7377_s14 + $0xa3] sm:$0xff] %vm9896_vm15, %v6544_v22  ;;  %vm9899_vm2 = vmmov %vm9895_vm12  ;;  %v6545_v18 = vadd.f32 %v8965_v11, %v6277_v21  ;;  %vm9171_vm6 = vcmp.lt.s32.totalorder %v4732_v36, 16  ;;  %v4741_v46 = vsel %vm9140_vm3, %v9123_v16, %v8993_v51  ;;  %v6546_v43 = vadd.f32 %v8979_v38, %v2300_v53 }
 0x238   : > { %v4923_v0 = vsel %vm9899_vm2, %v4870_v31, 0.0  ;;  %v4549_v11 = vmul.u32 18, %v4548_v20  ;;  %vm9902_vm1 = vmmov %vm9899_vm2  ;;  %v9909_v56 = vmov 0  ;;  %v2310_v20 = vpop.f32.mrb[23].mxu1  ;;  %vm9311_vm11 = vcmp.lt.s32.totalorder %v4738_v57, 16 }
 0x239   : > { %v4924_v40 = vadd.f32 %v4923_v0, %v8981_v13  ;;  %v4925_v60 = vsel %vm9902_vm1, %v4871_v34, 0.0  ;;  %vm9903_vm12 = vmmov %vm9902_vm1  ;;  %v4873_v28 = vsel %vm9001_vm9, %v6545_v18, 0.0  ;;  %v9203_v13 = vsub.s32 %v8675_v29, %v4560_v45  ;;  %v6283_v25 = vpop.f32.mrb[24].mxu1 }
 0x23a   : > { %v5037_v32 = vsel %vm9903_vm12, %v4984_v4, 0.0  ;;  %vm9904_vm15 = vmmov %vm9902_vm1  ;;  %v5039_v7 = vsel %vm9902_vm1, %v4985_v62, 0.0  ;;  %v4987_v23 = vmul.f32 %v4873_v28, %v4873_v28  ;;  %vm9907_vm9 = vnez %v9868_v48  ;;  %v9223_v62 = vpop.f32.mrb[28].mxu0 }
 0x23b   : > { %5101 = vst.msk [vmem:[%s7377_s14 + $0xbb] sm:$0xff] %vm9904_vm15, %v6545_v18  ;;  %vm9198_vm2 = vmand %vm4632_vm5, %vm4596_vm0  ;;  %v5038_v15 = vadd.f32 %v5037_v32, %v9016_v61  ;;  %v4872_v36 = vsel %vm9907_vm9, %v6546_v43, 0.0  ;;  %vm9211_vm0 = vcmp.lt.s32.totalorder %v4735_v33, 16  ;;  %v4926_v14 = vadd.f32 %v4925_v60, %v4924_v40  ;;  %v9241_v18 = vpop.f32.mrb[29].mxu0 }
 0x23c   : > { %vm9908_vm12 = vmmov %vm9902_vm1  ;;  %v9910_v56 = vsel %vm9211_vm0, 4294967295, %v9909_v56  ;;  %v4986_v22 = vmul.f32 %v4872_v36, %v4872_v36  ;;  %v6547_v61 = vadd.f32 %v9042_v49, %v6280_v10  ;;  %vm9217_vm15 = vcmp.lt.s32.totalorder %v4734_v41, 16 }
 0x23d   : > { %5100 = vst.msk [vmem:[%s7377_s14 + $0xb3] sm:$0xff] %vm9908_vm12, %v6546_v43  ;;  %vm9911_vm5 = vmmov %vm9902_vm1  ;;  %v9912_v48 = vmov 0  ;;  %v5040_v34 = vadd.f32 %v5039_v7, %v5038_v15  ;;  %v5150_v45 = vld [vmem:[%s7377_s14 + $0xb1] sm:$0x1]  ;;  %v6548_v33 = vadd.f32 %v9065_v5, %v2310_v20  ;;  %v4740_v31 = vsel %vm9198_vm2, %v9184_v1, %v9107_v2  ;;  %v2320_v7 = vpop.f32.mrb[25].mxu1 }
 0x23e   : > { %v4927_v29 = vsel %vm9911_vm5, %v4872_v36, 0.0  ;;  %v9913_v48 = vsel %vm9217_vm15, 4294967295, %v9912_v48  ;;  %v9230_v21 = vsub.s32 %v8894_v19, %v4549_v11  ;;  %v5148_v49 = vld [vmem:[%s7377_s14 + $0xa4] sm:$0x1]  ;;  %v4929_v41 = vsel %vm9902_vm1, %v4873_v28, 0.0  ;;  %vm9914_vm9 = vmmov %vm9902_vm1 }
 0x23f   : > { %v4928_v0 = vadd.f32 %v4927_v29, %v4926_v14  ;;  %v5041_v4 = vsel %vm9914_vm9, %v4986_v22, 0.0  ;;  %vm9915_vm12 = vcmask 24576   ;;  %v4875_v5 = vsel %vm9086_vm14, %v6547_v61, 0.0  ;;  %vm9916_vm5 = vmmov %vm9902_vm1  ;;  %v6286_v29 = vpop.f32.mrb[26].mxu1 }
 0x240   : > { %5151 = vst.msk [vmem:[%s7377_s14 + $0xb3] sm:$0x1] %vm9915_vm12, %v5150_v45  ;;  %vm4599_vm2 = vcmp.ne.s32.totalorder %v9203_v13, 0  ;;  %vm4635_vm3 = vcmp.lt.s32.totalorder %v9203_v13, 0  ;;  %vm9917_vm15 = vmmov %vm9915_vm12  ;;  %v5042_v53 = vadd.f32 %v5041_v4, %v5040_v34  ;;  %v4989_v40 = vmul.f32 %v4875_v5, %v4875_v5  ;;  %v2330_v34 = vpop.f32.mrb[27].mxu1 }
 0x241   : > { %5103 = vst.msk [vmem:[%s7377_s14 + $0xcb] sm:$0xff] %vm9916_vm5, %v6547_v61  ;;  %vm9918_vm0 = vmmov %vm9902_vm1  ;;  %v4874_v43 = vsel %vm9110_vm13, %v6548_v33, 0.0  ;;  %vm9257_vm14 = vcmp.lt.s32.totalorder %v4737_v55, 16  ;;  %v4930_v60 = vadd.f32 %v4929_v41, %v4928_v0  ;;  %v6549_v6 = vadd.f32 %v9126_v24, %v6283_v25  ;;  %v9273_v55 = vpop.f32.mrb[30].mxu0  ;;  %v6289_v0 = vpop.f32.mrb[28].mxu1 }
 0x242   : > { %5149 = vst.msk [vmem:[%s7377_s14 + $0xa2] sm:$0x1] %vm9917_vm15, %v5148_v49  ;;  %v5043_v19 = vsel %vm9918_vm0, %v4987_v23, 0.0  ;;  %vm9919_vm1 = vmmov %vm9918_vm0  ;;  %v4931_v32 = vsel %vm9918_vm0, %v4874_v43, 0.0  ;;  %v4988_v28 = vmul.f32 %v4874_v43, %v4874_v43  ;;  %vm9268_vm13 = vcmp.lt.s32.totalorder %v4736_v9, 16  ;;  %v9286_v9 = vpop.f32.mrb[31].mxu0 }
 0x243   : > { %5102 = vst.msk [vmem:[%s7377_s14 + $0xc3] sm:$0xff] %vm9919_vm1, %v6548_v33  ;;  %v5044_v30 = vadd.f32 %v5043_v19, %v5042_v53  ;;  %v6550_v8 = vadd.f32 %v9149_v3, %v2320_v7  ;;  %v9276_v15 = vadd.s32 18, %v9203_v13  ;;  %vm4598_vm4 = vcmp.ne.s32.totalorder %v9230_v21, 0  ;;  %vm9924_vm15 = vmmov %vm9918_vm0  ;;  %v9317_v45 = vpop.f32.mrb[32].mxu0 }
 0x244   : > { %v5152_v24 = vld [vmem:[%s7377_s14 + $0xb6] sm:$0x1]  ;;  %v4933_v63 = vsel %vm9924_vm15, %v4875_v5, 0.0  ;;  %v4932_v23 = vadd.f32 %v4931_v32, %v4930_v60  ;;  %vm9925_vm7 = vmmov %vm9918_vm0  ;;  %v4877_v26 = vsel %vm9163_vm10, %v6549_v6, 0.0  ;;  %vm9300_vm10 = vcmp.lt.s32.totalorder %v4739_v35, 16 }
 0x245   : > { %v5045_v42 = vsel %vm9925_vm7, %v4988_v28, 0.0  ;;  %vm9926_vm9 = vmmov %vm9918_vm0  ;;  %5153 = vst.msk [vmem:[%s7377_s14 + $0xb4] sm:$0x1] %vm9915_vm12, %v5152_v24  ;;  %v4991_v10 = vmul.f32 %v4877_v26, %v4877_v26  ;;  %v4876_v14 = vsel %vm9171_vm6, %v6550_v8, 0.0  ;;  %v6551_v20 = vadd.f32 %v9181_v54, %v6286_v29 }
 0x246   : > { %5105 = vst.msk [vmem:[%s7377_s14 + $0xdb] sm:$0xff] %vm9926_vm9, %v6549_v6  ;;  %vm9927_vm5 = vmmov %vm9918_vm0  ;;  %v5046_v36 = vadd.f32 %v5045_v42, %v5044_v30  ;;  %v4934_v22 = vadd.f32 %v4933_v63, %v4932_v23  ;;  %v4935_v61 = vsel %vm9918_vm0, %v4876_v14, 0.0  ;;  %v4990_v39 = vmul.f32 %v4876_v14, %v4876_v14 }
 0x247   : > { %v5047_v3 = vsel %vm9927_vm5, %v4989_v40, 0.0  ;;  %vm9928_vm1 = vmmov %vm9918_vm0  ;;  %v6552_v35 = vadd.f32 %v9192_v37, %v2330_v34  ;;  %vm4634_vm15 = vcmp.lt.s32.totalorder %v9230_v21, 0  ;;  %vm9935_vm8 = vnez %v9910_v56  ;;  %v4076_v56 = vpop.f32.mrb[33].mxu0  ;;  %v2340_v40 = vpop.f32.mrb[29].mxu1 }
 0x248   : > { %5104 = vst.msk [vmem:[%s7377_s14 + $0xd3] sm:$0xff] %vm9928_vm1, %v6550_v8  ;;  %vm9933_vm6 = vmmov %vm9918_vm0  ;;  %v5048_v58 = vadd.f32 %v5047_v3, %v5046_v36  ;;  %v4936_v27 = vadd.f32 %v4935_v61, %v4934_v22  ;;  %v4879_v52 = vsel %vm9935_vm8, %v6551_v20, 0.0  ;;  %vm9341_vm8 = vcmp.lt.s32.totalorder %v4741_v46, 16  ;;  %v9358_v43 = vpop.f32.mrb[34].mxu0  ;;  %v6292_v7 = vpop.f32.mrb[30].mxu1 }
 0x249   : > { %v4937_v59 = vsel %vm9933_vm6, %v4877_v26, 0.0  ;;  %vm9934_vm7 = vmmov %vm9918_vm0  ;;  %v4993_v37 = vmul.f32 %v4879_v52, %v4879_v52  ;;  %v6553_v53 = vadd.f32 %v9223_v62, %v6289_v0  ;;  %v6554_v46 = vadd.f32 %v9241_v18, %v2340_v40  ;;  %v4086_v30 = vpop.f32.mrb[35].mxu0  ;;  %v2350_v42 = vpop.f32.mrb[31].mxu1 }
 0x24a   : > { %v5154_v54 = vld [vmem:[%s7377_s14 + $0xc3] sm:$0x1]  ;;  %v5156_v33 = vld [vmem:[%s7377_s14 + $0xc8] sm:$0x1]  ;;  %v5049_v49 = vsel %vm9934_vm7, %v4990_v39, 0.0  ;;  %vm9936_vm9 = vmmov %vm9918_vm0  ;;  %v4938_v5 = vadd.f32 %v4937_v59, %v4936_v27  ;;  %v4706_v2 = vadd.s32 18, %v9230_v21  ;;  %v6555_v23 = vadd.f32 %v9273_v55, %v6292_v7 }
 0x24b   : > { %5107 = vst.msk [vmem:[%s7377_s14 + $0xeb] sm:$0xff] %vm9936_vm9, %v6551_v20  ;;  %vm9937_vm5 = vmmov %vm9915_vm12  ;;  %v5050_v57 = vadd.f32 %v5049_v49, %v5048_v58  ;;  %v4881_v18 = vsel %vm9257_vm14, %v6553_v53, 0.0  ;;  %v4880_v6 = vsel %vm9268_vm13, %v6554_v46, 0.0  ;;  %v6556_v50 = vadd.f32 %v9286_v9, %v2350_v42  ;;  %v6295_v39 = vpop.f32.mrb[32].mxu1 }
 0x24c   : > { %5155 = vst.msk [vmem:[%s7377_s14 + $0xc5] sm:$0x1] %vm9915_vm12, %v5154_v54  ;;  %vm9938_vm1 = vmmov %vm9918_vm0  ;;  %vm9939_vm0 = vnez %v9913_v48  ;;  %v4995_v11 = vmul.f32 %v4881_v18, %v4881_v18  ;;  %v4994_v63 = vmul.f32 %v4880_v6, %v4880_v6  ;;  %v4883_v9 = vsel %vm9300_vm10, %v6555_v23, 0.0  ;;  %v2360_v58 = vpop.f32.mrb[33].mxu1 }
 0x24d   : > { %5157 = vst.msk [vmem:[%s7377_s14 + $0xc6] sm:$0x1] %vm9937_vm5, %v5156_v33  ;;  %v5051_v12 = vsel %vm9938_vm1, %v4991_v10, 0.0  ;;  %v4878_v41 = vsel %vm9939_vm0, %v6552_v35, 0.0  ;;  %vm9940_vm6 = vmmov %vm9938_vm1  ;;  %vm9352_vm5 = vcmp.lt.s32.totalorder %v4740_v31, 16  ;;  %v4941_v16 = vsel %vm9938_vm1, %v4879_v52, 0.0 }
 0x24e   : > { %5106 = vst.msk [vmem:[%s7377_s14 + $0xe3] sm:$0xff] %vm9940_vm6, %v6552_v35  ;;  %vm9944_vm9 = vmmov %vm9938_vm1  ;;  %v4992_v48 = vmul.f32 %v4878_v41, %v4878_v41  ;;  %v5052_v17 = vadd.f32 %v5051_v12, %v5050_v57  ;;  %v5057_v22 = vsel %vm9938_vm1, %v4994_v63, 0.0  ;;  %v4882_v61 = vsel %vm9311_vm11, %v6556_v50, 0.0 }
 0x24f   : > { %v4939_v19 = vsel %vm9944_vm9, %v4878_v41, 0.0  ;;  %vm9364_vm0 = vmand %vm4635_vm3, %vm4599_vm2  ;;  %v5158_v1 = vld [vmem:[%s7377_s14 + $0xd5] sm:$0x1]  ;;  %v5160_v62 = vld [vmem:[%s7377_s14 + $0xda] sm:$0x1]  ;;  %vm9954_vm2 = vcmask 24576   ;;  %v4996_v34 = vmul.f32 %v4882_v61, %v4882_v61  ;;  %v6557_v59 = vadd.f32 %v9317_v45, %v6295_v39 }
 0x250   : > { %v4940_v31 = vadd.f32 %v4939_v19, %v4938_v5  ;;  %vm9950_vm6 = vmmov %vm9938_vm1  ;;  %5159 = vst.msk [vmem:[%s7377_s14 + $0xd7] sm:$0x1] %vm9954_vm2, %v5158_v1  ;;  %v4743_v36 = vsel %vm9364_vm0, %v9276_v15, %v9203_v13  ;;  %v4997_v15 = vmul.f32 %v4883_v9, %v4883_v9  ;;  %v6558_v33 = vadd.f32 %v4076_v56, %v2360_v58  ;;  %v6298_v5 = vpop.f32.mrb[34].mxu1 }
 0x251   : > { %v5053_v25 = vsel %vm9950_vm6, %v4992_v48, 0.0  ;;  %vm9951_vm7 = vmmov %vm9938_vm1  ;;  %vm9423_vm10 = vcmp.lt.s32.totalorder %v4743_v36, 16  ;;  %v4885_v57 = vsel %vm9341_vm8, %v6557_v59, 0.0  ;;  %v2370_v40 = vpop.f32.mrb[35].mxu1 }
 0x252   : > { %5109 = vst.msk [vmem:[%s7377_s14 + $0xfb] sm:$0xff] %vm9951_vm7, %v6553_v53  ;;  %vm9380_vm3 = vmand %vm4634_vm15, %vm4598_vm4  ;;  %v5054_v28 = vadd.f32 %v5053_v25, %v5052_v17  ;;  %v4942_v8 = vadd.f32 %v4941_v16, %v4940_v31  ;;  %v5164_v26 = vld [vmem:[%s7377_s14 + $0xec] sm:$0x1]  ;;  %v4999_v0 = vmul.f32 %v4885_v57, %v4885_v57  ;;  %v4884_v56 = vsel %vm9352_vm5, %v6558_v33, 0.0 }
 0x253   : > { %vm9955_vm9 = vmmov %vm9954_vm2  ;;  %v4742_v10 = vsel %vm9380_vm3, %v4706_v2, %v9230_v21  ;;  %v4998_v48 = vmul.f32 %v4884_v56, %v4884_v56  ;;  %v6559_v53 = vadd.f32 %v9358_v43, %v6298_v5  ;;  %v6560_v38 = vadd.f32 %v4086_v30, %v2370_v40 }
 0x254   : > { %5161 = vst.msk [vmem:[%s7377_s14 + $0xd8] sm:$0x1] %vm9955_vm9, %v5160_v62  ;;  %vm9956_vm12 = vmmov %vm9938_vm1  ;;  %vm9427_vm11 = vcmp.lt.s32.totalorder %v4742_v10, 16 }
 0x255   : > { %v5055_v32 = vsel %vm9956_vm12, %v4993_v37, 0.0  ;;  %vm9957_vm14 = vmmov %vm9938_vm1  ;;  %v5162_v14 = vld [vmem:[%s7377_s14 + $0xe7] sm:$0x1]  ;;  %v4887_v43 = vsel %vm9423_vm10, %v6559_v53, 0.0  ;;  %v4886_v25 = vsel %vm9427_vm11, %v6560_v38, 0.0 }
 0x256   : > { %5108 = vst.msk [vmem:[%s7377_s14 + $0xf3] sm:$0xff] %vm9957_vm14, %v6554_v46  ;;  %vm9958_vm4 = vmmov %vm9938_vm1  ;;  %v5056_v3 = vadd.f32 %v5055_v32, %v5054_v28  ;;  %v5000_v28 = vmul.f32 %v4886_v25, %v4886_v25 }
 0x257   : > { %v4943_v24 = vsel %vm9958_vm4, %v4880_v6, 0.0  ;;  %vm9959_vm13 = vmmov %vm9954_vm2 }
 0x258   : > { %5165 = vst.msk [vmem:[%s7377_s14 + $0xea] sm:$0x1] %vm9959_vm13, %v5164_v26  ;;  %vm9960_vm15 = vmmov %vm9938_vm1  ;;  %v4944_v29 = vadd.f32 %v4943_v24, %v4942_v8  ;;  %v5058_v21 = vadd.f32 %v5057_v22, %v5056_v3 }
 0x259   : > { %v4945_v55 = vsel %vm9960_vm15, %v4881_v18, 0.0  ;;  %vm9961_vm6 = vmmov %vm9938_vm1  ;;  %v5168_v35 = vld [vmem:[%s7377_s14 + $0xfe] sm:$0x1]  ;;  %v5001_v18 = vmul.f32 %v4887_v43, %v4887_v43 }
 0x25a   : > { %5111 = vst.msk [vmem:[%s7377_s14 + $0x10b] sm:$0xff] %vm9961_vm6, %v6555_v23  ;;  %vm9962_vm7 = vmmov %vm9954_vm2  ;;  %v4946_v20 = vadd.f32 %v4945_v55, %v4944_v29 }
 0x25b   : > { %5163 = vst.msk [vmem:[%s7377_s14 + $0xe9] sm:$0x1] %vm9962_vm7, %v5162_v14  ;;  %vm9963_vm0 = vmmov %vm9938_vm1 }
 0x25c   : > { %v5059_v13 = vsel %vm9963_vm0, %v4995_v11, 0.0  ;;  %vm9964_vm3 = vmmov %vm9963_vm0  ;;  %5115 = vst.msk [vmem:[%s7377_s14 + $0x12b] sm:$0xff] %vm9963_vm0, %v6559_v53 }
 0x25d   : > { %5110 = vst.msk [vmem:[%s7377_s14 + $0x103] sm:$0xff] %vm9964_vm3, %v6556_v50  ;;  %vm9965_vm2 = vmmov %vm9963_vm0  ;;  %v5060_v54 = vadd.f32 %v5059_v13, %v5058_v21  ;;  %v5166_v49 = vld [vmem:[%s7377_s14 + $0xf9] sm:$0x1] }
 0x25e   : > { %v4947_v44 = vsel %vm9965_vm2, %v4882_v61, 0.0  ;;  %vm9970_vm9 = vmmov %vm9962_vm7 }
 0x25f   : > { %5169 = vst.msk [vmem:[%s7377_s14 + $0xfc] sm:$0x1] %vm9970_vm9, %v5168_v35  ;;  %vm9971_vm12 = vmmov %vm9963_vm0  ;;  %v4948_v12 = vadd.f32 %v4947_v44, %v4946_v20 }
 0x260   : > { %v4949_v52 = vsel %vm9971_vm12, %v4883_v9, 0.0  ;;  %vm9972_vm14 = vmmov %vm9963_vm0 }
 0x261   : > { %v5061_v45 = vsel %vm9972_vm14, %v4996_v34, 0.0  ;;  %vm9973_vm4 = vmmov %vm9963_vm0  ;;  %v4950_v4 = vadd.f32 %v4949_v52, %v4948_v12  ;;  %v5170_v16 = vld [vmem:[%s7377_s14 + $0x10b] sm:$0x1]  ;;  %v5172_v17 = vld [vmem:[%s7377_s14 + $0x110] sm:$0x1] }
 0x262   : > { %5113 = vst.msk [vmem:[%s7377_s14 + $0x11b] sm:$0xff] %vm9973_vm4, %v6557_v59  ;;  %vm9974_vm13 = vmmov %vm9962_vm7  ;;  %v5062_v41 = vadd.f32 %v5061_v45, %v5060_v54 }
 0x263   : > { %5167 = vst.msk [vmem:[%s7377_s14 + $0xfb] sm:$0x1] %vm9974_vm13, %v5166_v49  ;;  %vm9975_vm15 = vmmov %vm9963_vm0  ;;  %v5178_v3 = vld [vmem:[%s7377_s14 + $0x12f] sm:$0x1] }
 0x264   : > { %v5063_v37 = vsel %vm9975_vm15, %v4997_v15, 0.0  ;;  %vm9976_vm1 = vmmov %vm9963_vm0 }
 0x265   : > { %5112 = vst.msk [vmem:[%s7377_s14 + $0x113] sm:$0xff] %vm9976_vm1, %v6558_v33  ;;  %vm9977_vm6 = vmmov %vm9963_vm0  ;;  %v5064_v46 = vadd.f32 %v5063_v37, %v5062_v41 }
 0x266   : > { %v4951_v19 = vsel %vm9977_vm6, %v4884_v56, 0.0  ;;  %vm9978_vm8 = vmmov %vm9962_vm7 }
 0x267   : > { %5171 = vst.msk [vmem:[%s7377_s14 + $0x10d] sm:$0x1] %vm9978_vm8, %v5170_v16  ;;  %vm9979_vm5 = vmmov %vm9962_vm7  ;;  %v4952_v51 = vadd.f32 %v4951_v19, %v4950_v4  ;;  %vm9993_vm8 = vcmask 25600  }
 0x268   : > { %5173 = vst.msk [vmem:[%s7377_s14 + $0x10e] sm:$0x1] %vm9979_vm5, %v5172_v17  ;;  %vm9980_vm7 = vmmov %vm9963_vm0 }
 0x269   : > { %v5065_v2 = vsel %vm9980_vm7, %v4998_v48, 0.0  ;;  %vm9981_vm3 = vmmov %vm9963_vm0  ;;  %v5174_v11 = vld [vmem:[%s7377_s14 + $0x11d] sm:$0x1]  ;;  %v5176_v6 = vld [vmem:[%s7377_s14 + $0x122] sm:$0x1] }
 0x26a   : > { %v4953_v1 = vsel %vm9981_vm3, %v4885_v57, 0.0  ;;  %vm9982_vm2 = vmmov %vm9963_vm0  ;;  %v5066_v31 = vadd.f32 %v5065_v2, %v5064_v46 }
 0x26b   : > { %v5067_v62 = vsel %vm9982_vm2, %v4999_v0, 0.0  ;;  %vm9983_vm9 = vmmov %vm9963_vm0  ;;  %v4954_v60 = vadd.f32 %v4953_v1, %v4952_v51 }
 0x26c   : > { %5114 = vst.msk [vmem:[%s7377_s14 + $0x123] sm:$0xff] %vm9983_vm9, %v6560_v38  ;;  %vm9984_vm12 = vmmov %vm9963_vm0  ;;  %v5068_v7 = vadd.f32 %v5067_v62, %v5066_v31  ;;  %v5187_v30 = vld [vmem:[%s7377_s14 + $0x116] sm:$0xff] }
 0x26d   : > { %v4955_v32 = vsel %vm9984_vm12, %v4886_v25, 0.0  ;;  %vm9985_vm10 = vmmov %vm9979_vm5 }
 0x26e   : > { %5175 = vst.msk [vmem:[%s7377_s14 + $0x11f] sm:$0x1] %vm9985_vm10, %v5174_v11  ;;  %vm9986_vm14 = vmmov %vm9979_vm5  ;;  %v4956_v8 = vadd.f32 %v4955_v32, %v4954_v60 }
 0x26f   : > { %5177 = vst.msk [vmem:[%s7377_s14 + $0x120] sm:$0x1] %vm9986_vm14, %v5176_v6  ;;  %vm9987_vm11 = vmmov %vm9963_vm0  ;;  %v5186_v50 = vld [vmem:[%s7377_s14 + $0x10e] sm:$0xff] }
 0x270   : > { %v5069_v24 = vsel %vm9987_vm11, %v5000_v28, 0.0  ;;  %vm9988_vm4 = vmmov %vm9963_vm0 }
 0x271   : > { %5190 = vst.msk [vmem:[%s7377_s14 + $0x13a] sm:$0xff] %vm9988_vm4, %v5187_v30  ;;  %vm9989_vm13 = vmmov %vm9963_vm0  ;;  %v5070_v23 = vadd.f32 %v5069_v24, %v5068_v7 }
 0x272   : > { %v4957_v63 = vsel %vm9989_vm13, %v4887_v43, 0.0  ;;  %vm9990_vm15 = vmmov %vm9963_vm0 }
 0x273   : > { %v5071_v42 = vsel %vm9990_vm15, %v5001_v18, 0.0  ;;  %v4958_v26 = vadd.f32 %v4957_v63, %v4956_v8  ;;  %vm9991_vm1 = vmmov %vm9979_vm5 }
 0x274   : > { %v5072_v36 = vadd.f32 %v5071_v42, %v5070_v23  ;;  %5179 = vst.msk [vmem:[%s7377_s14 + $0x131] sm:$0x1] %vm9991_vm1, %v5178_v3  ;;  %vm9992_vm6 = vmmov %vm9963_vm0 }
 0x275   : > { %5189 = vst.msk [vmem:[%s7377_s14 + $0x132] sm:$0xff] %vm9992_vm6, %v5186_v50  ;;  %v4959_v10 = vrot.slane %v4958_v26, 4  ;;  %v5188_v29 = vld [vmem:[%s7377_s14 + $0x11e] sm:$0x3]  ;;  %vm9994_vm5 = vmmov %vm9991_vm1 }
 0x276   : > { %v5073_v14 = vrot.slane %v5072_v36, 4  ;;  %5191 = vst.msk [vmem:[%s7377_s14 + $0x142] sm:$0x3] %vm9993_vm8, %v5188_v29  ;;  %vm9995_vm7 = vmmov %vm9991_vm1 }
 0x277   : > { %v4960_v55 = vadd.f32 %v4959_v10, %v4958_v26 }
 0x278   : > { %v5074_v22 = vadd.f32 %v5073_v14, %v5072_v36 }
 0x279   : > { %v4961_v9 = vrot.slane %v4960_v55, 2 }
 0x27a   : > { %v5075_v13 = vrot.slane %v5074_v22, 2 }
 0x27b   : > { %v4962_v21 = vadd.f32 %v4961_v9, %v4960_v55 }
 0x27c   : > { %v5076_v15 = vadd.f32 %v5075_v13, %v5074_v22 }
 0x27d   : > { %v4963_v61 = vrot.slane %v4962_v21, 1 }
 0x27e   : > { %v5077_v39 = vrot.slane %v5076_v15, 1 }
 0x27f   : > { %v4964_v20 = vadd.f32 %v4963_v61, %v4962_v21 }
 0x280   : > { %v5078_v44 = vadd.f32 %v5077_v39, %v5076_v15 }
 0x281   : > { %5193 = vst.msk [vmem:[%s181_s20] sm:$0x1] %vm9994_vm5, %v4964_v20 }
 0x282   : > { %5194 = vst.msk [vmem:[%s181_s20 + $0x1] sm:$0x1] %vm9995_vm7, %v5078_v44 }
 0x283 PF: > { %s14_s12 = sadd.s32 1, %s6902_s12  }
 0x284   : > { %p11_p4 = scmp.ge.s32.totalorder %s14_s12, 4  }
 0x286   :  { %13 = sbr.rel (!%p11_p4) target bundleno = 1 (0x1), region = 85 }

</bundles_post_ra>
